<compile_context>
chip_gen: v6e
topology: v6e:2x2x1
jax: 0.10.0
libtpu: 0.0.40
codegen_flags: <defaults>
</compile_context>

<pallas_src>
import functools

import jax
import jax.numpy as jnp
from jax import lax
from jax.experimental import pallas as pl
from jax.experimental.pallas import tpu as pltpu


def basic_block_kernel(x_ref, w1_ref, w2_ref, s1_ref, b1_ref, s2_ref, b2_ref,
                       out_ref, pad_scr, *, fold_taps):
    # x_ref    : (1, H, W, C)      unpadded input block (NHWC, C on lanes)
    # w1/w2    : (9*C, C) bf16     tap-folded conv weights, row = (dh*3+dw)*C + c
    # s*/b*    : (1, C) f32        fused BN scale / shift
    # out_ref  : (1, H, W, C)
    # pad_scr  : (H+2, W+2, C) f32 shared zero-padded scratch (conv1 and conv2)
    H = out_ref.shape[1]
    W = out_ref.shape[2]
    C = x_ref.shape[3]

    def conv3x3(w_ref):
        # 3x3 / stride 1 / pad 1 conv over pad_scr; returns (H*W, C) f32.
        pieces = [pad_scr[dh:dh + H, dw:dw + W, :].reshape(H * W, C)
                  for dh in range(3) for dw in range(3)]
        if fold_taps:
            # im2col in registers: one MXU matmul with K = 9*C (bf16 in, f32 acc).
            col = jnp.concatenate(pieces, axis=-1).astype(jnp.bfloat16)
            return jnp.dot(col, w_ref[...], preferred_element_type=jnp.float32)
        # Fallback: per-tap matmuls (K = C), accumulator seeded by tap 0.
        wt = w_ref[...].astype(jnp.float32).reshape(9, C, C)
        acc = jnp.dot(pieces[0], wt[0], preferred_element_type=jnp.float32)
        for t in range(1, 9):
            acc += jnp.dot(pieces[t], wt[t], preferred_element_type=jnp.float32)
        return acc

    # ---- zero only the four border strips (interior fully overwritten). ----
    # Done every grid step (NOT guarded by program_id==0: under megacore
    # "parallel" sharding each core owns its own scratch).
    zrow = jnp.zeros((1, W + 2, C), jnp.float32)
    zcol = jnp.zeros((H + 2, 1, C), jnp.float32)
    pad_scr[0:1, :, :] = zrow
    pad_scr[H + 1:H + 2, :, :] = zrow
    pad_scr[:, 0:1, :] = zcol
    pad_scr[:, W + 1:W + 2, :] = zcol

    # ---- in-kernel zero padding of the input ----
    x = x_ref[0]                              # (H, W, C) f32, single HBM read
    pad_scr[1:H + 1, 1:W + 1, :] = x

    # ---- conv1 -> bn1 -> relu ----
    acc1 = conv3x3(w1_ref)
    y1 = jnp.maximum(acc1 * s1_ref[...] + b1_ref[...], 0.0)

    # ---- reuse pad_scr (borders already zero this step) for conv2 input ----
    pad_scr[1:H + 1, 1:W + 1, :] = y1.reshape(H, W, C)

    # ---- conv2 -> bn2 -> + identity residual -> relu ----
    acc2 = conv3x3(w2_ref)
    y2 = acc2 * s2_ref[...] + b2_ref[...] + x.reshape(H * W, C)
    out_ref[0] = jnp.maximum(y2, 0.0).reshape(H, W, C)


def basic_block_pallas(x_nchw, w1, w2, s1, b1, s2, b2, *, fold_taps=True):
    """x_nchw: (N, C, H, W) f32. w1/w2: (3,3,C,C) HWIO. Returns (N, C, H, W)."""
    N, C, H, W = x_nchw.shape
    Cout = w1.shape[-1]
    assert w1.shape == (3, 3, C, Cout) and w2.shape == (3, 3, Cout, Cout)
    assert C == Cout, "identity residual requires inplanes == planes"

    # Boundary layout glue only: PyTorch module is NCHW, kernel runs NHWC.
    # TODO(synk): inside a full network keep NHWC end-to-end so these
    #             transposes disappear entirely.
    x_nhwc = jnp.transpose(x_nchw, (0, 2, 3, 1)).astype(jnp.float32)

    # Fold taps into the contraction dim: (3,3,C,Cout) -> (9*C, Cout),
    # row index = (dh*3 + dw)*C + c. Weights fed to the MXU in bf16.
    w1f = w1.reshape(9 * C, Cout).astype(jnp.bfloat16)
    w2f = w2.reshape(9 * Cout, Cout).astype(jnp.bfloat16)
    s1_2d = s1.reshape(1, Cout).astype(jnp.float32)
    b1_2d = b1.reshape(1, Cout).astype(jnp.float32)
    s2_2d = s2.reshape(1, Cout).astype(jnp.float32)
    b2_2d = b2.reshape(1, Cout).astype(jnp.float32)

    kernel = functools.partial(basic_block_kernel, fold_taps=fold_taps)

    out_nhwc = pl.pallas_call(
        kernel,
        out_shape=jax.ShapeDtypeStruct((N, H, W, Cout), jnp.float32),
        grid_spec=pltpu.PrefetchScalarGridSpec(
            num_scalar_prefetch=0,
            grid=(N,),
            in_specs=[
                pl.BlockSpec((1, H, W, C), lambda b: (b, 0, 0, 0)),
                pl.BlockSpec((9 * C, Cout), lambda b: (0, 0)),
                pl.BlockSpec((9 * Cout, Cout), lambda b: (0, 0)),
                pl.BlockSpec((1, Cout), lambda b: (0, 0)),
                pl.BlockSpec((1, Cout), lambda b: (0, 0)),
                pl.BlockSpec((1, Cout), lambda b: (0, 0)),
                pl.BlockSpec((1, Cout), lambda b: (0, 0)),
            ],
            out_specs=pl.BlockSpec((1, H, W, Cout), lambda b: (b, 0, 0, 0)),
            scratch_shapes=[pltpu.VMEM((H + 2, W + 2, C), jnp.float32)],
        ),
        compiler_params=pltpu.CompilerParams(
            dimension_semantics=("parallel",)),
    )(x_nhwc, w1f, w2f, s1_2d, b1_2d, s2_2d, b2_2d)

    return jnp.transpose(out_nhwc, (0, 3, 1, 2))


def basic_block_ref(x_nchw, w1, w2, s1, b1, s2, b2):
    """Pure-JAX f32 reference (NHWC convs), for correctness checking."""
    x = jnp.transpose(x_nchw, (0, 2, 3, 1))
    dn = ("NHWC", "HWIO", "NHWC")
    y = lax.conv_general_dilated(x, w1, (1, 1), "SAME", dimension_numbers=dn)
    y = jnp.maximum(y * s1 + b1, 0.0)
    y = lax.conv_general_dilated(y, w2, (1, 1), "SAME", dimension_numbers=dn)
    y = jnp.maximum(y * s2 + b2 + x, 0.0)
    return jnp.transpose(y, (0, 3, 1, 2))


if __name__ == "__main__":
    # Small shapes consistent with BasicBlock(inplanes=4, planes=4, stride=1).
    N, C, H, W = 2, 4, 16, 16
    key = jax.random.PRNGKey(0)
    kx, kw1, kw2, kg1, kb1, kg2, kb2, km1, kv1, km2, kv2 = jax.random.split(key, 11)

    x = jax.random.normal(kx, (N, C, H, W), jnp.float32)

    # conv weights, HWIO layout (kernel_h, kernel_w, in, out)
    w1 = jax.random.normal(kw1, (3, 3, C, C), jnp.float32) * 0.1
    w2 = jax.random.normal(kw2, (3, 3, C, C), jnp.float32) * 0.1

    # BatchNorm (inference) params -> fused scale/shift
    eps = 1e-5
    g1 = 1.0 + 0.1 * jax.random.normal(kg1, (C,), jnp.float32)
    be1 = 0.1 * jax.random.normal(kb1, (C,), jnp.float32)
    m1 = 0.1 * jax.random.normal(km1, (C,), jnp.float32)
    v1 = 1.0 + 0.1 * jax.random.uniform(kv1, (C,), jnp.float32)
    g2 = 1.0 + 0.1 * jax.random.normal(kg2, (C,), jnp.float32)
    be2 = 0.1 * jax.random.normal(kb2, (C,), jnp.float32)
    m2 = 0.1 * jax.random.normal(km2, (C,), jnp.float32)
    v2 = 1.0 + 0.1 * jax.random.uniform(kv2, (C,), jnp.float32)

    s1 = g1 / jnp.sqrt(v1 + eps)
    b1 = be1 - m1 * s1
    s2 = g2 / jnp.sqrt(v2 + eps)
    b2 = be2 - m2 * s2

    try:
        out = jax.block_until_ready(
            basic_block_pallas(x, w1, w2, s1, b1, s2, b2, fold_taps=True))
    except Exception:
        # This Mosaic build rejected the unaligned minor-dim concatenate used
        # by the im2col tap fold -> use the per-tap matmul path instead.
        out = jax.block_until_ready(
            basic_block_pallas(x, w1, w2, s1, b1, s2, b2, fold_taps=False))

    ref = basic_block_ref(x, w1, w2, s1, b1, s2, b2)
    assert out.shape == (N, C, H, W)
    # Tolerance covers bf16 MXU inputs (f32 accumulation) vs the pure-f32 ref.
    assert jnp.allclose(out, ref, atol=5e-2, rtol=5e-2), "mismatch vs reference"

    print("KERNEL_OK")
</pallas_src>

<mosaic_0001>
module attributes {stable_mosaic.version = 11 : i64} {
  func.func @basic_block_kernel(%arg0: i32, %arg1: memref<1x16x16x4xf32, #tpu.memory_space<vmem>>, %arg2: memref<36x4xbf16, #tpu.memory_space<vmem>>, %arg3: memref<36x4xbf16, #tpu.memory_space<vmem>>, %arg4: memref<1x4xf32, #tpu.memory_space<vmem>>, %arg5: memref<1x4xf32, #tpu.memory_space<vmem>>, %arg6: memref<1x4xf32, #tpu.memory_space<vmem>>, %arg7: memref<1x4xf32, #tpu.memory_space<vmem>>, %arg8: memref<1x16x16x4xf32, #tpu.memory_space<vmem>>, %arg9: memref<18x18x4xf32, #tpu.memory_space<vmem>>) attributes {dimension_semantics = [#tpu.dimension_semantics<parallel>], iteration_bounds = array<i64: 2>, scalar_prefetch = 0 : i64, scratch_operands = 1 : i64, tpu.core_type = #tpu.core_type<tc>, window_params = [{transform_indices = @transform_0, window_bounds = array<i64: 1, 16, 16, 4>}, {pipeline_mode = #tpu.pipeline_mode<synchronous>, transform_indices = @transform_1, window_bounds = array<i64: 36, 4>}, {pipeline_mode = #tpu.pipeline_mode<synchronous>, transform_indices = @transform_2, window_bounds = array<i64: 36, 4>}, {pipeline_mode = #tpu.pipeline_mode<synchronous>, transform_indices = @transform_3, window_bounds = array<i64: 1, 4>}, {pipeline_mode = #tpu.pipeline_mode<synchronous>, transform_indices = @transform_4, window_bounds = array<i64: 1, 4>}, {pipeline_mode = #tpu.pipeline_mode<synchronous>, transform_indices = @transform_5, window_bounds = array<i64: 1, 4>}, {pipeline_mode = #tpu.pipeline_mode<synchronous>, transform_indices = @transform_6, window_bounds = array<i64: 1, 4>}, {transform_indices = @transform_7, window_bounds = array<i64: 1, 16, 16, 4>}]} {
    %cst = arith.constant 0.000000e+00 : f32
    %0 = vector.broadcast %cst : f32 to vector<1x18x4xf32>
    %cst_0 = arith.constant 0.000000e+00 : f32
    %1 = vector.broadcast %cst_0 : f32 to vector<18x1x4xf32>
    %c0 = arith.constant 0 : index
    %c0_1 = arith.constant 0 : index
    %c0_2 = arith.constant 0 : index
    %2 = vector.load %arg9[%c0, %c0_1, %c0_2] : memref<18x18x4xf32, #tpu.memory_space<vmem>>, vector<1x18x4xf32>
    tpu.vector_store %arg9[%c0, %c0_1, %c0_2], %0 {strides = array<i32>} : memref<18x18x4xf32, #tpu.memory_space<vmem>>, vector<1x18x4xf32>,
    %c17 = arith.constant 17 : index
    %c0_3 = arith.constant 0 : index
    %c0_4 = arith.constant 0 : index
    %3 = vector.load %arg9[%c17, %c0_3, %c0_4] : memref<18x18x4xf32, #tpu.memory_space<vmem>>, vector<1x18x4xf32>
    tpu.vector_store %arg9[%c17, %c0_3, %c0_4], %0 {strides = array<i32>} : memref<18x18x4xf32, #tpu.memory_space<vmem>>, vector<1x18x4xf32>,
    %c0_5 = arith.constant 0 : index
    %c0_6 = arith.constant 0 : index
    %c0_7 = arith.constant 0 : index
    %4 = vector.load %arg9[%c0_5, %c0_6, %c0_7] : memref<18x18x4xf32, #tpu.memory_space<vmem>>, vector<18x1x4xf32>
    tpu.vector_store %arg9[%c0_5, %c0_6, %c0_7], %1 {strides = array<i32>} : memref<18x18x4xf32, #tpu.memory_space<vmem>>, vector<18x1x4xf32>,
    %c0_8 = arith.constant 0 : index
    %c17_9 = arith.constant 17 : index
    %c0_10 = arith.constant 0 : index
    %5 = vector.load %arg9[%c0_8, %c17_9, %c0_10] : memref<18x18x4xf32, #tpu.memory_space<vmem>>, vector<18x1x4xf32>
    tpu.vector_store %arg9[%c0_8, %c17_9, %c0_10], %1 {strides = array<i32>} : memref<18x18x4xf32, #tpu.memory_space<vmem>>, vector<18x1x4xf32>,
    %c0_11 = arith.constant 0 : index
    %c0_12 = arith.constant 0 : index
    %c0_13 = arith.constant 0 : index
    %c0_14 = arith.constant 0 : index
    %6 = vector.load %arg1[%c0_11, %c0_12, %c0_13, %c0_14] : memref<1x16x16x4xf32, #tpu.memory_space<vmem>>, vector<1x16x16x4xf32>
    %7 = vector.shape_cast %6 : vector<1x16x16x4xf32> to vector<16x16x4xf32>
    %c1 = arith.constant 1 : index
    %c1_15 = arith.constant 1 : index
    %c0_16 = arith.constant 0 : index
    %8 = vector.load %arg9[%c1, %c1_15, %c0_16] : memref<18x18x4xf32, #tpu.memory_space<vmem>>, vector<16x16x4xf32>
    tpu.vector_store %arg9[%c1, %c1_15, %c0_16], %7 {strides = array<i32>} : memref<18x18x4xf32, #tpu.memory_space<vmem>>, vector<16x16x4xf32>,
    %c0_17 = arith.constant 0 : index
    %c0_18 = arith.constant 0 : index
    %c0_19 = arith.constant 0 : index
    %9 = vector.load %arg9[%c0_17, %c0_18, %c0_19] : memref<18x18x4xf32, #tpu.memory_space<vmem>>, vector<16x16x4xf32>
    %10 = vector.shape_cast %9 : vector<16x16x4xf32> to vector<256x4xf32>
    %c0_20 = arith.constant 0 : index
    %c1_21 = arith.constant 1 : index
    %c0_22 = arith.constant 0 : index
    %11 = vector.load %arg9[%c0_20, %c1_21, %c0_22] : memref<18x18x4xf32, #tpu.memory_space<vmem>>, vector<16x16x4xf32>
    %12 = vector.shape_cast %11 : vector<16x16x4xf32> to vector<256x4xf32>
    %c0_23 = arith.constant 0 : index
    %c2 = arith.constant 2 : index
    %c0_24 = arith.constant 0 : index
    %13 = vector.load %arg9[%c0_23, %c2, %c0_24] : memref<18x18x4xf32, #tpu.memory_space<vmem>>, vector<16x16x4xf32>
    %14 = vector.shape_cast %13 : vector<16x16x4xf32> to vector<256x4xf32>
    %c1_25 = arith.constant 1 : index
    %c0_26 = arith.constant 0 : index
    %c0_27 = arith.constant 0 : index
    %15 = vector.load %arg9[%c1_25, %c0_26, %c0_27] : memref<18x18x4xf32, #tpu.memory_space<vmem>>, vector<16x16x4xf32>
    %16 = vector.shape_cast %15 : vector<16x16x4xf32> to vector<256x4xf32>
    %c1_28 = arith.constant 1 : index
    %c1_29 = arith.constant 1 : index
    %c0_30 = arith.constant 0 : index
    %17 = vector.load %arg9[%c1_28, %c1_29, %c0_30] : memref<18x18x4xf32, #tpu.memory_space<vmem>>, vector<16x16x4xf32>
    %18 = vector.shape_cast %17 : vector<16x16x4xf32> to vector<256x4xf32>
    %c1_31 = arith.constant 1 : index
    %c2_32 = arith.constant 2 : index
    %c0_33 = arith.constant 0 : index
    %19 = vector.load %arg9[%c1_31, %c2_32, %c0_33] : memref<18x18x4xf32, #tpu.memory_space<vmem>>, vector<16x16x4xf32>
    %20 = vector.shape_cast %19 : vector<16x16x4xf32> to vector<256x4xf32>
    %c2_34 = arith.constant 2 : index
    %c0_35 = arith.constant 0 : index
    %c0_36 = arith.constant 0 : index
    %21 = vector.load %arg9[%c2_34, %c0_35, %c0_36] : memref<18x18x4xf32, #tpu.memory_space<vmem>>, vector<16x16x4xf32>
    %22 = vector.shape_cast %21 : vector<16x16x4xf32> to vector<256x4xf32>
    %c2_37 = arith.constant 2 : index
    %c1_38 = arith.constant 1 : index
    %c0_39 = arith.constant 0 : index
    %23 = vector.load %arg9[%c2_37, %c1_38, %c0_39] : memref<18x18x4xf32, #tpu.memory_space<vmem>>, vector<16x16x4xf32>
    %24 = vector.shape_cast %23 : vector<16x16x4xf32> to vector<256x4xf32>
    %c2_40 = arith.constant 2 : index
    %c2_41 = arith.constant 2 : index
    %c0_42 = arith.constant 0 : index
    %25 = vector.load %arg9[%c2_40, %c2_41, %c0_42] : memref<18x18x4xf32, #tpu.memory_space<vmem>>, vector<16x16x4xf32>
    %26 = vector.shape_cast %25 : vector<16x16x4xf32> to vector<256x4xf32>
    %27 = tpu.concatenate %10, %12, %14, %16, %18, %20, %22, %24, %26 in 1 : vector<256x4xf32>, vector<256x4xf32>, vector<256x4xf32>, vector<256x4xf32>, vector<256x4xf32>, vector<256x4xf32>, vector<256x4xf32>, vector<256x4xf32>, vector<256x4xf32> -> vector<256x36xf32>
    %28 = arith.truncf %27 : vector<256x36xf32> to vector<256x36xbf16>
    %c0_43 = arith.constant 0 : index
    %c0_44 = arith.constant 0 : index
    %29 = vector.load %arg2[%c0_43, %c0_44] : memref<36x4xbf16, #tpu.memory_space<vmem>>, vector<36x4xbf16>
    %cst_45 = arith.constant dense<0.000000e+00> : vector<256x4xf32>
    %30 = tpu.matmul %28, %29, %cst_45 {dimension_numbers = #tpu.dot_dimension_numbers<[1], [0], [0], [1], [0, 0, 1, 1], [], []>} : vector<256x36xbf16>, vector<36x4xbf16>, vector<256x4xf32> -> vector<256x4xf32>
    %c0_46 = arith.constant 0 : index
    %c0_47 = arith.constant 0 : index
    %31 = vector.load %arg4[%c0_46, %c0_47] : memref<1x4xf32, #tpu.memory_space<vmem>>, vector<1x4xf32>
    %32 = vector.broadcast %31 : vector<1x4xf32> to vector<256x4xf32>
    %33 = arith.mulf %30, %32 : vector<256x4xf32>
    %c0_48 = arith.constant 0 : index
    %c0_49 = arith.constant 0 : index
    %34 = vector.load %arg5[%c0_48, %c0_49] : memref<1x4xf32, #tpu.memory_space<vmem>>, vector<1x4xf32>
    %35 = vector.broadcast %34 : vector<1x4xf32> to vector<256x4xf32>
    %36 = arith.addf %33, %35 : vector<256x4xf32>
    %cst_50 = arith.constant 0.000000e+00 : f32
    %37 = vector.broadcast %cst_50 : f32 to vector<256x4xf32>
    %38 = arith.maximumf %36, %37 : vector<256x4xf32>
    %39 = vector.shape_cast %38 : vector<256x4xf32> to vector<16x16x4xf32>
    %c1_51 = arith.constant 1 : index
    %c1_52 = arith.constant 1 : index
    %c0_53 = arith.constant 0 : index
    %40 = vector.load %arg9[%c1_51, %c1_52, %c0_53] : memref<18x18x4xf32, #tpu.memory_space<vmem>>, vector<16x16x4xf32>
    tpu.vector_store %arg9[%c1_51, %c1_52, %c0_53], %39 {strides = array<i32>} : memref<18x18x4xf32, #tpu.memory_space<vmem>>, vector<16x16x4xf32>,
    %c0_54 = arith.constant 0 : index
    %c0_55 = arith.constant 0 : index
    %c0_56 = arith.constant 0 : index
    %41 = vector.load %arg9[%c0_54, %c0_55, %c0_56] : memref<18x18x4xf32, #tpu.memory_space<vmem>>, vector<16x16x4xf32>
    %42 = vector.shape_cast %41 : vector<16x16x4xf32> to vector<256x4xf32>
    %c0_57 = arith.constant 0 : index
    %c1_58 = arith.constant 1 : index
    %c0_59 = arith.constant 0 : index
    %43 = vector.load %arg9[%c0_57, %c1_58, %c0_59] : memref<18x18x4xf32, #tpu.memory_space<vmem>>, vector<16x16x4xf32>
    %44 = vector.shape_cast %43 : vector<16x16x4xf32> to vector<256x4xf32>
    %c0_60 = arith.constant 0 : index
    %c2_61 = arith.constant 2 : index
    %c0_62 = arith.constant 0 : index
    %45 = vector.load %arg9[%c0_60, %c2_61, %c0_62] : memref<18x18x4xf32, #tpu.memory_space<vmem>>, vector<16x16x4xf32>
    %46 = vector.shape_cast %45 : vector<16x16x4xf32> to vector<256x4xf32>
    %c1_63 = arith.constant 1 : index
    %c0_64 = arith.constant 0 : index
    %c0_65 = arith.constant 0 : index
    %47 = vector.load %arg9[%c1_63, %c0_64, %c0_65] : memref<18x18x4xf32, #tpu.memory_space<vmem>>, vector<16x16x4xf32>
    %48 = vector.shape_cast %47 : vector<16x16x4xf32> to vector<256x4xf32>
    %c1_66 = arith.constant 1 : index
    %c1_67 = arith.constant 1 : index
    %c0_68 = arith.constant 0 : index
    %49 = vector.load %arg9[%c1_66, %c1_67, %c0_68] : memref<18x18x4xf32, #tpu.memory_space<vmem>>, vector<16x16x4xf32>
    %50 = vector.shape_cast %49 : vector<16x16x4xf32> to vector<256x4xf32>
    %c1_69 = arith.constant 1 : index
    %c2_70 = arith.constant 2 : index
    %c0_71 = arith.constant 0 : index
    %51 = vector.load %arg9[%c1_69, %c2_70, %c0_71] : memref<18x18x4xf32, #tpu.memory_space<vmem>>, vector<16x16x4xf32>
    %52 = vector.shape_cast %51 : vector<16x16x4xf32> to vector<256x4xf32>
    %c2_72 = arith.constant 2 : index
    %c0_73 = arith.constant 0 : index
    %c0_74 = arith.constant 0 : index
    %53 = vector.load %arg9[%c2_72, %c0_73, %c0_74] : memref<18x18x4xf32, #tpu.memory_space<vmem>>, vector<16x16x4xf32>
    %54 = vector.shape_cast %53 : vector<16x16x4xf32> to vector<256x4xf32>
    %c2_75 = arith.constant 2 : index
    %c1_76 = arith.constant 1 : index
    %c0_77 = arith.constant 0 : index
    %55 = vector.load %arg9[%c2_75, %c1_76, %c0_77] : memref<18x18x4xf32, #tpu.memory_space<vmem>>, vector<16x16x4xf32>
    %56 = vector.shape_cast %55 : vector<16x16x4xf32> to vector<256x4xf32>
    %c2_78 = arith.constant 2 : index
    %c2_79 = arith.constant 2 : index
    %c0_80 = arith.constant 0 : index
    %57 = vector.load %arg9[%c2_78, %c2_79, %c0_80] : memref<18x18x4xf32, #tpu.memory_space<vmem>>, vector<16x16x4xf32>
    %58 = vector.shape_cast %57 : vector<16x16x4xf32> to vector<256x4xf32>
    %59 = tpu.concatenate %42, %44, %46, %48, %50, %52, %54, %56, %58 in 1 : vector<256x4xf32>, vector<256x4xf32>, vector<256x4xf32>, vector<256x4xf32>, vector<256x4xf32>, vector<256x4xf32>, vector<256x4xf32>, vector<256x4xf32>, vector<256x4xf32> -> vector<256x36xf32>
    %60 = arith.truncf %59 : vector<256x36xf32> to vector<256x36xbf16>
    %c0_81 = arith.constant 0 : index
    %c0_82 = arith.constant 0 : index
    %61 = vector.load %arg3[%c0_81, %c0_82] : memref<36x4xbf16, #tpu.memory_space<vmem>>, vector<36x4xbf16>
    %cst_83 = arith.constant dense<0.000000e+00> : vector<256x4xf32>
    %62 = tpu.matmul %60, %61, %cst_83 {dimension_numbers = #tpu.dot_dimension_numbers<[1], [0], [0], [1], [0, 0, 1, 1], [], []>} : vector<256x36xbf16>, vector<36x4xbf16>, vector<256x4xf32> -> vector<256x4xf32>
    %c0_84 = arith.constant 0 : index
    %c0_85 = arith.constant 0 : index
    %63 = vector.load %arg6[%c0_84, %c0_85] : memref<1x4xf32, #tpu.memory_space<vmem>>, vector<1x4xf32>
    %64 = vector.broadcast %63 : vector<1x4xf32> to vector<256x4xf32>
    %65 = arith.mulf %62, %64 : vector<256x4xf32>
    %c0_86 = arith.constant 0 : index
    %c0_87 = arith.constant 0 : index
    %66 = vector.load %arg7[%c0_86, %c0_87] : memref<1x4xf32, #tpu.memory_space<vmem>>, vector<1x4xf32>
    %67 = vector.broadcast %66 : vector<1x4xf32> to vector<256x4xf32>
    %68 = arith.addf %65, %67 : vector<256x4xf32>
    %69 = vector.shape_cast %7 : vector<16x16x4xf32> to vector<256x4xf32>
    %70 = arith.addf %68, %69 : vector<256x4xf32>
    %cst_88 = arith.constant 0.000000e+00 : f32
    %71 = vector.broadcast %cst_88 : f32 to vector<256x4xf32>
    %72 = arith.maximumf %70, %71 : vector<256x4xf32>
    %73 = vector.shape_cast %72 : vector<256x4xf32> to vector<16x16x4xf32>
    %c0_89 = arith.constant 0 : index
    %c0_90 = arith.constant 0 : index
    %c0_91 = arith.constant 0 : index
    %c0_92 = arith.constant 0 : index
    %74 = vector.load %arg8[%c0_89, %c0_90, %c0_91, %c0_92] : memref<1x16x16x4xf32, #tpu.memory_space<vmem>>, vector<1x16x16x4xf32>
    %75 = vector.shape_cast %74 : vector<1x16x16x4xf32> to vector<16x16x4xf32>
    %76 = vector.shape_cast %73 : vector<16x16x4xf32> to vector<1x16x16x4xf32>
    tpu.vector_store %arg8[%c0_89, %c0_90, %c0_91, %c0_92], %76 {strides = array<i32>} : memref<1x16x16x4xf32, #tpu.memory_space<vmem>>, vector<1x16x16x4xf32>,
    return
  }
  func.func @transform_0(%arg0: i32) -> (i32, i32, i32, i32) {
    %c0_i32 = arith.constant 0 : i32
    %c0_i32_0 = arith.constant 0 : i32
    %c0_i32_1 = arith.constant 0 : i32
    %c0_i32_2 = arith.constant 0 : i32
    return %arg0, %c0_i32, %c0_i32_0, %c0_i32_1 : i32, i32, i32, i32
  }
  func.func @transform_1(%arg0: i32) -> (i32, i32) {
    %c0_i32 = arith.constant 0 : i32
    %c0_i32_0 = arith.constant 0 : i32
    %c0_i32_1 = arith.constant 0 : i32
    return %c0_i32, %c0_i32_0 : i32, i32
  }
  func.func @transform_2(%arg0: i32) -> (i32, i32) {
    %c0_i32 = arith.constant 0 : i32
    %c0_i32_0 = arith.constant 0 : i32
    %c0_i32_1 = arith.constant 0 : i32
    return %c0_i32, %c0_i32_0 : i32, i32
  }
  func.func @transform_3(%arg0: i32) -> (i32, i32) {
    %c0_i32 = arith.constant 0 : i32
    %c0_i32_0 = arith.constant 0 : i32
    %c0_i32_1 = arith.constant 0 : i32
    return %c0_i32, %c0_i32_0 : i32, i32
  }
  func.func @transform_4(%arg0: i32) -> (i32, i32) {
    %c0_i32 = arith.constant 0 : i32
    %c0_i32_0 = arith.constant 0 : i32
    %c0_i32_1 = arith.constant 0 : i32
    return %c0_i32, %c0_i32_0 : i32, i32
  }
  func.func @transform_5(%arg0: i32) -> (i32, i32) {
    %c0_i32 = arith.constant 0 : i32
    %c0_i32_0 = arith.constant 0 : i32
    %c0_i32_1 = arith.constant 0 : i32
    return %c0_i32, %c0_i32_0 : i32, i32
  }
  func.func @transform_6(%arg0: i32) -> (i32, i32) {
    %c0_i32 = arith.constant 0 : i32
    %c0_i32_0 = arith.constant 0 : i32
    %c0_i32_1 = arith.constant 0 : i32
    return %c0_i32, %c0_i32_0 : i32, i32
  }
  func.func @transform_7(%arg0: i32) -> (i32, i32, i32, i32) {
    %c0_i32 = arith.constant 0 : i32
    %c0_i32_0 = arith.constant 0 : i32
    %c0_i32_1 = arith.constant 0 : i32
    %c0_i32_2 = arith.constant 0 : i32
    return %arg0, %c0_i32, %c0_i32_0, %c0_i32_1 : i32, i32, i32, i32
  }
}

module attributes {stable_mosaic.version = 11 : i64} {
  func.func @basic_block_kernel(%arg0: i32, %arg1: memref<1x16x16x4xf32, #tpu.memory_space<vmem>>, %arg2: memref<36x4xbf16, #tpu.memory_space<vmem>>, %arg3: memref<36x4xbf16, #tpu.memory_space<vmem>>, %arg4: memref<1x4xf32, #tpu.memory_space<vmem>>, %arg5: memref<1x4xf32, #tpu.memory_space<vmem>>, %arg6: memref<1x4xf32, #tpu.memory_space<vmem>>, %arg7: memref<1x4xf32, #tpu.memory_space<vmem>>, %arg8: memref<1x16x16x4xf32, #tpu.memory_space<vmem>>, %arg9: memref<18x18x4xf32, #tpu.memory_space<vmem>>) attributes {dimension_semantics = [#tpu.dimension_semantics<parallel>], iteration_bounds = array<i64: 2>, scalar_prefetch = 0 : i64, scratch_operands = 1 : i64, tpu.core_type = #tpu.core_type<tc>, window_params = [{transform_indices = @transform_0, window_bounds = array<i64: 1, 16, 16, 4>}, {pipeline_mode = #tpu.pipeline_mode<synchronous>, transform_indices = @transform_1, window_bounds = array<i64: 36, 4>}, {pipeline_mode = #tpu.pipeline_mode<synchronous>, transform_indices = @transform_2, window_bounds = array<i64: 36, 4>}, {pipeline_mode = #tpu.pipeline_mode<synchronous>, transform_indices = @transform_3, window_bounds = array<i64: 1, 4>}, {pipeline_mode = #tpu.pipeline_mode<synchronous>, transform_indices = @transform_4, window_bounds = array<i64: 1, 4>}, {pipeline_mode = #tpu.pipeline_mode<synchronous>, transform_indices = @transform_5, window_bounds = array<i64: 1, 4>}, {pipeline_mode = #tpu.pipeline_mode<synchronous>, transform_indices = @transform_6, window_bounds = array<i64: 1, 4>}, {transform_indices = @transform_7, window_bounds = array<i64: 1, 16, 16, 4>}]} {
    %cst = arith.constant 0.000000e+00 : f32
    %0 = vector.broadcast %cst : f32 to vector<1x18x4xf32>
    %cst_0 = arith.constant 0.000000e+00 : f32
    %1 = vector.broadcast %cst_0 : f32 to vector<18x1x4xf32>
    %c0 = arith.constant 0 : index
    %c0_1 = arith.constant 0 : index
    %c0_2 = arith.constant 0 : index
    %2 = vector.load %arg9[%c0, %c0_1, %c0_2] : memref<18x18x4xf32, #tpu.memory_space<vmem>>, vector<1x18x4xf32>
    tpu.vector_store %arg9[%c0, %c0_1, %c0_2], %0 {strides = array<i32>} : memref<18x18x4xf32, #tpu.memory_space<vmem>>, vector<1x18x4xf32>,
    %c17 = arith.constant 17 : index
    %c0_3 = arith.constant 0 : index
    %c0_4 = arith.constant 0 : index
    %3 = vector.load %arg9[%c17, %c0_3, %c0_4] : memref<18x18x4xf32, #tpu.memory_space<vmem>>, vector<1x18x4xf32>
    tpu.vector_store %arg9[%c17, %c0_3, %c0_4], %0 {strides = array<i32>} : memref<18x18x4xf32, #tpu.memory_space<vmem>>, vector<1x18x4xf32>,
    %c0_5 = arith.constant 0 : index
    %c0_6 = arith.constant 0 : index
    %c0_7 = arith.constant 0 : index
    %4 = vector.load %arg9[%c0_5, %c0_6, %c0_7] : memref<18x18x4xf32, #tpu.memory_space<vmem>>, vector<18x1x4xf32>
    tpu.vector_store %arg9[%c0_5, %c0_6, %c0_7], %1 {strides = array<i32>} : memref<18x18x4xf32, #tpu.memory_space<vmem>>, vector<18x1x4xf32>,
    %c0_8 = arith.constant 0 : index
    %c17_9 = arith.constant 17 : index
    %c0_10 = arith.constant 0 : index
    %5 = vector.load %arg9[%c0_8, %c17_9, %c0_10] : memref<18x18x4xf32, #tpu.memory_space<vmem>>, vector<18x1x4xf32>
    tpu.vector_store %arg9[%c0_8, %c17_9, %c0_10], %1 {strides = array<i32>} : memref<18x18x4xf32, #tpu.memory_space<vmem>>, vector<18x1x4xf32>,
    %c0_11 = arith.constant 0 : index
    %c0_12 = arith.constant 0 : index
    %c0_13 = arith.constant 0 : index
    %c0_14 = arith.constant 0 : index
    %6 = vector.load %arg1[%c0_11, %c0_12, %c0_13, %c0_14] : memref<1x16x16x4xf32, #tpu.memory_space<vmem>>, vector<1x16x16x4xf32>
    %7 = vector.shape_cast %6 : vector<1x16x16x4xf32> to vector<16x16x4xf32>
    %c1 = arith.constant 1 : index
    %c1_15 = arith.constant 1 : index
    %c0_16 = arith.constant 0 : index
    %8 = vector.load %arg9[%c1, %c1_15, %c0_16] : memref<18x18x4xf32, #tpu.memory_space<vmem>>, vector<16x16x4xf32>
    tpu.vector_store %arg9[%c1, %c1_15, %c0_16], %7 {strides = array<i32>} : memref<18x18x4xf32, #tpu.memory_space<vmem>>, vector<16x16x4xf32>,
    %c0_17 = arith.constant 0 : index
    %c0_18 = arith.constant 0 : index
    %c0_19 = arith.constant 0 : index
    %9 = vector.load %arg9[%c0_17, %c0_18, %c0_19] : memref<18x18x4xf32, #tpu.memory_space<vmem>>, vector<16x16x4xf32>
    %10 = vector.shape_cast %9 : vector<16x16x4xf32> to vector<256x4xf32>
    %c0_20 = arith.constant 0 : index
    %c1_21 = arith.constant 1 : index
    %c0_22 = arith.constant 0 : index
    %11 = vector.load %arg9[%c0_20, %c1_21, %c0_22] : memref<18x18x4xf32, #tpu.memory_space<vmem>>, vector<16x16x4xf32>
    %12 = vector.shape_cast %11 : vector<16x16x4xf32> to vector<256x4xf32>
    %c0_23 = arith.constant 0 : index
    %c2 = arith.constant 2 : index
    %c0_24 = arith.constant 0 : index
    %13 = vector.load %arg9[%c0_23, %c2, %c0_24] : memref<18x18x4xf32, #tpu.memory_space<vmem>>, vector<16x16x4xf32>
    %14 = vector.shape_cast %13 : vector<16x16x4xf32> to vector<256x4xf32>
    %c1_25 = arith.constant 1 : index
    %c0_26 = arith.constant 0 : index
    %c0_27 = arith.constant 0 : index
    %15 = vector.load %arg9[%c1_25, %c0_26, %c0_27] : memref<18x18x4xf32, #tpu.memory_space<vmem>>, vector<16x16x4xf32>
    %16 = vector.shape_cast %15 : vector<16x16x4xf32> to vector<256x4xf32>
    %c1_28 = arith.constant 1 : index
    %c1_29 = arith.constant 1 : index
    %c0_30 = arith.constant 0 : index
    %17 = vector.load %arg9[%c1_28, %c1_29, %c0_30] : memref<18x18x4xf32, #tpu.memory_space<vmem>>, vector<16x16x4xf32>
    %18 = vector.shape_cast %17 : vector<16x16x4xf32> to vector<256x4xf32>
    %c1_31 = arith.constant 1 : index
    %c2_32 = arith.constant 2 : index
    %c0_33 = arith.constant 0 : index
    %19 = vector.load %arg9[%c1_31, %c2_32, %c0_33] : memref<18x18x4xf32, #tpu.memory_space<vmem>>, vector<16x16x4xf32>
    %20 = vector.shape_cast %19 : vector<16x16x4xf32> to vector<256x4xf32>
    %c2_34 = arith.constant 2 : index
    %c0_35 = arith.constant 0 : index
    %c0_36 = arith.constant 0 : index
    %21 = vector.load %arg9[%c2_34, %c0_35, %c0_36] : memref<18x18x4xf32, #tpu.memory_space<vmem>>, vector<16x16x4xf32>
    %22 = vector.shape_cast %21 : vector<16x16x4xf32> to vector<256x4xf32>
    %c2_37 = arith.constant 2 : index
    %c1_38 = arith.constant 1 : index
    %c0_39 = arith.constant 0 : index
    %23 = vector.load %arg9[%c2_37, %c1_38, %c0_39] : memref<18x18x4xf32, #tpu.memory_space<vmem>>, vector<16x16x4xf32>
    %24 = vector.shape_cast %23 : vector<16x16x4xf32> to vector<256x4xf32>
    %c2_40 = arith.constant 2 : index
    %c2_41 = arith.constant 2 : index
    %c0_42 = arith.constant 0 : index
    %25 = vector.load %arg9[%c2_40, %c2_41, %c0_42] : memref<18x18x4xf32, #tpu.memory_space<vmem>>, vector<16x16x4xf32>
    %26 = vector.shape_cast %25 : vector<16x16x4xf32> to vector<256x4xf32>
    %c0_43 = arith.constant 0 : index
    %c0_44 = arith.constant 0 : index
    %27 = vector.load %arg2[%c0_43, %c0_44] : memref<36x4xbf16, #tpu.memory_space<vmem>>, vector<36x4xbf16>
    %28 = arith.extf %27 : vector<36x4xbf16> to vector<36x4xf32>
    %29 = vector.shape_cast %28 : vector<36x4xf32> to vector<9x4x4xf32>
    %30 = vector.extract_strided_slice %29 {offsets = [0, 0, 0], sizes = [1, 4, 4], strides = [1, 1, 1]} : vector<9x4x4xf32> to vector<1x4x4xf32>
    %31 = vector.shape_cast %30 : vector<1x4x4xf32> to vector<4x4xf32>
    %cst_45 = arith.constant dense<0.000000e+00> : vector<256x4xf32>
    %32 = tpu.matmul %10, %31, %cst_45 {dimension_numbers = #tpu.dot_dimension_numbers<[1], [0], [0], [1], [0, 0, 1, 1], [], []>} : vector<256x4xf32>, vector<4x4xf32>, vector<256x4xf32> -> vector<256x4xf32>
    %33 = vector.extract_strided_slice %29 {offsets = [1, 0, 0], sizes = [1, 4, 4], strides = [1, 1, 1]} : vector<9x4x4xf32> to vector<1x4x4xf32>
    %34 = vector.shape_cast %33 : vector<1x4x4xf32> to vector<4x4xf32>
    %cst_46 = arith.constant dense<0.000000e+00> : vector<256x4xf32>
    %35 = tpu.matmul %12, %34, %cst_46 {dimension_numbers = #tpu.dot_dimension_numbers<[1], [0], [0], [1], [0, 0, 1, 1], [], []>} : vector<256x4xf32>, vector<4x4xf32>, vector<256x4xf32> -> vector<256x4xf32>
    %36 = arith.addf %32, %35 : vector<256x4xf32>
    %37 = vector.extract_strided_slice %29 {offsets = [2, 0, 0], sizes = [1, 4, 4], strides = [1, 1, 1]} : vector<9x4x4xf32> to vector<1x4x4xf32>
    %38 = vector.shape_cast %37 : vector<1x4x4xf32> to vector<4x4xf32>
    %cst_47 = arith.constant dense<0.000000e+00> : vector<256x4xf32>
    %39 = tpu.matmul %14, %38, %cst_47 {dimension_numbers = #tpu.dot_dimension_numbers<[1], [0], [0], [1], [0, 0, 1, 1], [], []>} : vector<256x4xf32>, vector<4x4xf32>, vector<256x4xf32> -> vector<256x4xf32>
    %40 = arith.addf %36, %39 : vector<256x4xf32>
    %41 = vector.extract_strided_slice %29 {offsets = [3, 0, 0], sizes = [1, 4, 4], strides = [1, 1, 1]} : vector<9x4x4xf32> to vector<1x4x4xf32>
    %42 = vector.shape_cast %41 : vector<1x4x4xf32> to vector<4x4xf32>
    %cst_48 = arith.constant dense<0.000000e+00> : vector<256x4xf32>
    %43 = tpu.matmul %16, %42, %cst_48 {dimension_numbers = #tpu.dot_dimension_numbers<[1], [0], [0], [1], [0, 0, 1, 1], [], []>} : vector<256x4xf32>, vector<4x4xf32>, vector<256x4xf32> -> vector<256x4xf32>
    %44 = arith.addf %40, %43 : vector<256x4xf32>
    %45 = vector.extract_strided_slice %29 {offsets = [4, 0, 0], sizes = [1, 4, 4], strides = [1, 1, 1]} : vector<9x4x4xf32> to vector<1x4x4xf32>
    %46 = vector.shape_cast %45 : vector<1x4x4xf32> to vector<4x4xf32>
    %cst_49 = arith.constant dense<0.000000e+00> : vector<256x4xf32>
    %47 = tpu.matmul %18, %46, %cst_49 {dimension_numbers = #tpu.dot_dimension_numbers<[1], [0], [0], [1], [0, 0, 1, 1], [], []>} : vector<256x4xf32>, vector<4x4xf32>, vector<256x4xf32> -> vector<256x4xf32>
    %48 = arith.addf %44, %47 : vector<256x4xf32>
    %49 = vector.extract_strided_slice %29 {offsets = [5, 0, 0], sizes = [1, 4, 4], strides = [1, 1, 1]} : vector<9x4x4xf32> to vector<1x4x4xf32>
    %50 = vector.shape_cast %49 : vector<1x4x4xf32> to vector<4x4xf32>
    %cst_50 = arith.constant dense<0.000000e+00> : vector<256x4xf32>
    %51 = tpu.matmul %20, %50, %cst_50 {dimension_numbers = #tpu.dot_dimension_numbers<[1], [0], [0], [1], [0, 0, 1, 1], [], []>} : vector<256x4xf32>, vector<4x4xf32>, vector<256x4xf32> -> vector<256x4xf32>
    %52 = arith.addf %48, %51 : vector<256x4xf32>
    %53 = vector.extract_strided_slice %29 {offsets = [6, 0, 0], sizes = [1, 4, 4], strides = [1, 1, 1]} : vector<9x4x4xf32> to vector<1x4x4xf32>
    %54 = vector.shape_cast %53 : vector<1x4x4xf32> to vector<4x4xf32>
    %cst_51 = arith.constant dense<0.000000e+00> : vector<256x4xf32>
    %55 = tpu.matmul %22, %54, %cst_51 {dimension_numbers = #tpu.dot_dimension_numbers<[1], [0], [0], [1], [0, 0, 1, 1], [], []>} : vector<256x4xf32>, vector<4x4xf32>, vector<256x4xf32> -> vector<256x4xf32>
    %56 = arith.addf %52, %55 : vector<256x4xf32>
    %57 = vector.extract_strided_slice %29 {offsets = [7, 0, 0], sizes = [1, 4, 4], strides = [1, 1, 1]} : vector<9x4x4xf32> to vector<1x4x4xf32>
    %58 = vector.shape_cast %57 : vector<1x4x4xf32> to vector<4x4xf32>
    %cst_52 = arith.constant dense<0.000000e+00> : vector<256x4xf32>
    %59 = tpu.matmul %24, %58, %cst_52 {dimension_numbers = #tpu.dot_dimension_numbers<[1], [0], [0], [1], [0, 0, 1, 1], [], []>} : vector<256x4xf32>, vector<4x4xf32>, vector<256x4xf32> -> vector<256x4xf32>
    %60 = arith.addf %56, %59 : vector<256x4xf32>
    %61 = vector.extract_strided_slice %29 {offsets = [8, 0, 0], sizes = [1, 4, 4], strides = [1, 1, 1]} : vector<9x4x4xf32> to vector<1x4x4xf32>
    %62 = vector.shape_cast %61 : vector<1x4x4xf32> to vector<4x4xf32>
    %cst_53 = arith.constant dense<0.000000e+00> : vector<256x4xf32>
    %63 = tpu.matmul %26, %62, %cst_53 {dimension_numbers = #tpu.dot_dimension_numbers<[1], [0], [0], [1], [0, 0, 1, 1], [], []>} : vector<256x4xf32>, vector<4x4xf32>, vector<256x4xf32> -> vector<256x4xf32>
    %64 = arith.addf %60, %63 : vector<256x4xf32>
    %c0_54 = arith.constant 0 : index
    %c0_55 = arith.constant 0 : index
    %65 = vector.load %arg4[%c0_54, %c0_55] : memref<1x4xf32, #tpu.memory_space<vmem>>, vector<1x4xf32>
    %66 = vector.broadcast %65 : vector<1x4xf32> to vector<256x4xf32>
    %67 = arith.mulf %64, %66 : vector<256x4xf32>
    %c0_56 = arith.constant 0 : index
    %c0_57 = arith.constant 0 : index
    %68 = vector.load %arg5[%c0_56, %c0_57] : memref<1x4xf32, #tpu.memory_space<vmem>>, vector<1x4xf32>
    %69 = vector.broadcast %68 : vector<1x4xf32> to vector<256x4xf32>
    %70 = arith.addf %67, %69 : vector<256x4xf32>
    %cst_58 = arith.constant 0.000000e+00 : f32
    %71 = vector.broadcast %cst_58 : f32 to vector<256x4xf32>
    %72 = arith.maximumf %70, %71 : vector<256x4xf32>
    %73 = vector.shape_cast %72 : vector<256x4xf32> to vector<16x16x4xf32>
    %c1_59 = arith.constant 1 : index
    %c1_60 = arith.constant 1 : index
    %c0_61 = arith.constant 0 : index
    %74 = vector.load %arg9[%c1_59, %c1_60, %c0_61] : memref<18x18x4xf32, #tpu.memory_space<vmem>>, vector<16x16x4xf32>
    tpu.vector_store %arg9[%c1_59, %c1_60, %c0_61], %73 {strides = array<i32>} : memref<18x18x4xf32, #tpu.memory_space<vmem>>, vector<16x16x4xf32>,
    %c0_62 = arith.constant 0 : index
    %c0_63 = arith.constant 0 : index
    %c0_64 = arith.constant 0 : index
    %75 = vector.load %arg9[%c0_62, %c0_63, %c0_64] : memref<18x18x4xf32, #tpu.memory_space<vmem>>, vector<16x16x4xf32>
    %76 = vector.shape_cast %75 : vector<16x16x4xf32> to vector<256x4xf32>
    %c0_65 = arith.constant 0 : index
    %c1_66 = arith.constant 1 : index
    %c0_67 = arith.constant 0 : index
    %77 = vector.load %arg9[%c0_65, %c1_66, %c0_67] : memref<18x18x4xf32, #tpu.memory_space<vmem>>, vector<16x16x4xf32>
    %78 = vector.shape_cast %77 : vector<16x16x4xf32> to vector<256x4xf32>
    %c0_68 = arith.constant 0 : index
    %c2_69 = arith.constant 2 : index
    %c0_70 = arith.constant 0 : index
    %79 = vector.load %arg9[%c0_68, %c2_69, %c0_70] : memref<18x18x4xf32, #tpu.memory_space<vmem>>, vector<16x16x4xf32>
    %80 = vector.shape_cast %79 : vector<16x16x4xf32> to vector<256x4xf32>
    %c1_71 = arith.constant 1 : index
    %c0_72 = arith.constant 0 : index
    %c0_73 = arith.constant 0 : index
    %81 = vector.load %arg9[%c1_71, %c0_72, %c0_73] : memref<18x18x4xf32, #tpu.memory_space<vmem>>, vector<16x16x4xf32>
    %82 = vector.shape_cast %81 : vector<16x16x4xf32> to vector<256x4xf32>
    %c1_74 = arith.constant 1 : index
    %c1_75 = arith.constant 1 : index
    %c0_76 = arith.constant 0 : index
    %83 = vector.load %arg9[%c1_74, %c1_75, %c0_76] : memref<18x18x4xf32, #tpu.memory_space<vmem>>, vector<16x16x4xf32>
    %84 = vector.shape_cast %83 : vector<16x16x4xf32> to vector<256x4xf32>
    %c1_77 = arith.constant 1 : index
    %c2_78 = arith.constant 2 : index
    %c0_79 = arith.constant 0 : index
    %85 = vector.load %arg9[%c1_77, %c2_78, %c0_79] : memref<18x18x4xf32, #tpu.memory_space<vmem>>, vector<16x16x4xf32>
    %86 = vector.shape_cast %85 : vector<16x16x4xf32> to vector<256x4xf32>
    %c2_80 = arith.constant 2 : index
    %c0_81 = arith.constant 0 : index
    %c0_82 = arith.constant 0 : index
    %87 = vector.load %arg9[%c2_80, %c0_81, %c0_82] : memref<18x18x4xf32, #tpu.memory_space<vmem>>, vector<16x16x4xf32>
    %88 = vector.shape_cast %87 : vector<16x16x4xf32> to vector<256x4xf32>
    %c2_83 = arith.constant 2 : index
    %c1_84 = arith.constant 1 : index
    %c0_85 = arith.constant 0 : index
    %89 = vector.load %arg9[%c2_83, %c1_84, %c0_85] : memref<18x18x4xf32, #tpu.memory_space<vmem>>, vector<16x16x4xf32>
    %90 = vector.shape_cast %89 : vector<16x16x4xf32> to vector<256x4xf32>
    %c2_86 = arith.constant 2 : index
    %c2_87 = arith.constant 2 : index
    %c0_88 = arith.constant 0 : index
    %91 = vector.load %arg9[%c2_86, %c2_87, %c0_88] : memref<18x18x4xf32, #tpu.memory_space<vmem>>, vector<16x16x4xf32>
    %92 = vector.shape_cast %91 : vector<16x16x4xf32> to vector<256x4xf32>
    %c0_89 = arith.constant 0 : index
    %c0_90 = arith.constant 0 : index
    %93 = vector.load %arg3[%c0_89, %c0_90] : memref<36x4xbf16, #tpu.memory_space<vmem>>, vector<36x4xbf16>
    %94 = arith.extf %93 : vector<36x4xbf16> to vector<36x4xf32>
    %95 = vector.shape_cast %94 : vector<36x4xf32> to vector<9x4x4xf32>
    %96 = vector.extract_strided_slice %95 {offsets = [0, 0, 0], sizes = [1, 4, 4], strides = [1, 1, 1]} : vector<9x4x4xf32> to vector<1x4x4xf32>
    %97 = vector.shape_cast %96 : vector<1x4x4xf32> to vector<4x4xf32>
    %cst_91 = arith.constant dense<0.000000e+00> : vector<256x4xf32>
    %98 = tpu.matmul %76, %97, %cst_91 {dimension_numbers = #tpu.dot_dimension_numbers<[1], [0], [0], [1], [0, 0, 1, 1], [], []>} : vector<256x4xf32>, vector<4x4xf32>, vector<256x4xf32> -> vector<256x4xf32>
    %99 = vector.extract_strided_slice %95 {offsets = [1, 0, 0], sizes = [1, 4, 4], strides = [1, 1, 1]} : vector<9x4x4xf32> to vector<1x4x4xf32>
    %100 = vector.shape_cast %99 : vector<1x4x4xf32> to vector<4x4xf32>
    %cst_92 = arith.constant dense<0.000000e+00> : vector<256x4xf32>
    %101 = tpu.matmul %78, %100, %cst_92 {dimension_numbers = #tpu.dot_dimension_numbers<[1], [0], [0], [1], [0, 0, 1, 1], [], []>} : vector<256x4xf32>, vector<4x4xf32>, vector<256x4xf32> -> vector<256x4xf32>
    %102 = arith.addf %98, %101 : vector<256x4xf32>
    %103 = vector.extract_strided_slice %95 {offsets = [2, 0, 0], sizes = [1, 4, 4], strides = [1, 1, 1]} : vector<9x4x4xf32> to vector<1x4x4xf32>
    %104 = vector.shape_cast %103 : vector<1x4x4xf32> to vector<4x4xf32>
    %cst_93 = arith.constant dense<0.000000e+00> : vector<256x4xf32>
    %105 = tpu.matmul %80, %104, %cst_93 {dimension_numbers = #tpu.dot_dimension_numbers<[1], [0], [0], [1], [0, 0, 1, 1], [], []>} : vector<256x4xf32>, vector<4x4xf32>, vector<256x4xf32> -> vector<256x4xf32>
    %106 = arith.addf %102, %105 : vector<256x4xf32>
    %107 = vector.extract_strided_slice %95 {offsets = [3, 0, 0], sizes = [1, 4, 4], strides = [1, 1, 1]} : vector<9x4x4xf32> to vector<1x4x4xf32>
    %108 = vector.shape_cast %107 : vector<1x4x4xf32> to vector<4x4xf32>
    %cst_94 = arith.constant dense<0.000000e+00> : vector<256x4xf32>
    %109 = tpu.matmul %82, %108, %cst_94 {dimension_numbers = #tpu.dot_dimension_numbers<[1], [0], [0], [1], [0, 0, 1, 1], [], []>} : vector<256x4xf32>, vector<4x4xf32>, vector<256x4xf32> -> vector<256x4xf32>
    %110 = arith.addf %106, %109 : vector<256x4xf32>
    %111 = vector.extract_strided_slice %95 {offsets = [4, 0, 0], sizes = [1, 4, 4], strides = [1, 1, 1]} : vector<9x4x4xf32> to vector<1x4x4xf32>
    %112 = vector.shape_cast %111 : vector<1x4x4xf32> to vector<4x4xf32>
    %cst_95 = arith.constant dense<0.000000e+00> : vector<256x4xf32>
    %113 = tpu.matmul %84, %112, %cst_95 {dimension_numbers = #tpu.dot_dimension_numbers<[1], [0], [0], [1], [0, 0, 1, 1], [], []>} : vector<256x4xf32>, vector<4x4xf32>, vector<256x4xf32> -> vector<256x4xf32>
    %114 = arith.addf %110, %113 : vector<256x4xf32>
    %115 = vector.extract_strided_slice %95 {offsets = [5, 0, 0], sizes = [1, 4, 4], strides = [1, 1, 1]} : vector<9x4x4xf32> to vector<1x4x4xf32>
    %116 = vector.shape_cast %115 : vector<1x4x4xf32> to vector<4x4xf32>
    %cst_96 = arith.constant dense<0.000000e+00> : vector<256x4xf32>
    %117 = tpu.matmul %86, %116, %cst_96 {dimension_numbers = #tpu.dot_dimension_numbers<[1], [0], [0], [1], [0, 0, 1, 1], [], []>} : vector<256x4xf32>, vector<4x4xf32>, vector<256x4xf32> -> vector<256x4xf32>
    %118 = arith.addf %114, %117 : vector<256x4xf32>
    %119 = vector.extract_strided_slice %95 {offsets = [6, 0, 0], sizes = [1, 4, 4], strides = [1, 1, 1]} : vector<9x4x4xf32> to vector<1x4x4xf32>
    %120 = vector.shape_cast %119 : vector<1x4x4xf32> to vector<4x4xf32>
    %cst_97 = arith.constant dense<0.000000e+00> : vector<256x4xf32>
    %121 = tpu.matmul %88, %120, %cst_97 {dimension_numbers = #tpu.dot_dimension_numbers<[1], [0], [0], [1], [0, 0, 1, 1], [], []>} : vector<256x4xf32>, vector<4x4xf32>, vector<256x4xf32> -> vector<256x4xf32>
    %122 = arith.addf %118, %121 : vector<256x4xf32>
    %123 = vector.extract_strided_slice %95 {offsets = [7, 0, 0], sizes = [1, 4, 4], strides = [1, 1, 1]} : vector<9x4x4xf32> to vector<1x4x4xf32>
    %124 = vector.shape_cast %123 : vector<1x4x4xf32> to vector<4x4xf32>
    %cst_98 = arith.constant dense<0.000000e+00> : vector<256x4xf32>
    %125 = tpu.matmul %90, %124, %cst_98 {dimension_numbers = #tpu.dot_dimension_numbers<[1], [0], [0], [1], [0, 0, 1, 1], [], []>} : vector<256x4xf32>, vector<4x4xf32>, vector<256x4xf32> -> vector<256x4xf32>
    %126 = arith.addf %122, %125 : vector<256x4xf32>
    %127 = vector.extract_strided_slice %95 {offsets = [8, 0, 0], sizes = [1, 4, 4], strides = [1, 1, 1]} : vector<9x4x4xf32> to vector<1x4x4xf32>
    %128 = vector.shape_cast %127 : vector<1x4x4xf32> to vector<4x4xf32>
    %cst_99 = arith.constant dense<0.000000e+00> : vector<256x4xf32>
    %129 = tpu.matmul %92, %128, %cst_99 {dimension_numbers = #tpu.dot_dimension_numbers<[1], [0], [0], [1], [0, 0, 1, 1], [], []>} : vector<256x4xf32>, vector<4x4xf32>, vector<256x4xf32> -> vector<256x4xf32>
    %130 = arith.addf %126, %129 : vector<256x4xf32>
    %c0_100 = arith.constant 0 : index
    %c0_101 = arith.constant 0 : index
    %131 = vector.load %arg6[%c0_100, %c0_101] : memref<1x4xf32, #tpu.memory_space<vmem>>, vector<1x4xf32>
    %132 = vector.broadcast %131 : vector<1x4xf32> to vector<256x4xf32>
    %133 = arith.mulf %130, %132 : vector<256x4xf32>
    %c0_102 = arith.constant 0 : index
    %c0_103 = arith.constant 0 : index
    %134 = vector.load %arg7[%c0_102, %c0_103] : memref<1x4xf32, #tpu.memory_space<vmem>>, vector<1x4xf32>
    %135 = vector.broadcast %134 : vector<1x4xf32> to vector<256x4xf32>
    %136 = arith.addf %133, %135 : vector<256x4xf32>
    %137 = vector.shape_cast %7 : vector<16x16x4xf32> to vector<256x4xf32>
    %138 = arith.addf %136, %137 : vector<256x4xf32>
    %cst_104 = arith.constant 0.000000e+00 : f32
    %139 = vector.broadcast %cst_104 : f32 to vector<256x4xf32>
    %140 = arith.maximumf %138, %139 : vector<256x4xf32>
    %141 = vector.shape_cast %140 : vector<256x4xf32> to vector<16x16x4xf32>
    %c0_105 = arith.constant 0 : index
    %c0_106 = arith.constant 0 : index
    %c0_107 = arith.constant 0 : index
    %c0_108 = arith.constant 0 : index
    %142 = vector.load %arg8[%c0_105, %c0_106, %c0_107, %c0_108] : memref<1x16x16x4xf32, #tpu.memory_space<vmem>>, vector<1x16x16x4xf32>
    %143 = vector.shape_cast %142 : vector<1x16x16x4xf32> to vector<16x16x4xf32>
    %144 = vector.shape_cast %141 : vector<16x16x4xf32> to vector<1x16x16x4xf32>
    tpu.vector_store %arg8[%c0_105, %c0_106, %c0_107, %c0_108], %144 {strides = array<i32>} : memref<1x16x16x4xf32, #tpu.memory_space<vmem>>, vector<1x16x16x4xf32>,
    return
  }
  func.func @transform_0(%arg0: i32) -> (i32, i32, i32, i32) {
    %c0_i32 = arith.constant 0 : i32
    %c0_i32_0 = arith.constant 0 : i32
    %c0_i32_1 = arith.constant 0 : i32
    %c0_i32_2 = arith.constant 0 : i32
    return %arg0, %c0_i32, %c0_i32_0, %c0_i32_1 : i32, i32, i32, i32
  }
  func.func @transform_1(%arg0: i32) -> (i32, i32) {
    %c0_i32 = arith.constant 0 : i32
    %c0_i32_0 = arith.constant 0 : i32
    %c0_i32_1 = arith.constant 0 : i32
    return %c0_i32, %c0_i32_0 : i32, i32
  }
  func.func @transform_2(%arg0: i32) -> (i32, i32) {
    %c0_i32 = arith.constant 0 : i32
    %c0_i32_0 = arith.constant 0 : i32
    %c0_i32_1 = arith.constant 0 : i32
    return %c0_i32, %c0_i32_0 : i32, i32
  }
  func.func @transform_3(%arg0: i32) -> (i32, i32) {
    %c0_i32 = arith.constant 0 : i32
    %c0_i32_0 = arith.constant 0 : i32
    %c0_i32_1 = arith.constant 0 : i32
    return %c0_i32, %c0_i32_0 : i32, i32
  }
  func.func @transform_4(%arg0: i32) -> (i32, i32) {
    %c0_i32 = arith.constant 0 : i32
    %c0_i32_0 = arith.constant 0 : i32
    %c0_i32_1 = arith.constant 0 : i32
    return %c0_i32, %c0_i32_0 : i32, i32
  }
  func.func @transform_5(%arg0: i32) -> (i32, i32) {
    %c0_i32 = arith.constant 0 : i32
    %c0_i32_0 = arith.constant 0 : i32
    %c0_i32_1 = arith.constant 0 : i32
    return %c0_i32, %c0_i32_0 : i32, i32
  }
  func.func @transform_6(%arg0: i32) -> (i32, i32) {
    %c0_i32 = arith.constant 0 : i32
    %c0_i32_0 = arith.constant 0 : i32
    %c0_i32_1 = arith.constant 0 : i32
    return %c0_i32, %c0_i32_0 : i32, i32
  }
  func.func @transform_7(%arg0: i32) -> (i32, i32, i32, i32) {
    %c0_i32 = arith.constant 0 : i32
    %c0_i32_0 = arith.constant 0 : i32
    %c0_i32_1 = arith.constant 0 : i32
    %c0_i32_2 = arith.constant 0 : i32
    return %arg0, %c0_i32, %c0_i32_0, %c0_i32_1 : i32, i32, i32, i32
  }
}

</mosaic_0001>

<bundles_post_ra>
// kernel: tpu_custom_call.1
= control target key start
LH: loop header
LB: loop body
LE: loop exit
PB: predicated region body
PF: predicated region fallthrough
CT: control target
= control target key end

     0   :  { %s5937_s24 = smov 0   ;;  %s8847_s0 = inlined_call_operand.vmem [shape: f32[2,16,16,4], index: 0, kind: input, shape index: {}]   ;;  %s8848_s1 = inlined_call_operand.vmem [shape: bf16[36,4], index: 1, kind: input, shape index: {}]   ;;  %s8849_s2 = inlined_call_operand.vmem [shape: bf16[36,4], index: 2, kind: input, shape index: {}]   ;;  %s8850_s3 = inlined_call_operand.vmem [shape: f32[1,4], index: 3, kind: input, shape index: {}]   ;;  %s8851_s4 = inlined_call_operand.vmem [shape: f32[1,4], index: 4, kind: input, shape index: {}]   ;;  %s8852_s5 = inlined_call_operand.vmem [shape: f32[1,4], index: 5, kind: input, shape index: {}]   ;;  %s8853_s6 = inlined_call_operand.vmem [shape: f32[1,4], index: 6, kind: input, shape index: {}]   ;;  %s8854_s7 = inlined_call_operand.vmem [shape: f32[2,16,16,4], index: 7, kind: output, shape index: {}]  }
   0x1 LB: > { %s4404_s25 = sadd.s32 4294967295, %s5886_s24   ;;  %p4408_p0 = scmp.ge.s32.totalorder %s5886_s24, 1  ;;  %s5886_s24 = sphi %s5937_s24, %s17_s24  }
   0x2   : > { %p237_p1 = scmp.lt.s32.totalorder %s5886_s24, 3 }
   0x4   : > { %p238_p2 = pnand %p4408_p0, %p237_p1 }
   0x6   : > { %241 = sbr.rel (%p238_p2) target bundleno = 1167 (0x48f), region = 48 }
   0xb   : > { %vm280_vm0 = vcmask 31744   ;;  %vm283_vm1 = vcmask 25600   ;;  %p5947_p3 = scmp.lt.s32.totalorder %s4404_s25, 1  ;;  %vm289_vm2 = vcmask 24576   ;;  %v5888_v0 = vmov 0.0   ;;  %s5889_s8 = smov 4  }
   0xc   : > { %281 = vst.msk [vmem:[#allocation2] sm:$0xff] %vm280_vm0, %v5888_v0  ;;  %282 = vst.msk [vmem:[#allocation2 + $0x8] sm:$0xff] %vm280_vm0, %v5888_v0  ;;  %s5890_s9 = smov 8   ;;  %s5891_s10 = smov 12   ;;  %vm2052_vm3 = vcmask 1041408   ;;  %vm1736_vm4 = vcmask 64512  }
   0xd   : > { %284 = vst.msk [vmem:[#allocation2 + $0x10] sm:$0x3] %vm283_vm1, %v5888_v0  ;;  %288 = vst.msk [vmem:[#allocation2 + $0x1a8] sm:$0x3] %vm283_vm1, %v5888_v0  ;;  %s9188_s25 = smov (!%p5947_p3, %s4404_s25), 1  ;;  %s5892_s11 = smov 16  }
   0xe   : > { %286 = vst.msk [vmem:[#allocation2 + $0x198] sm:$0xff] %vm280_vm0, %v5888_v0  ;;  %287 = vst.msk [vmem:[#allocation2 + $0x1a0] sm:$0xff] %vm280_vm0, %v5888_v0  ;;  %s4457_s27 = sshll.u32 %s9188_s25, 8  ;;  %s5893_s12 = smov 20   ;;  %vm1769_vm5 = vcmask 97280   ;;  %vm1802_vm6 = vcmask 130048  }
   0xf   : > { %291 = vst.msk [vmem:[#allocation2 + $0x18] sm:$0x1] %vm289_vm2, %v5888_v0  ;;  %292 = vst.msk [vmem:[#allocation2 + $0x30] sm:$0x1] %vm289_vm2, %v5888_v0  ;;  %s6003_s30 = scalar_lea.vmem %s8847_s0, %s4457_s27  ;;  %s5894_s13 = smov 24   ;;  %vm1835_vm7 = vcmask 162816  }
  0x10   : > { %293 = vst.msk [vmem:[#allocation2 + $0x48] sm:$0x1] %vm289_vm2, %v5888_v0  ;;  %294 = vst.msk [vmem:[#allocation2 + $0x60] sm:$0x1] %vm289_vm2, %v5888_v0  ;;  %v6006_v1 = vld [vmem:[%s6003_s30 + $0x10] sm:$0xff]  ;;  %v6009_v2 = vld [vmem:[%s6003_s30 + $0x18] sm:$0xff] }
  0x11   : > { %295 = vst.msk [vmem:[#allocation2 + $0x78] sm:$0x1] %vm289_vm2, %v5888_v0  ;;  %296 = vst.msk [vmem:[#allocation2 + $0x90] sm:$0x1] %vm289_vm2, %v5888_v0  ;;  %v6012_v3 = vld [vmem:[%s6003_s30] sm:$0xff]  ;;  %v6019_v4 = vld [vmem:[%s6003_s30 + $0x8] sm:$0xff] }
  0x12   : > { %297 = vst.msk [vmem:[#allocation2 + $0xa8] sm:$0x1] %vm289_vm2, %v5888_v0  ;;  %298 = vst.msk [vmem:[#allocation2 + $0xc0] sm:$0x1] %vm289_vm2, %v5888_v0  ;;  %v6024_v5 = vld [vmem:[%s6003_s30 + $0x20] sm:$0xff]  ;;  %v6027_v6 = vld [vmem:[%s6003_s30 + $0x28] sm:$0xff] }
  0x13   : > { %299 = vst.msk [vmem:[#allocation2 + $0xd8] sm:$0x1] %vm289_vm2, %v5888_v0  ;;  %300 = vst.msk [vmem:[#allocation2 + $0xf0] sm:$0x1] %vm289_vm2, %v5888_v0  ;;  %v423_v7 = vld [vmem:[#allocation2 + $0x1] sm:$0xff]  ;;  %v6036_v9 = vld [vmem:[%s6003_s30 + $0x30] sm:$0xff] }
  0x14   : > { %301 = vst.msk [vmem:[#allocation2 + $0x108] sm:$0x1] %vm289_vm2, %v5888_v0  ;;  %302 = vst.msk [vmem:[#allocation2 + $0x120] sm:$0x1] %vm289_vm2, %v5888_v0  ;;  %v424_v8 = vld [vmem:[#allocation2 + $0x9] sm:$0xff]  ;;  %v6039_v11 = vld [vmem:[%s6003_s30 + $0x38] sm:$0xff] }
  0x15   : > { %303 = vst.msk [vmem:[#allocation2 + $0x138] sm:$0x1] %vm289_vm2, %v5888_v0  ;;  %304 = vst.msk [vmem:[#allocation2 + $0x150] sm:$0x1] %vm289_vm2, %v5888_v0  ;;  %v4592_v10 = vpack.i.bf16 %v424_v8, %v423_v7  ;;  %v6044_v12 = vld [vmem:[%s6003_s30 + $0x40] sm:$0xff]  ;;  %v6047_v13 = vld [vmem:[%s6003_s30 + $0x48] sm:$0xff] }
  0x16   : > { %305 = vst.msk [vmem:[#allocation2 + $0x168] sm:$0x1] %vm289_vm2, %v5888_v0  ;;  %306 = vst.msk [vmem:[#allocation2 + $0x180] sm:$0x1] %vm289_vm2, %v5888_v0  ;;  %v6056_v14 = vld [vmem:[%s6003_s30 + $0x50] sm:$0xff]  ;;  %v6059_v15 = vld [vmem:[%s6003_s30 + $0x58] sm:$0xff] }
  0x17   : > { %309 = vst.msk [vmem:[#allocation2 + $0x29] sm:$0x1] %vm289_vm2, %v5888_v0  ;;  %310 = vst.msk [vmem:[#allocation2 + $0x41] sm:$0x1] %vm289_vm2, %v5888_v0  ;;  %v6062_v16 = vld [vmem:[%s6003_s30 + $0x60] sm:$0xff]  ;;  %4593 = vrot.lane.b32.xlu0 %v4592_v10, %s5889_s8  ;;  %v6070_v17 = vld [vmem:[%s6003_s30 + $0x68] sm:$0xff] }
  0x18   : > { %311 = vst.msk [vmem:[#allocation2 + $0x59] sm:$0x1] %vm289_vm2, %v5888_v0  ;;  %312 = vst.msk [vmem:[#allocation2 + $0x71] sm:$0x1] %vm289_vm2, %v5888_v0  ;;  %v6075_v18 = vld [vmem:[%s6003_s30 + $0x70] sm:$0xff]  ;;  %v6078_v19 = vld [vmem:[%s6003_s30 + $0x78] sm:$0xff] }
  0x19   : > { %313 = vst.msk [vmem:[#allocation2 + $0x89] sm:$0x1] %vm289_vm2, %v5888_v0  ;;  %314 = vst.msk [vmem:[#allocation2 + $0xa1] sm:$0x1] %vm289_vm2, %v5888_v0  ;;  %v6087_v20 = vld [vmem:[%s6003_s30 + $0x80] sm:$0xff]  ;;  %v6090_v21 = vld [vmem:[%s6003_s30 + $0x88] sm:$0xff] }
  0x1a   : > { %315 = vst.msk [vmem:[#allocation2 + $0xb9] sm:$0x1] %vm289_vm2, %v5888_v0  ;;  %316 = vst.msk [vmem:[#allocation2 + $0xd1] sm:$0x1] %vm289_vm2, %v5888_v0  ;;  %v6093_v22 = vld [vmem:[%s6003_s30 + $0x90] sm:$0xff]  ;;  %v6100_v23 = vld [vmem:[%s6003_s30 + $0x98] sm:$0xff] }
  0x1b   : > { %317 = vst.msk [vmem:[#allocation2 + $0xe9] sm:$0x1] %vm289_vm2, %v5888_v0  ;;  %318 = vst.msk [vmem:[#allocation2 + $0x101] sm:$0x1] %vm289_vm2, %v5888_v0  ;;  %v6105_v24 = vld [vmem:[%s6003_s30 + $0xa0] sm:$0xff]  ;;  %v6108_v25 = vld [vmem:[%s6003_s30 + $0xa8] sm:$0xff] }
  0x1c   : > { %319 = vst.msk [vmem:[#allocation2 + $0x119] sm:$0x1] %vm289_vm2, %v5888_v0  ;;  %320 = vst.msk [vmem:[#allocation2 + $0x131] sm:$0x1] %vm289_vm2, %v5888_v0  ;;  %v6121_v35 = vld [vmem:[%s6003_s30 + $0xb0] sm:$0xff]  ;;  %v6124_v36 = vld [vmem:[%s6003_s30 + $0xb8] sm:$0xff] }
  0x1d   : > { %321 = vst.msk [vmem:[#allocation2 + $0x149] sm:$0x1] %vm289_vm2, %v5888_v0  ;;  %322 = vst.msk [vmem:[#allocation2 + $0x161] sm:$0x1] %vm289_vm2, %v5888_v0  ;;  %v6147_v50 = vld [vmem:[%s6003_s30 + $0xc0] sm:$0xff]  ;;  %v6150_v51 = vld [vmem:[%s6003_s30 + $0xc8] sm:$0xff] }
  0x1e   : > { %323 = vst.msk [vmem:[#allocation2 + $0x179] sm:$0x1] %vm289_vm2, %v5888_v0  ;;  %324 = vst.msk [vmem:[#allocation2 + $0x191] sm:$0x1] %vm289_vm2, %v5888_v0  ;;  %v6153_v52 = vld [vmem:[%s6003_s30 + $0xd0] sm:$0xff]  ;;  %v6160_v53 = vld [vmem:[%s6003_s30 + $0xd8] sm:$0xff] }
  0x1f   : > { %308 = vst.msk [vmem:[#allocation2 + $0x11] sm:$0x1] %vm289_vm2, %v5888_v0  ;;  %290 = vst.msk [vmem:[#allocation2] sm:$0x1] %vm289_vm2, %v5888_v0  ;;  %v6165_v54 = vld [vmem:[%s6003_s30 + $0xe0] sm:$0xff]  ;;  %v6168_v55 = vld [vmem:[%s6003_s30 + $0xe8] sm:$0xff] }
  0x20   : > { %307 = vst.msk [vmem:[#allocation2 + $0x198] sm:$0x1] %vm289_vm2, %v5888_v0  ;;  %325 = vst.msk [vmem:[#allocation2 + $0x1a9] sm:$0x1] %vm289_vm2, %v5888_v0  ;;  %s5895_s16 = smov 28   ;;  %s5896_s21 = smov 32  }
  0x21   : > { %8963 = vst [vmem:[#allocation3_spill] sm:$0xff] %v6006_v1  ;;  %8964 = vst [vmem:[#allocation4_spill] sm:$0xff] %v6009_v2  ;;  %vm1868_vm8 = vcmask 195584   ;;  %vm1901_vm9 = vcmask 228352   ;;  %vm1934_vm10 = vcmask 261120   ;;  %vm2003_vm11 = vcmask 293888  }
  0x22   : > { %8965 = vst [vmem:[#allocation5_spill] sm:$0xff] %v6012_v3  ;;  %361 = vst.msk [vmem:[#allocation2 + $0x31] sm:$0xff] %vm280_vm0, %v6006_v1 }
  0x23   : > { %362 = vst.msk [vmem:[#allocation2 + $0x39] sm:$0xff] %vm280_vm0, %v6009_v2  ;;  %8966 = vst [vmem:[#allocation6_spill] sm:$0xff] %v6019_v4 }
  0x24   : > { %359 = vst.msk [vmem:[#allocation2 + $0x19] sm:$0xff] %vm280_vm0, %v6012_v3  ;;  %8967 = vst [vmem:[#allocation7_spill] sm:$0xff] %v6024_v5 }
  0x25   : > { %8968 = vst [vmem:[#allocation8_spill] sm:$0xff] %v6027_v6  ;;  %360 = vst.msk [vmem:[#allocation2 + $0x21] sm:$0xff] %vm280_vm0, %v6019_v4 }
  0x26   : > { %363 = vst.msk [vmem:[#allocation2 + $0x49] sm:$0xff] %vm280_vm0, %v6024_v5  ;;  %364 = vst.msk [vmem:[#allocation2 + $0x51] sm:$0xff] %vm280_vm0, %v6027_v6 }
  0x27   : > { %8969 = vst [vmem:[#allocation9_spill] sm:$0xff] %v6036_v9  ;;  %8970 = vst [vmem:[#allocation10_spill] sm:$0xff] %v6039_v11 }
  0x28   : > { %365 = vst.msk [vmem:[#allocation2 + $0x61] sm:$0xff] %vm280_vm0, %v6036_v9  ;;  %8971 = vst [vmem:[#allocation11_spill] sm:$0xff] %v6044_v12 }
  0x29   : > { %8972 = vst [vmem:[#allocation12_spill] sm:$0xff] %v6047_v13  ;;  %366 = vst.msk [vmem:[#allocation2 + $0x69] sm:$0xff] %vm280_vm0, %v6039_v11  ;;  %v427_v26 = vld [vmem:[#allocation2 + $0x31] sm:$0xff] }
  0x2a   : > { %367 = vst.msk [vmem:[#allocation2 + $0x79] sm:$0xff] %vm280_vm0, %v6044_v12  ;;  %368 = vst.msk [vmem:[#allocation2 + $0x81] sm:$0xff] %vm280_vm0, %v6047_v13  ;;  %v428_v27 = vld [vmem:[#allocation2 + $0x39] sm:$0xff] }
  0x2b   : > { %8973 = vst [vmem:[#allocation13_spill] sm:$0xff] %v6056_v14  ;;  %8974 = vst [vmem:[#allocation14_spill] sm:$0xff] %v6059_v15  ;;  %v425_v28 = vld [vmem:[#allocation2 + $0x19] sm:$0xff]  ;;  %v6116_v29 = vpack.i.bf16 %v428_v27, %v427_v26 }
  0x2c   : > { %8975 = vst [vmem:[#allocation15_spill] sm:$0xff] %v6062_v16  ;;  %369 = vst.msk [vmem:[#allocation2 + $0x91] sm:$0xff] %vm280_vm0, %v6056_v14  ;;  %v426_v30 = vld [vmem:[#allocation2 + $0x21] sm:$0xff] }
  0x2d   : > { %370 = vst.msk [vmem:[#allocation2 + $0x99] sm:$0xff] %vm280_vm0, %v6059_v15  ;;  %8976 = vst [vmem:[#allocation16_spill] sm:$0xff] %v6070_v17  ;;  %v429_v31 = vld [vmem:[#allocation2 + $0x49] sm:$0xff]  ;;  %v430_v32 = vld [vmem:[#allocation2 + $0x51] sm:$0xff]  ;;  %v6118_v33 = vpack.i.bf16 %v426_v30, %v425_v28  ;;  %4603 = vrot.lane.b32.xlu1 %v6116_v29, %s5889_s8 }
  0x2e   : > { %371 = vst.msk [vmem:[#allocation2 + $0xa9] sm:$0xff] %vm280_vm0, %v6062_v16  ;;  %8977 = vst [vmem:[#allocation17_spill] sm:$0xff] %v6075_v18  ;;  %v6128_v37 = vpack.i.bf16 %v430_v32, %v429_v31 }
  0x2f   : > { %8978 = vst [vmem:[#allocation18_spill] sm:$0xff] %v6078_v19  ;;  %372 = vst.msk [vmem:[#allocation2 + $0xb1] sm:$0xff] %vm280_vm0, %v6070_v17  ;;  %v431_v34 = vld [vmem:[#allocation2 + $0x61] sm:$0xff]  ;;  %4598 = vrot.lane.b32.xlu0 %v6118_v33, %s5889_s8 }
  0x30   : > { %373 = vst.msk [vmem:[#allocation2 + $0xc1] sm:$0xff] %vm280_vm0, %v6075_v18  ;;  %374 = vst.msk [vmem:[#allocation2 + $0xc9] sm:$0xff] %vm280_vm0, %v6078_v19  ;;  %v432_v38 = vld [vmem:[#allocation2 + $0x69] sm:$0xff] }
  0x31   : > { %8979 = vst [vmem:[#allocation19_spill] sm:$0xff] %v6087_v20  ;;  %8980 = vst [vmem:[#allocation20_spill] sm:$0xff] %v6090_v21  ;;  %v6136_v39 = vpack.i.bf16 %v432_v38, %v431_v34  ;;  %v433_v40 = vld [vmem:[#allocation2 + $0x79] sm:$0xff]  ;;  %v434_v41 = vld [vmem:[#allocation2 + $0x81] sm:$0xff]  ;;  %4608 = vrot.lane.b32.xlu1 %v6128_v37, %s5889_s8 }
  0x32   : > { %8981 = vst [vmem:[#allocation21_spill] sm:$0xff] %v6093_v22  ;;  %375 = vst.msk [vmem:[#allocation2 + $0xd9] sm:$0xff] %vm280_vm0, %v6087_v20  ;;  %v6140_v45 = vpack.i.bf16 %v434_v41, %v433_v40 }
  0x33   : > { %376 = vst.msk [vmem:[#allocation2 + $0xe1] sm:$0xff] %vm280_vm0, %v6090_v21  ;;  %8982 = vst [vmem:[#allocation22_spill] sm:$0xff] %v6100_v23  ;;  %v435_v42 = vld [vmem:[#allocation2 + $0x91] sm:$0xff]  ;;  %4613 = vrot.lane.b32.xlu0 %v6136_v39, %s5889_s8 }
  0x34   : > { %377 = vst.msk [vmem:[#allocation2 + $0xf1] sm:$0xff] %vm280_vm0, %v6093_v22  ;;  %8983 = vst [vmem:[#allocation23_spill] sm:$0xff] %v6105_v24  ;;  %v436_v43 = vld [vmem:[#allocation2 + $0x99] sm:$0xff]  ;;  %v6330_v21 = vld [vmem:[#allocation2 + $0x90] sm:$0xff] }
  0x35   : > { %8984 = vst [vmem:[#allocation24_spill] sm:$0xff] %v6108_v25  ;;  %378 = vst.msk [vmem:[#allocation2 + $0xf9] sm:$0xff] %vm280_vm0, %v6100_v23  ;;  %v437_v44 = vld [vmem:[#allocation2 + $0xa9] sm:$0xff]  ;;  %v6144_v49 = vpack.i.bf16 %v436_v43, %v435_v42  ;;  %4618 = vrot.lane.b32.xlu1 %v6140_v45, %s5889_s8  ;;  %v6332_v23 = vld [vmem:[#allocation2 + $0x98] sm:$0xff] }
  0x36   : > { %379 = vst.msk [vmem:[#allocation2 + $0x109] sm:$0xff] %vm280_vm0, %v6105_v24  ;;  %380 = vst.msk [vmem:[#allocation2 + $0x111] sm:$0xff] %vm280_vm0, %v6108_v25  ;;  %v438_v46 = vld [vmem:[#allocation2 + $0xb1] sm:$0xff]  ;;  %v455_v42 = vld [vmem:[#allocation2 + $0x2] sm:$0xff]  ;;  %v6342_v17 = vpack.i.bf16 %v6332_v23, %v6330_v21 }
  0x37   : > { %8985 = vst [vmem:[#allocation25_spill] sm:$0xff] %v6121_v35  ;;  %8986 = vst [vmem:[#allocation26_spill] sm:$0xff] %v6124_v36  ;;  %v439_v47 = vld [vmem:[#allocation2 + $0xc1] sm:$0xff]  ;;  %v440_v48 = vld [vmem:[#allocation2 + $0xc9] sm:$0xff]  ;;  %v6178_v56 = vpack.i.bf16 %v438_v46, %v437_v44  ;;  %4623 = vrot.lane.b32.xlu0 %v6144_v49, %s5889_s8 }
  0x38   : > { %381 = vst.msk [vmem:[#allocation2 + $0x121] sm:$0xff] %vm280_vm0, %v6121_v35  ;;  %382 = vst.msk [vmem:[#allocation2 + $0x129] sm:$0xff] %vm280_vm0, %v6124_v36  ;;  %v6182_v57 = vpack.i.bf16 %v440_v48, %v439_v47  ;;  %v456_v43 = vld [vmem:[#allocation2 + $0xa] sm:$0xff]  ;;  %v457_v47 = vld [vmem:[#allocation2 + $0x1a] sm:$0xff] }
  0x39   : > { %8987 = vst [vmem:[#allocation27_spill] sm:$0xff] %v6147_v50  ;;  %8988 = vst [vmem:[#allocation28_spill] sm:$0xff] %v6150_v51  ;;  %v441_v58 = vld [vmem:[#allocation2 + $0xd9] sm:$0xff]  ;;  %4628 = vrot.lane.b32.xlu1 %v6178_v56, %s5889_s8  ;;  %v4672_v46 = vpack.i.bf16 %v456_v43, %v455_v42  ;;  %v458_v48 = vld [vmem:[#allocation2 + $0x22] sm:$0xff] }
  0x3a   : > { %8989 = vst [vmem:[#allocation29_spill] sm:$0xff] %v6153_v52  ;;  %383 = vst.msk [vmem:[#allocation2 + $0x139] sm:$0xff] %vm280_vm0, %v6147_v50  ;;  %v442_v59 = vld [vmem:[#allocation2 + $0xe1] sm:$0xff]  ;;  %v467_v42 = vld [vmem:[#allocation2 + $0x92] sm:$0xff] }
  0x3b   : > { %384 = vst.msk [vmem:[#allocation2 + $0x141] sm:$0xff] %vm280_vm0, %v6150_v51  ;;  %8990 = vst [vmem:[#allocation30_spill] sm:$0xff] %v6160_v53  ;;  %v443_v60 = vld [vmem:[#allocation2 + $0xf1] sm:$0xff]  ;;  %v6186_v62 = vpack.i.bf16 %v442_v59, %v441_v58  ;;  %4633 = vrot.lane.b32.xlu0 %v6182_v57, %s5889_s8  ;;  %v460_v59 = vld [vmem:[#allocation2 + $0x3a] sm:$0xff] }
  0x3c   : > { %385 = vst.msk [vmem:[#allocation2 + $0x151] sm:$0xff] %vm280_vm0, %v6153_v52  ;;  %8991 = vst [vmem:[#allocation31_spill] sm:$0xff] %v6165_v54  ;;  %v444_v61 = vld [vmem:[#allocation2 + $0xf9] sm:$0xff]  ;;  %v6297_v50 = vld [vmem:[#allocation2 + $0x50] sm:$0xff] }
  0x3d   : > { %8992 = vst [vmem:[#allocation32_spill] sm:$0xff] %v6168_v55  ;;  %386 = vst.msk [vmem:[#allocation2 + $0x159] sm:$0xff] %vm280_vm0, %v6160_v53  ;;  %v6190_v63 = vpack.i.bf16 %v444_v61, %v443_v60  ;;  %v445_v0 = vld [vmem:[#allocation2 + $0x109] sm:$0xff]  ;;  %v446_v7 = vld [vmem:[#allocation2 + $0x111] sm:$0xff]  ;;  %4638 = vrot.lane.b32.xlu1 %v6186_v62, %s5889_s8  ;;  %v6216_v60 = vpack.i.bf16 %v458_v48, %v457_v47 }
  0x3e   : > { %387 = vst.msk [vmem:[#allocation2 + $0x169] sm:$0xff] %vm280_vm0, %v6165_v54  ;;  %388 = vst.msk [vmem:[#allocation2 + $0x171] sm:$0xff] %vm280_vm0, %v6168_v55  ;;  %v6194_v26 = vpack.i.bf16 %v446_v7, %v445_v0  ;;  %v459_v58 = vld [vmem:[#allocation2 + $0x32] sm:$0xff]  ;;  %v461_v0 = vld [vmem:[#allocation2 + $0x4a] sm:$0xff] }
  0x3f   : > { %v447_v8 = vld [vmem:[#allocation2 + $0x121] sm:$0xff]  ;;  %v448_v10 = vld [vmem:[#allocation2 + $0x129] sm:$0xff]  ;;  %4643 = vrot.lane.b32.xlu0 %v6190_v63, %s5889_s8  ;;  %v6219_v61 = vpack.i.bf16 %v460_v59, %v459_v58  ;;  %v462_v7 = vld [vmem:[#allocation2 + $0x52] sm:$0xff] }
  0x40   : > { %v6198_v27 = vpack.i.bf16 %v448_v10, %v447_v8  ;;  %v463_v8 = vld [vmem:[#allocation2 + $0x62] sm:$0xff]  ;;  %v464_v10 = vld [vmem:[#allocation2 + $0x6a] sm:$0xff]  ;;  %v468_v43 = vld [vmem:[#allocation2 + $0x9a] sm:$0xff] }
  0x41   : > { %v449_v28 = vld [vmem:[#allocation2 + $0x139] sm:$0xff]  ;;  %4648 = vrot.lane.b32.xlu1 %v6194_v26, %s5889_s8  ;;  %v6245_v47 = vpack.i.bf16 %v468_v43, %v467_v42  ;;  %v469_v48 = vld [vmem:[#allocation2 + $0xaa] sm:$0xff]  ;;  %v471_v59 = vld [vmem:[#allocation2 + $0xc2] sm:$0xff] }
  0x42   : > { %v450_v30 = vld [vmem:[#allocation2 + $0x141] sm:$0xff]  ;;  %v470_v58 = vld [vmem:[#allocation2 + $0xb2] sm:$0xff]  ;;  %v480_v54 = vld [vmem:[#allocation2 + $0x12a] sm:$0xff] }
  0x43   : > { %v451_v31 = vld [vmem:[#allocation2 + $0x151] sm:$0xff]  ;;  %v6202_v34 = vpack.i.bf16 %v450_v30, %v449_v28  ;;  %4653 = vrot.lane.b32.xlu0 %v6198_v27, %s5889_s8  ;;  %v476_v55 = vld [vmem:[#allocation2 + $0xfa] sm:$0xff]  ;;  %v6312_v25 = vld [vmem:[#allocation2 + $0x68] sm:$0xff] }
  0x44   : > { %v452_v32 = vld [vmem:[#allocation2 + $0x159] sm:$0xff]  ;;  %v6222_v28 = vld [vmem:[%s6003_s30 + $0xf0] sm:$0xff]  ;;  %v6334_v20 = vld [vmem:[#allocation2 + $0xa8] sm:$0xff] }
  0x45   : > { %v6206_v38 = vpack.i.bf16 %v452_v32, %v451_v31  ;;  %v453_v40 = vld [vmem:[#allocation2 + $0x169] sm:$0xff]  ;;  %v454_v41 = vld [vmem:[#allocation2 + $0x171] sm:$0xff]  ;;  %4658 = vrot.lane.b32.xlu1 %v6202_v34, %s5889_s8  ;;  %8993 = vst [vmem:[#allocation33_spill] sm:$0xff] %v6222_v28  ;;  %389 = vst.msk [vmem:[#allocation2 + $0x181] sm:$0xff] %vm280_vm0, %v6222_v28  ;;  %v6233_v31 = vpack.i.bf16 %v462_v7, %v461_v0  ;;  %v6237_v32 = vpack.i.bf16 %v464_v10, %v463_v8 }
  0x46   : > { %v6210_v44 = vpack.i.bf16 %v454_v41, %v453_v40  ;;  %v6225_v30 = vld [vmem:[%s6003_s30 + $0xf8] sm:$0xff]  ;;  %v466_v41 = vld [vmem:[#allocation2 + $0x82] sm:$0xff]  ;;  %v472_v0 = vld [vmem:[#allocation2 + $0xca] sm:$0xff]  ;;  %v6249_v7 = vpack.i.bf16 %v470_v58, %v469_v48  ;;  %8995 = vst [vmem:[#allocation35_spill] sm:$0xff] %v6334_v20 }
  0x47   : > { %4663 = vrot.lane.b32.xlu0 %v6206_v38, %s5889_s8  ;;  %8994 = vst [vmem:[#allocation34_spill] sm:$0xff] %v6225_v30  ;;  %390 = vst.msk [vmem:[#allocation2 + $0x189] sm:$0xff] %vm280_vm0, %v6225_v30  ;;  %v465_v40 = vld [vmem:[#allocation2 + $0x7a] sm:$0xff]  ;;  %v6253_v8 = vpack.i.bf16 %v472_v0, %v471_v59  ;;  %v477_v48 = vld [vmem:[#allocation2 + $0x10a] sm:$0xff] }
  0x48   : > { %v473_v10 = vld [vmem:[#allocation2 + $0xda] sm:$0xff]  ;;  %v478_v58 = vld [vmem:[#allocation2 + $0x112] sm:$0xff]  ;;  %v479_v30 = vld [vmem:[#allocation2 + $0x122] sm:$0xff] }
  0x49   : > { %4668 = vrot.lane.b32.xlu1 %v6210_v44, %s5889_s8  ;;  %v6265_v59 = vpack.i.bf16 %v478_v58, %v477_v48  ;;  %v6269_v0 = vpack.i.bf16 %v480_v54, %v479_v30  ;;  %v483_v28 = vld [vmem:[#allocation2 + $0x152] sm:$0xff]  ;;  %v484_v51 = vld [vmem:[#allocation2 + $0x15a] sm:$0xff]  ;;  %v485_v48 = vld [vmem:[#allocation2 + $0x16a] sm:$0xff] }
  0x4a   : > { %v486_v58 = vld [vmem:[#allocation2 + $0x172] sm:$0xff]  ;;  %v6281_v54 = vld [vmem:[#allocation2 + $0x20] sm:$0xff]  ;;  %v6352_v18 = vld [vmem:[#allocation2 + $0xc8] sm:$0xff] }
  0x4b   : > { %4673 = vrot.lane.b32.xlu0 %v4672_v46, %s5890_s9  ;;  %v6241_v46 = vpack.i.bf16 %v466_v41, %v465_v40  ;;  %v474_v40 = vld [vmem:[#allocation2 + $0xe2] sm:$0xff]  ;;  %v475_v41 = vld [vmem:[#allocation2 + $0xf2] sm:$0xff]  ;;  %v6285_v30 = vpack.i.bf16 %v486_v58, %v485_v48  ;;  %8997 = vst [vmem:[#allocation37_spill] sm:$0xff] %v6352_v18 }
  0x4c   : > { %v6257_v42 = vpack.i.bf16 %v474_v40, %v473_v10  ;;  %v6261_v43 = vpack.i.bf16 %v476_v55, %v475_v41  ;;  %v481_v10 = vld [vmem:[#allocation2 + $0x13a] sm:$0xff]  ;;  %v482_v40 = vld [vmem:[#allocation2 + $0x142] sm:$0xff]  ;;  %v6277_v41 = vpack.i.bf16 %v484_v51, %v483_v28  ;;  %v6336_v22 = vld [vmem:[#allocation2 + $0xb0] sm:$0xff] }
  0x4d   : > { %4678 = vrot.lane.b32.xlu1 %v6216_v60, %s5890_s9  ;;  %v6273_v55 = vpack.i.bf16 %v482_v40, %v481_v10  ;;  %v6279_v53 = vld [vmem:[#allocation2 + $0x18] sm:$0xff]  ;;  %v6291_v40 = vld [vmem:[#allocation2 + $0x30] sm:$0xff]  ;;  %v6295_v28 = vld [vmem:[#allocation2 + $0x48] sm:$0xff]  ;;  %v6348_v19 = vpack.i.bf16 %v6336_v22, %v6334_v20 }
  0x4e   : > { %v4752_v10 = vpack.i.bf16 %v6281_v54, %v6279_v53  ;;  %v6293_v51 = vld [vmem:[#allocation2 + $0x38] sm:$0xff]  ;;  %v6308_v58 = vpack.i.bf16 %v6297_v50, %v6295_v28  ;;  %v6310_v52 = vld [vmem:[#allocation2 + $0x60] sm:$0xff]  ;;  %v6370_v6 = vld [vmem:[#allocation2 + $0xf0] sm:$0xff] }
  0x4f   : > { %4683 = vrot.lane.b32.xlu0 %v6219_v61, %s5890_s9  ;;  %v6303_v48 = vpack.i.bf16 %v6293_v51, %v6291_v40  ;;  %v6314_v36 = vld [vmem:[#allocation2 + $0x78] sm:$0xff]  ;;  %v6316_v24 = vld [vmem:[#allocation2 + $0x80] sm:$0xff]  ;;  %v6322_v35 = vpack.i.bf16 %v6312_v25, %v6310_v52  ;;  %9000 = vst [vmem:[#allocation40_spill] sm:$0xff] %v6370_v6  ;;  %v6374_v5 = vld [vmem:[#allocation2 + $0x108] sm:$0xff] }
  0x50   : > { %v6350_v16 = vld [vmem:[#allocation2 + $0xc0] sm:$0xff]  ;;  %v6354_v13 = vld [vmem:[#allocation2 + $0xd8] sm:$0xff]  ;;  %9002 = vst [vmem:[#allocation42_spill] sm:$0xff] %v6374_v5  ;;  %v6376_v9 = vld [vmem:[#allocation2 + $0x110] sm:$0xff] }
  0x51   : > { %4688 = vrot.lane.b32.xlu1 %v6233_v31, %s5890_s9  ;;  %8996 = vst [vmem:[#allocation36_spill] sm:$0xff] %v6350_v16  ;;  %8998 = vst [vmem:[#allocation38_spill] sm:$0xff] %v6354_v13  ;;  %v6356_v15 = vld [vmem:[#allocation2 + $0xe0] sm:$0xff]  ;;  %v6362_v12 = vpack.i.bf16 %v6352_v18, %v6350_v16  ;;  %v6372_v11 = vld [vmem:[#allocation2 + $0xf8] sm:$0xff]  ;;  %v6388_v2 = vpack.i.bf16 %v6376_v9, %v6374_v5 }
  0x52   : > { %8999 = vst [vmem:[#allocation39_spill] sm:$0xff] %v6356_v15  ;;  %v6368_v14 = vpack.i.bf16 %v6356_v15, %v6354_v13  ;;  %9001 = vst [vmem:[#allocation41_spill] sm:$0xff] %v6372_v11  ;;  %v6382_v4 = vpack.i.bf16 %v6372_v11, %v6370_v6  ;;  %v6390_v3 = vld [vmem:[#allocation2 + $0x120] sm:$0xff]  ;;  %v6392_v1 = vld [vmem:[#allocation2 + $0x128] sm:$0xff] }
  0x53   : > { %4693 = vrot.lane.b32.xlu0 %v6237_v32, %s5890_s9  ;;  %9003 = vst [vmem:[#allocation43_spill] sm:$0xff] %v6376_v9  ;;  %9004 = vst [vmem:[#allocation44_spill] sm:$0xff] %v6390_v3  ;;  %v6394_v13 = vld [vmem:[#allocation2 + $0x138] sm:$0xff]  ;;  %v6396_v15 = vld [vmem:[#allocation2 + $0x140] sm:$0xff]  ;;  %v6402_v6 = vpack.i.bf16 %v6392_v1, %v6390_v3 }
  0x54   : > { %9005 = vst [vmem:[#allocation45_spill] sm:$0xff] %v6392_v1  ;;  %9006 = vst [vmem:[#allocation46_spill] sm:$0xff] %v6394_v13  ;;  %v6408_v5 = vpack.i.bf16 %v6396_v15, %v6394_v13  ;;  %v6410_v9 = vld [vmem:[#allocation2 + $0x150] sm:$0xff]  ;;  %v6412_v11 = vld [vmem:[#allocation2 + $0x158] sm:$0xff] }
  0x55   : > { %4698 = vrot.lane.b32.xlu1 %v6241_v46, %s5890_s9  ;;  %9007 = vst [vmem:[#allocation47_spill] sm:$0xff] %v6396_v15  ;;  %v6414_v16 = vld [vmem:[#allocation2 + $0x168] sm:$0xff]  ;;  %v6416_v18 = vld [vmem:[#allocation2 + $0x170] sm:$0xff]  ;;  %v6422_v3 = vpack.i.bf16 %v6412_v11, %v6410_v9  ;;  %v517_v15 = vld [vmem:[#allocation2 + $0x180] sm:$0xff] }
  0x56   : > { %v6428_v13 = vpack.i.bf16 %v6416_v18, %v6414_v16  ;;  %v518_v1 = vld [vmem:[#allocation2 + $0x188] sm:$0xff] }
  0x57   : > { %4703 = vrot.lane.b32.xlu0 %v6245_v47, %s5890_s9  ;;  %v6432_v20 = vpack.i.bf16 %v518_v1, %v517_v15 }
  0x59   : > { %4708 = vrot.lane.b32.xlu1 %v6249_v7, %s5890_s9 }
  0x5b   : > { %4713 = vrot.lane.b32.xlu0 %v6253_v8, %s5890_s9 }
  0x5d   : > { %4718 = vrot.lane.b32.xlu1 %v6257_v42, %s5890_s9 }
  0x5f   : > { %4723 = vrot.lane.b32.xlu0 %v6261_v43, %s5890_s9 }
  0x61   : > { %4728 = vrot.lane.b32.xlu1 %v6265_v59, %s5890_s9 }
  0x63   : > { %4733 = vrot.lane.b32.xlu0 %v6269_v0, %s5890_s9 }
  0x65   : > { %4738 = vrot.lane.b32.xlu1 %v6273_v55, %s5890_s9 }
  0x67   : > { %4743 = vrot.lane.b32.xlu0 %v6277_v41, %s5890_s9 }
  0x69   : > { %4748 = vrot.lane.b32.xlu1 %v6285_v30, %s5890_s9 }
  0x6b   : > { %4753 = vrot.lane.b32.xlu0 %v4752_v10, %s5891_s10  ;;  %v6328_v10 = vpack.i.bf16 %v6316_v24, %v6314_v36 }
  0x6d   : > { %4758 = vrot.lane.b32.xlu1 %v6303_v48, %s5891_s10 }
  0x6f   : > { %4763 = vrot.lane.b32.xlu0 %v6308_v58, %s5891_s10 }
  0x71   : > { %4768 = vrot.lane.b32.xlu1 %v6322_v35, %s5891_s10 }
  0x73   : > { %4773 = vrot.lane.b32.xlu0 %v6328_v10, %s5891_s10 }
  0x75   : > { %4778 = vrot.lane.b32.xlu1 %v6342_v17, %s5891_s10 }
  0x77   : > { %4783 = vrot.lane.b32.xlu0 %v6348_v19, %s5891_s10 }
  0x79   : > { %4788 = vrot.lane.b32.xlu1 %v6362_v12, %s5891_s10 }
  0x7b   : > { %4793 = vrot.lane.b32.xlu0 %v6368_v14, %s5891_s10 }
  0x7d   : > { %4798 = vrot.lane.b32.xlu1 %v6382_v4, %s5891_s10 }
  0x7f   : > { %4803 = vrot.lane.b32.xlu0 %v6388_v2, %s5891_s10 }
  0x81   : > { %4808 = vrot.lane.b32.xlu1 %v6402_v6, %s5891_s10 }
  0x83   : > { %4813 = vrot.lane.b32.xlu0 %v6408_v5, %s5891_s10 }
  0x85   : > { %4818 = vrot.lane.b32.xlu1 %v6422_v3, %s5891_s10 }
  0x87   : > { %4823 = vrot.lane.b32.xlu0 %v6428_v13, %s5891_s10 }
  0x89   : > { %4828 = vrot.lane.b32.xlu1 %v6432_v20, %s5891_s10  ;;  %v6456_v1 = vpop.permute.xlu0 %4593 }
  0x8b   : > { %4833 = vrot.lane.b32.xlu0 %v6118_v33, %s5892_s11  ;;  %v549_v33 = vld [vmem:[#allocation2 + $0x181] sm:$0xff] }
  0x8d   : > { %4838 = vrot.lane.b32.xlu1 %v6116_v29, %s5892_s11 }
  0x8f   : > { %4843 = vrot.lane.b32.xlu0 %v6128_v37, %s5892_s11  ;;  %v550_v37 = vld [vmem:[#allocation2 + $0x189] sm:$0xff] }
  0x91   : > { %4848 = vrot.lane.b32.xlu1 %v6136_v39, %s5892_s11 }
  0x93   : > { %4853 = vrot.lane.b32.xlu0 %v6140_v45, %s5892_s11 }
  0x95   : > { %4858 = vrot.lane.b32.xlu1 %v6144_v49, %s5892_s11  ;;  %v4907_v49 = vpack.i.bf16 %v550_v37, %v549_v33 }
  0x97   : > { %4863 = vrot.lane.b32.xlu0 %v6178_v56, %s5892_s11 }
  0x99   : > { %4868 = vrot.lane.b32.xlu1 %v6182_v57, %s5892_s11 }
  0x9b   : > { %4873 = vrot.lane.b32.xlu0 %v6186_v62, %s5892_s11 }
  0x9d   : > { %4878 = vrot.lane.b32.xlu1 %v6190_v63, %s5892_s11 }
  0x9f   : > { %4883 = vrot.lane.b32.xlu0 %v6194_v26, %s5892_s11  ;;  %v6462_v15 = vpop.permute.xlu1 %4603 }
  0xa1   : > { %v6464_v29 = vpop.permute.xlu0 %4598  ;;  %4888 = vrot.lane.b32.xlu1 %v6198_v27, %s5892_s11 }
  0xa3   : > { %4893 = vrot.lane.b32.xlu0 %v6202_v34, %s5892_s11  ;;  %v6470_v39 = vpop.permute.xlu1 %4608 }
  0xa5   : > { %v6472_v45 = vpop.permute.xlu0 %4613  ;;  %4898 = vrot.lane.b32.xlu1 %v6206_v38, %s5892_s11 }
  0xa7   : > { %4903 = vrot.lane.b32.xlu0 %v6210_v44, %s5892_s11  ;;  %v6478_v56 = vpop.permute.xlu1 %4618 }
  0xa9   : > { %v6480_v57 = vpop.permute.xlu0 %4623  ;;  %4908 = vrot.lane.b32.xlu1 %v4907_v49, %s5892_s11 }
  0xab   : > { %4913 = vrot.lane.b32.xlu0 %v6216_v60, %s5893_s12  ;;  %v6485_v62 = vpop.permute.xlu1 %4628 }
  0xad   : > { %v6487_v63 = vpop.permute.xlu0 %4633  ;;  %4918 = vrot.lane.b32.xlu1 %v6219_v61, %s5893_s12 }
  0xaf   : > { %4923 = vrot.lane.b32.xlu0 %v6233_v31, %s5893_s12  ;;  %v6493_v26 = vpop.permute.xlu1 %4638 }
  0xb1   : > { %v6495_v27 = vpop.permute.xlu0 %4643  ;;  %4928 = vrot.lane.b32.xlu1 %v6237_v32, %s5893_s12 }
  0xb3   : > { %4933 = vrot.lane.b32.xlu0 %v6241_v46, %s5893_s12  ;;  %v6501_v34 = vpop.permute.xlu1 %4648 }
  0xb5   : > { %v6503_v38 = vpop.permute.xlu0 %4653  ;;  %4938 = vrot.lane.b32.xlu1 %v6245_v47, %s5893_s12  ;;  %v581_v47 = vld [vmem:[#allocation2 + $0x182] sm:$0xff] }
  0xb7   : > { %4943 = vrot.lane.b32.xlu0 %v6249_v7, %s5893_s12  ;;  %v6509_v44 = vpop.permute.xlu1 %4658  ;;  %v582_v7 = vld [vmem:[#allocation2 + $0x18a] sm:$0xff] }
  0xb9   : > { %v6511_v60 = vpop.permute.xlu0 %4663  ;;  %4948 = vrot.lane.b32.xlu1 %v6253_v8, %s5893_s12 }
  0xbb   : > { %4953 = vrot.lane.b32.xlu0 %v6257_v42, %s5893_s12  ;;  %v6517_v61 = vpop.permute.xlu1 %4668 }
  0xbd   : > { %v6519_v31 = vpop.permute.xlu0 %4673  ;;  %4958 = vrot.lane.b32.xlu1 %v6261_v43, %s5893_s12  ;;  %v6539_v43 = vpack.i.bf16 %v582_v7, %v581_v47  ;;  %v616_v47 = vld [vmem:[#allocation2 + $0x31] sm:$0xff]  ;;  %v617_v7 = vld [vmem:[#allocation2 + $0x39] sm:$0xff] }
  0xbf   : > { %4963 = vrot.lane.b32.xlu0 %v6265_v59, %s5893_s12  ;;  %v6525_v32 = vpop.permute.xlu1 %4678 }
  0xc1   : > { %v6527_v46 = vpop.permute.xlu0 %4683  ;;  %4968 = vrot.lane.b32.xlu1 %v6269_v0, %s5893_s12 }
  0xc3   : > { %4973 = vrot.lane.b32.xlu0 %v6273_v55, %s5893_s12  ;;  %v6533_v8 = vpop.permute.xlu1 %4688 }
  0xc5   : > { %v6535_v42 = vpop.permute.xlu0 %4693  ;;  %4978 = vrot.lane.b32.xlu1 %v6277_v41, %s5893_s12 }
  0xc7   : > { %4983 = vrot.lane.b32.xlu0 %v6285_v30, %s5893_s12  ;;  %v6543_v59 = vpop.permute.xlu1 %4698 }
  0xc9   : > { %v6545_v0 = vpop.permute.xlu0 %4703  ;;  %4988 = vrot.lane.b32.xlu1 %v6539_v43, %s5893_s12 }
  0xcb   : > { %4993 = vrot.lane.b32.xlu0 %v6303_v48, %s5894_s13  ;;  %v6551_v55 = vpop.permute.xlu1 %4708 }
  0xcd   : > { %v6553_v33 = vpop.permute.xlu0 %4713  ;;  %4998 = vrot.lane.b32.xlu1 %v6308_v58, %s5894_s13 }
  0xcf   : > { %5003 = vrot.lane.b32.xlu0 %v6322_v35, %s5894_s13  ;;  %v6559_v41 = vpop.permute.xlu1 %4718 }
  0xd1   : > { %v6561_v30 = vpop.permute.xlu0 %4723  ;;  %5008 = vrot.lane.b32.xlu1 %v6328_v10, %s5894_s13 }
  0xd3   : > { %5013 = vrot.lane.b32.xlu0 %v6342_v17, %s5894_s13  ;;  %v6567_v48 = vpop.permute.xlu1 %4728 }
  0xd5   : > { %v6569_v37 = vpop.permute.xlu0 %4733  ;;  %5018 = vrot.lane.b32.xlu1 %v6348_v19, %s5894_s13 }
  0xd6   : > { %9008 = vst [vmem:[#allocation48_spill] sm:$0xff] %v6569_v37 }
  0xd7   : > { %5023 = vrot.lane.b32.xlu0 %v6362_v12, %s5894_s13  ;;  %v6575_v35 = vpop.permute.xlu1 %4738 }
  0xd8   : > { %9009 = vst [vmem:[#allocation49_spill] sm:$0xff] %v6575_v35 }
  0xd9   : > { %v6577_v58 = vpop.permute.xlu0 %4743  ;;  %5028 = vrot.lane.b32.xlu1 %v6368_v14, %s5894_s13  ;;  %v615_v14 = vld [vmem:[#allocation2 + $0x1a0] sm:$0xff] }
  0xda   : > { %9010 = vst [vmem:[#allocation50_spill] sm:$0xff] %v6577_v58 }
  0xdb   : > { %5033 = vrot.lane.b32.xlu0 %v6382_v4, %s5894_s13  ;;  %v6583_v17 = vpop.permute.xlu1 %4748  ;;  %v614_v4 = vld [vmem:[#allocation2 + $0x198] sm:$0xff] }
  0xdc   : > { %9011 = vst [vmem:[#allocation51_spill] sm:$0xff] %v6583_v17  ;;  %v621_v17 = vld [vmem:[#allocation2 + $0x69] sm:$0xff] }
  0xdd   : > { %v6585_v10 = vpop.permute.xlu0 %4753  ;;  %5038 = vrot.lane.b32.xlu1 %v6388_v2, %s5894_s13 }
  0xde   : > { %9012 = vst [vmem:[#allocation52_spill] sm:$0xff] %v6585_v10 }
  0xdf   : > { %5043 = vrot.lane.b32.xlu0 %v6402_v6, %s5894_s13  ;;  %v6591_v12 = vpop.permute.xlu1 %4758  ;;  %v5067_v6 = vpack.i.bf16 %v615_v14, %v614_v4  ;;  %v622_v4 = vld [vmem:[#allocation2 + $0x79] sm:$0xff]  ;;  %v623_v14 = vld [vmem:[#allocation2 + $0x81] sm:$0xff] }
  0xe0   : > { %9013 = vst [vmem:[#allocation53_spill] sm:$0xff] %v6591_v12  ;;  %v619_v12 = vld [vmem:[#allocation2 + $0x51] sm:$0xff] }
  0xe1   : > { %v6593_v19 = vpop.permute.xlu0 %4763  ;;  %5048 = vrot.lane.b32.xlu1 %v6408_v5, %s5894_s13  ;;  %v618_v5 = vld [vmem:[#allocation2 + $0x49] sm:$0xff] }
  0xe2   : > { %9014 = vst [vmem:[#allocation54_spill] sm:$0xff] %v6593_v19  ;;  %v5072_v19 = vpack.i.bf16 %v617_v7, %v616_v47 }
  0xe3   : > { %5053 = vrot.lane.b32.xlu0 %v6422_v3, %s5894_s13  ;;  %v6599_v49 = vpop.permute.xlu1 %4768  ;;  %v620_v3 = vld [vmem:[#allocation2 + $0x61] sm:$0xff] }
  0xe4   : > { %9015 = vst [vmem:[#allocation55_spill] sm:$0xff] %v6599_v49 }
  0xe5   : > { %v6601_v2 = vpop.permute.xlu0 %4773  ;;  %5058 = vrot.lane.b32.xlu1 %v6428_v13, %s5894_s13  ;;  %v5077_v13 = vpack.i.bf16 %v619_v12, %v618_v5  ;;  %v5873_v12 = vld [vmem:[%s8848_s1 + $0x8] sm:$0xff]   ;;  %v627_v5 = vld [vmem:[#allocation2 + $0xb1] sm:$0xff] }
  0xe6   : > { %9016 = vst [vmem:[#allocation56_spill] sm:$0xff] %v6601_v2  ;;  %v5872_v2 = vld [vmem:[%s8848_s1 + $0x10] ss:$0 sps:$4 sm:$0x33]  }
  0xe7   : > { %5063 = vrot.lane.b32.xlu0 %v6432_v20, %s5894_s13  ;;  %v6607_v10 = vpop.permute.xlu1 %4778  ;;  %v5082_v20 = vpack.i.bf16 %v621_v17, %v620_v3  ;;  %4573 = vmatprep.subr.msk.bf16.mxu0 %vm2052_vm3, %v5872_v2  ;;  %v2054_v47 = vsel %vm2052_vm3, %v5872_v2, 0  ;;  %v5087_v17 = vpack.i.bf16 %v623_v14, %v622_v4  ;;  %v628_v3 = vld [vmem:[#allocation2 + $0xc1] sm:$0xff]  ;;  %v648_v14 = vld [vmem:[#allocation2 + $0x32] sm:$0xff] }
  0xe8   : > { %9017 = vst [vmem:[#allocation57_spill] sm:$0xff] %v6607_v10  ;;  %v625_v10 = vld [vmem:[#allocation2 + $0x99] sm:$0xff]  ;;  %4498 = vmatpush3.bf16.msra.mxu0 %v2054_v47 }
  0xe9   : > { %v6609_v58 = vpop.permute.xlu0 %4783  ;;  %5068 = vrot.lane.b32.xlu1 %v5067_v6, %s5894_s13  ;;  %v626_v6 = vld [vmem:[#allocation2 + $0xa9] sm:$0xff]  ;;  %4499 = vmatprep.subr.bf16.mxu0 %v5873_v12 }
  0xea   : > { %9018 = vst [vmem:[#allocation58_spill] sm:$0xff] %v6609_v58  ;;  %v624_v58 = vld [vmem:[#allocation2 + $0x91] sm:$0xff] }
  0xeb   : > { %5073 = vrot.lane.b32.xlu0 %v5072_v19, %s5895_s16  ;;  %v6618_v7 = vpop.permute.xlu1 %4788  ;;  %v5092_v19 = vpack.i.bf16 %v625_v10, %v624_v58  ;;  %v630_v10 = vld [vmem:[#allocation2 + $0xd9] sm:$0xff] }
  0xec   : > { %9019 = vst [vmem:[#allocation59_spill] sm:$0xff] %v6618_v7  ;;  %v629_v7 = vld [vmem:[#allocation2 + $0xc9] sm:$0xff]  ;;  %4500 = vmatpush3.bf16.msra.mxu0 %v5873_v12 }
  0xed   : > { %v6620_v49 = vpop.permute.xlu0 %4793  ;;  %5078 = vrot.lane.b32.xlu1 %v5077_v13, %s5895_s16  ;;  %v5097_v13 = vpack.i.bf16 %v627_v5, %v626_v6  ;;  %v5102_v58 = vpack.i.bf16 %v629_v7, %v628_v3  ;;  %v650_v6 = vld [vmem:[#allocation2 + $0x4a] sm:$0xff]  ;;  %v651_v5 = vld [vmem:[#allocation2 + $0x52] sm:$0xff]  ;;  %v652_v7 = vld [vmem:[#allocation2 + $0x62] sm:$0xff] }
  0xee   : > { %9020 = vst [vmem:[#allocation60_spill] sm:$0xff] %v6620_v49  ;;  %v5874_v49 = vld [vmem:[%s8848_s1] sm:$0xff]   ;;  %v653_v3 = vld [vmem:[#allocation2 + $0x6a] sm:$0xff] }
  0xef   : > { %5083 = vrot.lane.b32.xlu0 %v5082_v20, %s5895_s16  ;;  %v6627_v2 = vpop.permute.xlu1 %4798  ;;  %v631_v20 = vld [vmem:[#allocation2 + $0xe1] sm:$0xff]  ;;  %4501 = vmatprep.subr.bf16.mxu0 %v5874_v49 }
  0xf0   : > { %9021 = vst [vmem:[#allocation61_spill] sm:$0xff] %v6627_v2  ;;  %v649_v2 = vld [vmem:[#allocation2 + $0x3a] sm:$0xff]  ;;  %4502 = vmatpush3.bf16.msra.mxu0 %v5874_v49  ;;  %v5122_v49 = vpack.i.bf16 %v653_v3, %v652_v7  ;;  %v661_v7 = vld [vmem:[#allocation2 + $0xca] sm:$0xff] }
  0xf1   : > { %v6629_v47 = vpop.permute.xlu0 %4803  ;;  %5088 = vrot.lane.b32.xlu1 %v5087_v17, %s5895_s16  ;;  %v5112_v17 = vpack.i.bf16 %v649_v2, %v648_v14  ;;  %v656_v2 = vld [vmem:[#allocation2 + $0x92] sm:$0xff] }
  0xf2   : > { %9022 = vst [vmem:[#allocation62_spill] sm:$0xff] %v6629_v47  ;;  %v5107_v47 = vpack.i.bf16 %v631_v20, %v630_v10  ;;  %v655_v10 = vld [vmem:[#allocation2 + $0x82] sm:$0xff] }
  0xf3   : > { %5093 = vrot.lane.b32.xlu0 %v5092_v19, %s5895_s16  ;;  %v6636_v4 = vpop.permute.xlu1 %4808 }
  0xf4   : > { %9023 = vst [vmem:[#allocation63_spill] sm:$0xff] %v6636_v4  ;;  %v5117_v4 = vpack.i.bf16 %v651_v5, %v650_v6  ;;  %v659_v6 = vld [vmem:[#allocation2 + $0xb2] sm:$0xff] }
  0xf5   : > { %v6638_v12 = vpop.permute.xlu0 %4813  ;;  %5098 = vrot.lane.b32.xlu1 %v5097_v13, %s5895_s16  ;;  %v654_v13 = vld [vmem:[#allocation2 + $0x7a] sm:$0xff] }
  0xf6   : > { %9024 = vst [vmem:[#allocation64_spill] sm:$0xff] %v6638_v12  ;;  %v662_v12 = vld [vmem:[#allocation2 + $0xda] sm:$0xff] }
  0xf7   : > { %5103 = vrot.lane.b32.xlu0 %v5102_v58, %s5895_s16  ;;  %v6642_v19 = vpop.permute.xlu1 %4818  ;;  %v657_v58 = vld [vmem:[#allocation2 + $0x9a] sm:$0xff] }
  0xf8   : > { %9025 = vst [vmem:[#allocation65_spill] sm:$0xff] %v6642_v19  ;;  %v5127_v19 = vpack.i.bf16 %v655_v10, %v654_v13  ;;  %v633_v10 = vld [vmem:[#allocation2 + $0xf9] sm:$0xff] }
  0xf9   : > { %v6644_v35 = vpop.permute.xlu0 %4823  ;;  %5108 = vrot.lane.b32.xlu1 %v5107_v47, %s5895_s16  ;;  %v658_v47 = vld [vmem:[#allocation2 + $0xaa] sm:$0xff] }
  0xfa   : > { %9026 = vst [vmem:[#allocation66_spill] sm:$0xff] %v6644_v35  ;;  %v5132_v35 = vpack.i.bf16 %v657_v58, %v656_v2 }
  0xfb   : > { %5113 = vrot.lane.b32.xlu0 %v5112_v17, %s5896_s21  ;;  %v6648_v20 = vpop.permute.xlu1 %4828  ;;  %v660_v17 = vld [vmem:[#allocation2 + $0xc2] sm:$0xff] }
  0xfc   : > { %9027 = vst [vmem:[#allocation67_spill] sm:$0xff] %v6648_v20  ;;  %v5137_v20 = vpack.i.bf16 %v659_v6, %v658_v47  ;;  %v665_v6 = vld [vmem:[#allocation2 + $0xfa] sm:$0xff] }
  0xfd   : > { %v6650_v14 = vpop.permute.xlu0 %4833  ;;  %5118 = vrot.lane.b32.xlu1 %v5117_v4, %s5896_s21  ;;  %v663_v4 = vld [vmem:[#allocation2 + $0xe2] sm:$0xff] }
  0xfe   : > { %9028 = vst [vmem:[#allocation68_spill] sm:$0xff] %v6650_v14  ;;  %v5142_v14 = vpack.i.bf16 %v661_v7, %v660_v17  ;;  %v5147_v58 = vpack.i.bf16 %v663_v4, %v662_v12  ;;  %v637_v4 = vld [vmem:[#allocation2 + $0x129] sm:$0xff] }
  0xff   : > { %5123 = vrot.lane.b32.xlu0 %v5122_v49, %s5896_s21  ;;  %v6654_v5 = vpop.permute.xlu1 %4838  ;;  %v632_v49 = vld [vmem:[#allocation2 + $0xf1] sm:$0xff] }
 0x100   : > { %9029 = vst [vmem:[#allocation69_spill] sm:$0xff] %v6654_v5  ;;  %v634_v5 = vld [vmem:[#allocation2 + $0x109] sm:$0xff] }
 0x101   : > { %v6656_v3 = vpop.permute.xlu0 %4843  ;;  %5128 = vrot.lane.b32.xlu1 %v5127_v19, %s5896_s21  ;;  %v635_v19 = vld [vmem:[#allocation2 + $0x111] sm:$0xff] }
 0x102   : > { %9030 = vst [vmem:[#allocation70_spill] sm:$0xff] %v6656_v3  ;;  %v5152_v3 = vpack.i.bf16 %v633_v10, %v632_v49  ;;  %v5157_v7 = vpack.i.bf16 %v635_v19, %v634_v5  ;;  %v669_v19 = vld [vmem:[#allocation2 + $0x12a] sm:$0xff] }
 0x103   : > { %5133 = vrot.lane.b32.xlu0 %v5132_v35, %s5896_s21  ;;  %v6660_v13 = vpop.permute.xlu1 %4848  ;;  %v664_v35 = vld [vmem:[#allocation2 + $0xf2] sm:$0xff] }
 0x104   : > { %9031 = vst [vmem:[#allocation71_spill] sm:$0xff] %v6660_v13  ;;  %v666_v13 = vld [vmem:[#allocation2 + $0x10a] sm:$0xff] }
 0x105   : > { %v6662_v2 = vpop.permute.xlu0 %4853  ;;  %5138 = vrot.lane.b32.xlu1 %v5137_v20, %s5896_s21  ;;  %v667_v20 = vld [vmem:[#allocation2 + $0x112] sm:$0xff] }
 0x106   : > { %9032 = vst [vmem:[#allocation72_spill] sm:$0xff] %v6662_v2  ;;  %v5162_v2 = vpack.i.bf16 %v665_v6, %v664_v35  ;;  %v5167_v10 = vpack.i.bf16 %v667_v20, %v666_v13  ;;  %v641_v20 = vld [vmem:[#allocation2 + $0x159] sm:$0xff] }
 0x107   : > { %5143 = vrot.lane.b32.xlu0 %v5142_v14, %s5896_s21  ;;  %v6666_v47 = vpop.permute.xlu1 %4858  ;;  %v636_v14 = vld [vmem:[#allocation2 + $0x121] sm:$0xff] }
 0x108   : > { %9033 = vst [vmem:[#allocation73_spill] sm:$0xff] %v6666_v47  ;;  %v638_v47 = vld [vmem:[#allocation2 + $0x139] sm:$0xff] }
 0x109   : > { %v6668_v17 = vpop.permute.xlu0 %4863  ;;  %5148 = vrot.lane.b32.xlu1 %v5147_v58, %s5896_s21  ;;  %v639_v58 = vld [vmem:[#allocation2 + $0x141] sm:$0xff] }
 0x10a   : > { %9034 = vst [vmem:[#allocation74_spill] sm:$0xff] %v6668_v17  ;;  %v5172_v17 = vpack.i.bf16 %v637_v4, %v636_v14  ;;  %v5177_v6 = vpack.i.bf16 %v639_v58, %v638_v47  ;;  %v673_v58 = vld [vmem:[#allocation2 + $0x15a] sm:$0xff] }
 0x10b   : > { %5153 = vrot.lane.b32.xlu0 %v5152_v3, %s5895_s16  ;;  %v6672_v12 = vpop.permute.xlu1 %4868  ;;  %v668_v3 = vld [vmem:[#allocation2 + $0x122] sm:$0xff] }
 0x10c   : > { %9035 = vst [vmem:[#allocation75_spill] sm:$0xff] %v6672_v12  ;;  %v670_v12 = vld [vmem:[#allocation2 + $0x13a] sm:$0xff] }
 0x10d   : > { %v6674_v49 = vpop.permute.xlu0 %4873  ;;  %5158 = vrot.lane.b32.xlu1 %v5157_v7, %s5895_s16  ;;  %v671_v7 = vld [vmem:[#allocation2 + $0x142] sm:$0xff] }
 0x10e   : > { %9036 = vst [vmem:[#allocation76_spill] sm:$0xff] %v6674_v49  ;;  %v5182_v49 = vpack.i.bf16 %v669_v19, %v668_v3  ;;  %v5187_v4 = vpack.i.bf16 %v671_v7, %v670_v12  ;;  %v645_v7 = vld [vmem:[#allocation2 + $0x189] sm:$0xff] }
 0x10f   : > { %5163 = vrot.lane.b32.xlu0 %v5162_v2, %s5896_s21  ;;  %v6678_v5 = vpop.permute.xlu1 %4878  ;;  %v640_v2 = vld [vmem:[#allocation2 + $0x151] sm:$0xff] }
 0x110   : > { %9037 = vst [vmem:[#allocation77_spill] sm:$0xff] %v6678_v5  ;;  %v642_v5 = vld [vmem:[#allocation2 + $0x169] sm:$0xff] }
 0x111   : > { %v6680_v35 = vpop.permute.xlu0 %4883  ;;  %5168 = vrot.lane.b32.xlu1 %v5167_v10, %s5896_s21  ;;  %v643_v10 = vld [vmem:[#allocation2 + $0x171] sm:$0xff] }
 0x112   : > { %9038 = vst [vmem:[#allocation78_spill] sm:$0xff] %v6680_v35  ;;  %v5192_v35 = vpack.i.bf16 %v641_v20, %v640_v2  ;;  %v5197_v19 = vpack.i.bf16 %v643_v10, %v642_v5 }
 0x113   : > { %5173 = vrot.lane.b32.xlu0 %v5172_v17, %s5895_s16  ;;  %v6684_v13 = vpop.permute.xlu1 %4888  ;;  %v672_v17 = vld [vmem:[#allocation2 + $0x152] sm:$0xff] }
 0x114   : > { %9039 = vst [vmem:[#allocation79_spill] sm:$0xff] %v6684_v13  ;;  %v674_v13 = vld [vmem:[#allocation2 + $0x16a] sm:$0xff] }
 0x115   : > { %v6686_v14 = vpop.permute.xlu0 %4893  ;;  %5178 = vrot.lane.b32.xlu1 %v5177_v6, %s5895_s16  ;;  %v675_v6 = vld [vmem:[#allocation2 + $0x172] sm:$0xff] }
 0x116   : > { %9040 = vst [vmem:[#allocation80_spill] sm:$0xff] %v6686_v14  ;;  %v5202_v14 = vpack.i.bf16 %v673_v58, %v672_v17  ;;  %v5207_v20 = vpack.i.bf16 %v675_v6, %v674_v13  ;;  %v4596_v17 = vunpack.i.h.bf16 %v6456_v1  ;;  %v4595_v58 = vunpack.i.l.bf16 %v6456_v1  ;;  %v679_v13 = vld [vmem:[#allocation2 + $0x1a2] sm:$0xff] }
 0x117   : > { %5183 = vrot.lane.b32.xlu0 %v5182_v49, %s5896_s21  ;;  %v6690_v47 = vpop.permute.xlu1 %4898  ;;  %v644_v49 = vld [vmem:[#allocation2 + $0x181] sm:$0xff]  ;;  %v4610_v1 = vunpack.i.l.bf16 %v6470_v39 }
 0x118   : > { %9041 = vst [vmem:[#allocation81_spill] sm:$0xff] %v6690_v47  ;;  %v646_v47 = vld [vmem:[#allocation2 + $0x199] sm:$0xff]  ;;  %v392_v6 = vld [vmem:[#allocation2 + $0x8] sm:$0xff] }
 0x119   : > { %v6692_v3 = vpop.permute.xlu0 %4903  ;;  %5188 = vrot.lane.b32.xlu1 %v5187_v4, %s5896_s21  ;;  %v647_v4 = vld [vmem:[#allocation2 + $0x1a1] sm:$0xff]  ;;  %v6725_v37 = vsel %vm280_vm0, %v392_v6, %v4596_v17  ;;  %v4650_v6 = vunpack.i.l.bf16 %v6501_v34 }
 0x11a   : > { %9042 = vst [vmem:[#allocation82_spill] sm:$0xff] %v6692_v3  ;;  %v5212_v3 = vpack.i.bf16 %v645_v7, %v644_v49  ;;  %v5217_v10 = vpack.i.bf16 %v647_v4, %v646_v47  ;;  %v4606_v49 = vunpack.i.h.bf16 %v6462_v15  ;;  %v4605_v7 = vunpack.i.l.bf16 %v6462_v15 }
 0x11b   : > { %5193 = vrot.lane.b32.xlu0 %v5192_v35, %s5895_s16  ;;  %v6696_v12 = vpop.permute.xlu1 %4908  ;;  %v4601_v47 = vunpack.i.h.bf16 %v6464_v29 }
 0x11c   : > { %9043 = vst [vmem:[#allocation83_spill] sm:$0xff] %v6696_v12  ;;  %v4600_v12 = vunpack.i.l.bf16 %v6464_v29 }
 0x11d   : > { %v6698_v2 = vpop.permute.xlu0 %4913  ;;  %5198 = vrot.lane.b32.xlu1 %v5197_v19, %s5895_s16  ;;  %v678_v19 = vld [vmem:[#allocation2 + $0x19a] sm:$0xff] }
 0x11e   : > { %9044 = vst [vmem:[#allocation84_spill] sm:$0xff] %v6698_v2  ;;  %v4621_v2 = vunpack.i.h.bf16 %v6478_v56  ;;  %v5227_v15 = vpack.i.bf16 %v679_v13, %v678_v19  ;;  %v6744_v17 = vsel %vm280_vm0, %v6279_v53, %v4600_v12  ;;  %v6751_v19 = vsel %vm280_vm0, %v6281_v54, %v4601_v47  ;;  %v9049_v47 = vld [vmem:[#allocation37_spill] sm:$0xff] }
 0x11f   : > { %5203 = vrot.lane.b32.xlu0 %v5202_v14, %s5896_s21  ;;  %v6702_v5 = vpop.permute.xlu1 %4918  ;;  %v391_v14 = vld [vmem:[#allocation2] sm:$0xff]  ;;  %v4630_v12 = vunpack.i.l.bf16 %v6485_v62  ;;  %v4646_v13 = vunpack.i.h.bf16 %v6495_v27 }
 0x120   : > { %9045 = vst [vmem:[#allocation85_spill] sm:$0xff] %v6702_v5  ;;  %v4615_v5 = vunpack.i.l.bf16 %v6472_v45  ;;  %v6728_v29 = vsel %vm280_vm0, %v391_v14, %v4595_v58  ;;  %v4625_v58 = vunpack.i.l.bf16 %v6480_v57  ;;  %v6773_v54 = vsel %vm280_vm0, %v6316_v24, %v4621_v2 }
 0x121   : > { %v6704_v35 = vpop.permute.xlu0 %4923  ;;  %5208 = vrot.lane.b32.xlu1 %v5207_v20, %s5896_s21  ;;  %v4611_v20 = vunpack.i.h.bf16 %v6470_v39  ;;  %v4626_v39 = vunpack.i.h.bf16 %v6480_v57  ;;  %v4640_v2 = vunpack.i.l.bf16 %v6493_v26 }
 0x122   : > { %9046 = vst [vmem:[#allocation86_spill] sm:$0xff] %v6704_v35  ;;  %v6769_v57 = vsel %vm280_vm0, %v6310_v52, %v4615_v5  ;;  %v4636_v52 = vunpack.i.h.bf16 %v6487_v63  ;;  %v4635_v5 = vunpack.i.l.bf16 %v6487_v63  ;;  %v6790_v24 = vsel %vm280_vm0, %v6330_v21, %v4625_v58  ;;  %v9052_v58 = vld [vmem:[#allocation38_spill] sm:$0xff] }
 0x123   : > { %5213 = vrot.lane.b32.xlu0 %v5212_v3, %s5895_s16  ;;  %v6713_v35 = vpop.permute.xlu1 %4928  ;;  %v4616_v3 = vunpack.i.h.bf16 %v6472_v45  ;;  %v6736_v45 = vsel %vm280_vm0, %v6291_v40, %v4605_v7  ;;  %v6755_v40 = vsel %vm280_vm0, %v6297_v50, %v4611_v20  ;;  %v4631_v50 = vunpack.i.h.bf16 %v6485_v62 }
 0x124   : > { %9047 = vst [vmem:[#allocation87_spill] sm:$0xff] %v6713_v35  ;;  %v4620_v35 = vunpack.i.l.bf16 %v6478_v56  ;;  %v4641_v62 = vunpack.i.h.bf16 %v6493_v26  ;;  %v4656_v63 = vunpack.i.h.bf16 %v6503_v38  ;;  %v9048_v26 = vld [vmem:[#allocation35_spill] sm:$0xff]  ;;  %v4655_v7 = vunpack.i.l.bf16 %v6503_v38 }
 0x125   : > { %v6719_v4 = vpop.permute.xlu0 %4933  ;;  %5218 = vrot.lane.b32.xlu1 %v5217_v10, %s5895_s16  ;;  %v6740_v10 = vsel %vm280_vm0, %v6293_v51, %v4606_v49  ;;  %v6759_v51 = vsel %vm280_vm0, %v6295_v28, %v4610_v1  ;;  %v6763_v53 = vsel %vm280_vm0, %v6312_v25, %v4616_v3  ;;  %v6784_v28 = vsel %vm280_vm0, %v6332_v23, %v4626_v39 }
 0x126   : > { %v6780_v25 = vsel %vm280_vm0, %v6314_v36, %v4620_v35  ;;  %v4645_v23 = vunpack.i.l.bf16 %v6495_v27  ;;  %v4651_v35 = vunpack.i.h.bf16 %v6501_v34  ;;  %v6805_v21 = vsel %vm280_vm0, %v6336_v22, %v4631_v50  ;;  %v9050_v34 = vld [vmem:[#allocation36_spill] sm:$0xff]  ;;  %v9053_v50 = vld [vmem:[#allocation41_spill] sm:$0xff] }
 0x127   : > { %5223 = vrot.lane.b32.xlu0 %v6539_v43, %s5896_s21  ;;  %v6747_v56 = vpop.permute.xlu1 %4938  ;;  %v6809_v49 = vsel %vm280_vm0, %v9048_v26, %v4630_v12  ;;  %v4661_v27 = vunpack.i.h.bf16 %v6509_v44  ;;  %v6815_v20 = vsel %vm280_vm0, %v9049_v47, %v4636_v52  ;;  %v6819_v1 = vsel %vm280_vm0, %v9050_v34, %v4635_v5  ;;  %v9054_v26 = vld [vmem:[#allocation40_spill] sm:$0xff]  ;;  %v9055_v47 = vld [vmem:[#allocation43_spill] sm:$0xff]  ;;  %v9056_v34 = vld [vmem:[#allocation42_spill] sm:$0xff] }
 0x128   : > { %v4660_v3 = vunpack.i.l.bf16 %v6509_v44  ;;  %v4666_v22 = vunpack.i.h.bf16 %v6511_v60  ;;  %v6829_v38 = vsel %vm280_vm0, %v9052_v58, %v4640_v2  ;;  %v6833_v12 = vsel %vm280_vm0, %v9053_v50, %v4646_v13 }
 0x129   : > { %v6765_v43 = vpop.permute.xlu0 %4943  ;;  %5228 = vrot.lane.b32.xlu1 %v5227_v15, %s5896_s21  ;;  %v9051_v15 = vld [vmem:[#allocation39_spill] sm:$0xff]  ;;  %v4665_v52 = vunpack.i.l.bf16 %v6511_v60  ;;  %v6840_v44 = vsel %vm280_vm0, %v9054_v26, %v4645_v23  ;;  %v6848_v2 = vsel %vm280_vm0, %v9056_v34, %v4650_v6  ;;  %v9059_v60 = vld [vmem:[#allocation44_spill] sm:$0xff]  ;;  %v9061_v6 = vld [vmem:[#allocation46_spill] sm:$0xff] }
 0x12a   : > { %v6825_v39 = vsel %vm280_vm0, %v9051_v15, %v4641_v62  ;;  %v6844_v62 = vsel %vm280_vm0, %v9055_v47, %v4651_v35  ;;  %v9057_v15 = vld [vmem:[#allocation45_spill] sm:$0xff]  ;;  %v6858_v50 = vsel %vm280_vm0, %v9059_v60, %v4655_v7  ;;  %v9060_v23 = vld [vmem:[#allocation47_spill] sm:$0xff]  ;;  %v4671_v35 = vunpack.i.h.bf16 %v6517_v61 }
 0x12b   : > { %v6795_v36 = vpop.permute.xlu1 %4948  ;;  %v6852_v13 = vsel %vm280_vm0, %v9057_v15, %v4656_v63  ;;  %v6862_v26 = vsel %vm280_vm0, %v9060_v23, %v4661_v27  ;;  %v4670_v47 = vunpack.i.l.bf16 %v6517_v61  ;;  %v6868_v34 = vsel %vm280_vm0, %v9061_v6, %v4660_v3 }
 0x12c   : > { %v6872_v63 = vsel %vm280_vm0, %v6412_v11, %v4666_v22  ;;  %v4676_v15 = vunpack.i.h.bf16 %v6519_v31  ;;  %v4675_v7 = vunpack.i.l.bf16 %v6519_v31  ;;  %v6878_v27 = vsel %vm280_vm0, %v6410_v9, %v4665_v52 }
 0x12d   : > { %v6801_v14 = vpop.permute.xlu0 %4953  ;;  %v4681_v60 = vunpack.i.h.bf16 %v6525_v32  ;;  %v4680_v61 = vunpack.i.l.bf16 %v6525_v32  ;;  %v4686_v23 = vunpack.i.h.bf16 %v6527_v46  ;;  %v4685_v6 = vunpack.i.l.bf16 %v6527_v46 }
 0x12e   : > { %v4691_v11 = vunpack.i.h.bf16 %v6533_v8  ;;  %v4690_v22 = vunpack.i.l.bf16 %v6533_v8  ;;  %v4695_v31 = vunpack.i.l.bf16 %v6535_v42  ;;  %v6893_v9 = vsel %vm280_vm0, %v6416_v18, %v4671_v35 }
 0x12f   : > { %v6836_v5 = vpop.permute.xlu1 %4958  ;;  %v6897_v32 = vsel %vm280_vm0, %v6414_v16, %v4670_v47  ;;  %v4696_v52 = vunpack.i.h.bf16 %v6535_v42  ;;  %v4701_v46 = vunpack.i.h.bf16 %v6543_v59  ;;  %v6907_v8 = vsel %vm1736_vm4, %v6728_v29, %v4675_v7 }
 0x130   : > { %v4705_v18 = vunpack.i.l.bf16 %v6545_v0  ;;  %v6913_v16 = vsel %vm1736_vm4, %v6744_v17, %v4680_v61  ;;  %v6917_v42 = vsel %vm1736_vm4, %v6751_v19, %v4681_v60  ;;  %v4706_v35 = vunpack.i.h.bf16 %v6545_v0 }
 0x131   : > { %v6854_v58 = vpop.permute.xlu0 %4963  ;;  %v6932_v17 = vsel %vm1736_vm4, %v6755_v40, %v4691_v11  ;;  %v6936_v19 = vsel %vm1736_vm4, %v6759_v51, %v4690_v22  ;;  %v6946_v0 = vsel %vm1736_vm4, %v6763_v53, %v4696_v52  ;;  %v4711_v40 = vunpack.i.h.bf16 %v6551_v55 }
 0x132   : > { %9058 = vst [vmem:[#allocation35_spill] sm:$0xff] %v6854_v58  ;;  %v4716_v7 = vunpack.i.h.bf16 %v6553_v33  ;;  %v4715_v53 = vunpack.i.l.bf16 %v6553_v33  ;;  %v4721_v60 = vunpack.i.h.bf16 %v6559_v41  ;;  %v4725_v61 = vunpack.i.l.bf16 %v6561_v30  ;;  %v9067_v33 = vld [vmem:[#allocation48_spill] sm:$0xff] }
 0x133   : > { %v6883_v3 = vpop.permute.xlu1 %4968  ;;  %v4736_v22 = vunpack.i.h.bf16 %v9067_v33 }
 0x134   : > { %9062 = vst [vmem:[#allocation37_spill] sm:$0xff] %v6883_v3  ;;  %v6903_v3 = vsel %vm1736_vm4, %v6725_v37, %v4676_v15  ;;  %v6921_v37 = vsel %vm1736_vm4, %v6740_v10, %v4686_v23  ;;  %v6940_v10 = vsel %vm1736_vm4, %v6769_v57, %v4695_v31  ;;  %v4710_v15 = vunpack.i.l.bf16 %v6551_v55  ;;  %v9068_v31 = vld [vmem:[#allocation49_spill] sm:$0xff] }
 0x135   : > { %v6889_v58 = vpop.permute.xlu0 %4973  ;;  %v6960_v57 = vsel %vm1736_vm4, %v6790_v24, %v4705_v18  ;;  %v4720_v55 = vunpack.i.l.bf16 %v6559_v41  ;;  %v4726_v24 = vunpack.i.h.bf16 %v6561_v30  ;;  %v4730_v23 = vunpack.i.l.bf16 %v6567_v48 }
 0x136   : > { %9063 = vst [vmem:[#allocation36_spill] sm:$0xff] %v6889_v58  ;;  %v4700_v58 = vunpack.i.l.bf16 %v6543_v59  ;;  %v6928_v59 = vsel %vm1736_vm4, %v6736_v45, %v4685_v6  ;;  %v6950_v45 = vsel %vm1736_vm4, %v6773_v54, %v4701_v46  ;;  %v6966_v54 = vsel %vm1736_vm4, %v6784_v28, %v4706_v35 }
 0x137   : > { %v6924_v29 = vpop.permute.xlu1 %4978  ;;  %v4735_v6 = vunpack.i.l.bf16 %v9067_v33  ;;  %v6981_v28 = vsel %vm1736_vm4, %v6805_v21, %v4711_v40  ;;  %v6985_v41 = vsel %vm1736_vm4, %v6809_v49, %v4710_v15  ;;  %v4741_v30 = vunpack.i.h.bf16 %v9068_v31  ;;  %v9069_v21 = vld [vmem:[#allocation50_spill] sm:$0xff] }
 0x138   : > { %9064 = vst [vmem:[#allocation39_spill] sm:$0xff] %v6924_v29  ;;  %v6956_v51 = vsel %vm1736_vm4, %v6780_v25, %v4700_v58  ;;  %v4731_v58 = vunpack.i.h.bf16 %v6567_v48  ;;  %v6991_v52 = vsel %vm1736_vm4, %v6819_v1, %v4715_v53  ;;  %v6995_v48 = vsel %vm1736_vm4, %v6815_v20, %v4716_v7 }
 0x139   : > { %v6942_v47 = vpop.permute.xlu0 %4983  ;;  %v4740_v46 = vunpack.i.l.bf16 %v9068_v31  ;;  %v4745_v18 = vunpack.i.l.bf16 %v9069_v21  ;;  %v7001_v49 = vsel %vm1736_vm4, %v6825_v39, %v4721_v60  ;;  %v7005_v35 = vsel %vm1736_vm4, %v6829_v38, %v4720_v55 }
 0x13a   : > { %9065 = vst [vmem:[#allocation38_spill] sm:$0xff] %v6942_v47  ;;  %v7009_v1 = vsel %vm1736_vm4, %v6840_v44, %v4725_v61  ;;  %v4746_v40 = vunpack.i.h.bf16 %v9069_v21  ;;  %v7016_v15 = vsel %vm1736_vm4, %v6833_v12, %v4726_v24  ;;  %v7020_v39 = vsel %vm1736_vm4, %v6844_v62, %v4731_v58  ;;  %v9070_v62 = vld [vmem:[#allocation51_spill] sm:$0xff]  ;;  %v9071_v61 = vld [vmem:[#allocation52_spill] sm:$0xff]  ;;  %v9072_v58 = vld [vmem:[#allocation53_spill] sm:$0xff] }
 0x13b   : > { %v6971_v25 = vpop.permute.xlu1 %4988  ;;  %v7024_v38 = vsel %vm1736_vm4, %v6848_v2, %v4730_v23  ;;  %v7028_v44 = vsel %vm1736_vm4, %v6858_v50, %v4735_v6  ;;  %v7034_v53 = vsel %vm1736_vm4, %v6852_v13, %v4736_v22  ;;  %v7038_v12 = vsel %vm1736_vm4, %v6862_v26, %v4741_v30  ;;  %v9073_v6 = vld [vmem:[#allocation54_spill] sm:$0xff]  ;;  %v9075_v21 = vld [vmem:[#allocation56_spill] sm:$0xff] }
 0x13c   : > { %9066 = vst [vmem:[#allocation41_spill] sm:$0xff] %v6971_v25  ;;  %v4751_v60 = vunpack.i.h.bf16 %v9070_v62  ;;  %v4750_v55 = vunpack.i.l.bf16 %v9070_v62  ;;  %v7044_v2 = vsel %vm1736_vm4, %v6868_v34, %v4740_v46  ;;  %v7048_v50 = vsel %vm1736_vm4, %v6878_v27, %v4745_v18  ;;  %v9074_v27 = vld [vmem:[#allocation55_spill] sm:$0xff] }
 0x13d   : > { %v6977_v11 = vpop.permute.xlu0 %4993  ;;  %v4756_v24 = vunpack.i.h.bf16 %v9071_v61  ;;  %v4755_v13 = vunpack.i.l.bf16 %v9071_v61  ;;  %v7054_v26 = vsel %vm1736_vm4, %v6872_v63, %v4746_v40  ;;  %v4761_v23 = vunpack.i.h.bf16 %v9072_v58 }
 0x13e   : > { %v4760_v33 = vunpack.i.l.bf16 %v9072_v58  ;;  %v4765_v22 = vunpack.i.l.bf16 %v9073_v6  ;;  %v4766_v31 = vunpack.i.h.bf16 %v9073_v6  ;;  %v4771_v30 = vunpack.i.h.bf16 %v9074_v27  ;;  %v9078_v58 = vld [vmem:[#allocation57_spill] sm:$0xff] }
 0x13f   : > { %v7012_v20 = vpop.permute.xlu1 %4998  ;;  %v4770_v46 = vunpack.i.l.bf16 %v9074_v27  ;;  %v4775_v18 = vunpack.i.l.bf16 %v9075_v21  ;;  %v7069_v63 = vsel %vm1736_vm4, %v6893_v9, %v4751_v60  ;;  %v7073_v40 = vsel %vm1736_vm4, %v6897_v32, %v4750_v55  ;;  %v9079_v9 = vld [vmem:[#allocation58_spill] sm:$0xff] }
 0x140   : > { %9076 = vst [vmem:[#allocation40_spill] sm:$0xff] %v7069_v63  ;;  %9077 = vst [vmem:[#allocation43_spill] sm:$0xff] %v7073_v40  ;;  %v4776_v61 = vunpack.i.h.bf16 %v9075_v21  ;;  %v4780_v6 = vunpack.i.l.bf16 %v9078_v58  ;;  %v7079_v25 = vsel %vm1769_vm5, %v6907_v8, %v4755_v13  ;;  %v7083_v27 = vsel %vm1769_vm5, %v6903_v3, %v4756_v24  ;;  %v9082_v21 = vld [vmem:[#allocation61_spill] sm:$0xff] }
 0x141   : > { %v7030_v7 = vpop.permute.xlu0 %5003  ;;  %v4781_v47 = vunpack.i.h.bf16 %v9078_v58  ;;  %v4785_v60 = vunpack.i.l.bf16 %v9079_v9  ;;  %v7089_v32 = vsel %vm1769_vm5, %v6913_v16, %v4760_v33  ;;  %v7093_v55 = vsel %vm1769_vm5, %v6917_v42, %v4761_v23  ;;  %v9083_v58 = vld [vmem:[#allocation62_spill] sm:$0xff]  ;;  %v9087_v40 = vld [vmem:[#allocation65_spill] sm:$0xff] }
 0x142   : > { %v7097_v8 = vsel %vm1769_vm5, %v6928_v59, %v4765_v22  ;;  %v4786_v13 = vunpack.i.h.bf16 %v9079_v9  ;;  %v7104_v24 = vsel %vm1769_vm5, %v6921_v37, %v4766_v31  ;;  %v7108_v16 = vsel %vm1769_vm5, %v6936_v19, %v4770_v46  ;;  %v9080_v19 = vld [vmem:[#allocation59_spill] sm:$0xff] }
 0x143   : > { %v7059_v34 = vpop.permute.xlu1 %5008  ;;  %v7112_v42 = vsel %vm1769_vm5, %v6932_v17, %v4771_v30  ;;  %v7116_v59 = vsel %vm1769_vm5, %v6940_v10, %v4775_v18  ;;  %v7122_v33 = vsel %vm1769_vm5, %v6946_v0, %v4776_v61  ;;  %v7126_v37 = vsel %vm1769_vm5, %v6956_v51, %v4780_v6  ;;  %v9081_v30 = vld [vmem:[#allocation60_spill] sm:$0xff]  ;;  %v9084_v6 = vld [vmem:[#allocation63_spill] sm:$0xff] }
 0x144   : > { %v4791_v22 = vunpack.i.h.bf16 %v9080_v19  ;;  %v4790_v31 = vunpack.i.l.bf16 %v9080_v19  ;;  %v7132_v17 = vsel %vm1769_vm5, %v6950_v45, %v4781_v47  ;;  %v7136_v10 = vsel %vm1769_vm5, %v6960_v57, %v4785_v60  ;;  %v9085_v19 = vld [vmem:[#allocation64_spill] sm:$0xff] }
 0x145   : > { %v7065_v62 = vpop.permute.xlu0 %5013  ;;  %v4796_v46 = vunpack.i.h.bf16 %v9081_v30  ;;  %v4795_v0 = vunpack.i.l.bf16 %v9081_v30  ;;  %v7142_v51 = vsel %vm1769_vm5, %v6966_v54, %v4786_v13  ;;  %v4801_v18 = vunpack.i.h.bf16 %v9082_v21 }
 0x146   : > { %v4800_v61 = vunpack.i.l.bf16 %v9082_v21  ;;  %v4805_v47 = vunpack.i.l.bf16 %v9083_v58  ;;  %v4806_v57 = vunpack.i.h.bf16 %v9083_v58  ;;  %v4811_v9 = vunpack.i.h.bf16 %v9084_v6 }
 0x147   : > { %v7100_v3 = vpop.permute.xlu1 %5018  ;;  %v4810_v60 = vunpack.i.l.bf16 %v9084_v6  ;;  %v4815_v30 = vunpack.i.l.bf16 %v9085_v19  ;;  %v7157_v54 = vsel %vm1769_vm5, %v6985_v41, %v4790_v31  ;;  %v7161_v13 = vsel %vm1769_vm5, %v6981_v28, %v4791_v22  ;;  %v9088_v41 = vld [vmem:[#allocation66_spill] sm:$0xff] }
 0x148   : > { %v4816_v21 = vunpack.i.h.bf16 %v9085_v19  ;;  %v4820_v58 = vunpack.i.l.bf16 %v9087_v40  ;;  %v7167_v29 = vsel %vm1769_vm5, %v6991_v52, %v4795_v0  ;;  %v7171_v6 = vsel %vm1769_vm5, %v6995_v48, %v4796_v46 }
 0x149   : > { %v7118_v23 = vpop.permute.xlu0 %5023  ;;  %v4825_v31 = vunpack.i.l.bf16 %v9088_v41  ;;  %v7177_v28 = vsel %vm1769_vm5, %v7005_v35, %v4800_v61  ;;  %v7181_v22 = vsel %vm1769_vm5, %v7001_v49, %v4801_v18  ;;  %v7185_v52 = vsel %vm1769_vm5, %v7009_v1, %v4805_v47 }
 0x14a   : > { %v4826_v0 = vunpack.i.h.bf16 %v9088_v41  ;;  %v7196_v35 = vsel %vm1769_vm5, %v7024_v38, %v4810_v60  ;;  %v7200_v49 = vsel %vm1769_vm5, %v7020_v39, %v4811_v9  ;;  %v7204_v1 = vsel %vm1769_vm5, %v7028_v44, %v4815_v30  ;;  %v9090_v38 = vld [vmem:[#allocation68_spill] sm:$0xff]  ;;  %v9092_v60 = vld [vmem:[#allocation70_spill] sm:$0xff] }
 0x14b   : > { %v7147_v45 = vpop.permute.xlu1 %5028  ;;  %v7210_v18 = vsel %vm1769_vm5, %v7034_v53, %v4816_v21  ;;  %v4836_v61 = vunpack.i.h.bf16 %v9090_v38  ;;  %v4835_v47 = vunpack.i.l.bf16 %v9090_v38  ;;  %v7224_v44 = vsel %vm1769_vm5, %v7048_v50, %v4825_v31  ;;  %v9093_v21 = vld [vmem:[#allocation71_spill] sm:$0xff]  ;;  %v9096_v38 = vld [vmem:[#allocation72_spill] sm:$0xff] }
 0x14c   : > { %v4846_v19 = vunpack.i.h.bf16 %v9092_v60  ;;  %v4845_v30 = vunpack.i.l.bf16 %v9092_v60  ;;  %v4851_v31 = vunpack.i.h.bf16 %v9093_v21  ;;  %v4856_v60 = vunpack.i.h.bf16 %v9096_v38 }
 0x14d   : > { %v7153_v63 = vpop.permute.xlu0 %5033 }
 0x14e   : > { %9086 = vst [vmem:[#allocation42_spill] sm:$0xff] %v7153_v63  ;;  %v4821_v63 = vunpack.i.h.bf16 %v9087_v40  ;;  %v7192_v40 = vsel %vm1769_vm5, %v7016_v15, %v4806_v57  ;;  %v7214_v15 = vsel %vm1769_vm5, %v7044_v2, %v4820_v58  ;;  %v9091_v57 = vld [vmem:[#allocation69_spill] sm:$0xff]  ;;  %v7230_v2 = vsel %vm1769_vm5, %v7054_v26, %v4826_v0 }
 0x14f   : > { %v7188_v48 = vpop.permute.xlu1 %5038  ;;  %v4841_v9 = vunpack.i.h.bf16 %v9091_v57  ;;  %v4840_v53 = vunpack.i.l.bf16 %v9091_v57  ;;  %v4850_v58 = vunpack.i.l.bf16 %v9093_v21  ;;  %v4855_v57 = vunpack.i.l.bf16 %v9096_v38 }
 0x150   : > { %v7220_v39 = vsel %vm1769_vm5, %v7038_v12, %v4821_v63  ;;  %v7245_v26 = vsel %vm1802_vm6, %v7079_v25, %v4835_v47  ;;  %v7249_v0 = vsel %vm1802_vm6, %v7083_v27, %v4836_v61  ;;  %v9099_v25 = vld [vmem:[#allocation74_spill] sm:$0xff]  ;;  %v7265_v27 = vsel %vm1802_vm6, %v7097_v8, %v4845_v30  ;;  %v9101_v30 = vld [vmem:[#allocation75_spill] sm:$0xff] }
 0x151   : > { %v7206_v46 = vpop.permute.xlu0 %5043  ;;  %v7255_v50 = vsel %vm1802_vm6, %v7089_v32, %v4840_v53  ;;  %v7259_v21 = vsel %vm1802_vm6, %v7093_v55, %v4841_v9  ;;  %v4865_v47 = vunpack.i.l.bf16 %v9099_v25  ;;  %v7269_v61 = vsel %vm1802_vm6, %v7104_v24, %v4846_v19 }
 0x152   : > { %9089 = vst [vmem:[#allocation45_spill] sm:$0xff] %v7206_v46  ;;  %v7273_v32 = vsel %vm1802_vm6, %v7108_v16, %v4850_v58  ;;  %v4866_v53 = vunpack.i.h.bf16 %v9099_v25  ;;  %v7280_v9 = vsel %vm1802_vm6, %v7112_v42, %v4851_v31  ;;  %v7284_v8 = vsel %vm1802_vm6, %v7116_v59, %v4855_v57  ;;  %v9103_v42 = vld [vmem:[#allocation76_spill] sm:$0xff]  ;;  %v9104_v25 = vld [vmem:[#allocation77_spill] sm:$0xff] }
 0x153   : > { %v7235_v12 = vpop.permute.xlu1 %5048  ;;  %v4870_v24 = vunpack.i.l.bf16 %v9101_v30  ;;  %v7292_v16 = vsel %vm1802_vm6, %v7122_v33, %v4856_v60  ;;  %v4876_v31 = vunpack.i.h.bf16 %v9103_v42  ;;  %v4875_v38 = vunpack.i.l.bf16 %v9103_v42 }
 0x154   : > { %9094 = vst [vmem:[#allocation44_spill] sm:$0xff] %v7235_v12  ;;  %v9098_v12 = vld [vmem:[#allocation73_spill] sm:$0xff]  ;;  %v7306_v57 = vsel %vm1802_vm6, %v7136_v10, %v4865_v47  ;;  %v4881_v33 = vunpack.i.h.bf16 %v9104_v25  ;;  %v4880_v60 = vunpack.i.l.bf16 %v9104_v25 }
 0x155   : > { %v7241_v46 = vpop.permute.xlu0 %5053  ;;  %v4860_v41 = vunpack.i.l.bf16 %v9098_v12  ;;  %v4861_v63 = vunpack.i.h.bf16 %v9098_v12  ;;  %v4871_v12 = vunpack.i.h.bf16 %v9101_v30  ;;  %v7321_v10 = vsel %vm1802_vm6, %v7157_v54, %v4870_v24  ;;  %v9109_v24 = vld [vmem:[#allocation81_spill] sm:$0xff] }
 0x156   : > { %9097 = vst [vmem:[#allocation47_spill] sm:$0xff] %v7241_v46  ;;  %v4900_v46 = vunpack.i.l.bf16 %v9109_v24 }
 0x157   : > { %v7276_v55 = vpop.permute.xlu1 %5058  ;;  %v7296_v58 = vsel %vm1802_vm6, %v7126_v37, %v4860_v41  ;;  %v7302_v59 = vsel %vm1802_vm6, %v7132_v17, %v4861_v63  ;;  %v7312_v37 = vsel %vm1802_vm6, %v7142_v51, %v4866_v53  ;;  %v9105_v41 = vld [vmem:[#allocation78_spill] sm:$0xff]  ;;  %v7325_v63 = vsel %vm1802_vm6, %v7161_v13, %v4871_v12  ;;  %v9108_v51 = vld [vmem:[#allocation80_spill] sm:$0xff] }
 0x158   : > { %9100 = vst [vmem:[#allocation46_spill] sm:$0xff] %v7276_v55  ;;  %v4886_v30 = vunpack.i.h.bf16 %v9105_v41  ;;  %v4885_v42 = vunpack.i.l.bf16 %v9105_v41  ;;  %v4895_v53 = vunpack.i.l.bf16 %v9108_v51  ;;  %v7333_v41 = vsel %vm1802_vm6, %v7167_v29, %v4875_v38  ;;  %v9110_v29 = vld [vmem:[#allocation82_spill] sm:$0xff] }
 0x159   : > { %v7288_v19 = vpop.permute.xlu0 %5063  ;;  %v4896_v54 = vunpack.i.h.bf16 %v9108_v51  ;;  %v7343_v13 = vsel %vm1802_vm6, %v7177_v28, %v4880_v60  ;;  %v7347_v12 = vsel %vm1802_vm6, %v7181_v22, %v4881_v33  ;;  %v4905_v38 = vunpack.i.l.bf16 %v9110_v29 }
 0x15a   : > { %9102 = vst [vmem:[#allocation48_spill] sm:$0xff] %v7288_v19  ;;  %v9106_v19 = vld [vmem:[#allocation79_spill] sm:$0xff]  ;;  %v4906_v60 = vunpack.i.h.bf16 %v9110_v29  ;;  %v9117_v29 = vld [vmem:[#allocation86_spill] sm:$0xff] }
 0x15b   : > { %v4890_v55 = vunpack.i.l.bf16 %v9106_v19  ;;  %v7317_v17 = vpop.permute.xlu1 %5068  ;;  %v4891_v47 = vunpack.i.h.bf16 %v9106_v19  ;;  %v4901_v19 = vunpack.i.h.bf16 %v9109_v24 }
 0x15c   : > { %9107 = vst [vmem:[#allocation49_spill] sm:$0xff] %v7317_v17  ;;  %v7337_v17 = vsel %vm1802_vm6, %v7171_v6, %v4876_v31  ;;  %v7353_v6 = vsel %vm1802_vm6, %v7185_v52, %v4885_v42  ;;  %v7357_v31 = vsel %vm1802_vm6, %v7192_v40, %v4886_v30  ;;  %v7372_v52 = vsel %vm1802_vm6, %v7204_v1, %v4895_v53  ;;  %v9111_v42 = vld [vmem:[#allocation84_spill] sm:$0xff] }
 0x15d   : > { %v7329_v25 = vpop.permute.xlu0 %5073  ;;  %v7361_v28 = vsel %vm1802_vm6, %v7196_v35, %v4890_v55  ;;  %v7368_v33 = vsel %vm1802_vm6, %v7200_v49, %v4891_v47  ;;  %v4916_v40 = vunpack.i.h.bf16 %v9111_v42  ;;  %v4915_v30 = vunpack.i.l.bf16 %v9111_v42  ;;  %v9114_v49 = vld [vmem:[#allocation85_spill] sm:$0xff] }
 0x15e   : > { %v7380_v35 = vsel %vm1802_vm6, %v7210_v18, %v4896_v54  ;;  %v7384_v55 = vsel %vm1802_vm6, %v7214_v15, %v4900_v46  ;;  %v4921_v47 = vunpack.i.h.bf16 %v9114_v49  ;;  %v4920_v24 = vunpack.i.l.bf16 %v9114_v49 }
 0x15f   : > { %v7364_v22 = vpop.permute.xlu1 %5078  ;;  %9112 = vst [vmem:[#allocation50_spill] sm:$0xff] %v7380_v35  ;;  %9113 = vst [vmem:[#allocation51_spill] sm:$0xff] %v7384_v55  ;;  %v7390_v1 = vsel %vm1802_vm6, %v7220_v39, %v4901_v19  ;;  %v7394_v53 = vsel %vm1802_vm6, %v7224_v44, %v4905_v38  ;;  %v4926_v42 = vunpack.i.h.bf16 %v9117_v29  ;;  %v4925_v18 = vunpack.i.l.bf16 %v9117_v29  ;;  %v9120_v55 = vld [vmem:[#allocation87_spill] sm:$0xff] }
 0x160   : > { %9115 = vst [vmem:[#allocation52_spill] sm:$0xff] %v7390_v1  ;;  %9116 = vst [vmem:[#allocation53_spill] sm:$0xff] %v7394_v53  ;;  %v7400_v46 = vsel %vm1802_vm6, %v7230_v2, %v4906_v60  ;;  %v4930_v35 = vunpack.i.l.bf16 %v9120_v55  ;;  %v1836_v44 = vsel %vm1835_vm7, %v7245_v26, %v4915_v30  ;;  %v1837_v19 = vsel %vm1835_vm7, %v7249_v0, %v4916_v40 }
 0x161   : > { %v7376_v51 = vpop.permute.xlu0 %5083  ;;  %9118 = vst [vmem:[#allocation54_spill] sm:$0xff] %v7400_v46  ;;  %v4931_v38 = vunpack.i.h.bf16 %v9120_v55  ;;  %v4935_v2 = vunpack.i.l.bf16 %v6719_v4  ;;  %v1838_v29 = vsel %vm1835_vm7, %v7255_v50, %v4920_v24  ;;  %v1839_v54 = vsel %vm1835_vm7, %v7259_v21, %v4921_v47 }
 0x162   : > { %v4936_v49 = vunpack.i.h.bf16 %v6719_v4  ;;  %v4940_v26 = vunpack.i.l.bf16 %v6747_v56  ;;  %v1840_v0 = vsel %vm1835_vm7, %v7265_v27, %v4925_v18  ;;  %v1841_v40 = vsel %vm1835_vm7, %v7269_v61, %v4926_v42 }
 0x163   : > { %v7405_v39 = vpop.permute.xlu1 %5088  ;;  %v4941_v30 = vunpack.i.h.bf16 %v6747_v56  ;;  %v4995_v55 = vunpack.i.l.bf16 %v6977_v11  ;;  %v7429_v50 = vsel %vm1835_vm7, %v7273_v32, %v4930_v35  ;;  %v4996_v21 = vunpack.i.h.bf16 %v6977_v11 }
 0x164   : > { %v5001_v4 = vunpack.i.h.bf16 %v7012_v20  ;;  %v5000_v47 = vunpack.i.l.bf16 %v7012_v20  ;;  %v7438_v27 = vsel %vm1835_vm7, %v7280_v9, %v4931_v38  ;;  %v7442_v56 = vsel %vm1835_vm7, %v7284_v8, %v4935_v2 }
 0x165   : > { %v7413_v60 = vpop.permute.xlu0 %5093  ;;  %v5006_v61 = vunpack.i.h.bf16 %v7030_v7  ;;  %v5005_v32 = vunpack.i.l.bf16 %v7030_v7  ;;  %v7450_v20 = vsel %vm1835_vm7, %v7292_v16, %v4936_v49  ;;  %v7454_v35 = vsel %vm1835_vm7, %v7296_v58, %v4940_v26 }
 0x166   : > { %v4946_v9 = vunpack.i.h.bf16 %v6765_v43  ;;  %v4945_v42 = vunpack.i.l.bf16 %v6765_v43  ;;  %v7460_v8 = vsel %vm1835_vm7, %v7302_v59, %v4941_v30  ;;  %v5076_v7 = vunpack.i.h.bf16 %v7329_v25 }
 0x167   : > { %v7434_v24 = vpop.permute.xlu1 %5098  ;;  %v5075_v18 = vunpack.i.l.bf16 %v7329_v25  ;;  %v1869_v38 = vsel %vm1868_vm8, %v1836_v44, %v4995_v55  ;;  %v1871_v16 = vsel %vm1868_vm8, %v1838_v29, %v5000_v47  ;;  %v1872_v49 = vsel %vm1868_vm8, %v1839_v54, %v5001_v4 }
 0x168   : > { %v5080_v58 = vunpack.i.l.bf16 %v7364_v22  ;;  %v1870_v43 = vsel %vm1868_vm8, %v1837_v19, %v4996_v21  ;;  %v1873_v26 = vsel %vm1868_vm8, %v1840_v0, %v5005_v32  ;;  %v1874_v59 = vsel %vm1868_vm8, %v1841_v40, %v5006_v61 }
 0x169   : > { %v7446_v11 = vpop.permute.xlu0 %5103  ;;  %v5011_v30 = vunpack.i.h.bf16 %v7059_v34  ;;  %v5081_v25 = vunpack.i.h.bf16 %v7364_v22  ;;  %v5086_v44 = vunpack.i.h.bf16 %v7376_v51  ;;  %v5085_v29 = vunpack.i.l.bf16 %v7376_v51 }
 0x16a   : > { %v5010_v4 = vunpack.i.l.bf16 %v7059_v34  ;;  %v5016_v47 = vunpack.i.h.bf16 %v7065_v62  ;;  %v1902_v19 = vsel %vm1901_vm9, %v1869_v38, %v5075_v18  ;;  %v1903_v0 = vsel %vm1901_vm9, %v1870_v43, %v5076_v7 }
 0x16b   : > { %v7468_v2 = vpop.permute.xlu1 %5108  ;;  %v5015_v40 = vunpack.i.l.bf16 %v7065_v62  ;;  %v1904_v21 = vsel %vm1901_vm9, %v1871_v16, %v5080_v58  ;;  %v1905_v51 = vsel %vm1901_vm9, %v1872_v49, %v5081_v25  ;;  %v1906_v1 = vsel %vm1901_vm9, %v1873_v26, %v5085_v29 }
 0x16c   : > { %v1907_v18 = vsel %vm1901_vm9, %v1874_v59, %v5086_v44  ;;  %v5091_v62 = vunpack.i.h.bf16 %v7405_v39  ;;  %v5090_v16 = vunpack.i.l.bf16 %v7405_v39  ;;  %v5096_v49 = vunpack.i.h.bf16 %v7413_v60 }
 0x16d   : > { %v5114_v15 = vpop.permute.xlu0 %5113  ;;  %v5095_v44 = vunpack.i.l.bf16 %v7413_v60  ;;  %v1875_v60 = vsel %vm1868_vm8, %v7429_v50, %v5010_v4 }
 0x16e   : > { %v5116_v54 = vunpack.i.h.bf16 %v5114_v15  ;;  %v5115_v55 = vunpack.i.l.bf16 %v5114_v15 }
 0x16f   : > { %v5119_v22 = vpop.permute.xlu1 %5118 }
 0x170   : > { %v1935_v61 = vsel %vm1934_vm10, %v1902_v19, %v5115_v55  ;;  %v1936_v32 = vsel %vm1934_vm10, %v1903_v0, %v5116_v54  ;;  %v5121_v15 = vunpack.i.h.bf16 %v5119_v22  ;;  %v5120_v46 = vunpack.i.l.bf16 %v5119_v22 }
 0x171   : > { %v5124_v34 = vpop.permute.xlu0 %5123  ;;  %v1967_v53 = vpack.c.bf16 %v1936_v32, %v1935_v61  ;;  %v4950_v22 = vunpack.i.l.bf16 %v6795_v36  ;;  %v1876_v61 = vsel %vm1868_vm8, %v7438_v27, %v5011_v30 }
 0x172   : > { %v5126_v7 = vunpack.i.h.bf16 %v5124_v34  ;;  %v5125_v38 = vunpack.i.l.bf16 %v5124_v34  ;;  %v1937_v58 = vsel %vm1934_vm10, %v1904_v21, %v5120_v46  ;;  %v1938_v43 = vsel %vm1934_vm10, %v1905_v51, %v5121_v15 }
 0x173   : > { %4503 = vmatprep.mubr.msk.bf16.mxu0 %vm2003_vm11, %v1967_v53  ;;  %v5129_v29 = vpop.permute.xlu1 %5128  ;;  %v1968_v59 = vpack.c.bf16 %v1938_v43, %v1937_v58  ;;  %v1848_v46 = vsel %vm1835_vm7, %v7306_v57, %v4945_v42  ;;  %v1849_v53 = vsel %vm1835_vm7, %v7312_v37, %v4946_v9  ;;  %v1877_v57 = vsel %vm1868_vm8, %v7442_v56, %v5015_v40 }
 0x174   : > { %v1939_v25 = vsel %vm1934_vm10, %v1906_v1, %v5125_v38  ;;  %v1940_v26 = vsel %vm1934_vm10, %v1907_v18, %v5126_v7  ;;  %v5131_v54 = vunpack.i.h.bf16 %v5129_v29  ;;  %v5130_v55 = vunpack.i.l.bf16 %v5129_v29 }
 0x175   : > { %v5134_v19 = vpop.permute.xlu0 %5133  ;;  %v1969_v39 = vpack.c.bf16 %v1940_v26, %v1939_v25  ;;  %4504 = vmatmul.mubr.msk.bf16.vlgmr.msra.gmra.mxu0 %vm2003_vm11, %v1968_v59  ;;  %v4951_v1 = vunpack.i.h.bf16 %v6795_v36  ;;  %v1878_v37 = vsel %vm1868_vm8, %v7450_v20, %v5016_v47  ;;  %v1908_v9 = vsel %vm1901_vm9, %v1875_v60, %v5090_v16 }
 0x176   : > { %v5136_v0 = vunpack.i.h.bf16 %v5134_v19  ;;  %v5135_v21 = vunpack.i.l.bf16 %v5134_v19  ;;  %v1909_v42 = vsel %vm1901_vm9, %v1876_v61, %v5091_v62  ;;  %v1910_v36 = vsel %vm1901_vm9, %v1877_v57, %v5095_v44  ;;  %v9121_v61 = vld [vmem:[#allocation42_spill] sm:$0xff] }
 0x177   : > { %4507 = vmatprep.mubr.msk.bf16.mxu0 %vm2003_vm11, %v1969_v39  ;;  %v5139_v32 = vpop.permute.xlu1 %5138  ;;  %v1911_v50 = vsel %vm1901_vm9, %v1878_v37, %v5096_v49  ;;  %v1941_v4 = vsel %vm1934_vm10, %v1908_v9, %v5130_v55  ;;  %v1942_v27 = vsel %vm1934_vm10, %v1909_v42, %v5131_v54  ;;  %v4956_v51 = vunpack.i.h.bf16 %v6801_v14 }
 0x178   : > { %v4955_v56 = vunpack.i.l.bf16 %v6801_v14  ;;  %v1943_v20 = vsel %vm1934_vm10, %v1910_v36, %v5135_v21  ;;  %v1944_v47 = vsel %vm1934_vm10, %v1911_v50, %v5136_v0  ;;  %v5021_v40 = vunpack.i.h.bf16 %v7100_v3 }
 0x179   : > { %v5144_v30 = vpop.permute.xlu0 %5143  ;;  %v5020_v15 = vunpack.i.l.bf16 %v7100_v3  ;;  %v5026_v34 = vunpack.i.h.bf16 %v7118_v23  ;;  %v5025_v18 = vunpack.i.l.bf16 %v7118_v23  ;;  %v5101_v7 = vunpack.i.h.bf16 %v7434_v24 }
 0x17a   : > { %v5100_v38 = vunpack.i.l.bf16 %v7434_v24  ;;  %v5106_v62 = vunpack.i.h.bf16 %v7446_v11  ;;  %v1970_v14 = vpack.c.bf16 %v1942_v27, %v1941_v4  ;;  %v5105_v58 = vunpack.i.l.bf16 %v7446_v11 }
 0x17b   : > { %v7530_v16 = vpop.permute.xlu1 %5148  ;;  %v5141_v43 = vunpack.i.h.bf16 %v5139_v32  ;;  %v5140_v49 = vunpack.i.l.bf16 %v5139_v32  ;;  %v1971_v26 = vpack.c.bf16 %v1944_v47, %v1943_v20  ;;  %v1850_v3 = vsel %vm1835_vm7, %v7321_v10, %v4950_v22 }
 0x17c   : > { %v1851_v23 = vsel %vm1835_vm7, %v7325_v63, %v4951_v1  ;;  %v5146_v29 = vunpack.i.h.bf16 %v5144_v30  ;;  %v5145_v59 = vunpack.i.l.bf16 %v5144_v30  ;;  %v1852_v24 = vsel %vm1835_vm7, %v7333_v41, %v4955_v56 }
 0x17d   : > { %v5154_v25 = vpop.permute.xlu0 %5153  ;;  %4508 = vmatmul.mubr.msk.bf16.gmra.mxu0 %vm2003_vm11, %v1970_v14  ;;  %v1853_v11 = vsel %vm1835_vm7, %v7337_v17, %v4956_v51  ;;  %v1879_v44 = vsel %vm1868_vm8, %v7454_v35, %v5020_v15  ;;  %v1880_v54 = vsel %vm1868_vm8, %v7460_v8, %v5021_v40  ;;  %v1881_v10 = vsel %vm1868_vm8, %v1848_v46, %v5025_v18 }
 0x17e   : > { %4511 = vmatprep.mubr.msk.bf16.mxu0 %vm2003_vm11, %v1971_v26  ;;  %v1882_v63 = vsel %vm1868_vm8, %v1849_v53, %v5026_v34  ;;  %v1912_v55 = vsel %vm1901_vm9, %v1879_v44, %v5100_v38  ;;  %v1913_v19 = vsel %vm1901_vm9, %v1880_v54, %v5101_v7  ;;  %v1914_v17 = vsel %vm1901_vm9, %v1881_v10, %v5105_v58 }
 0x17f   : > { %v7551_v41 = vpop.permute.xlu1 %5158  ;;  %v1915_v39 = vsel %vm1901_vm9, %v1882_v63, %v5106_v62  ;;  %v1945_v35 = vsel %vm1934_vm10, %v1912_v55, %v5140_v49  ;;  %v1946_v8 = vsel %vm1934_vm10, %v1913_v19, %v5141_v43  ;;  %v4961_v21 = vunpack.i.h.bf16 %v6836_v5 }
 0x180   : > { %v4960_v46 = vunpack.i.l.bf16 %v6836_v5  ;;  %v1947_v53 = vsel %vm1934_vm10, %v1914_v17, %v5145_v59  ;;  %v1948_v1 = vsel %vm1934_vm10, %v1915_v39, %v5146_v29  ;;  %v5031_v22 = vunpack.i.h.bf16 %v7147_v45 }
 0x181   : > { %v5164_v0 = vpop.permute.xlu0 %5163  ;;  %v5030_v60 = vunpack.i.l.bf16 %v7147_v45  ;;  %v5036_v57 = vunpack.i.h.bf16 %v9121_v61  ;;  %v5035_v37 = vunpack.i.l.bf16 %v9121_v61  ;;  %v5111_v9 = vunpack.i.h.bf16 %v7468_v2  ;;  %v9122_v45 = vld [vmem:[#allocation35_spill] sm:$0xff] }
 0x182   : > { %v5110_v42 = vunpack.i.l.bf16 %v7468_v2  ;;  %v5151_v32 = vunpack.i.h.bf16 %v7530_v16  ;;  %v1972_v5 = vpack.c.bf16 %v1946_v8, %v1945_v35  ;;  %v5150_v50 = vunpack.i.l.bf16 %v7530_v16  ;;  %v9124_v8 = vld [vmem:[#allocation37_spill] sm:$0xff] }
 0x183   : > { %v7568_v36 = vpop.permute.xlu1 %5168  ;;  %v5156_v4 = vunpack.i.h.bf16 %v5154_v25  ;;  %v5155_v27 = vunpack.i.l.bf16 %v5154_v25  ;;  %v1973_v51 = vpack.c.bf16 %v1948_v1, %v1947_v53  ;;  %v4966_v56 = vunpack.i.h.bf16 %v9122_v45  ;;  %v9125_v53 = vld [vmem:[#allocation36_spill] sm:$0xff] }
 0x184   : > { %v4965_v20 = vunpack.i.l.bf16 %v9122_v45  ;;  %v5166_v47 = vunpack.i.h.bf16 %v5164_v0  ;;  %v5165_v40 = vunpack.i.l.bf16 %v5164_v0  ;;  %v1854_v2 = vsel %vm1835_vm7, %v7343_v13, %v4960_v46 }
 0x185   : > { %v5174_v30 = vpop.permute.xlu0 %5173  ;;  %4512 = vmatmul.mubr.msk.bf16.gmra.mxu0 %vm2003_vm11, %v1972_v5  ;;  %v1855_v15 = vsel %vm1835_vm7, %v7347_v12, %v4961_v21  ;;  %v1883_v34 = vsel %vm1868_vm8, %v1850_v3, %v5030_v60  ;;  %v1884_v18 = vsel %vm1868_vm8, %v1851_v23, %v5031_v22  ;;  %v1885_v7 = vsel %vm1868_vm8, %v1852_v24, %v5035_v37  ;;  %v9123_v24 = vld [vmem:[#allocation45_spill] sm:$0xff] }
 0x186   : > { %4515 = vmatprep.mubr.msk.bf16.mxu0 %vm2003_vm11, %v1973_v51  ;;  %v1886_v38 = vsel %vm1868_vm8, %v1853_v11, %v5036_v57  ;;  %v1916_v62 = vsel %vm1901_vm9, %v1883_v34, %v5110_v42  ;;  %v1917_v16 = vsel %vm1901_vm9, %v1884_v18, %v5111_v9  ;;  %v1918_v58 = vsel %vm1901_vm9, %v1885_v7, %v5155_v27 }
 0x187   : > { %v7585_v14 = vpop.permute.xlu1 %5178  ;;  %v1949_v13 = vsel %vm1934_vm10, %v1916_v62, %v5150_v50  ;;  %v1950_v12 = vsel %vm1934_vm10, %v1917_v16, %v5151_v32  ;;  %v1919_v43 = vsel %vm1901_vm9, %v1886_v38, %v5156_v4  ;;  %v1856_v25 = vsel %vm1835_vm7, %v7353_v6, %v4965_v20 }
 0x188   : > { %v1857_v26 = vsel %vm1835_vm7, %v7357_v31, %v4966_v56  ;;  %v1951_v3 = vsel %vm1934_vm10, %v1918_v58, %v5165_v40  ;;  %v1952_v23 = vsel %vm1934_vm10, %v1919_v43, %v5166_v47  ;;  %v5041_v29 = vunpack.i.h.bf16 %v7188_v48  ;;  %v9126_v56 = vld [vmem:[#allocation44_spill] sm:$0xff]  ;;  %v9127_v40 = vld [vmem:[#allocation47_spill] sm:$0xff]  ;;  %v9128_v58 = vld [vmem:[#allocation50_spill] sm:$0xff] }
 0x189   : > { %v5184_v49 = vpop.permute.xlu0 %5183  ;;  %v5040_v59 = vunpack.i.l.bf16 %v7188_v48  ;;  %v5046_v11 = vunpack.i.h.bf16 %v9123_v24  ;;  %v5045_v44 = vunpack.i.l.bf16 %v9123_v24  ;;  %v5161_v54 = vunpack.i.h.bf16 %v7551_v41 }
 0x18a   : > { %v5160_v10 = vunpack.i.l.bf16 %v7551_v41  ;;  %v5171_v6 = vunpack.i.h.bf16 %v7568_v36  ;;  %v1974_v31 = vpack.c.bf16 %v1950_v12, %v1949_v13  ;;  %v5170_v55 = vunpack.i.l.bf16 %v7568_v36 }
 0x18b   : > { %v5189_v63 = vpop.permute.xlu1 %5188  ;;  %v5176_v19 = vunpack.i.h.bf16 %v5174_v30  ;;  %v5175_v17 = vunpack.i.l.bf16 %v5174_v30  ;;  %v1975_v35 = vpack.c.bf16 %v1952_v23, %v1951_v3  ;;  %v4971_v48 = vunpack.i.h.bf16 %v9124_v8  ;;  %v9129_v3 = vld [vmem:[#allocation39_spill] sm:$0xff] }
 0x18c   : > { %v4970_v0 = vunpack.i.l.bf16 %v9124_v8  ;;  %v5186_v21 = vunpack.i.h.bf16 %v5184_v49  ;;  %v5185_v46 = vunpack.i.l.bf16 %v5184_v49  ;;  %v4976_v41 = vunpack.i.h.bf16 %v9125_v53 }
 0x18d   : > { %v5194_v39 = vpop.permute.xlu0 %5193  ;;  %4516 = vmatmul.mubr.msk.bf16.gmra.mxu0 %vm2003_vm11, %v1974_v31  ;;  %v4975_v1 = vunpack.i.l.bf16 %v9125_v53  ;;  %v1887_v22 = vsel %vm1868_vm8, %v1854_v2, %v5040_v59  ;;  %v1888_v60 = vsel %vm1868_vm8, %v1855_v15, %v5041_v29  ;;  %v1889_v61 = vsel %vm1868_vm8, %v1856_v25, %v5045_v44  ;;  %v9130_v31 = vld [vmem:[#allocation38_spill] sm:$0xff] }
 0x18e   : > { %4519 = vmatprep.mubr.msk.bf16.mxu0 %vm2003_vm11, %v1975_v35  ;;  %v1890_v57 = vsel %vm1868_vm8, %v1857_v26, %v5046_v11  ;;  %v1920_v37 = vsel %vm1901_vm9, %v1887_v22, %v5160_v10  ;;  %v1921_v9 = vsel %vm1901_vm9, %v1888_v60, %v5161_v54  ;;  %v1922_v5 = vsel %vm1901_vm9, %v1889_v61, %v5175_v17  ;;  %v9131_v35 = vld [vmem:[#allocation46_spill] sm:$0xff] }
 0x18f   : > { %v7617_v42 = vpop.permute.xlu1 %5198  ;;  %v1953_v32 = vsel %vm1934_vm10, %v1920_v37, %v5170_v55  ;;  %v1954_v36 = vsel %vm1934_vm10, %v1921_v9, %v5171_v6  ;;  %v1923_v50 = vsel %vm1901_vm9, %v1890_v57, %v5176_v19  ;;  %v1858_v27 = vsel %vm1835_vm7, %v7361_v28, %v4970_v0  ;;  %v9132_v0 = vld [vmem:[#allocation48_spill] sm:$0xff] }
 0x190   : > { %v1859_v30 = vsel %vm1835_vm7, %v7368_v33, %v4971_v48  ;;  %v1955_v51 = vsel %vm1934_vm10, %v1922_v5, %v5185_v46  ;;  %v1956_v45 = vsel %vm1934_vm10, %v1923_v50, %v5186_v21  ;;  %v5051_v20 = vunpack.i.h.bf16 %v9126_v56  ;;  %v9134_v50 = vld [vmem:[#allocation52_spill] sm:$0xff] }
 0x191   : > { %v5204_v4 = vpop.permute.xlu0 %5203  ;;  %v5050_v47 = vunpack.i.l.bf16 %v9126_v56  ;;  %v5056_v2 = vunpack.i.h.bf16 %v9127_v40  ;;  %v5055_v15 = vunpack.i.l.bf16 %v9127_v40  ;;  %v5181_v34 = vunpack.i.h.bf16 %v7585_v14 }
 0x192   : > { %v5180_v18 = vunpack.i.l.bf16 %v7585_v14  ;;  %v5191_v28 = vunpack.i.h.bf16 %v5189_v63  ;;  %v1976_v7 = vpack.c.bf16 %v1954_v36, %v1953_v32  ;;  %v5190_v38 = vunpack.i.l.bf16 %v5189_v63  ;;  %v9133_v36 = vld [vmem:[#allocation51_spill] sm:$0xff] }
 0x193   : > { %v5196_v33 = vunpack.i.h.bf16 %v5194_v39  ;;  %v5195_v62 = vunpack.i.l.bf16 %v5194_v39  ;;  %v1977_v13 = vpack.c.bf16 %v1956_v45, %v1955_v51  ;;  %v1860_v12 = vsel %vm1835_vm7, %v7372_v52, %v4975_v1  ;;  %v5209_v26 = vpop.permute.xlu1 %5208  ;;  %v9135_v51 = vld [vmem:[#allocation53_spill] sm:$0xff]  ;;  %v9136_v45 = vld [vmem:[#allocation54_spill] sm:$0xff] }
 0x194   : > { %v1861_v43 = vsel %vm1835_vm7, %v9128_v58, %v4976_v41  ;;  %v5206_v49 = vunpack.i.h.bf16 %v5204_v4  ;;  %v5205_v25 = vunpack.i.l.bf16 %v5204_v4  ;;  %v4981_v14 = vunpack.i.h.bf16 %v9129_v3 }
 0x195   : > { %v5214_v16 = vpop.permute.xlu0 %5213  ;;  %4520 = vmatmul.mubr.msk.bf16.gmra.mxu0 %vm2003_vm11, %v1976_v7  ;;  %v4980_v23 = vunpack.i.l.bf16 %v9129_v3  ;;  %v1891_v29 = vsel %vm1868_vm8, %v1858_v27, %v5050_v47  ;;  %v1892_v59 = vsel %vm1868_vm8, %v1859_v30, %v5051_v20  ;;  %v1893_v52 = vsel %vm1868_vm8, %v1860_v12, %v5055_v15 }
 0x196   : > { %4523 = vmatprep.mubr.msk.bf16.mxu0 %vm2003_vm11, %v1977_v13  ;;  %v1894_v24 = vsel %vm1868_vm8, %v1861_v43, %v5056_v2  ;;  %v1924_v11 = vsel %vm1901_vm9, %v1891_v29, %v5180_v18  ;;  %v1925_v44 = vsel %vm1901_vm9, %v1892_v59, %v5181_v34  ;;  %v1926_v6 = vsel %vm1901_vm9, %v1893_v52, %v5195_v62  ;;  %v9138_v43 = vld [vmem:[#allocation67_spill] sm:$0xff]  ;;  %v9143_v29 = vld [vmem:[#allocation49_spill] sm:$0xff] }
 0x197   : > { %v1957_v54 = vsel %vm1934_vm10, %v1924_v11, %v5190_v38  ;;  %v1958_v10 = vsel %vm1934_vm10, %v1925_v44, %v5191_v28  ;;  %v1927_v63 = vsel %vm1901_vm9, %v1894_v24, %v5196_v33  ;;  %v4986_v55 = vunpack.i.h.bf16 %v9130_v31  ;;  %v5219_v60 = vpop.permute.xlu1 %5218  ;;  %v9137_v33 = vld [vmem:[#allocation41_spill] sm:$0xff]  ;;  %v9144_v24 = vld [vmem:[#allocation83_spill] sm:$0xff] }
 0x198   : > { %v4985_v19 = vunpack.i.l.bf16 %v9130_v31  ;;  %v1959_v17 = vsel %vm1934_vm10, %v1926_v6, %v5205_v25  ;;  %v1960_v39 = vsel %vm1934_vm10, %v1927_v63, %v5206_v49  ;;  %v5061_v8 = vunpack.i.h.bf16 %v9131_v35  ;;  %v9140_v25 = vld [vmem:[#allocation43_spill] sm:$0xff] }
 0x199   : > { %v5060_v48 = vunpack.i.l.bf16 %v9131_v35  ;;  %v5066_v21 = vunpack.i.h.bf16 %v9132_v0  ;;  %v5065_v46 = vunpack.i.l.bf16 %v9132_v0  ;;  %v5224_v53 = vpop.permute.xlu0 %5223  ;;  %v5201_v41 = vunpack.i.h.bf16 %v7617_v42 }
 0x19a   : > { %v5200_v1 = vunpack.i.l.bf16 %v7617_v42  ;;  %v5211_v22 = vunpack.i.h.bf16 %v5209_v26  ;;  %v1978_v61 = vpack.c.bf16 %v1958_v10, %v1957_v54  ;;  %v5210_v57 = vunpack.i.l.bf16 %v5209_v26 }
 0x19b   : > { %v5216_v37 = vunpack.i.h.bf16 %v5214_v16  ;;  %v5215_v9 = vunpack.i.l.bf16 %v5214_v16  ;;  %v1979_v32 = vpack.c.bf16 %v1960_v39, %v1959_v17  ;;  %v1862_v5 = vsel %vm1835_vm7, %v9133_v36, %v4980_v23  ;;  %v5229_v58 = vpop.permute.xlu1 %5228  ;;  %v7724_v36 = vld [vmem:[%s8851_s4] ss:$0 sm:$0xff] }
 0x19c   : > { %v1863_v4 = vsel %vm1835_vm7, %v9134_v50, %v4981_v14  ;;  %v5226_v27 = vunpack.i.h.bf16 %v5224_v53  ;;  %v5225_v30 = vunpack.i.l.bf16 %v5224_v53  ;;  %v1864_v42 = vsel %vm1835_vm7, %v9135_v51, %v4985_v19  ;;  %v9142_v14 = vld [vmem:[#allocation40_spill] sm:$0xff] }
 0x19d   : > { %4524 = vmatmul.mubr.msk.bf16.gmra.mxu0 %vm2003_vm11, %v1978_v61  ;;  %v1865_v56 = vsel %vm1835_vm7, %v9136_v45, %v4986_v55  ;;  %v1895_v20 = vsel %vm1868_vm8, %v1862_v5, %v5060_v48  ;;  %v1896_v47 = vsel %vm1868_vm8, %v1863_v4, %v5061_v8  ;;  %v1897_v40 = vsel %vm1868_vm8, %v1864_v42, %v5065_v46  ;;  %v2423_v61 = vld [vmem:[#allocation2 + $0x2] sm:$0xff] }
 0x19e   : > { %4527 = vmatprep.mubr.msk.bf16.mxu0 %vm2003_vm11, %v1979_v32  ;;  %v1898_v2 = vsel %vm1868_vm8, %v1865_v56, %v5066_v21  ;;  %v1928_v15 = vsel %vm1901_vm9, %v1895_v20, %v5200_v1  ;;  %v1929_v34 = vsel %vm1901_vm9, %v1896_v47, %v5201_v41  ;;  %v1930_v7 = vsel %vm1901_vm9, %v1897_v40, %v5215_v9  ;;  %v2391_v1 = vld [vmem:[#allocation2 + $0x1] sm:$0xff]  ;;  %v7719_v9 = vld [vmem:[%s8850_s3] ss:$0 sm:$0xff] }
 0x19f   : > { %v1961_v18 = vsel %vm1934_vm10, %v1928_v15, %v5210_v57  ;;  %v1962_v28 = vsel %vm1934_vm10, %v1929_v34, %v5211_v22  ;;  %v1931_v38 = vsel %vm1901_vm9, %v1898_v2, %v5216_v37  ;;  %v4991_v62 = vunpack.i.h.bf16 %v9137_v33  ;;  %v2392_v22 = vld [vmem:[#allocation2 + $0x9] sm:$0xff] }
 0x1a0   : > { %v4990_v16 = vunpack.i.l.bf16 %v9137_v33  ;;  %v1963_v13 = vsel %vm1934_vm10, %v1930_v7, %v5225_v30  ;;  %v1964_v12 = vsel %vm1934_vm10, %v1931_v38, %v5226_v27  ;;  %v9139_v49 = vunpack.i.l.bf16 %v9138_v43  ;;  %v2424_v57 = vld [vmem:[#allocation2 + $0xa] sm:$0xff] }
 0x1a1   : > { %v9141_v3 = vunpack.i.h.bf16 %v9138_v43  ;;  %v5071_v59 = vunpack.i.h.bf16 %v9143_v29  ;;  %v5070_v52 = vunpack.i.l.bf16 %v9143_v29  ;;  %v9145_v11 = vunpack.i.l.bf16 %v9144_v24 }
 0x1a2   : > { %v1800_v26 = vsel %vm1769_vm5, %v9140_v25, %v9139_v49  ;;  %v5221_v54 = vunpack.i.h.bf16 %v5219_v60  ;;  %v5220_v10 = vunpack.i.l.bf16 %v5219_v60  ;;  %v1980_v6 = vpack.c.bf16 %v1962_v28, %v1961_v18 }
 0x1a3   : > { %v1801_v23 = vsel %vm1769_vm5, %v9142_v14, %v9141_v3  ;;  %v1833_v44 = vsel %vm1802_vm6, %v1800_v26, %v9145_v11  ;;  %v9146_v63 = vunpack.i.h.bf16 %v9144_v24  ;;  %v5231_v55 = vunpack.i.h.bf16 %v5229_v58 }
 0x1a4   : > { %v5230_v19 = vunpack.i.l.bf16 %v5229_v58  ;;  %v1981_v17 = vpack.c.bf16 %v1964_v12, %v1963_v13  ;;  %v1866_v39 = vsel %vm1835_vm7, %v1833_v44, %v4990_v16  ;;  %v5232_v60 = vpack.i.bf16 %v2392_v22, %v2391_v1 }
 0x1a5   : > { %v1834_v31 = vsel %vm1802_vm6, %v1801_v23, %v9146_v63  ;;  %4528 = vmatmul.mubr.msk.bf16.gmra.mxu0 %vm2003_vm11, %v1980_v6  ;;  %v1899_v8 = vsel %vm1868_vm8, %v1866_v39, %v5070_v52  ;;  %v5237_v37 = vpack.i.bf16 %v2424_v57, %v2423_v61 }
 0x1a6   : > { %v1867_v35 = vsel %vm1835_vm7, %v1834_v31, %v4991_v62  ;;  %4531 = vmatprep.mubr.msk.bf16.mxu0 %vm2003_vm11, %v1981_v17  ;;  %v1932_v0 = vsel %vm1901_vm9, %v1899_v8, %v5220_v10  ;;  %5233 = vrot.lane.b32.xlu0 %v5232_v60, %s5889_s8 }
 0x1a7   : > { %v1900_v48 = vsel %vm1868_vm8, %v1867_v35, %v5071_v59  ;;  %v1965_v46 = vsel %vm1934_vm10, %v1932_v0, %v5230_v19 }
 0x1a8   : > { %v1933_v21 = vsel %vm1901_vm9, %v1900_v48, %v5221_v54 }
 0x1a9   : > { %v1966_v53 = vsel %vm1934_vm10, %v1933_v21, %v5231_v55 }
 0x1aa   : > { %v1982_v41 = vpack.c.bf16 %v1966_v53, %v1965_v46  ;;  %5238 = vrot.lane.b32.xlu0 %v5237_v37, %s5890_s9 }
 0x1ad   : > { %4532 = vmatmul.mubr.msk.bf16.gmra.mxu0 %vm2003_vm11, %v1982_v41 }
 0x235   : > { %v4505_v32 = vpop.f32.mrf.mxu0 }
 0x236   : > { %v2226_v5 = vmul.f32 %v4505_v32, %v7719_v9 }
 0x237   : > { %v2090_v50 = vpop.f32.mrf.mxu0 }
 0x238   : > { %v2265_v4 = vadd.f32 %v7724_v36, %v2226_v5  ;;  %v2224_v27 = vmul.f32 %v7719_v9, %v2090_v50 }
 0x239   : > { %v4506_v30 = vpop.f32.mrf.mxu0 }
 0x23a   : > { %v2297_v51 = vmax.f32 %v2265_v4, 0.0  ;;  %v2263_v42 = vadd.f32 %v7724_v36, %v2224_v27  ;;  %v2227_v45 = vmul.f32 %v4506_v30, %v7719_v9 }
 0x23b   : > { %v2093_v56 = vpop.f32.mrf.mxu0 }
 0x23c   : > { %2329 = vst.msk [vmem:[#allocation2 + $0x31] sm:$0xff] %vm280_vm0, %v2297_v51  ;;  %v2295_v20 = vmax.f32 %v2263_v42, 0.0  ;;  %v2266_v47 = vadd.f32 %v7724_v36, %v2227_v45  ;;  %v2225_v40 = vmul.f32 %v7719_v9, %v2093_v56 }
 0x23d   : > { %v4509_v2 = vpop.f32.mrf.mxu0 }
 0x23e   : > { %2327 = vst.msk [vmem:[#allocation2 + $0x19] sm:$0xff] %vm280_vm0, %v2295_v20  ;;  %v2298_v15 = vmax.f32 %v2266_v47, 0.0  ;;  %v2264_v34 = vadd.f32 %v7724_v36, %v2225_v40  ;;  %v2230_v18 = vmul.f32 %v4509_v2, %v7719_v9 }
 0x23f   : > { %v2106_v28 = vpop.f32.mrf.mxu0 }
 0x240   : > { %2330 = vst.msk [vmem:[#allocation2 + $0x39] sm:$0xff] %vm280_vm0, %v2298_v15  ;;  %v2296_v7 = vmax.f32 %v2264_v34, 0.0  ;;  %v2269_v38 = vadd.f32 %v7724_v36, %v2230_v18  ;;  %v2228_v33 = vmul.f32 %v7719_v9, %v2106_v28 }
 0x241   : > { %v4510_v62 = vpop.f32.mrf.mxu0 }
 0x242   : > { %2328 = vst.msk [vmem:[#allocation2 + $0x21] sm:$0xff] %vm280_vm0, %v2296_v7  ;;  %v2301_v16 = vmax.f32 %v2269_v38, 0.0  ;;  %v2267_v13 = vadd.f32 %v7724_v36, %v2228_v33  ;;  %v2231_v12 = vmul.f32 %v4510_v62, %v7719_v9 }
 0x243   : > { %v2109_v58 = vpop.f32.mrf.mxu0  ;;  %v7749_v59 = vld [vmem:[#allocation2 + $0x30] sm:$0xff] }
 0x244   : > { %2333 = vst.msk [vmem:[#allocation2 + $0x61] sm:$0xff] %vm280_vm0, %v2301_v16  ;;  %v2299_v43 = vmax.f32 %v2267_v13, 0.0  ;;  %v2270_v49 = vadd.f32 %v7724_v36, %v2231_v12  ;;  %v2229_v25 = vmul.f32 %v7719_v9, %v2109_v58  ;;  %v2395_v6 = vld [vmem:[#allocation2 + $0x31] sm:$0xff] }
 0x245   : > { %v4513_v26 = vpop.f32.mrf.mxu0  ;;  %v2393_v51 = vld [vmem:[#allocation2 + $0x19] sm:$0xff] }
 0x246   : > { %2331 = vst.msk [vmem:[#allocation2 + $0x49] sm:$0xff] %vm280_vm0, %v2299_v43  ;;  %v2302_v3 = vmax.f32 %v2270_v49, 0.0  ;;  %v2268_v14 = vadd.f32 %v7724_v36, %v2229_v25  ;;  %v2234_v23 = vmul.f32 %v4513_v26, %v7719_v9 }
 0x247   : > { %v2122_v29 = vpop.f32.mrf.mxu0  ;;  %v7751_v52 = vld [vmem:[#allocation2 + $0x38] sm:$0xff] }
 0x248   : > { %v2396_v24 = vld [vmem:[#allocation2 + $0x39] sm:$0xff]  ;;  %2334 = vst.msk [vmem:[#allocation2 + $0x69] sm:$0xff] %vm280_vm0, %v2302_v3  ;;  %v2300_v11 = vmax.f32 %v2268_v14, 0.0  ;;  %v2273_v44 = vadd.f32 %v7724_v36, %v2234_v23  ;;  %v2232_v54 = vmul.f32 %v7719_v9, %v2122_v29  ;;  %v5252_v10 = vpack.i.bf16 %v7751_v52, %v7749_v59 }
 0x249   : > { %v4514_v63 = vpop.f32.mrf.mxu0  ;;  %v5242_v31 = vpack.i.bf16 %v2396_v24, %v2395_v6  ;;  %v2427_v39 = vld [vmem:[#allocation2 + $0x32] sm:$0xff]  ;;  %v2428_v35 = vld [vmem:[#allocation2 + $0x3a] sm:$0xff]  ;;  %v2426_v2 = vld [vmem:[#allocation2 + $0x22] sm:$0xff] }
 0x24a   : > { %2332 = vst.msk [vmem:[#allocation2 + $0x51] sm:$0xff] %vm280_vm0, %v2300_v11  ;;  %v2305_v55 = vmax.f32 %v2273_v44, 0.0  ;;  %v2271_v19 = vadd.f32 %v7724_v36, %v2232_v54  ;;  %v2235_v17 = vmul.f32 %v4514_v63, %v7719_v9  ;;  %5253 = vrot.lane.b32.xlu1 %v5252_v10, %s5891_s10  ;;  %v5247_v53 = vpack.i.bf16 %v2428_v35, %v2427_v39  ;;  %v2394_v5 = vld [vmem:[#allocation2 + $0x21] sm:$0xff]  ;;  %v7800_v29 = vld [vmem:[#allocation2 + $0x18] sm:$0xff] }
 0x24b   : > { %5243 = vrot.lane.b32.xlu0 %v5242_v31, %s5889_s8  ;;  %v2125_v8 = vpop.f32.mrf.mxu0  ;;  %v5282_v20 = vpack.i.bf16 %v2394_v5, %v2393_v51  ;;  %v2425_v40 = vld [vmem:[#allocation2 + $0x1a] sm:$0xff] }
 0x24c   : > { %2337 = vst.msk [vmem:[#allocation2 + $0x91] sm:$0xff] %vm280_vm0, %v2305_v55  ;;  %v2303_v48 = vmax.f32 %v2271_v19, 0.0  ;;  %v2274_v0 = vadd.f32 %v7724_v36, %v2235_v17  ;;  %v2233_v21 = vmul.f32 %v7719_v9, %v2125_v8  ;;  %v5287_v62 = vpack.i.bf16 %v2426_v2, %v2425_v40  ;;  %v7794_v49 = vld [vmem:[#allocation2 + $0x20] sm:$0xff] }
 0x24d   : > { %v4517_v46 = vpop.f32.mrf.mxu0  ;;  %v2461_v26 = vld [vmem:[#allocation2 + $0x60] sm:$0xff]  ;;  %v5292_v44 = vpack.i.bf16 %v7794_v49, %v7800_v29 }
 0x24e   : > { %2335 = vst.msk [vmem:[#allocation2 + $0x79] sm:$0xff] %vm280_vm0, %v2303_v48  ;;  %v2306_v41 = vmax.f32 %v2274_v0, 0.0  ;;  %v2272_v1 = vadd.f32 %v7724_v36, %v2233_v21  ;;  %v2238_v22 = vmul.f32 %v4517_v46, %v7719_v9  ;;  %5258 = vrot.lane.b32.xlu1 %v5242_v31, %s5892_s11  ;;  %v2493_v55 = vld [vmem:[#allocation2 + $0x61] sm:$0xff] }
 0x24f   : > { %5248 = vrot.lane.b32.xlu0 %v5247_v53, %s5890_s9  ;;  %v2138_v60 = vpop.f32.mrf.mxu0  ;;  %v2462_v13 = vld [vmem:[#allocation2 + $0x68] sm:$0xff] }
 0x250   : > { %2338 = vst.msk [vmem:[#allocation2 + $0x99] sm:$0xff] %vm280_vm0, %v2306_v41  ;;  %v2304_v61 = vmax.f32 %v2272_v1, 0.0  ;;  %v2277_v57 = vadd.f32 %v7724_v36, %v2238_v22  ;;  %v2236_v37 = vmul.f32 %v7719_v9, %v2138_v60  ;;  %v7802_v24 = vpack.i.bf16 %v2462_v13, %v2461_v26  ;;  %v2494_v54 = vld [vmem:[#allocation2 + $0x69] sm:$0xff] }
 0x251   : > { %v4518_v32 = vpop.f32.mrf.mxu0  ;;  %v7815_v35 = vpack.i.bf16 %v2494_v54, %v2493_v55  ;;  %v2525_v48 = vld [vmem:[#allocation2 + $0x62] sm:$0xff]  ;;  %v2526_v0 = vld [vmem:[#allocation2 + $0x6a] sm:$0xff]  ;;  %v2430_v2 = vld [vmem:[#allocation2 + $0x52] sm:$0xff] }
 0x252   : > { %2336 = vst.msk [vmem:[#allocation2 + $0x81] sm:$0xff] %vm280_vm0, %v2304_v61  ;;  %v2309_v50 = vmax.f32 %v2277_v57, 0.0  ;;  %v2275_v4 = vadd.f32 %v7724_v36, %v2236_v37  ;;  %v2239_v27 = vmul.f32 %v4518_v32, %v7719_v9  ;;  %5263 = vrot.lane.b32.xlu1 %v5247_v53, %s5893_s12  ;;  %v7826_v61 = vpack.i.bf16 %v2526_v0, %v2525_v48  ;;  %v2398_v37 = vld [vmem:[#allocation2 + $0x51] sm:$0xff]  ;;  %v5875_v32 = vld [vmem:[%s8849_s2 + $0x10] ss:$0 sps:$4 sm:$0x33]  }
 0x253   : > { %5268 = vrot.lane.b32.xlu0 %v5252_v10, %s5894_s13  ;;  %v2141_v30 = vpop.f32.mrf.mxu0  ;;  %4574 = vmatprep.subr.msk.bf16.mxu1 %vm2052_vm3, %v5875_v32  ;;  %v4012_v51 = vsel %vm2052_vm3, %v5875_v32, 0  ;;  %v2429_v40 = vld [vmem:[#allocation2 + $0x4a] sm:$0xff] }
 0x254   : > { %2341 = vst.msk [vmem:[#allocation2 + $0xc1] sm:$0xff] %vm280_vm0, %v2309_v50  ;;  %v2307_v42 = vmax.f32 %v2275_v4, 0.0  ;;  %v2278_v45 = vadd.f32 %v7724_v36, %v2239_v27  ;;  %v2237_v56 = vmul.f32 %v7719_v9, %v2141_v30  ;;  %v2397_v30 = vld [vmem:[#allocation2 + $0x49] sm:$0xff]  ;;  %4536 = vmatpush3.bf16.msra.mxu1 %v4012_v51 }
 0x255   : > { %v4521_v47 = vpop.f32.mrf.mxu0 }
 0x256   : > { %2339 = vst.msk [vmem:[#allocation2 + $0xa9] sm:$0xff] %vm280_vm0, %v2307_v42  ;;  %v2310_v15 = vmax.f32 %v2278_v45, 0.0  ;;  %v2276_v34 = vadd.f32 %v7724_v36, %v2237_v56  ;;  %v2242_v18 = vmul.f32 %v4521_v47, %v7719_v9  ;;  %5283 = vrot.lane.b32.xlu1 %v5282_v20, %s5889_s8 }
 0x257   : > { %5273 = vrot.lane.b32.xlu0 %v5242_v31, %s5895_s16  ;;  %v2154_v28 = vpop.f32.mrf.mxu0  ;;  %v7891_v0 = vld [vmem:[#allocation2 + $0x98] sm:$0xff] }
 0x258   : > { %2342 = vst.msk [vmem:[#allocation2 + $0xc9] sm:$0xff] %vm280_vm0, %v2310_v15  ;;  %v2308_v7 = vmax.f32 %v2276_v34, 0.0  ;;  %v2281_v38 = vadd.f32 %v7724_v36, %v2242_v18  ;;  %v2240_v33 = vmul.f32 %v7719_v9, %v2154_v28  ;;  %v5876_v28 = vld [vmem:[%s8849_s2 + $0x8] sm:$0xff]  }
 0x259   : > { %v4522_v16 = vpop.f32.mrf.mxu0  ;;  %4537 = vmatprep.subr.bf16.mxu1 %v5876_v28 }
 0x25a   : > { %2340 = vst.msk [vmem:[#allocation2 + $0xb1] sm:$0xff] %vm280_vm0, %v2308_v7  ;;  %v2313_v12 = vmax.f32 %v2281_v38, 0.0  ;;  %v2279_v58 = vadd.f32 %v7724_v36, %v2240_v33  ;;  %v2243_v43 = vmul.f32 %v4522_v16, %v7719_v9  ;;  %5288 = vrot.lane.b32.xlu1 %v5287_v62, %s5890_s9  ;;  %v5352_v16 = vpack.i.bf16 %v2430_v2, %v2429_v40 }
 0x25b   : > { %5278 = vrot.lane.b32.xlu0 %v5247_v53, %s5896_s21  ;;  %v2157_v25 = vpop.f32.mrf.mxu0  ;;  %4538 = vmatpush3.bf16.msra.mxu1 %v5876_v28  ;;  %v2407_v2 = vld [vmem:[#allocation2 + $0xc1] sm:$0xff] }
 0x25c   : > { %2345 = vst.msk [vmem:[#allocation2 + $0xf1] sm:$0xff] %vm280_vm0, %v2313_v12  ;;  %v2311_v3 = vmax.f32 %v2279_v58, 0.0  ;;  %v2282_v14 = vadd.f32 %v7724_v36, %v2243_v43  ;;  %v2241_v23 = vmul.f32 %v7719_v9, %v2157_v25  ;;  %v7857_v12 = vld [vmem:[#allocation2 + $0x50] sm:$0xff]  ;;  %v5877_v58 = vld [vmem:[%s8849_s2] sm:$0xff]  }
 0x25d   : > { %v4525_v11 = vpop.f32.mrf.mxu0  ;;  %4539 = vmatprep.subr.bf16.mxu1 %v5877_v58 }
 0x25e   : > { %2343 = vst.msk [vmem:[#allocation2 + $0xd9] sm:$0xff] %vm280_vm0, %v2311_v3  ;;  %v2314_v10 = vmax.f32 %v2282_v14, 0.0  ;;  %v2280_v6 = vadd.f32 %v7724_v36, %v2241_v23  ;;  %v2246_v63 = vmul.f32 %v4525_v11, %v7719_v9  ;;  %5318 = vrot.lane.b32.xlu1 %v7802_v24, %s5891_s10  ;;  %v7868_v14 = vld [vmem:[#allocation2 + $0x48] sm:$0xff] }
 0x25f   : > { %5293 = vrot.lane.b32.xlu0 %v5292_v44, %s5891_s10  ;;  %v2170_v31 = vpop.f32.mrf.mxu0  ;;  %v5362_v54 = vpack.i.bf16 %v7857_v12, %v7868_v14  ;;  %4540 = vmatpush3.bf16.msra.mxu1 %v5877_v58  ;;  %v2408_v40 = vld [vmem:[#allocation2 + $0xc9] sm:$0xff] }
 0x260   : > { %2346 = vst.msk [vmem:[#allocation2 + $0xf9] sm:$0xff] %vm280_vm0, %v2314_v10  ;;  %v2312_v19 = vmax.f32 %v2280_v6, 0.0  ;;  %v2285_v17 = vadd.f32 %v7724_v36, %v2246_v63  ;;  %v2244_v39 = vmul.f32 %v7719_v9, %v2170_v31  ;;  %v2439_v28 = vld [vmem:[#allocation2 + $0xc2] sm:$0xff] }
 0x261   : > { %v4526_v8 = vpop.f32.mrf.mxu0 }
 0x262   : > { %2344 = vst.msk [vmem:[#allocation2 + $0xe1] sm:$0xff] %vm280_vm0, %v2312_v19  ;;  %v2317_v21 = vmax.f32 %v2285_v17, 0.0  ;;  %v2283_v46 = vadd.f32 %v7724_v36, %v2244_v39  ;;  %v2247_v53 = vmul.f32 %v4526_v8, %v7719_v9  ;;  %5323 = vrot.lane.b32.xlu1 %v7815_v35, %s5892_s11 }
 0x263   : > { %5298 = vrot.lane.b32.xlu0 %v5282_v20, %s5892_s11  ;;  %v2173_v41 = vpop.f32.mrf.mxu0  ;;  %v7842_v20 = vpack.i.bf16 %v2398_v37, %v2397_v30  ;;  %v2434_v37 = vld [vmem:[#allocation2 + $0x82] sm:$0xff]  ;;  %v2473_v58 = vld [vmem:[#allocation2 + $0xf0] sm:$0xff] }
 0x264   : > { %2349 = vst.msk [vmem:[#allocation2 + $0x121] sm:$0xff] %vm280_vm0, %v2317_v21  ;;  %v2315_v1 = vmax.f32 %v2283_v46, 0.0  ;;  %v2286_v22 = vadd.f32 %v7724_v36, %v2247_v53  ;;  %v2245_v60 = vmul.f32 %v7719_v9, %v2173_v41  ;;  %v2498_v21 = vld [vmem:[#allocation2 + $0x99] sm:$0xff] }
 0x265   : > { %v4529_v57 = vpop.f32.mrf.mxu0  ;;  %v2529_v53 = vld [vmem:[#allocation2 + $0x92] sm:$0xff]  ;;  %v2530_v41 = vld [vmem:[#allocation2 + $0x9a] sm:$0xff] }
 0x266   : > { %2347 = vst.msk [vmem:[#allocation2 + $0x109] sm:$0xff] %vm280_vm0, %v2315_v1  ;;  %v2318_v5 = vmax.f32 %v2286_v22, 0.0  ;;  %v2284_v50 = vadd.f32 %v7724_v36, %v2245_v60  ;;  %v2250_v4 = vmul.f32 %v4529_v57, %v7719_v9  ;;  %5328 = vrot.lane.b32.xlu1 %v7826_v61, %s5893_s12  ;;  %v7906_v1 = vpack.i.bf16 %v2530_v41, %v2529_v53  ;;  %v2402_v22 = vld [vmem:[#allocation2 + $0x81] sm:$0xff]  ;;  %v2401_v60 = vld [vmem:[#allocation2 + $0x79] sm:$0xff] }
 0x267   : > { %5303 = vrot.lane.b32.xlu0 %v5287_v62, %s5893_s12  ;;  %v2186_v27 = vpop.f32.mrf.mxu0  ;;  %v2433_v57 = vld [vmem:[#allocation2 + $0x7a] sm:$0xff] }
 0x268   : > { %2350 = vst.msk [vmem:[#allocation2 + $0x129] sm:$0xff] %vm280_vm0, %v2318_v5  ;;  %v2316_v42 = vmax.f32 %v2284_v50, 0.0  ;;  %v2289_v45 = vadd.f32 %v7724_v36, %v2250_v4  ;;  %v2248_v56 = vmul.f32 %v7719_v9, %v2186_v27  ;;  %v5427_v32 = vpack.i.bf16 %v2434_v37, %v2433_v57  ;;  %v7913_v5 = vld [vmem:[#allocation2 + $0x80] sm:$0xff]  ;;  %v7918_v50 = vld [vmem:[#allocation2 + $0x78] sm:$0xff]  ;;  %v2470_v27 = vld [vmem:[#allocation2 + $0xc8] sm:$0xff] }
 0x269   : > { %v4530_v47 = vpop.f32.mrf.mxu0  ;;  %v5437_v4 = vpack.i.bf16 %v7913_v5, %v7918_v50  ;;  %v2469_v30 = vld [vmem:[#allocation2 + $0xc0] sm:$0xff] }
 0x26a   : > { %2348 = vst.msk [vmem:[#allocation2 + $0x111] sm:$0xff] %vm280_vm0, %v2316_v42  ;;  %v2321_v15 = vmax.f32 %v2289_v45, 0.0  ;;  %v2287_v34 = vadd.f32 %v7724_v36, %v2248_v56  ;;  %v2251_v18 = vmul.f32 %v4530_v47, %v7719_v9  ;;  %5348 = vrot.lane.b32.xlu1 %v7842_v20, %s5889_s8  ;;  %v7928_v51 = vpack.i.bf16 %v2470_v27, %v2469_v30  ;;  %v2406_v42 = vld [vmem:[#allocation2 + $0xb1] sm:$0xff]  ;;  %v2405_v45 = vld [vmem:[#allocation2 + $0xa9] sm:$0xff] }
 0x26b   : > { %5308 = vrot.lane.b32.xlu0 %v7815_v35, %s5889_s8  ;;  %v2189_v7 = vpop.f32.mrf.mxu0  ;;  %v7933_v56 = vpack.i.bf16 %v2406_v42, %v2405_v45  ;;  %v2438_v47 = vld [vmem:[#allocation2 + $0xb2] sm:$0xff] }
 0x26c   : > { %2353 = vst.msk [vmem:[#allocation2 + $0x151] sm:$0xff] %vm280_vm0, %v2321_v15  ;;  %v2319_v38 = vmax.f32 %v2287_v34, 0.0  ;;  %v2290_v33 = vadd.f32 %v7724_v36, %v2251_v18  ;;  %v2249_v62 = vmul.f32 %v7719_v9, %v2189_v7  ;;  %v7940_v34 = vpack.i.bf16 %v2408_v40, %v2407_v2  ;;  %v7942_v18 = vld [vmem:[#allocation2 + $0xb0] sm:$0xff] }
 0x26d   : > { %v4533_v13 = vpop.f32.mrf.mxu0  ;;  %v2440_v7 = vld [vmem:[#allocation2 + $0xca] sm:$0xff] }
 0x26e   : > { %2351 = vst.msk [vmem:[#allocation2 + $0x139] sm:$0xff] %vm280_vm0, %v2319_v38  ;;  %v2322_v43 = vmax.f32 %v2290_v33, 0.0  ;;  %v2288_v25 = vadd.f32 %v7724_v36, %v2249_v62  ;;  %v2254_v26 = vmul.f32 %v4533_v13, %v7719_v9  ;;  %5353 = vrot.lane.b32.xlu1 %v5352_v16, %s5890_s9  ;;  %v7948_v38 = vld [vmem:[#allocation2 + $0xa8] sm:$0xff]  ;;  %v7952_v62 = vpack.i.bf16 %v2440_v7, %v2439_v28  ;;  %v2412_v13 = vld [vmem:[#allocation2 + $0xf9] sm:$0xff] }
 0x26f   : > { %5313 = vrot.lane.b32.xlu0 %v7826_v61, %s5890_s9  ;;  %v2202_v3 = vpop.f32.mrf.mxu0  ;;  %v5492_v33 = vpack.i.bf16 %v7942_v18, %v7948_v38  ;;  %v2413_v57 = vld [vmem:[#allocation2 + $0x109] sm:$0xff] }
 0x270   : > { %2354 = vst.msk [vmem:[#allocation2 + $0x159] sm:$0xff] %vm280_vm0, %v2322_v43  ;;  %v2320_v23 = vmax.f32 %v2288_v25, 0.0  ;;  %v2293_v11 = vadd.f32 %v7724_v36, %v2254_v26  ;;  %v2252_v44 = vmul.f32 %v7719_v9, %v2202_v3  ;;  %v2411_v25 = vld [vmem:[#allocation2 + $0xf1] sm:$0xff]  ;;  %v7964_v3 = vpop.permute.xlu0 %5233 }
 0x271   : > { %v4534_v10 = vpop.f32.mrf.mxu0  ;;  %v7962_v26 = vpack.i.bf16 %v2412_v13, %v2411_v25  ;;  %v2445_v30 = vld [vmem:[#allocation2 + $0x10a] sm:$0xff]  ;;  %v2446_v42 = vld [vmem:[#allocation2 + $0x112] sm:$0xff] }
 0x272   : > { %2352 = vst.msk [vmem:[#allocation2 + $0x141] sm:$0xff] %vm280_vm0, %v2320_v23  ;;  %v2325_v6 = vmax.f32 %v2293_v11, 0.0  ;;  %v2291_v63 = vadd.f32 %v7724_v36, %v2252_v44  ;;  %v2255_v31 = vmul.f32 %v4534_v10, %v7719_v9  ;;  %5363 = vrot.lane.b32.xlu1 %v5362_v54, %s5894_s13  ;;  %v2410_v23 = vld [vmem:[#allocation2 + $0xe1] sm:$0xff]  ;;  %v2443_v11 = vld [vmem:[#allocation2 + $0xf2] sm:$0xff]  ;;  %v8014_v40 = vpack.i.bf16 %v2446_v42, %v2445_v30 }
 0x273   : > { %5333 = vrot.lane.b32.xlu0 %v7802_v24, %s5894_s13  ;;  %v2205_v55 = vpop.f32.mrf.mxu0  ;;  %v2444_v44 = vld [vmem:[#allocation2 + $0xfa] sm:$0xff]  ;;  %v2476_v45 = vld [vmem:[#allocation2 + $0x110] sm:$0xff] }
 0x274   : > { %2357 = vst.msk [vmem:[#allocation2 + $0x181] sm:$0xff] %vm280_vm0, %v2325_v6  ;;  %v2323_v19 = vmax.f32 %v2291_v63, 0.0  ;;  %v2294_v17 = vadd.f32 %v7724_v36, %v2255_v31  ;;  %v2253_v39 = vmul.f32 %v7719_v9, %v2205_v55  ;;  %v7897_v9 = vld [vmem:[#allocation2 + $0x90] sm:$0xff]  ;;  %v7972_v6 = vpack.i.bf16 %v2444_v44, %v2443_v11  ;;  %v2441_v63 = vld [vmem:[#allocation2 + $0xda] sm:$0xff]  ;;  %v2442_v31 = vld [vmem:[#allocation2 + $0xe2] sm:$0xff] }
 0x275   : > { %v2472_v55 = vld [vmem:[#allocation2 + $0xe0] sm:$0xff]  ;;  %v2419_v25 = vld [vmem:[#allocation2 + $0x151] sm:$0xff] }
 0x276   : > { %2355 = vst.msk [vmem:[#allocation2 + $0x169] sm:$0xff] %vm280_vm0, %v2323_v19  ;;  %v2326_v8 = vmax.f32 %v2294_v17, 0.0  ;;  %v2292_v48 = vadd.f32 %v7724_v36, %v2253_v39  ;;  %5368 = vrot.lane.b32.xlu1 %v7842_v20, %s5895_s16  ;;  %v5397_v36 = vpack.i.bf16 %v7891_v0, %v7897_v9  ;;  %v7978_v19 = vpop.permute.xlu0 %5238  ;;  %v2471_v17 = vld [vmem:[#allocation2 + $0xd8] sm:$0xff]  ;;  %v7980_v39 = vpack.i.bf16 %v2442_v31, %v2441_v63 }
 0x277   : > { %5338 = vrot.lane.b32.xlu0 %v7815_v35, %s5895_s16  ;;  %v2497_v35 = vld [vmem:[#allocation2 + $0x91] sm:$0xff]  ;;  %v2452_v63 = vld [vmem:[#allocation2 + $0x15a] sm:$0xff] }
 0x278   : > { %2358 = vst.msk [vmem:[#allocation2 + $0x189] sm:$0xff] %vm280_vm0, %v2326_v8  ;;  %v2324_v24 = vmax.f32 %v2292_v48, 0.0  ;;  %v5402_v46 = vpack.i.bf16 %v2498_v21, %v2497_v35  ;;  %v7982_v8 = vpack.i.bf16 %v2472_v55, %v2471_v17  ;;  %v2478_v48 = vld [vmem:[#allocation2 + $0x128] sm:$0xff]  ;;  %v2482_v7 = vld [vmem:[#allocation2 + $0x158] sm:$0xff] }
 0x279   : > { %v2418_v44 = vld [vmem:[#allocation2 + $0x141] sm:$0xff]  ;;  %v2417_v31 = vld [vmem:[#allocation2 + $0x139] sm:$0xff] }
 0x27a   : > { %2356 = vst.msk [vmem:[#allocation2 + $0x171] sm:$0xff] %vm280_vm0, %v2324_v24  ;;  %5373 = vrot.lane.b32.xlu1 %v5352_v16, %s5896_s21  ;;  %v2416_v24 = vld [vmem:[#allocation2 + $0x129] sm:$0xff]  ;;  %v8038_v17 = vpack.i.bf16 %v2418_v44, %v2417_v31  ;;  %v5240_v44 = vunpack.i.l.bf16 %v7978_v19 }
 0x27b   : > { %5343 = vrot.lane.b32.xlu0 %v7826_v61, %s5896_s21  ;;  %v5422_v61 = vpack.i.bf16 %v2402_v22, %v2401_v60  ;;  %v2414_v22 = vld [vmem:[#allocation2 + $0x111] sm:$0xff]  ;;  %v2447_v60 = vld [vmem:[#allocation2 + $0x122] sm:$0xff] }
 0x27e   : > { %5398 = vrot.lane.b32.xlu1 %v5397_v36, %s5891_s10 }
 0x27f   : > { %5358 = vrot.lane.b32.xlu0 %v5362_v54, %s5891_s10  ;;  %v2409_v54 = vld [vmem:[#allocation2 + $0xd9] sm:$0xff] }
 0x280   : > { %v7970_v10 = vpack.i.bf16 %v2410_v23, %v2409_v54  ;;  %v2451_v54 = vld [vmem:[#allocation2 + $0x152] sm:$0xff] }
 0x282   : > { %5403 = vrot.lane.b32.xlu1 %v5402_v46, %s5892_s11 }
 0x283   : > { %5378 = vrot.lane.b32.xlu0 %v7842_v20, %s5892_s11  ;;  %v2437_v20 = vld [vmem:[#allocation2 + $0xaa] sm:$0xff] }
 0x284   : > { %v7938_v15 = vpack.i.bf16 %v2438_v47, %v2437_v20  ;;  %v2475_v47 = vld [vmem:[#allocation2 + $0x108] sm:$0xff] }
 0x285   : > { %v8018_v28 = vpack.i.bf16 %v2476_v45, %v2475_v47  ;;  %v5236_v45 = vunpack.i.h.bf16 %v7964_v3  ;;  %v5235_v47 = vunpack.i.l.bf16 %v7964_v3 }
 0x286   : > { %5408 = vrot.lane.b32.xlu1 %v7906_v1, %s5893_s12 }
 0x287   : > { %5383 = vrot.lane.b32.xlu0 %v5352_v16, %s5893_s12  ;;  %v2474_v16 = vld [vmem:[#allocation2 + $0xf8] sm:$0xff] }
 0x288   : > { %v7960_v43 = vpack.i.bf16 %v2474_v16, %v2473_v58  ;;  %v2481_v16 = vld [vmem:[#allocation2 + $0x150] sm:$0xff] }
 0x289   : > { %v8026_v58 = vpack.i.bf16 %v2482_v7, %v2481_v16  ;;  %v2359_v7 = vld [vmem:[#allocation2] sm:$0xff] }
 0x28a   : > { %5423 = vrot.lane.b32.xlu1 %v5422_v61, %s5889_s8  ;;  %v3671_v31 = vsel %vm280_vm0, %v2359_v7, %v5235_v47 }
 0x28b   : > { %5388 = vrot.lane.b32.xlu0 %v5402_v46, %s5889_s8  ;;  %9147 = vst [vmem:[#allocation55_spill] sm:$0xff] %v8026_v58 }
 0x28e   : > { %5428 = vrot.lane.b32.xlu1 %v5427_v32, %s5890_s9 }
 0x28f   : > { %5393 = vrot.lane.b32.xlu0 %v7906_v1, %s5890_s9 }
 0x292   : > { %5438 = vrot.lane.b32.xlu1 %v5437_v4, %s5894_s13 }
 0x293   : > { %5413 = vrot.lane.b32.xlu0 %v5397_v36, %s5894_s13  ;;  %v2477_v36 = vld [vmem:[#allocation2 + $0x120] sm:$0xff] }
 0x294   : > { %v7990_v35 = vpack.i.bf16 %v2478_v48, %v2477_v36  ;;  %v2449_v36 = vld [vmem:[#allocation2 + $0x13a] sm:$0xff] }
 0x296   : > { %5443 = vrot.lane.b32.xlu1 %v5422_v61, %s5895_s16 }
 0x297   : > { %5418 = vrot.lane.b32.xlu0 %v5402_v46, %s5895_s16  ;;  %v2415_v46 = vld [vmem:[#allocation2 + $0x121] sm:$0xff] }
 0x298   : > { %v7994_v41 = vpack.i.bf16 %v2416_v24, %v2415_v46  ;;  %v8042_v24 = vpack.i.bf16 %v2452_v63, %v2451_v54  ;;  %v2450_v46 = vld [vmem:[#allocation2 + $0x142] sm:$0xff] }
 0x29a   : > { %5448 = vrot.lane.b32.xlu1 %v5427_v32, %s5896_s21  ;;  %9149 = vst [vmem:[#allocation57_spill] sm:$0xff] %v8042_v24 }
 0x29b   : > { %5433 = vrot.lane.b32.xlu0 %v5437_v4, %s5891_s10 }
 0x29e   : > { %5473 = vrot.lane.b32.xlu1 %v7928_v51, %s5891_s10 }
 0x29f   : > { %5453 = vrot.lane.b32.xlu0 %v5422_v61, %s5892_s11  ;;  %v2448_v61 = vld [vmem:[#allocation2 + $0x12a] sm:$0xff] }
 0x2a0   : > { %v8006_v27 = vpack.i.bf16 %v2448_v61, %v2447_v60  ;;  %v2479_v61 = vld [vmem:[#allocation2 + $0x138] sm:$0xff] }
 0x2a2   : > { %5478 = vrot.lane.b32.xlu1 %v7933_v56, %s5889_s8 }
 0x2a3   : > { %5458 = vrot.lane.b32.xlu0 %v5427_v32, %s5893_s12  ;;  %v8002_v32 = vpack.i.bf16 %v2414_v22, %v2413_v57  ;;  %v2480_v22 = vld [vmem:[#allocation2 + $0x140] sm:$0xff]  ;;  %v8050_v57 = vpack.i.bf16 %v2450_v46, %v2449_v36  ;;  %v2422_v46 = vld [vmem:[#allocation2 + $0x171] sm:$0xff] }
 0x2a4   : > { %v8052_v42 = vpack.i.bf16 %v2480_v22, %v2479_v61 }
 0x2a5   : > { %9150 = vst [vmem:[#allocation58_spill] sm:$0xff] %v8050_v57 }
 0x2a6   : > { %5483 = vrot.lane.b32.xlu1 %v7938_v15, %s5890_s9 }
 0x2a7   : > { %5463 = vrot.lane.b32.xlu0 %v7940_v34, %s5889_s8 }
 0x2aa   : > { %5493 = vrot.lane.b32.xlu1 %v5492_v33, %s5894_s13 }
 0x2ab   : > { %5468 = vrot.lane.b32.xlu0 %v7952_v62, %s5890_s9 }
 0x2ae   : > { %5498 = vrot.lane.b32.xlu1 %v7933_v56, %s5895_s16 }
 0x2af   : > { %5488 = vrot.lane.b32.xlu0 %v5492_v33, %s5891_s10  ;;  %v2420_v33 = vld [vmem:[#allocation2 + $0x159] sm:$0xff] }
 0x2b0   : > { %v8030_v11 = vpack.i.bf16 %v2420_v33, %v2419_v25  ;;  %v2360_v33 = vld [vmem:[#allocation2 + $0x8] sm:$0xff]  ;;  %v5241_v25 = vunpack.i.h.bf16 %v7978_v19  ;;  %v3703_v19 = vsel %vm1736_vm4, %v3671_v31, %v5240_v44 }
 0x2b1   : > { %v3672_v63 = vsel %vm280_vm0, %v2360_v33, %v5236_v45 }
 0x2b2   : > { %5513 = vrot.lane.b32.xlu1 %v7960_v43, %s5891_s10  ;;  %9148 = vst [vmem:[#allocation56_spill] sm:$0xff] %v8030_v11  ;;  %v3704_v45 = vsel %vm1736_vm4, %v3672_v63, %v5241_v25 }
 0x2b3   : > { %5503 = vrot.lane.b32.xlu0 %v7962_v26, %s5889_s8 }
 0x2b6   : > { %5518 = vrot.lane.b32.xlu1 %v7970_v10, %s5889_s8 }
 0x2b7   : > { %5508 = vrot.lane.b32.xlu0 %v7972_v6, %s5890_s9 }
 0x2ba   : > { %5523 = vrot.lane.b32.xlu1 %v7980_v39, %s5890_s9 }
 0x2bb   : > { %5528 = vrot.lane.b32.xlu0 %v7982_v8, %s5891_s10 }
 0x2bc   : > { %v7988_v21 = vpop.permute.xlu1 %5253 }
 0x2bd   : > { %v7992_v53 = vpop.permute.xlu0 %5243 }
 0x2be   : > { %5543 = vrot.lane.b32.xlu1 %v7990_v35, %s5891_s10 }
 0x2bf   : > { %5533 = vrot.lane.b32.xlu0 %v7994_v41, %s5889_s8 }
 0x2c0   : > { %v8000_v37 = vpop.permute.xlu1 %5258 }
 0x2c1   : > { %v8004_v4 = vpop.permute.xlu0 %5248 }
 0x2c2   : > { %5548 = vrot.lane.b32.xlu1 %v8002_v32, %s5889_s8 }
 0x2c3   : > { %5538 = vrot.lane.b32.xlu0 %v8006_v27, %s5890_s9 }
 0x2c4   : > { %v8012_v20 = vpop.permute.xlu1 %5263 }
 0x2c5   : > { %v8016_v2 = vpop.permute.xlu0 %5268 }
 0x2c6   : > { %5553 = vrot.lane.b32.xlu1 %v8014_v40, %s5890_s9 }
 0x2c7   : > { %5558 = vrot.lane.b32.xlu0 %v8018_v28, %s5891_s10 }
 0x2c8   : > { %v8024_v13 = vpop.permute.xlu1 %5283 }
 0x2c9   : > { %v8028_v23 = vpop.permute.xlu0 %5273 }
 0x2ca   : > { %5573 = vrot.lane.b32.xlu1 %v8026_v58, %s5891_s10  ;;  %v2421_v58 = vld [vmem:[#allocation2 + $0x169] sm:$0xff]  ;;  %v5275_v63 = vunpack.i.l.bf16 %v8028_v23 }
 0x2cb   : > { %5563 = vrot.lane.b32.xlu0 %v8030_v11, %s5889_s8  ;;  %v8074_v47 = vpack.i.bf16 %v2422_v46, %v2421_v58  ;;  %v5276_v58 = vunpack.i.h.bf16 %v8028_v23  ;;  %v5286_v23 = vunpack.i.h.bf16 %v8024_v13 }
 0x2cc   : > { %v8036_v55 = vpop.permute.xlu1 %5288 }
 0x2cd   : > { %v8040_v48 = vpop.permute.xlu0 %5278 }
 0x2ce   : > { %5578 = vrot.lane.b32.xlu1 %v8038_v17, %s5889_s8  ;;  %v5281_v46 = vunpack.i.h.bf16 %v8040_v48 }
 0x2cf   : > { %5568 = vrot.lane.b32.xlu0 %v8042_v24, %s5890_s9 }
 0x2d0   : > { %v8048_v60 = vpop.permute.xlu1 %5318 }
 0x2d1   : > { %v5294_v30 = vpop.permute.xlu0 %5293 }
 0x2d2   : > { %5583 = vrot.lane.b32.xlu1 %v8050_v57, %s5890_s9  ;;  %v5296_v3 = vunpack.i.h.bf16 %v5294_v30  ;;  %v5295_v36 = vunpack.i.l.bf16 %v5294_v30 }
 0x2d3   : > { %5588 = vrot.lane.b32.xlu0 %v8052_v42, %s5891_s10 }
 0x2d4   : > { %v8060_v16 = vpop.permute.xlu1 %5323  ;;  %v3736_v30 = vsel %vm1769_vm5, %v3704_v45, %v5296_v3  ;;  %v3735_v7 = vsel %vm1769_vm5, %v3703_v19, %v5295_v36  ;;  %v2453_v19 = vld [vmem:[#allocation2 + $0x16a] sm:$0xff]  ;;  %v2454_v45 = vld [vmem:[#allocation2 + $0x172] sm:$0xff] }
 0x2d5   : > { %v5299_v54 = vpop.permute.xlu0 %5298 }
 0x2d6   : > { %5598 = vrot.lane.b32.xlu1 %v7938_v15, %s5896_s21  ;;  %v5301_v22 = vunpack.i.h.bf16 %v5299_v54  ;;  %v5300_v61 = vunpack.i.l.bf16 %v5299_v54  ;;  %v5270_v54 = vunpack.i.l.bf16 %v8016_v2 }
 0x2d7   : > { %5593 = vrot.lane.b32.xlu0 %v7906_v1, %s5896_s21  ;;  %v5271_v1 = vunpack.i.h.bf16 %v8016_v2  ;;  %v5280_v2 = vunpack.i.l.bf16 %v8040_v48  ;;  %v5291_v48 = vunpack.i.h.bf16 %v8036_v55 }
 0x2d8   : > { %v8070_v24 = vpop.permute.xlu1 %5328  ;;  %v3767_v44 = vsel %vm1802_vm6, %v3735_v7, %v5300_v61  ;;  %v3768_v25 = vsel %vm1802_vm6, %v3736_v30, %v5301_v22  ;;  %v5290_v30 = vunpack.i.l.bf16 %v8036_v55  ;;  %v3674_v55 = vsel %vm280_vm0, %v7794_v49, %v5286_v23 }
 0x2d9   : > { %v5304_v33 = vpop.permute.xlu0 %5303 }
 0x2da   : > { %v5306_v11 = vunpack.i.h.bf16 %v5304_v33  ;;  %v5305_v57 = vunpack.i.l.bf16 %v5304_v33  ;;  %5608 = vrot.lane.b32.xlu1 %v7940_v34, %s5892_s11 }
 0x2db   : > { %5603 = vrot.lane.b32.xlu0 %v7933_v56, %s5892_s11 }
 0x2dc   : > { %v3799_v31 = vsel %vm1835_vm7, %v3767_v44, %v5305_v57  ;;  %v3800_v3 = vsel %vm1835_vm7, %v3768_v25, %v5306_v11  ;;  %v8090_v36 = vpop.permute.xlu1 %5348  ;;  %v5285_v57 = vunpack.i.l.bf16 %v8024_v13  ;;  %v8112_v44 = vpack.i.bf16 %v2454_v45, %v2453_v19 }
 0x2dd   : > { %v8094_v61 = vpop.permute.xlu0 %5308  ;;  %v3831_v22 = vsel %vm1868_vm8, %v3799_v31, %v5270_v54  ;;  %v3832_v56 = vsel %vm1868_vm8, %v3800_v3, %v5271_v1  ;;  %v5256_v31 = vunpack.i.h.bf16 %v7988_v21  ;;  %v5255_v3 = vunpack.i.l.bf16 %v7988_v21 }
 0x2de   : > { %5618 = vrot.lane.b32.xlu1 %v8074_v47, %s5889_s8  ;;  %v3863_v11 = vsel %vm1901_vm9, %v3831_v22, %v5275_v63  ;;  %v3864_v33 = vsel %vm1901_vm9, %v3832_v56, %v5276_v58  ;;  %v3673_v58 = vsel %vm280_vm0, %v7800_v29, %v5285_v57  ;;  %v3706_v63 = vsel %vm1736_vm4, %v3674_v55, %v5291_v48 }
 0x2df   : > { %5613 = vrot.lane.b32.xlu0 %v7938_v15, %s5893_s12  ;;  %v3895_v7 = vsel %vm1934_vm10, %v3863_v11, %v5280_v2  ;;  %v3896_v1 = vsel %vm1934_vm10, %v3864_v33, %v5281_v46  ;;  %v3705_v15 = vsel %vm1736_vm4, %v3673_v58, %v5290_v30  ;;  %v3738_v2 = vsel %vm1769_vm5, %v3706_v63, %v5256_v31 }
 0x2e0   : > { %v8110_v54 = vpop.permute.xlu1 %5353  ;;  %v3927_v13 = vpack.c.bf16 %v3896_v1, %v3895_v7  ;;  %v3737_v49 = vsel %vm1769_vm5, %v3705_v15, %v5255_v3  ;;  %v5261_v22 = vunpack.i.h.bf16 %v8000_v37  ;;  %v5260_v56 = vunpack.i.l.bf16 %v8000_v37 }
 0x2e1   : > { %v8114_v25 = vpop.permute.xlu0 %5313  ;;  %v5266_v11 = vunpack.i.h.bf16 %v8012_v20  ;;  %v5265_v33 = vunpack.i.l.bf16 %v8012_v20 }
 0x2e2   : > { %4541 = vmatprep.mubr.msk.bf16.mxu1 %vm2003_vm11, %v3927_v13  ;;  %5623 = vrot.lane.b32.xlu1 %v8112_v44, %s5890_s9  ;;  %v3769_v21 = vsel %vm1802_vm6, %v3737_v49, %v5260_v56  ;;  %v3770_v19 = vsel %vm1802_vm6, %v3738_v2, %v5261_v22  ;;  %v5245_v49 = vunpack.i.l.bf16 %v7992_v53  ;;  %v5246_v2 = vunpack.i.h.bf16 %v7992_v53 }
 0x2e3   : > { %5633 = vrot.lane.b32.xlu0 %v7928_v51, %s5894_s13  ;;  %v3802_v37 = vsel %vm1835_vm7, %v3770_v19, %v5266_v11  ;;  %v5250_v22 = vunpack.i.l.bf16 %v8004_v4  ;;  %v5351_v56 = vunpack.i.h.bf16 %v8090_v36  ;;  %v5356_v19 = vunpack.i.h.bf16 %v8110_v54 }
 0x2e4   : > { %v5364_v29 = vpop.permute.xlu1 %5363  ;;  %v3675_v53 = vsel %vm280_vm0, %v7749_v59, %v5245_v49 }
 0x2e5   : > { %v8129_v46 = vpop.permute.xlu0 %5333  ;;  %v5366_v45 = vunpack.i.h.bf16 %v5364_v29  ;;  %v5365_v23 = vunpack.i.l.bf16 %v5364_v29 }
 0x2e6   : > { %5628 = vrot.lane.b32.xlu1 %v7952_v62, %s5893_s12 }
 0x2e7   : > { %5643 = vrot.lane.b32.xlu0 %v7940_v34, %s5895_s16  ;;  %v3801_v34 = vsel %vm1835_vm7, %v3769_v21, %v5265_v33  ;;  %v3834_v1 = vsel %vm1868_vm8, %v3802_v37, %v5366_v45  ;;  %v5355_v45 = vunpack.i.l.bf16 %v8110_v54 }
 0x2e8   : > { %v5369_v51 = vpop.permute.xlu1 %5368  ;;  %v3833_v13 = vsel %vm1868_vm8, %v3801_v34, %v5365_v23  ;;  %v3678_v34 = vsel %vm280_vm0, %v7857_v12, %v5351_v56  ;;  %v5335_v12 = vunpack.i.l.bf16 %v8129_v46 }
 0x2e9   : > { %v8141_v57 = vpop.permute.xlu0 %5338  ;;  %v5371_v48 = vunpack.i.h.bf16 %v5369_v51  ;;  %v5370_v30 = vunpack.i.l.bf16 %v5369_v51  ;;  %v5350_v51 = vunpack.i.l.bf16 %v8090_v36 }
 0x2ea   : > { %5638 = vrot.lane.b32.xlu1 %v7982_v8, %s5894_s13 }
 0x2eb   : > { %5653 = vrot.lane.b32.xlu0 %v7952_v62, %s5896_s21  ;;  %v3865_v15 = vsel %vm1901_vm9, %v3833_v13, %v5370_v30  ;;  %v3866_v8 = vsel %vm1901_vm9, %v3834_v1, %v5371_v48  ;;  %v5321_v30 = vunpack.i.h.bf16 %v8048_v60  ;;  %v3677_v59 = vsel %vm280_vm0, %v7868_v14, %v5350_v51 }
 0x2ec   : > { %v5374_v7 = vpop.permute.xlu1 %5373  ;;  %v8202_v1 = vsel %vm1736_vm4, %v3678_v34, %v5356_v19 }
 0x2ed   : > { %v8153_v58 = vpop.permute.xlu0 %5343  ;;  %v5376_v20 = vunpack.i.h.bf16 %v5374_v7  ;;  %v5375_v55 = vunpack.i.l.bf16 %v5374_v7  ;;  %v8199_v7 = vsel %vm1736_vm4, %v3677_v59, %v5355_v45 }
 0x2ee   : > { %5648 = vrot.lane.b32.xlu1 %v7970_v10, %s5895_s16 }
 0x2ef   : > { %v3897_v62 = vsel %vm1934_vm10, %v3865_v15, %v5375_v55  ;;  %v3898_v63 = vsel %vm1934_vm10, %v3866_v8, %v5376_v20  ;;  %5663 = vrot.lane.b32.xlu0 %v7970_v10, %s5892_s11  ;;  %v5251_v10 = vunpack.i.h.bf16 %v8004_v4  ;;  %v3707_v4 = vsel %vm1736_vm4, %v3675_v53, %v5250_v22 }
 0x2f0   : > { %v8163_v31 = vpop.permute.xlu1 %5398  ;;  %v3928_v3 = vpack.c.bf16 %v3898_v63, %v3897_v62  ;;  %v5341_v8 = vunpack.i.h.bf16 %v8141_v57 }
 0x2f1   : > { %v5359_v29 = vpop.permute.xlu0 %5358 }
 0x2f2   : > { %4542 = vmatmul.mubr.msk.bf16.vlgmr.msra.gmra.mxu1 %vm2003_vm11, %v3928_v3  ;;  %5658 = vrot.lane.b32.xlu1 %v7980_v39, %s5896_s21  ;;  %v5361_v11 = vunpack.i.h.bf16 %v5359_v29  ;;  %v5360_v33 = vunpack.i.l.bf16 %v5359_v29  ;;  %v5340_v3 = vunpack.i.l.bf16 %v8141_v57  ;;  %v5346_v29 = vunpack.i.h.bf16 %v8153_v58 }
 0x2f3   : > { %5673 = vrot.lane.b32.xlu0 %v7980_v39, %s5893_s12  ;;  %v3676_v39 = vsel %vm280_vm0, %v7751_v52, %v5246_v2  ;;  %v5320_v52 = vunpack.i.l.bf16 %v8048_v60 }
 0x2f4   : > { %v8176_v21 = vpop.permute.xlu1 %5403  ;;  %v3708_v54 = vsel %vm1736_vm4, %v3676_v39, %v5251_v10  ;;  %v3739_v14 = vsel %vm1769_vm5, %v3707_v4, %v5360_v33  ;;  %v5401_v10 = vunpack.i.h.bf16 %v8163_v31  ;;  %v5400_v39 = vunpack.i.l.bf16 %v8163_v31 }
 0x2f5   : > { %v5379_v23 = vpop.permute.xlu0 %5378  ;;  %v3740_v20 = vsel %vm1769_vm5, %v3708_v54, %v5361_v11  ;;  %v5406_v4 = vunpack.i.h.bf16 %v8176_v21 }
 0x2f6   : > { %5668 = vrot.lane.b32.xlu1 %v7962_v26, %s5892_s11  ;;  %v5381_v36 = vunpack.i.h.bf16 %v5379_v23  ;;  %v5380_v48 = vunpack.i.l.bf16 %v5379_v23 }
 0x2f7   : > { %5683 = vrot.lane.b32.xlu0 %v7960_v43, %s5894_s13  ;;  %v5336_v43 = vunpack.i.h.bf16 %v8129_v46  ;;  %v5345_v46 = vunpack.i.l.bf16 %v8153_v58 }
 0x2f8   : > { %v8195_v37 = vpop.permute.xlu1 %5408  ;;  %v3771_v62 = vsel %vm1802_vm6, %v3739_v14, %v5380_v48  ;;  %v3772_v63 = vsel %vm1802_vm6, %v3740_v20, %v5381_v36  ;;  %v5405_v36 = vunpack.i.l.bf16 %v8176_v21 }
 0x2f9   : > { %v5384_v13 = vpop.permute.xlu0 %5383  ;;  %v5411_v54 = vunpack.i.h.bf16 %v8195_v37  ;;  %v5410_v59 = vunpack.i.l.bf16 %v8195_v37 }
 0x2fa   : > { %v5386_v55 = vunpack.i.h.bf16 %v5384_v13  ;;  %v5385_v15 = vunpack.i.l.bf16 %v5384_v13  ;;  %5678 = vrot.lane.b32.xlu1 %v7972_v6, %s5893_s12 }
 0x2fb   : > { %5693 = vrot.lane.b32.xlu0 %v7962_v26, %s5895_s16 }
 0x2fc   : > { %v3803_v49 = vsel %vm1835_vm7, %v3771_v62, %v5385_v15  ;;  %v3804_v2 = vsel %vm1835_vm7, %v3772_v63, %v5386_v55  ;;  %v5424_v22 = vpop.permute.xlu1 %5423 }
 0x2fd   : > { %v3835_v56 = vsel %vm1868_vm8, %v3803_v49, %v5335_v12  ;;  %v3836_v51 = vsel %vm1868_vm8, %v3804_v2, %v5336_v43  ;;  %v5389_v19 = vpop.permute.xlu0 %5388  ;;  %v5426_v45 = vunpack.i.h.bf16 %v5424_v22  ;;  %v5425_v26 = vunpack.i.l.bf16 %v5424_v22 }
 0x2fe   : > { %5688 = vrot.lane.b32.xlu1 %v8018_v28, %s5894_s13  ;;  %v3867_v57 = vsel %vm1901_vm9, %v3835_v56, %v5340_v3  ;;  %v3868_v23 = vsel %vm1901_vm9, %v3836_v51, %v5341_v8  ;;  %v5391_v53 = vunpack.i.h.bf16 %v5389_v19  ;;  %v5390_v11 = vunpack.i.l.bf16 %v5389_v19 }
 0x2ff   : > { %5703 = vrot.lane.b32.xlu0 %v7972_v6, %s5896_s21  ;;  %v3899_v58 = vsel %vm1934_vm10, %v3867_v57, %v5345_v46  ;;  %v3900_v33 = vsel %vm1934_vm10, %v3868_v23, %v5346_v29  ;;  %v3681_v6 = vsel %vm280_vm0, %v7918_v50, %v5425_v26  ;;  %v3682_v20 = vsel %vm280_vm0, %v7913_v5, %v5426_v45 }
 0x300   : > { %v5429_v28 = vpop.permute.xlu1 %5428  ;;  %v3929_v48 = vpack.c.bf16 %v3900_v33, %v3899_v58  ;;  %v3683_v21 = vsel %vm280_vm0, %v7897_v9, %v5390_v11  ;;  %v3684_v37 = vsel %vm280_vm0, %v7891_v0, %v5391_v53  ;;  %v3742_v3 = vsel %vm1769_vm5, %v8202_v1, %v5321_v30 }
 0x301   : > { %v5394_v34 = vpop.permute.xlu0 %5393  ;;  %v5431_v43 = vunpack.i.h.bf16 %v5429_v28  ;;  %v5430_v13 = vunpack.i.l.bf16 %v5429_v28  ;;  %v5326_v2 = vunpack.i.h.bf16 %v8060_v16  ;;  %v5325_v22 = vunpack.i.l.bf16 %v8060_v16 }
 0x302   : > { %v5396_v31 = vunpack.i.h.bf16 %v5394_v34  ;;  %v5395_v14 = vunpack.i.l.bf16 %v5394_v34  ;;  %4545 = vmatprep.mubr.msk.bf16.mxu1 %vm2003_vm11, %v3929_v48  ;;  %5698 = vrot.lane.b32.xlu1 %v8002_v32, %s5895_s16  ;;  %v5330_v56 = vunpack.i.l.bf16 %v8070_v24 }
 0x303   : > { %v3713_v55 = vsel %vm1736_vm4, %v3681_v6, %v5430_v13  ;;  %v3714_v50 = vsel %vm1736_vm4, %v3682_v20, %v5431_v43  ;;  %5713 = vrot.lane.b32.xlu0 %v8002_v32, %s5892_s11  ;;  %v3741_v32 = vsel %vm1769_vm5, %v8199_v7, %v5320_v52  ;;  %v3774_v30 = vsel %vm1802_vm6, %v3742_v3, %v5326_v2  ;;  %v9153_v2 = vld [vmem:[#allocation55_spill] sm:$0xff] }
 0x304   : > { %v8252_v5 = vsel %vm1736_vm4, %v3683_v21, %v5395_v14  ;;  %v8255_v15 = vsel %vm1736_vm4, %v3684_v37, %v5396_v31  ;;  %v3745_v12 = vsel %vm1769_vm5, %v3713_v55, %v5400_v39  ;;  %v3746_v9 = vsel %vm1769_vm5, %v3714_v50, %v5401_v10  ;;  %v5439_v8 = vpop.permute.xlu1 %5438  ;;  %v9151_v31 = vld [vmem:[#allocation58_spill] sm:$0xff] }
 0x305   : > { %v8259_v62 = vpop.permute.xlu0 %5413  ;;  %v3777_v0 = vsel %vm1802_vm6, %v3745_v12, %v5405_v36  ;;  %v3778_v63 = vsel %vm1802_vm6, %v3746_v9, %v5406_v4  ;;  %v3773_v52 = vsel %vm1802_vm6, %v3741_v32, %v5325_v22  ;;  %v5441_v7 = vunpack.i.h.bf16 %v5439_v8  ;;  %v2375_v12 = vld [vmem:[#allocation2 + $0xc0] sm:$0xff]  ;;  %v2376_v9 = vld [vmem:[#allocation2 + $0xc8] sm:$0xff] }
 0x306   : > { %5708 = vrot.lane.b32.xlu1 %v8014_v40, %s5896_s21  ;;  %v8274_v29 = vsel %vm1835_vm7, %v3777_v0, %v5410_v59  ;;  %v8277_v49 = vsel %vm1835_vm7, %v3778_v63, %v5411_v54  ;;  %v5440_v1 = vunpack.i.l.bf16 %v5439_v8  ;;  %v5331_v10 = vunpack.i.h.bf16 %v8070_v24  ;;  %v9152_v63 = vld [vmem:[#allocation56_spill] sm:$0xff] }
 0x307   : > { %5723 = vrot.lane.b32.xlu0 %v8014_v40, %s5893_s12  ;;  %v3805_v40 = vsel %vm1835_vm7, %v3773_v52, %v5330_v56 }
 0x308   : > { %v5444_v60 = vpop.permute.xlu1 %5443  ;;  %v3806_v16 = vsel %vm1835_vm7, %v3774_v30, %v5331_v10  ;;  %v3837_v57 = vsel %vm1868_vm8, %v3805_v40, %v5440_v1  ;;  %v9154_v1 = vld [vmem:[#allocation57_spill] sm:$0xff]  ;;  %v8360_v10 = vld [vmem:[#allocation2 + $0x168] sm:$0xff] }
 0x309   : > { %v8285_v46 = vpop.permute.xlu0 %5418  ;;  %v5446_v51 = vunpack.i.h.bf16 %v5444_v60  ;;  %v5445_v19 = vunpack.i.l.bf16 %v5444_v60  ;;  %v3838_v26 = vsel %vm1868_vm8, %v3806_v16, %v5441_v7  ;;  %v8354_v7 = vld [vmem:[#allocation2 + $0x170] sm:$0xff] }
 0x30a   : > { %5718 = vrot.lane.b32.xlu1 %v7994_v41, %s5892_s11 }
 0x30b   : > { %5733 = vrot.lane.b32.xlu0 %v7990_v35, %s5894_s13  ;;  %v3869_v11 = vsel %vm1901_vm9, %v3837_v57, %v5445_v19  ;;  %v3870_v58 = vsel %vm1901_vm9, %v3838_v26, %v5446_v51  ;;  %v5787_v51 = vpack.i.bf16 %v8354_v7, %v8360_v10  ;;  %v2379_v57 = vld [vmem:[#allocation2 + $0xf0] sm:$0xff] }
 0x30c   : > { %v5449_v45 = vpop.permute.xlu1 %5448 }
 0x30d   : > { %v8297_v23 = vpop.permute.xlu0 %5433  ;;  %v5451_v24 = vunpack.i.h.bf16 %v5449_v45  ;;  %v5450_v53 = vunpack.i.l.bf16 %v5449_v45 }
 0x30e   : > { %5728 = vrot.lane.b32.xlu1 %v8006_v27, %s5893_s12 }
 0x30f   : > { %v3901_v35 = vsel %vm1934_vm10, %v3869_v11, %v5450_v53  ;;  %v3902_v33 = vsel %vm1934_vm10, %v3870_v58, %v5451_v24  ;;  %5743 = vrot.lane.b32.xlu0 %v7994_v41, %s5895_s16  ;;  %v2380_v24 = vld [vmem:[#allocation2 + $0xf8] sm:$0xff] }
 0x310   : > { %v3930_v39 = vpack.c.bf16 %v3902_v33, %v3901_v35  ;;  %v5474_v4 = vpop.permute.xlu1 %5473 }
 0x311   : > { %v8307_v36 = vpop.permute.xlu0 %5453  ;;  %v5476_v6 = vunpack.i.h.bf16 %v5474_v4 }
 0x312   : > { %4546 = vmatmul.mubr.msk.bf16.gmra.mxu1 %vm2003_vm11, %v3930_v39  ;;  %5738 = vrot.lane.b32.xlu1 %v8052_v42, %s5894_s13  ;;  %v5475_v42 = vunpack.i.l.bf16 %v5474_v4 }
 0x313   : > { %5753 = vrot.lane.b32.xlu0 %v8006_v27, %s5896_s21 }
 0x314   : > { %v5479_v28 = vpop.permute.xlu1 %5478 }
 0x315   : > { %v8314_v48 = vpop.permute.xlu0 %5458  ;;  %v5481_v54 = vunpack.i.h.bf16 %v5479_v28  ;;  %v5480_v59 = vunpack.i.l.bf16 %v5479_v28 }
 0x316   : > { %5748 = vrot.lane.b32.xlu1 %v8038_v17, %s5895_s16 }
 0x317   : > { %5763 = vrot.lane.b32.xlu0 %v8038_v17, %s5892_s11  ;;  %v3685_v27 = vsel %vm280_vm0, %v7948_v38, %v5480_v59  ;;  %v3686_v20 = vsel %vm280_vm0, %v7942_v18, %v5481_v54  ;;  %v2377_v59 = vld [vmem:[#allocation2 + $0xd8] sm:$0xff] }
 0x318   : > { %v5484_v41 = vpop.permute.xlu1 %5483 }
 0x319   : > { %v5464_v34 = vpop.permute.xlu0 %5463  ;;  %v5486_v43 = vunpack.i.h.bf16 %v5484_v41  ;;  %v5485_v13 = vunpack.i.l.bf16 %v5484_v41  ;;  %v2378_v41 = vld [vmem:[#allocation2 + $0xe0] sm:$0xff] }
 0x31a   : > { %5758 = vrot.lane.b32.xlu1 %v9151_v31, %s5896_s21  ;;  %v5466_v14 = vunpack.i.h.bf16 %v5464_v34  ;;  %v5465_v21 = vunpack.i.l.bf16 %v5464_v34 }
 0x31b   : > { %v3717_v37 = vsel %vm1736_vm4, %v3685_v27, %v5485_v13  ;;  %v3718_v17 = vsel %vm1736_vm4, %v3686_v20, %v5486_v43  ;;  %5773 = vrot.lane.b32.xlu0 %v9151_v31, %s5893_s12 }
 0x31c   : > { %v8330_v55 = vpop.permute.xlu1 %5493  ;;  %v8333_v50 = vsel %vm1769_vm5, %v3717_v37, %v5475_v42  ;;  %v8336_v38 = vsel %vm1769_vm5, %v3718_v17, %v5476_v6  ;;  %v3687_v32 = vsel %vm280_vm0, %v2375_v12, %v5465_v21  ;;  %v3688_v3 = vsel %vm280_vm0, %v2376_v9, %v5466_v14  ;;  %v2486_v6 = vld [vmem:[#allocation2 + $0x188] sm:$0xff]  ;;  %v2485_v37 = vld [vmem:[#allocation2 + $0x180] sm:$0xff] }
 0x31d   : > { %v5469_v18 = vpop.permute.xlu0 %5468 }
 0x31e   : > { %v5471_v8 = vunpack.i.h.bf16 %v5469_v18  ;;  %v5470_v0 = vunpack.i.l.bf16 %v5469_v18  ;;  %5768 = vrot.lane.b32.xlu1 %v9152_v63, %s5892_s11  ;;  %v5817_v18 = vpack.i.bf16 %v2486_v6, %v2485_v37 }
 0x31f   : > { %5783 = vrot.lane.b32.xlu0 %v9153_v2, %s5894_s13  ;;  %v8399_v2 = vld [vmem:[#allocation2 + $0x1a0] sm:$0xff] }
 0x320   : > { %v8345_v22 = vsel %vm1736_vm4, %v3687_v32, %v5470_v0  ;;  %v8348_v60 = vsel %vm1736_vm4, %v3688_v3, %v5471_v8  ;;  %v8350_v52 = vpop.permute.xlu1 %5498  ;;  %v2518_v0 = vld [vmem:[#allocation2 + $0x189] sm:$0xff]  ;;  %v8397_v3 = vld [vmem:[#allocation2 + $0x198] sm:$0xff] }
 0x321   : > { %v8352_v30 = vpop.permute.xlu0 %5488  ;;  %v2550_v32 = vld [vmem:[#allocation2 + $0x18a] sm:$0xff] }
 0x322   : > { %5778 = vrot.lane.b32.xlu1 %v9154_v1, %s5893_s12 }
 0x323   : > { %5793 = vrot.lane.b32.xlu0 %v9152_v63, %s5895_s16  ;;  %v2549_v63 = vld [vmem:[#allocation2 + $0x182] sm:$0xff] }
 0x324   : > { %v5514_v56 = vpop.permute.xlu1 %5513 }
 0x325   : > { %v5504_v19 = vpop.permute.xlu0 %5503  ;;  %v5516_v42 = vunpack.i.h.bf16 %v5514_v56  ;;  %v5515_v27 = vunpack.i.l.bf16 %v5514_v56  ;;  %v2517_v56 = vld [vmem:[#allocation2 + $0x181] sm:$0xff] }
 0x326   : > { %5788 = vrot.lane.b32.xlu1 %v5787_v51, %s5894_s13  ;;  %v5506_v40 = vunpack.i.h.bf16 %v5504_v19  ;;  %v5505_v16 = vunpack.i.l.bf16 %v5504_v19  ;;  %v5827_v19 = vpack.i.bf16 %v2518_v0, %v2517_v56  ;;  %v2613_v0 = vld [vmem:[#allocation2 + $0x199] sm:$0xff] }
 0x327   : > { %5803 = vrot.lane.b32.xlu0 %v9154_v1, %s5896_s21 }
 0x328   : > { %v5519_v45 = vpop.permute.xlu1 %5518  ;;  %v3691_v33 = vsel %vm280_vm0, %v2379_v57, %v5505_v16  ;;  %v3692_v39 = vsel %vm280_vm0, %v2380_v24, %v5506_v40  ;;  %v5311_v40 = vunpack.i.h.bf16 %v8094_v61  ;;  %v5310_v16 = vunpack.i.l.bf16 %v8094_v61  ;;  %v2383_v24 = vld [vmem:[#allocation2 + $0x120] sm:$0xff] }
 0x329   : > { %v5509_v26 = vpop.permute.xlu0 %5508  ;;  %v5521_v58 = vunpack.i.h.bf16 %v5519_v45  ;;  %v5520_v35 = vunpack.i.l.bf16 %v5519_v45  ;;  %v5847_v57 = vpack.i.bf16 %v8399_v2, %v8397_v3  ;;  %v2614_v2 = vld [vmem:[#allocation2 + $0x1a1] sm:$0xff] }
 0x32a   : > { %v5511_v53 = vunpack.i.h.bf16 %v5509_v26  ;;  %v5510_v11 = vunpack.i.l.bf16 %v5509_v26  ;;  %5798 = vrot.lane.b32.xlu1 %v8074_v47, %s5895_s16  ;;  %v5837_v26 = vpack.i.bf16 %v2550_v32, %v2549_v63  ;;  %v5456_v63 = vunpack.i.h.bf16 %v8307_v36 }
 0x32b   : > { %5813 = vrot.lane.b32.xlu0 %v5787_v51, %s5891_s10  ;;  %v3689_v20 = vsel %vm280_vm0, %v2377_v59, %v5520_v35  ;;  %v3690_v31 = vsel %vm280_vm0, %v2378_v41, %v5521_v58  ;;  %v5436_v59 = vunpack.i.h.bf16 %v8297_v23  ;;  %v5435_v41 = vunpack.i.l.bf16 %v8297_v23 }
 0x32c   : > { %v8373_v4 = vsel %vm1736_vm4, %v3691_v33, %v5510_v11  ;;  %v8376_v28 = vsel %vm1736_vm4, %v3692_v39, %v5511_v53  ;;  %v5524_v54 = vpop.permute.xlu1 %5523  ;;  %v2384_v53 = vld [vmem:[#allocation2 + $0x128] sm:$0xff]  ;;  %v5315_v39 = vunpack.i.l.bf16 %v8114_v25  ;;  %v5455_v32 = vunpack.i.l.bf16 %v8307_v36 }
 0x32d   : > { %v8378_v34 = vpop.permute.xlu0 %5528  ;;  %v5526_v43 = vunpack.i.h.bf16 %v5524_v54  ;;  %v5525_v13 = vunpack.i.l.bf16 %v5524_v54 }
 0x32e   : > { %5808 = vrot.lane.b32.xlu1 %v8112_v44, %s5896_s21 }
 0x32f   : > { %v3721_v14 = vsel %vm1736_vm4, %v3689_v20, %v5525_v13  ;;  %v3722_v21 = vsel %vm1736_vm4, %v3690_v31, %v5526_v43  ;;  %5823 = vrot.lane.b32.xlu0 %v8074_v47, %s5892_s11  ;;  %v2382_v20 = vld [vmem:[#allocation2 + $0x110] sm:$0xff] }
 0x330   : > { %v8388_v17 = vpop.permute.xlu1 %5543  ;;  %v8391_v12 = vsel %vm1769_vm5, %v3721_v14, %v5515_v27  ;;  %v8394_v9 = vsel %vm1769_vm5, %v3722_v21, %v5516_v42  ;;  %v2381_v27 = vld [vmem:[#allocation2 + $0x108] sm:$0xff] }
 0x331   : > { %v5534_v8 = vpop.permute.xlu0 %5533  ;;  %v5546_v42 = vunpack.i.h.bf16 %v8388_v17 }
 0x332   : > { %5818 = vrot.lane.b32.xlu1 %v5817_v18, %s5891_s10  ;;  %v5536_v47 = vunpack.i.h.bf16 %v5534_v8  ;;  %v5535_v1 = vunpack.i.l.bf16 %v5534_v8 }
 0x333   : > { %5833 = vrot.lane.b32.xlu0 %v8112_v44, %s5893_s12  ;;  %v5316_v44 = vunpack.i.h.bf16 %v8114_v25  ;;  %v5545_v25 = vunpack.i.l.bf16 %v8388_v17 }
 0x334   : > { %v5549_v51 = vpop.permute.xlu1 %5548  ;;  %v3695_v54 = vsel %vm280_vm0, %v2383_v24, %v5535_v1  ;;  %v3696_v61 = vsel %vm280_vm0, %v2384_v53, %v5536_v47  ;;  %v2645_v47 = vld [vmem:[#allocation2 + $0x19a] sm:$0xff]  ;;  %v2646_v1 = vld [vmem:[#allocation2 + $0x1a2] sm:$0xff] }
 0x335   : > { %v5539_v45 = vpop.permute.xlu0 %5538  ;;  %v5551_v35 = vunpack.i.h.bf16 %v5549_v51  ;;  %v5550_v33 = vunpack.i.l.bf16 %v5549_v51 }
 0x336   : > { %v5541_v11 = vunpack.i.h.bf16 %v5539_v45  ;;  %v5540_v58 = vunpack.i.l.bf16 %v5539_v45  ;;  %5828 = vrot.lane.b32.xlu1 %v5827_v19, %s5892_s11 }
 0x337   : > { %5843 = vrot.lane.b32.xlu0 %v5817_v18, %s5894_s13  ;;  %v3693_v37 = vsel %vm280_vm0, %v2381_v27, %v5550_v33  ;;  %v3694_v23 = vsel %vm280_vm0, %v2382_v20, %v5551_v35  ;;  %v5460_v35 = vunpack.i.l.bf16 %v8314_v48 }
 0x338   : > { %v8416_v43 = vsel %vm1736_vm4, %v3695_v54, %v5540_v58  ;;  %v8419_v13 = vsel %vm1736_vm4, %v3696_v61, %v5541_v11  ;;  %v5554_v6 = vpop.permute.xlu1 %5553  ;;  %v5879_v11 = vld [vmem:[#allocation2 + $0x68] sm:$0xff]  ;;  %v5857_v61 = vpack.i.bf16 %v2614_v2, %v2613_v0  ;;  %v5495_v0 = vunpack.i.l.bf16 %v8330_v55 }
 0x339   : > { %v5559_v31 = vpop.permute.xlu0 %5558  ;;  %v5556_v14 = vunpack.i.h.bf16 %v5554_v6  ;;  %v5555_v21 = vunpack.i.l.bf16 %v5554_v6  ;;  %v3680_v58 = vsel %vm280_vm0, %v5879_v11, %v5311_v40  ;;  %v5867_v6 = vpack.i.bf16 %v2646_v1, %v2645_v47 }
 0x33a   : > { %v5561_v18 = vunpack.i.h.bf16 %v5559_v31  ;;  %v5560_v8 = vunpack.i.l.bf16 %v5559_v31  ;;  %5838 = vrot.lane.b32.xlu1 %v5837_v26, %s5893_s12  ;;  %v3712_v54 = vsel %vm1736_vm4, %v3680_v58, %v5316_v44  ;;  %v5416_v40 = vunpack.i.h.bf16 %v8259_v62 }
 0x33b   : > { %v3725_v17 = vsel %vm1736_vm4, %v3693_v37, %v5555_v21  ;;  %v3726_v3 = vsel %vm1736_vm4, %v3694_v23, %v5556_v14  ;;  %5853 = vrot.lane.b32.xlu0 %v5827_v19, %s5895_s16  ;;  %v5878_v19 = vld [vmem:[#allocation2 + $0x60] sm:$0xff]  ;;  %v5420_v31 = vunpack.i.l.bf16 %v8285_v46  ;;  %v2387_v21 = vld [vmem:[#allocation2 + $0x150] sm:$0xff] }
 0x33c   : > { %v8433_v56 = vsel %vm1769_vm5, %v8376_v28, %v5561_v18  ;;  %v8437_v51 = vsel %vm1769_vm5, %v8373_v4, %v5560_v8  ;;  %v8439_v45 = vpop.permute.xlu1 %5573  ;;  %v8442_v36 = vsel %vm1769_vm5, %v3725_v17, %v5545_v25  ;;  %v8445_v24 = vsel %vm1769_vm5, %v3726_v3, %v5546_v42 }
 0x33d   : > { %v3679_v53 = vsel %vm280_vm0, %v5878_v19, %v5310_v16  ;;  %v5461_v28 = vunpack.i.h.bf16 %v8314_v48  ;;  %v5564_v4 = vpop.permute.xlu0 %5563  ;;  %v3744_v42 = vsel %vm1769_vm5, %v3712_v54, %v5436_v59  ;;  %v5415_v48 = vunpack.i.l.bf16 %v8259_v62 }
 0x33e   : > { %v3711_v33 = vsel %vm1736_vm4, %v3679_v53, %v5315_v39  ;;  %5848 = vrot.lane.b32.xlu1 %v5847_v57, %s5894_s13  ;;  %v5566_v25 = vunpack.i.h.bf16 %v5564_v4  ;;  %v5565_v27 = vunpack.i.l.bf16 %v5564_v4  ;;  %v3776_v44 = vsel %vm1802_vm6, %v3744_v42, %v5456_v63  ;;  %v2386_v53 = vld [vmem:[#allocation2 + $0x140] sm:$0xff] }
 0x33f   : > { %v3743_v16 = vsel %vm1769_vm5, %v3711_v33, %v5435_v41  ;;  %5863 = vrot.lane.b32.xlu0 %v5837_v26, %s5896_s21  ;;  %v5421_v57 = vunpack.i.h.bf16 %v8285_v46  ;;  %v3808_v41 = vsel %vm1835_vm7, %v3776_v44, %v5461_v28  ;;  %v2388_v26 = vld [vmem:[#allocation2 + $0x158] sm:$0xff]  ;;  %v5496_v8 = vunpack.i.h.bf16 %v8330_v55 }
 0x340   : > { %v3775_v39 = vsel %vm1802_vm6, %v3743_v16, %v5455_v32  ;;  %v5579_v20 = vpop.permute.xlu1 %5578  ;;  %v3699_v63 = vsel %vm280_vm0, %v2387_v21, %v5565_v27  ;;  %v3700_v46 = vsel %vm280_vm0, %v2388_v26, %v5566_v25  ;;  %v5501_v32 = vunpack.i.h.bf16 %v8350_v52  ;;  %v2385_v55 = vld [vmem:[#allocation2 + $0x138] sm:$0xff] }
 0x341   : > { %v3807_v59 = vsel %vm1835_vm7, %v3775_v39, %v5460_v35  ;;  %v5569_v14 = vpop.permute.xlu0 %5568  ;;  %v5581_v18 = vunpack.i.h.bf16 %v5579_v20  ;;  %v5580_v62 = vunpack.i.l.bf16 %v5579_v20  ;;  %v5500_v17 = vunpack.i.l.bf16 %v8350_v52 }
 0x342   : > { %v5571_v37 = vunpack.i.h.bf16 %v5569_v14  ;;  %v5570_v23 = vunpack.i.l.bf16 %v5569_v14  ;;  %5858 = vrot.lane.b32.xlu1 %v5857_v61, %s5895_s16  ;;  %v5576_v1 = vunpack.i.h.bf16 %v8439_v45  ;;  %v5575_v19 = vunpack.i.l.bf16 %v8439_v45  ;;  %s8682_s16 = scalar_lea.vmem %s8854_s7, %s4457_s27 }
 0x343   : > { %v3697_v35 = vsel %vm280_vm0, %v2385_v55, %v5580_v62  ;;  %v3698_v52 = vsel %vm280_vm0, %v2386_v53, %v5581_v18  ;;  %v3839_v54 = vsel %vm1868_vm8, %v3807_v59, %v5415_v48  ;;  %v3840_v61 = vsel %vm1868_vm8, %v3808_v41, %v5416_v40 }
 0x344   : > { %v8473_v3 = vsel %vm1736_vm4, %v3699_v63, %v5570_v23  ;;  %v8476_v2 = vsel %vm1736_vm4, %v3700_v46, %v5571_v37  ;;  %v5584_v47 = vpop.permute.xlu1 %5583  ;;  %v3842_v40 = vsel %vm1868_vm8, %v8277_v49, %v5496_v8  ;;  %v3841_v48 = vsel %vm1868_vm8, %v8274_v29, %v5495_v0 }
 0x345   : > { %v5589_v11 = vpop.permute.xlu0 %5588  ;;  %v5586_v58 = vunpack.i.h.bf16 %v5584_v47  ;;  %v5585_v28 = vunpack.i.l.bf16 %v5584_v47  ;;  %v3873_v59 = vsel %vm1901_vm9, %v3841_v48, %v5500_v17  ;;  %v3871_v21 = vsel %vm1901_vm9, %v3839_v54, %v5420_v31 }
 0x346   : > { %v5591_v4 = vunpack.i.h.bf16 %v5589_v11  ;;  %v5590_v33 = vunpack.i.l.bf16 %v5589_v11  ;;  %5868 = vrot.lane.b32.xlu1 %v5867_v6, %s5896_s21  ;;  %v3872_v26 = vsel %vm1901_vm9, %v3840_v61, %v5421_v57  ;;  %v5491_v53 = vunpack.i.h.bf16 %v8352_v30 }
 0x347   : > { %v3729_v42 = vsel %vm1736_vm4, %v3697_v35, %v5585_v28  ;;  %v3730_v45 = vsel %vm1736_vm4, %v3698_v52, %v5586_v58  ;;  %v5490_v11 = vunpack.i.l.bf16 %v8352_v30 }
 0x348   : > { %v8489_v16 = vsel %vm1769_vm5, %v8419_v13, %v5591_v4  ;;  %v8493_v25 = vsel %vm1769_vm5, %v8416_v43, %v5590_v33  ;;  %v5599_v27 = vpop.permute.xlu1 %5598  ;;  %v8496_v39 = vsel %vm1769_vm5, %v3729_v42, %v5575_v19  ;;  %v8499_v6 = vsel %vm1769_vm5, %v3730_v45, %v5576_v1 }
 0x349   : > { %v5594_v44 = vpop.permute.xlu0 %5593  ;;  %v5601_v13 = vunpack.i.h.bf16 %v5599_v27  ;;  %v5600_v20 = vunpack.i.l.bf16 %v5599_v27  ;;  %v3874_v43 = vsel %vm1901_vm9, %v3842_v40, %v5501_v32  ;;  %v3747_v30 = vsel %vm1769_vm5, %v8252_v5, %v5490_v11 }
 0x34a   : > { %v5596_v41 = vunpack.i.h.bf16 %v5594_v44  ;;  %v5595_v14 = vunpack.i.l.bf16 %v5594_v44 }
 0x34b   : > { %v3906_v37 = vsel %vm1934_vm10, %v3874_v43, %v5601_v13  ;;  %v3905_v49 = vsel %vm1934_vm10, %v3873_v59, %v5600_v20 }
 0x34c   : > { %v3904_v23 = vsel %vm1934_vm10, %v3872_v26, %v5596_v41  ;;  %v3903_v29 = vsel %vm1934_vm10, %v3871_v21, %v5595_v14  ;;  %v3932_v18 = vpack.c.bf16 %v3906_v37, %v3905_v49  ;;  %v5609_v62 = vpop.permute.xlu1 %5608 }
 0x34d   : > { %v3931_v8 = vpack.c.bf16 %v3904_v23, %v3903_v29  ;;  %v5604_v0 = vpop.permute.xlu0 %5603  ;;  %v5611_v21 = vunpack.i.h.bf16 %v5609_v62  ;;  %v5610_v5 = vunpack.i.l.bf16 %v5609_v62 }
 0x34e   : > { %v5606_v35 = vunpack.i.h.bf16 %v5604_v0  ;;  %v5605_v52 = vunpack.i.l.bf16 %v5604_v0 }
 0x34f   : > { %4549 = vmatprep.mubr.msk.bf16.mxu1 %vm2003_vm11, %v3931_v8  ;;  %v3782_v62 = vsel %vm1802_vm6, %v8336_v38, %v5611_v21 }
 0x350   : > { %4550 = vmatmul.mubr.msk.bf16.gmra.mxu1 %vm2003_vm11, %v3932_v18  ;;  %v5619_v63 = vpop.permute.xlu1 %5618  ;;  %v3779_v48 = vsel %vm1802_vm6, %v3747_v30, %v5605_v52 }
 0x351   : > { %v5614_v31 = vpop.permute.xlu0 %5613  ;;  %v5621_v46 = vunpack.i.h.bf16 %v5619_v63  ;;  %v5620_v57 = vunpack.i.l.bf16 %v5619_v63 }
 0x352   : > { %v5616_v33 = vunpack.i.h.bf16 %v5614_v31  ;;  %v5615_v54 = vunpack.i.l.bf16 %v5614_v31 }
 0x353   : > { %v3701_v19 = vsel %vm280_vm0, %v8360_v10, %v5620_v57  ;;  %v3702_v55 = vsel %vm280_vm0, %v8354_v7, %v5621_v46  ;;  %v3748_v7 = vsel %vm1769_vm5, %v8255_v15, %v5491_v53 }
 0x354   : > { %v5624_v32 = vpop.permute.xlu1 %5623  ;;  %v3780_v40 = vsel %vm1802_vm6, %v3748_v7, %v5606_v35  ;;  %v3811_v13 = vsel %vm1835_vm7, %v3779_v48, %v5615_v54  ;;  %v5530_v7 = vunpack.i.l.bf16 %v8378_v34 }
 0x355   : > { %v5634_v17 = vpop.permute.xlu0 %5633  ;;  %v5626_v47 = vunpack.i.h.bf16 %v5624_v32  ;;  %v5625_v1 = vunpack.i.l.bf16 %v5624_v32  ;;  %v3812_v20 = vsel %vm1835_vm7, %v3780_v40, %v5616_v33 }
 0x356   : > { %v5636_v10 = vunpack.i.h.bf16 %v5634_v17  ;;  %v5635_v42 = vunpack.i.l.bf16 %v5634_v17  ;;  %v3781_v17 = vsel %vm1802_vm6, %v8333_v50, %v5610_v5 }
 0x357   : > { %v8522_v58 = vsel %vm1736_vm4, %v3701_v19, %v5625_v1  ;;  %v8525_v28 = vsel %vm1736_vm4, %v3702_v55, %v5626_v47 }
 0x358   : > { %v5629_v4 = vpop.permute.xlu1 %5628  ;;  %v3843_v43 = vsel %vm1868_vm8, %v3811_v13, %v5635_v42  ;;  %v3844_v41 = vsel %vm1868_vm8, %v3812_v20, %v5636_v10  ;;  %v5531_v42 = vunpack.i.h.bf16 %v8378_v34 }
 0x359   : > { %v5644_v61 = vpop.permute.xlu0 %5643  ;;  %v5631_v49 = vunpack.i.h.bf16 %v5629_v4  ;;  %v5630_v23 = vunpack.i.l.bf16 %v5629_v4 }
 0x35a   : > { %v5646_v45 = vunpack.i.h.bf16 %v5644_v61  ;;  %v5645_v27 = vunpack.i.l.bf16 %v5644_v61 }
 0x35b   : > { %v3814_v47 = vsel %vm1835_vm7, %v3782_v62, %v5631_v49  ;;  %v3813_v1 = vsel %vm1835_vm7, %v3781_v17, %v5630_v23 }
 0x35c   : > { %v5639_v44 = vpop.permute.xlu1 %5638  ;;  %v3875_v26 = vsel %vm1901_vm9, %v3843_v43, %v5645_v27  ;;  %v3876_v37 = vsel %vm1901_vm9, %v3844_v41, %v5646_v45  ;;  %v3751_v43 = vsel %vm1769_vm5, %v8345_v22, %v5530_v7 }
 0x35d   : > { %v5654_v59 = vpop.permute.xlu0 %5653  ;;  %v5641_v63 = vunpack.i.h.bf16 %v5639_v44  ;;  %v5640_v31 = vunpack.i.l.bf16 %v5639_v44 }
 0x35e   : > { %v5656_v15 = vunpack.i.h.bf16 %v5654_v59  ;;  %v5655_v14 = vunpack.i.l.bf16 %v5654_v59  ;;  %v3752_v59 = vsel %vm1769_vm5, %v8348_v60, %v5531_v42 }
 0x35f   : > { %v3845_v55 = vsel %vm1868_vm8, %v3813_v1, %v5640_v31  ;;  %v3846_v53 = vsel %vm1868_vm8, %v3814_v47, %v5641_v63 }
 0x360   : > { %v3907_v29 = vsel %vm1934_vm10, %v3875_v26, %v5655_v14  ;;  %v3908_v18 = vsel %vm1934_vm10, %v3876_v37, %v5656_v15  ;;  %v5649_v8 = vpop.permute.xlu1 %5648 }
 0x361   : > { %v3933_v0 = vpack.c.bf16 %v3908_v18, %v3907_v29  ;;  %v5664_v46 = vpop.permute.xlu0 %5663  ;;  %v5651_v57 = vunpack.i.h.bf16 %v5649_v8  ;;  %v5650_v32 = vunpack.i.l.bf16 %v5649_v8 }
 0x362   : > { %v5666_v30 = vunpack.i.h.bf16 %v5664_v46  ;;  %v5665_v45 = vunpack.i.l.bf16 %v5664_v46 }
 0x363   : > { %4553 = vmatprep.mubr.msk.bf16.mxu1 %vm2003_vm11, %v3933_v0  ;;  %v3877_v4 = vsel %vm1901_vm9, %v3845_v55, %v5650_v32  ;;  %v3878_v38 = vsel %vm1901_vm9, %v3846_v53, %v5651_v57 }
 0x364   : > { %v5659_v19 = vpop.permute.xlu1 %5658  ;;  %v3784_v14 = vsel %vm1802_vm6, %v3752_v59, %v5666_v30  ;;  %v3783_v34 = vsel %vm1802_vm6, %v3751_v43, %v5665_v45 }
 0x365   : > { %v5674_v11 = vpop.permute.xlu0 %5673  ;;  %v5661_v35 = vunpack.i.h.bf16 %v5659_v19  ;;  %v5660_v52 = vunpack.i.l.bf16 %v5659_v19 }
 0x366   : > { %v5676_v40 = vunpack.i.h.bf16 %v5674_v11  ;;  %v5675_v48 = vunpack.i.l.bf16 %v5674_v11 }
 0x367   : > { %v3909_v50 = vsel %vm1934_vm10, %v3877_v4, %v5660_v52  ;;  %v3910_v33 = vsel %vm1934_vm10, %v3878_v38, %v5661_v35 }
 0x368   : > { %v3934_v54 = vpack.c.bf16 %v3910_v33, %v3909_v50  ;;  %v5669_v61 = vpop.permute.xlu1 %5668  ;;  %v3815_v5 = vsel %vm1835_vm7, %v3783_v34, %v5675_v48  ;;  %v3816_v26 = vsel %vm1835_vm7, %v3784_v14, %v5676_v40 }
 0x369   : > { %v5684_v10 = vpop.permute.xlu0 %5683  ;;  %v5671_v18 = vunpack.i.h.bf16 %v5669_v61  ;;  %v5670_v22 = vunpack.i.l.bf16 %v5669_v61 }
 0x36a   : > { %4554 = vmatmul.mubr.msk.bf16.gmra.mxu1 %vm2003_vm11, %v3934_v54  ;;  %v5686_v13 = vunpack.i.h.bf16 %v5684_v10  ;;  %v5685_v20 = vunpack.i.l.bf16 %v5684_v10 }
 0x36b   : > { %v3786_v53 = vsel %vm1802_vm6, %v8394_v9, %v5671_v18  ;;  %v3785_v11 = vsel %vm1802_vm6, %v8391_v12, %v5670_v22 }
 0x36c   : > { %v5679_v27 = vpop.permute.xlu1 %5678  ;;  %v3847_v49 = vsel %vm1868_vm8, %v3815_v5, %v5685_v20  ;;  %v3848_v23 = vsel %vm1868_vm8, %v3816_v26, %v5686_v13 }
 0x36d   : > { %v5694_v44 = vpop.permute.xlu0 %5693  ;;  %v5681_v63 = vunpack.i.h.bf16 %v5679_v27  ;;  %v5680_v31 = vunpack.i.l.bf16 %v5679_v27 }
 0x36e   : > { %v5696_v41 = vunpack.i.h.bf16 %v5694_v44  ;;  %v5695_v15 = vunpack.i.l.bf16 %v5694_v44 }
 0x36f   : > { %v3817_v35 = vsel %vm1835_vm7, %v3785_v11, %v5680_v31  ;;  %v3818_v52 = vsel %vm1835_vm7, %v3786_v53, %v5681_v63 }
 0x370   : > { %v5689_v21 = vpop.permute.xlu1 %5688  ;;  %v3879_v8 = vsel %vm1901_vm9, %v3847_v49, %v5695_v15  ;;  %v3880_v0 = vsel %vm1901_vm9, %v3848_v23, %v5696_v41 }
 0x371   : > { %v5704_v37 = vpop.permute.xlu0 %5703  ;;  %v5691_v17 = vunpack.i.h.bf16 %v5689_v21  ;;  %v5690_v47 = vunpack.i.l.bf16 %v5689_v21 }
 0x372   : > { %v5706_v60 = vunpack.i.h.bf16 %v5704_v37  ;;  %v5705_v29 = vunpack.i.l.bf16 %v5704_v37 }
 0x373   : > { %v3849_v38 = vsel %vm1868_vm8, %v3817_v35, %v5690_v47  ;;  %v3850_v50 = vsel %vm1868_vm8, %v3818_v52, %v5691_v17 }
 0x374   : > { %v3911_v46 = vsel %vm1934_vm10, %v3879_v8, %v5705_v29  ;;  %v3912_v57 = vsel %vm1934_vm10, %v3880_v0, %v5706_v60  ;;  %v5699_v32 = vpop.permute.xlu1 %5698 }
 0x375   : > { %v3935_v62 = vpack.c.bf16 %v3912_v57, %v3911_v46  ;;  %v5714_v1 = vpop.permute.xlu0 %5713  ;;  %v5701_v19 = vunpack.i.h.bf16 %v5699_v32  ;;  %v5700_v55 = vunpack.i.l.bf16 %v5699_v32 }
 0x376   : > { %v5716_v27 = vunpack.i.h.bf16 %v5714_v1  ;;  %v5715_v40 = vunpack.i.l.bf16 %v5714_v1 }
 0x377   : > { %4557 = vmatprep.mubr.msk.bf16.mxu1 %vm2003_vm11, %v3935_v62  ;;  %v3881_v10 = vsel %vm1901_vm9, %v3849_v38, %v5700_v55  ;;  %v3882_v9 = vsel %vm1901_vm9, %v3850_v50, %v5701_v19 }
 0x378   : > { %v5709_v4 = vpop.permute.xlu1 %5708  ;;  %v3788_v14 = vsel %vm1802_vm6, %v8433_v56, %v5716_v27  ;;  %v3787_v34 = vsel %vm1802_vm6, %v8437_v51, %v5715_v40 }
 0x379   : > { %v5724_v33 = vpop.permute.xlu0 %5723  ;;  %v5711_v54 = vunpack.i.h.bf16 %v5709_v4  ;;  %v5710_v61 = vunpack.i.l.bf16 %v5709_v4 }
 0x37a   : > { %v5726_v44 = vunpack.i.h.bf16 %v5724_v33  ;;  %v5725_v13 = vunpack.i.l.bf16 %v5724_v33 }
 0x37b   : > { %v3913_v12 = vsel %vm1934_vm10, %v3881_v10, %v5710_v61  ;;  %v3914_v42 = vsel %vm1934_vm10, %v3882_v9, %v5711_v54 }
 0x37c   : > { %v3936_v7 = vpack.c.bf16 %v3914_v42, %v3913_v12  ;;  %v5719_v30 = vpop.permute.xlu1 %5718  ;;  %v3819_v5 = vsel %vm1835_vm7, %v3787_v34, %v5725_v13  ;;  %v3820_v26 = vsel %vm1835_vm7, %v3788_v14, %v5726_v44 }
 0x37d   : > { %v5734_v45 = vpop.permute.xlu0 %5733  ;;  %v5721_v18 = vunpack.i.h.bf16 %v5719_v30  ;;  %v5720_v22 = vunpack.i.l.bf16 %v5719_v30 }
 0x37e   : > { %4558 = vmatmul.mubr.msk.bf16.gmra.mxu1 %vm2003_vm11, %v3936_v7  ;;  %v5736_v59 = vunpack.i.h.bf16 %v5734_v45  ;;  %v5735_v43 = vunpack.i.l.bf16 %v5734_v45 }
 0x37f   : > { %v3790_v19 = vsel %vm1802_vm6, %v8445_v24, %v5721_v18  ;;  %v3789_v55 = vsel %vm1802_vm6, %v8442_v36, %v5720_v22 }
 0x380   : > { %v5729_v48 = vpop.permute.xlu1 %5728  ;;  %v3851_v49 = vsel %vm1868_vm8, %v3819_v5, %v5735_v43  ;;  %v3852_v23 = vsel %vm1868_vm8, %v3820_v26, %v5736_v59 }
 0x381   : > { %v5744_v20 = vpop.permute.xlu0 %5743  ;;  %v5731_v0 = vunpack.i.h.bf16 %v5729_v48  ;;  %v5730_v51 = vunpack.i.l.bf16 %v5729_v48 }
 0x382   : > { %v5746_v41 = vunpack.i.h.bf16 %v5744_v20  ;;  %v5745_v15 = vunpack.i.l.bf16 %v5744_v20 }
 0x383   : > { %v3821_v53 = vsel %vm1835_vm7, %v3789_v55, %v5730_v51  ;;  %v3822_v11 = vsel %vm1835_vm7, %v3790_v19, %v5731_v0 }
 0x384   : > { %v5739_v21 = vpop.permute.xlu1 %5738  ;;  %v3883_v8 = vsel %vm1901_vm9, %v3851_v49, %v5745_v15  ;;  %v3884_v56 = vsel %vm1901_vm9, %v3852_v23, %v5746_v41 }
 0x385   : > { %v5754_v37 = vpop.permute.xlu0 %5753  ;;  %v5741_v32 = vunpack.i.h.bf16 %v5739_v21  ;;  %v5740_v62 = vunpack.i.l.bf16 %v5739_v21 }
 0x386   : > { %v5756_v60 = vunpack.i.h.bf16 %v5754_v37  ;;  %v5755_v29 = vunpack.i.l.bf16 %v5754_v37 }
 0x387   : > { %v3853_v52 = vsel %vm1868_vm8, %v3821_v53, %v5740_v62  ;;  %v3854_v4 = vsel %vm1868_vm8, %v3822_v11, %v5741_v32 }
 0x388   : > { %v3915_v63 = vsel %vm1934_vm10, %v3883_v8, %v5755_v29  ;;  %v3916_v31 = vsel %vm1934_vm10, %v3884_v56, %v5756_v60  ;;  %v5749_v46 = vpop.permute.xlu1 %5748 }
 0x389   : > { %v3937_v57 = vpack.c.bf16 %v3916_v31, %v3915_v63  ;;  %v5764_v17 = vpop.permute.xlu0 %5763  ;;  %v5751_v47 = vunpack.i.h.bf16 %v5749_v46  ;;  %v5750_v1 = vunpack.i.l.bf16 %v5749_v46 }
 0x38a   : > { %v5766_v42 = vunpack.i.h.bf16 %v5764_v17  ;;  %v5765_v7 = vunpack.i.l.bf16 %v5764_v17 }
 0x38b   : > { %4561 = vmatprep.mubr.msk.bf16.mxu1 %vm2003_vm11, %v3937_v57  ;;  %v3885_v54 = vsel %vm1901_vm9, %v3853_v52, %v5750_v1  ;;  %v3886_v24 = vsel %vm1901_vm9, %v3854_v4, %v5751_v47 }
 0x38c   : > { %v5759_v35 = vpop.permute.xlu1 %5758  ;;  %v3791_v59 = vsel %vm1802_vm6, %v8493_v25, %v5765_v7  ;;  %v3792_v43 = vsel %vm1802_vm6, %v8489_v16, %v5766_v42 }
 0x38d   : > { %v5774_v38 = vpop.permute.xlu0 %5773  ;;  %v5761_v50 = vunpack.i.h.bf16 %v5759_v35  ;;  %v5760_v33 = vunpack.i.l.bf16 %v5759_v35 }
 0x38e   : > { %v5776_v45 = vunpack.i.h.bf16 %v5774_v38  ;;  %v5775_v27 = vunpack.i.l.bf16 %v5774_v38 }
 0x38f   : > { %v3917_v36 = vsel %vm1934_vm10, %v3885_v54, %v5760_v33  ;;  %v3918_v61 = vsel %vm1934_vm10, %v3886_v24, %v5761_v50 }
 0x390   : > { %v3938_v10 = vpack.c.bf16 %v3918_v61, %v3917_v36  ;;  %v5769_v9 = vpop.permute.xlu1 %5768  ;;  %v3823_v15 = vsel %vm1835_vm7, %v3791_v59, %v5775_v27  ;;  %v3824_v14 = vsel %vm1835_vm7, %v3792_v43, %v5776_v45 }
 0x391   : > { %v5784_v12 = vpop.permute.xlu0 %5783  ;;  %v5771_v49 = vunpack.i.h.bf16 %v5769_v9  ;;  %v5770_v23 = vunpack.i.l.bf16 %v5769_v9 }
 0x392   : > { %4562 = vmatmul.mubr.msk.bf16.gmra.mxu1 %vm2003_vm11, %v3938_v10  ;;  %v5786_v48 = vunpack.i.h.bf16 %v5784_v12  ;;  %v5785_v44 = vunpack.i.l.bf16 %v5784_v12 }
 0x393   : > { %v3794_v57 = vsel %vm1802_vm6, %v8499_v6, %v5771_v49  ;;  %v3793_v32 = vsel %vm1802_vm6, %v8496_v39, %v5770_v23 }
 0x394   : > { %v5779_v30 = vpop.permute.xlu1 %5778  ;;  %v3855_v21 = vsel %vm1868_vm8, %v3823_v15, %v5785_v44  ;;  %v3856_v5 = vsel %vm1868_vm8, %v3824_v14, %v5786_v48 }
 0x395   : > { %v5794_v40 = vpop.permute.xlu0 %5793  ;;  %v5781_v29 = vunpack.i.h.bf16 %v5779_v30  ;;  %v5780_v16 = vunpack.i.l.bf16 %v5779_v30 }
 0x396   : > { %v5796_v13 = vunpack.i.h.bf16 %v5794_v40  ;;  %v5795_v20 = vunpack.i.l.bf16 %v5794_v40 }
 0x397   : > { %v3825_v62 = vsel %vm1835_vm7, %v3793_v32, %v5780_v16  ;;  %v3826_v17 = vsel %vm1835_vm7, %v3794_v57, %v5781_v29 }
 0x398   : > { %v5789_v41 = vpop.permute.xlu1 %5788  ;;  %v3887_v60 = vsel %vm1901_vm9, %v3855_v21, %v5795_v20  ;;  %v3888_v25 = vsel %vm1901_vm9, %v3856_v5, %v5796_v13 }
 0x399   : > { %v5804_v34 = vpop.permute.xlu0 %5803  ;;  %v5791_v0 = vunpack.i.h.bf16 %v5789_v41  ;;  %v5790_v51 = vunpack.i.l.bf16 %v5789_v41 }
 0x39a   : > { %v5806_v26 = vunpack.i.h.bf16 %v5804_v34  ;;  %v5805_v37 = vunpack.i.l.bf16 %v5804_v34 }
 0x39b   : > { %v3857_v1 = vsel %vm1868_vm8, %v3825_v62, %v5790_v51  ;;  %v3858_v19 = vsel %vm1868_vm8, %v3826_v17, %v5791_v0 }
 0x39c   : > { %v3919_v18 = vsel %vm1934_vm10, %v3887_v60, %v5805_v37  ;;  %v3920_v22 = vsel %vm1934_vm10, %v3888_v25, %v5806_v26  ;;  %v5799_v8 = vpop.permute.xlu1 %5798 }
 0x39d   : > { %v3939_v56 = vpack.c.bf16 %v3920_v22, %v3919_v18  ;;  %v5814_v63 = vpop.permute.xlu0 %5813  ;;  %v5801_v31 = vunpack.i.h.bf16 %v5799_v8  ;;  %v5800_v46 = vunpack.i.l.bf16 %v5799_v8 }
 0x39e   : > { %v5816_v24 = vunpack.i.h.bf16 %v5814_v63  ;;  %v5815_v36 = vunpack.i.l.bf16 %v5814_v63 }
 0x39f   : > { %4565 = vmatprep.mubr.msk.bf16.mxu1 %vm2003_vm11, %v3939_v56  ;;  %v3889_v35 = vsel %vm1901_vm9, %v3857_v1, %v5800_v46  ;;  %v3890_v6 = vsel %vm1901_vm9, %v3858_v19, %v5801_v31 }
 0x3a0   : > { %v5809_v47 = vpop.permute.xlu1 %5808  ;;  %v3764_v27 = vsel %vm1769_vm5, %v8476_v2, %v5816_v24  ;;  %v3763_v40 = vsel %vm1769_vm5, %v8473_v3, %v5815_v36  ;;  %v8649_v2 = vld [vmem:[%s8852_s5] ss:$0 sm:$0xff] }
 0x3a1   : > { %v5824_v55 = vpop.permute.xlu0 %5823  ;;  %v5811_v53 = vunpack.i.h.bf16 %v5809_v47  ;;  %v5810_v11 = vunpack.i.l.bf16 %v5809_v47 }
 0x3a2   : > { %v5825_v61 = vunpack.i.l.bf16 %v5824_v55  ;;  %v5826_v10 = vunpack.i.h.bf16 %v5824_v55  ;;  %v9155_v55 = vld [vmem:[#allocation3_spill] sm:$0xff] }
 0x3a3   : > { %v3921_v39 = vsel %vm1934_vm10, %v3889_v35, %v5810_v11  ;;  %v3922_v52 = vsel %vm1934_vm10, %v3890_v6, %v5811_v53 }
 0x3a4   : > { %v3940_v4 = vpack.c.bf16 %v3922_v52, %v3921_v39  ;;  %v5819_v38 = vpop.permute.xlu1 %5818  ;;  %v3795_v44 = vsel %vm1802_vm6, %v3763_v40, %v5825_v61  ;;  %v3796_v43 = vsel %vm1802_vm6, %v3764_v27, %v5826_v10 }
 0x3a5   : > { %v5834_v50 = vpop.permute.xlu0 %5833  ;;  %v5820_v12 = vunpack.i.l.bf16 %v5819_v38  ;;  %v5821_v13 = vunpack.i.h.bf16 %v5819_v38 }
 0x3a6   : > { %4566 = vmatmul.mubr.msk.bf16.gmra.mxu1 %vm2003_vm11, %v3940_v4  ;;  %v5835_v9 = vunpack.i.l.bf16 %v5834_v50  ;;  %v5836_v7 = vunpack.i.h.bf16 %v5834_v50 }
 0x3a7   : > { %v3765_v15 = vsel %vm1769_vm5, %v8522_v58, %v5820_v12  ;;  %v8657_v58 = vld [vmem:[%s8853_s6] ss:$0 sm:$0xff]  ;;  %v3766_v29 = vsel %vm1769_vm5, %v8525_v28, %v5821_v13  ;;  %v9158_v13 = vld [vmem:[#allocation6_spill] sm:$0xff] }
 0x3a8   : > { %v5829_v33 = vpop.permute.xlu1 %5828  ;;  %v3827_v41 = vsel %vm1835_vm7, %v3795_v44, %v5835_v9  ;;  %v3828_v3 = vsel %vm1835_vm7, %v3796_v43, %v5836_v7 }
 0x3a9   : > { %v5844_v54 = vpop.permute.xlu0 %5843  ;;  %v5831_v21 = vunpack.i.h.bf16 %v5829_v33  ;;  %v5830_v5 = vunpack.i.l.bf16 %v5829_v33  ;;  %v9156_v33 = vld [vmem:[#allocation5_spill] sm:$0xff] }
 0x3aa   : > { %v5845_v30 = vunpack.i.l.bf16 %v5844_v54  ;;  %v5846_v48 = vunpack.i.h.bf16 %v5844_v54 }
 0x3ab   : > { %v3798_v46 = vsel %vm1802_vm6, %v3766_v29, %v5831_v21  ;;  %v3797_v62 = vsel %vm1802_vm6, %v3765_v15, %v5830_v5  ;;  %v9159_v5 = vld [vmem:[#allocation9_spill] sm:$0xff] }
 0x3ac   : > { %v5839_v42 = vpop.permute.xlu1 %5838  ;;  %v3859_v34 = vsel %vm1868_vm8, %v3827_v41, %v5845_v30  ;;  %v3860_v37 = vsel %vm1868_vm8, %v3828_v3, %v5846_v48  ;;  %v9157_v30 = vld [vmem:[#allocation4_spill] sm:$0xff] }
 0x3ad   : > { %v5854_v45 = vpop.permute.xlu0 %5853  ;;  %v5841_v49 = vunpack.i.h.bf16 %v5839_v42  ;;  %v5840_v8 = vunpack.i.l.bf16 %v5839_v42 }
 0x3ae   : > { %v5856_v20 = vunpack.i.h.bf16 %v5854_v45  ;;  %v5855_v59 = vunpack.i.l.bf16 %v5854_v45 }
 0x3af   : > { %v3830_v17 = vsel %vm1835_vm7, %v3798_v46, %v5841_v49  ;;  %v3829_v39 = vsel %vm1835_vm7, %v3797_v62, %v5840_v8  ;;  %v9161_v8 = vld [vmem:[#allocation10_spill] sm:$0xff] }
 0x3b0   : > { %v5849_v14 = vpop.permute.xlu1 %5848  ;;  %v3891_v16 = vsel %vm1901_vm9, %v3859_v34, %v5855_v59  ;;  %v3892_v18 = vsel %vm1901_vm9, %v3860_v37, %v5856_v20 }
 0x3b1   : > { %v5864_v26 = vpop.permute.xlu0 %5863  ;;  %v5851_v51 = vunpack.i.h.bf16 %v5849_v14  ;;  %v5850_v47 = vunpack.i.l.bf16 %v5849_v14 }
 0x3b2   : > { %v5866_v23 = vunpack.i.h.bf16 %v5864_v26  ;;  %v5865_v60 = vunpack.i.l.bf16 %v5864_v26  ;;  %v4543_v25 = vpop.f32.mrf.mxu1 }
 0x3b3   : > { %v4184_v22 = vmul.f32 %v4543_v25, %v8649_v2  ;;  %v3862_v52 = vsel %vm1868_vm8, %v3830_v17, %v5851_v51  ;;  %v3861_v61 = vsel %vm1868_vm8, %v3829_v39, %v5850_v47  ;;  %v9160_v25 = vld [vmem:[#allocation7_spill] sm:$0xff] }
 0x3b4   : > { %v3923_v56 = vsel %vm1934_vm10, %v3891_v16, %v5865_v60  ;;  %v3924_v0 = vsel %vm1934_vm10, %v3892_v18, %v5866_v23  ;;  %v4048_v63 = vpop.f32.mrf.mxu1  ;;  %v5859_v31 = vpop.permute.xlu1 %5858 }
 0x3b5   : > { %v3941_v57 = vpack.c.bf16 %v3924_v0, %v3923_v56  ;;  %v4223_v28 = vadd.f32 %v8657_v58, %v4184_v22  ;;  %v4182_v32 = vmul.f32 %v8649_v2, %v4048_v63  ;;  %v5861_v1 = vunpack.i.h.bf16 %v5859_v31  ;;  %v9162_v63 = vld [vmem:[#allocation8_spill] sm:$0xff] }
 0x3b6   : > { %v4544_v19 = vpop.f32.mrf.mxu1  ;;  %v5860_v35 = vunpack.i.l.bf16 %v5859_v31 }
 0x3b7   : > { %v4255_v53 = vadd.f32 %v4223_v28, %v9155_v55  ;;  %v4221_v11 = vadd.f32 %v8657_v58, %v4182_v32  ;;  %v4185_v6 = vmul.f32 %v4544_v19, %v8649_v2  ;;  %4569 = vmatprep.mubr.msk.bf16.mxu1 %vm2003_vm11, %v3941_v57  ;;  %v3894_v10 = vsel %vm1901_vm9, %v3862_v52, %v5861_v1  ;;  %v9163_v1 = vld [vmem:[#allocation13_spill] sm:$0xff] }
 0x3b8   : > { %v4051_v4 = vpop.f32.mrf.mxu1  ;;  %v5869_v38 = vpop.permute.xlu1 %5868  ;;  %v3893_v7 = vsel %vm1901_vm9, %v3861_v61, %v5860_v35 }
 0x3b9   : > { %v4287_v50 = vmax.f32 %v4255_v53, 0.0  ;;  %v4253_v54 = vadd.f32 %v4221_v11, %v9156_v33  ;;  %v4224_v24 = vadd.f32 %v8657_v58, %v4185_v6  ;;  %v4183_v36 = vmul.f32 %v8649_v2, %v4051_v4  ;;  %v9164_v6 = vld [vmem:[#allocation11_spill] sm:$0xff] }
 0x3ba   : > { %v5871_v9 = vunpack.i.h.bf16 %v5869_v38  ;;  %v5870_v12 = vunpack.i.l.bf16 %v5869_v38 }
 0x3bb   : > { %4319 = vst.msk [vmem:[%s8682_s16 + $0x10] sm:$0xff] %vm280_vm0, %v4287_v50  ;;  %v4285_v42 = vmax.f32 %v4253_v54, 0.0  ;;  %v4256_v45 = vadd.f32 %v4224_v24, %v9157_v30  ;;  %v4222_v27 = vadd.f32 %v8657_v58, %v4183_v36  ;;  %v9165_v50 = vld [vmem:[#allocation14_spill] sm:$0xff]  ;;  %v9166_v36 = vld [vmem:[#allocation12_spill] sm:$0xff] }
 0x3bc   : > { %v3925_v40 = vsel %vm1934_vm10, %v3893_v7, %v5870_v12  ;;  %v3926_v48 = vsel %vm1934_vm10, %v3894_v10, %v5871_v9 }
 0x3bd   : > { %4317 = vst.msk [vmem:[%s8682_s16] sm:$0xff] %vm280_vm0, %v4285_v42  ;;  %v4288_v44 = vmax.f32 %v4256_v45, 0.0  ;;  %v4254_v20 = vadd.f32 %v4222_v27, %v9158_v13  ;;  %v3942_v59 = vpack.c.bf16 %v3926_v48, %v3925_v40  ;;  %v9167_v27 = vld [vmem:[#allocation17_spill] sm:$0xff] }
 0x3bf   : > { %4320 = vst.msk [vmem:[%s8682_s16 + $0x18] sm:$0xff] %vm280_vm0, %v4288_v44  ;;  %v4286_v43 = vmax.f32 %v4254_v20, 0.0  ;;  %4570 = vmatmul.mubr.msk.bf16.gmra.mxu1 %vm2003_vm11, %v3942_v59  ;;  %v9168_v59 = vld [vmem:[#allocation15_spill] sm:$0xff] }
 0x3c1   : > { %4318 = vst.msk [vmem:[%s8682_s16 + $0x8] sm:$0xff] %vm280_vm0, %v4286_v43 }
 0x3d2   : > { %v4547_v41 = vpop.f32.mrf.mxu1 }
 0x3d3   : > { %v4188_v15 = vmul.f32 %v4547_v41, %v8649_v2 }
 0x3d4   : > { %v4064_v14 = vpop.f32.mrf.mxu1 }
 0x3d5   : > { %v4227_v3 = vadd.f32 %v8657_v58, %v4188_v15  ;;  %v4186_v34 = vmul.f32 %v8649_v2, %v4064_v14 }
 0x3d6   : > { %v4548_v21 = vpop.f32.mrf.mxu1 }
 0x3d7   : > { %v4259_v26 = vadd.f32 %v4227_v3, %v9159_v5  ;;  %v4225_v37 = vadd.f32 %v8657_v58, %v4186_v34  ;;  %v4189_v49 = vmul.f32 %v4548_v21, %v8649_v2  ;;  %v9169_v3 = vld [vmem:[#allocation18_spill] sm:$0xff] }
 0x3d8   : > { %v4067_v23 = vpop.f32.mrf.mxu1 }
 0x3d9   : > { %v4291_v60 = vmax.f32 %v4259_v26, 0.0  ;;  %v4257_v29 = vadd.f32 %v4225_v37, %v9160_v25  ;;  %v4228_v16 = vadd.f32 %v8657_v58, %v4189_v49  ;;  %v4187_v18 = vmul.f32 %v8649_v2, %v4067_v23  ;;  %v9170_v26 = vld [vmem:[#allocation16_spill] sm:$0xff] }
 0x3db   : > { %4323 = vst.msk [vmem:[%s8682_s16 + $0x30] sm:$0xff] %vm280_vm0, %v4291_v60  ;;  %v4289_v22 = vmax.f32 %v4257_v29, 0.0  ;;  %v4260_v56 = vadd.f32 %v4228_v16, %v9161_v8  ;;  %v4226_v0 = vadd.f32 %v8657_v58, %v4187_v18 }
 0x3dd   : > { %4321 = vst.msk [vmem:[%s8682_s16 + $0x20] sm:$0xff] %vm280_vm0, %v4289_v22  ;;  %v4292_v51 = vmax.f32 %v4260_v56, 0.0  ;;  %v4258_v31 = vadd.f32 %v4226_v0, %v9162_v63  ;;  %v9171_v22 = vld [vmem:[#allocation21_spill] sm:$0xff] }
 0x3df   : > { %4324 = vst.msk [vmem:[%s8682_s16 + $0x38] sm:$0xff] %vm280_vm0, %v4292_v51  ;;  %v4290_v46 = vmax.f32 %v4258_v31, 0.0  ;;  %v9172_v31 = vld [vmem:[#allocation19_spill] sm:$0xff] }
 0x3e1   : > { %4322 = vst.msk [vmem:[%s8682_s16 + $0x28] sm:$0xff] %vm280_vm0, %v4290_v46 }
 0x410   : > { %v4551_v57 = vpop.f32.mrf.mxu1 }
 0x411   : > { %v4192_v28 = vmul.f32 %v4551_v57, %v8649_v2 }
 0x412   : > { %v4080_v32 = vpop.f32.mrf.mxu1 }
 0x413   : > { %v4231_v62 = vadd.f32 %v8657_v58, %v4192_v28  ;;  %v4190_v17 = vmul.f32 %v8649_v2, %v4080_v32 }
 0x414   : > { %v4552_v47 = vpop.f32.mrf.mxu1 }
 0x415   : > { %v4263_v19 = vadd.f32 %v4231_v62, %v9163_v1  ;;  %v4229_v55 = vadd.f32 %v8657_v58, %v4190_v17  ;;  %v4193_v53 = vmul.f32 %v4552_v47, %v8649_v2  ;;  %v9173_v62 = vld [vmem:[#allocation22_spill] sm:$0xff] }
 0x416   : > { %v4083_v11 = vpop.f32.mrf.mxu1 }
 0x417   : > { %v4295_v35 = vmax.f32 %v4263_v19, 0.0  ;;  %v4261_v39 = vadd.f32 %v4229_v55, %v9164_v6  ;;  %v4232_v52 = vadd.f32 %v8657_v58, %v4193_v53  ;;  %v4191_v4 = vmul.f32 %v8649_v2, %v4083_v11  ;;  %v9174_v19 = vld [vmem:[#allocation20_spill] sm:$0xff] }
 0x419   : > { %4327 = vst.msk [vmem:[%s8682_s16 + $0x50] sm:$0xff] %vm280_vm0, %v4295_v35  ;;  %v4293_v38 = vmax.f32 %v4261_v39, 0.0  ;;  %v4264_v33 = vadd.f32 %v4232_v52, %v9165_v50  ;;  %v4230_v54 = vadd.f32 %v8657_v58, %v4191_v4 }
 0x41b   : > { %4325 = vst.msk [vmem:[%s8682_s16 + $0x40] sm:$0xff] %vm280_vm0, %v4293_v38  ;;  %v4296_v24 = vmax.f32 %v4264_v33, 0.0  ;;  %v4262_v61 = vadd.f32 %v4230_v54, %v9166_v36  ;;  %v9175_v38 = vld [vmem:[#allocation25_spill] sm:$0xff] }
 0x41d   : > { %4328 = vst.msk [vmem:[%s8682_s16 + $0x58] sm:$0xff] %vm280_vm0, %v4296_v24  ;;  %v4294_v10 = vmax.f32 %v4262_v61, 0.0  ;;  %v9176_v61 = vld [vmem:[#allocation23_spill] sm:$0xff] }
 0x41f   : > { %4326 = vst.msk [vmem:[%s8682_s16 + $0x48] sm:$0xff] %vm280_vm0, %v4294_v10 }
 0x42a   : > { %v4555_v9 = vpop.f32.mrf.mxu1 }
 0x42b   : > { %v4196_v12 = vmul.f32 %v4555_v9, %v8649_v2 }
 0x42c   : > { %v4096_v42 = vpop.f32.mrf.mxu1 }
 0x42d   : > { %v4235_v7 = vadd.f32 %v8657_v58, %v4196_v12  ;;  %v4194_v30 = vmul.f32 %v8649_v2, %v4096_v42 }
 0x42e   : > { %v4556_v45 = vpop.f32.mrf.mxu1 }
 0x42f   : > { %v4267_v40 = vadd.f32 %v4235_v7, %v9167_v27  ;;  %v4233_v48 = vadd.f32 %v8657_v58, %v4194_v30  ;;  %v4197_v44 = vmul.f32 %v4556_v45, %v8649_v2  ;;  %v9177_v7 = vld [vmem:[#allocation26_spill] sm:$0xff] }
 0x430   : > { %v4099_v13 = vpop.f32.mrf.mxu1 }
 0x431   : > { %v4299_v20 = vmax.f32 %v4267_v40, 0.0  ;;  %v4265_v43 = vadd.f32 %v4233_v48, %v9168_v59  ;;  %v4236_v41 = vadd.f32 %v8657_v58, %v4197_v44  ;;  %v4195_v15 = vmul.f32 %v8649_v2, %v4099_v13  ;;  %v9178_v40 = vld [vmem:[#allocation24_spill] sm:$0xff] }
 0x433   : > { %4331 = vst.msk [vmem:[%s8682_s16 + $0x70] sm:$0xff] %vm280_vm0, %v4299_v20  ;;  %v4297_v14 = vmax.f32 %v4265_v43, 0.0  ;;  %v4268_v34 = vadd.f32 %v4236_v41, %v9169_v3  ;;  %v4234_v21 = vadd.f32 %v8657_v58, %v4195_v15 }
 0x435   : > { %4329 = vst.msk [vmem:[%s8682_s16 + $0x60] sm:$0xff] %vm280_vm0, %v4297_v14  ;;  %v4300_v5 = vmax.f32 %v4268_v34, 0.0  ;;  %v4266_v37 = vadd.f32 %v4234_v21, %v9170_v26  ;;  %v9179_v14 = vld [vmem:[#allocation29_spill] sm:$0xff] }
 0x437   : > { %4332 = vst.msk [vmem:[%s8682_s16 + $0x78] sm:$0xff] %vm280_vm0, %v4300_v5  ;;  %v4298_v49 = vmax.f32 %v4266_v37, 0.0  ;;  %v9180_v37 = vld [vmem:[#allocation27_spill] sm:$0xff] }
 0x439   : > { %4330 = vst.msk [vmem:[%s8682_s16 + $0x68] sm:$0xff] %vm280_vm0, %v4298_v49 }
 0x43e   : > { %v4559_v23 = vpop.f32.mrf.mxu1 }
 0x43f   : > { %v4200_v60 = vmul.f32 %v4559_v23, %v8649_v2 }
 0x440   : > { %v4112_v25 = vpop.f32.mrf.mxu1 }
 0x441   : > { %v4239_v29 = vadd.f32 %v8657_v58, %v4200_v60  ;;  %v4198_v16 = vmul.f32 %v8649_v2, %v4112_v25 }
 0x442   : > { %v4560_v18 = vpop.f32.mrf.mxu1 }
 0x443   : > { %v4271_v8 = vadd.f32 %v4239_v29, %v9171_v22  ;;  %v4237_v56 = vadd.f32 %v8657_v58, %v4198_v16  ;;  %v4201_v0 = vmul.f32 %v4560_v18, %v8649_v2  ;;  %v9181_v29 = vld [vmem:[#allocation30_spill] sm:$0xff] }
 0x444   : > { %v4115_v51 = vpop.f32.mrf.mxu1 }
 0x445   : > { %v4303_v63 = vmax.f32 %v4271_v8, 0.0  ;;  %v4269_v46 = vadd.f32 %v4237_v56, %v9172_v31  ;;  %v4240_v57 = vadd.f32 %v8657_v58, %v4201_v0  ;;  %v4199_v28 = vmul.f32 %v8649_v2, %v4115_v51  ;;  %v9182_v8 = vld [vmem:[#allocation28_spill] sm:$0xff] }
 0x447   : > { %4335 = vst.msk [vmem:[%s8682_s16 + $0x90] sm:$0xff] %vm280_vm0, %v4303_v63  ;;  %v4301_v32 = vmax.f32 %v4269_v46, 0.0  ;;  %v4272_v17 = vadd.f32 %v4240_v57, %v9173_v62  ;;  %v4238_v47 = vadd.f32 %v8657_v58, %v4199_v28 }
 0x449   : > { %4333 = vst.msk [vmem:[%s8682_s16 + $0x80] sm:$0xff] %vm280_vm0, %v4301_v32  ;;  %v4304_v1 = vmax.f32 %v4272_v17, 0.0  ;;  %v4270_v55 = vadd.f32 %v4238_v47, %v9174_v19  ;;  %v9183_v32 = vld [vmem:[#allocation33_spill] sm:$0xff] }
 0x44b   : > { %4336 = vst.msk [vmem:[%s8682_s16 + $0x98] sm:$0xff] %vm280_vm0, %v4304_v1  ;;  %v4302_v53 = vmax.f32 %v4270_v55, 0.0  ;;  %v9184_v55 = vld [vmem:[#allocation31_spill] sm:$0xff] }
 0x44d   : > { %4334 = vst.msk [vmem:[%s8682_s16 + $0x88] sm:$0xff] %vm280_vm0, %v4302_v53 }
 0x452   : > { %v4563_v11 = vpop.f32.mrf.mxu1 }
 0x453   : > { %v4204_v35 = vmul.f32 %v4563_v11, %v8649_v2 }
 0x454   : > { %v4128_v6 = vpop.f32.mrf.mxu1 }
 0x455   : > { %v4243_v39 = vadd.f32 %v8657_v58, %v4204_v35  ;;  %v4202_v52 = vmul.f32 %v8649_v2, %v4128_v6 }
 0x456   : > { %v4564_v4 = vpop.f32.mrf.mxu1 }
 0x457   : > { %v4275_v50 = vadd.f32 %v4243_v39, %v9175_v38  ;;  %v4241_v33 = vadd.f32 %v8657_v58, %v4202_v52  ;;  %v4205_v54 = vmul.f32 %v4564_v4, %v8649_v2  ;;  %v9185_v39 = vld [vmem:[#allocation34_spill] sm:$0xff] }
 0x458   : > { %v4131_v24 = vpop.f32.mrf.mxu1 }
 0x459   : > { %v4307_v36 = vmax.f32 %v4275_v50, 0.0  ;;  %v4273_v10 = vadd.f32 %v4241_v33, %v9176_v61  ;;  %v4244_v9 = vadd.f32 %v8657_v58, %v4205_v54  ;;  %v4203_v12 = vmul.f32 %v8649_v2, %v4131_v24  ;;  %v9186_v50 = vld [vmem:[#allocation32_spill] sm:$0xff] }
 0x45b   : > { %4339 = vst.msk [vmem:[%s8682_s16 + $0xb0] sm:$0xff] %vm280_vm0, %v4307_v36  ;;  %v4305_v42 = vmax.f32 %v4273_v10, 0.0  ;;  %v4276_v30 = vadd.f32 %v4244_v9, %v9177_v7  ;;  %v4242_v45 = vadd.f32 %v8657_v58, %v4203_v12 }
 0x45d   : > { %4337 = vst.msk [vmem:[%s8682_s16 + $0xa0] sm:$0xff] %vm280_vm0, %v4305_v42  ;;  %v4308_v27 = vmax.f32 %v4276_v30, 0.0  ;;  %v4274_v48 = vadd.f32 %v4242_v45, %v9178_v40 }
 0x45f   : > { %4340 = vst.msk [vmem:[%s8682_s16 + $0xb8] sm:$0xff] %vm280_vm0, %v4308_v27  ;;  %v4306_v44 = vmax.f32 %v4274_v48, 0.0 }
 0x461   : > { %4338 = vst.msk [vmem:[%s8682_s16 + $0xa8] sm:$0xff] %vm280_vm0, %v4306_v44 }
 0x466   : > { %v4567_v13 = vpop.f32.mrf.mxu1 }
 0x467   : > { %v4208_v20 = vmul.f32 %v4567_v13, %v8649_v2 }
 0x468   : > { %v4144_v59 = vpop.f32.mrf.mxu1 }
 0x469   : > { %v4247_v43 = vadd.f32 %v8657_v58, %v4208_v20  ;;  %v4206_v41 = vmul.f32 %v8649_v2, %v4144_v59 }
 0x46a   : > { %v4568_v15 = vpop.f32.mrf.mxu1 }
 0x46b   : > { %v4279_v3 = vadd.f32 %v4247_v43, %v9179_v14  ;;  %v4245_v34 = vadd.f32 %v8657_v58, %v4206_v41  ;;  %v4209_v21 = vmul.f32 %v4568_v15, %v8649_v2 }
 0x46c   : > { %v4147_v5 = vpop.f32.mrf.mxu1 }
 0x46d   : > { %v4311_v26 = vmax.f32 %v4279_v3, 0.0  ;;  %v4277_v49 = vadd.f32 %v4245_v34, %v9180_v37  ;;  %v4248_v23 = vadd.f32 %v8657_v58, %v4209_v21  ;;  %v4207_v60 = vmul.f32 %v8649_v2, %v4147_v5 }
 0x46f   : > { %4343 = vst.msk [vmem:[%s8682_s16 + $0xd0] sm:$0xff] %vm280_vm0, %v4311_v26  ;;  %v4309_v25 = vmax.f32 %v4277_v49, 0.0  ;;  %v4280_v16 = vadd.f32 %v4248_v23, %v9181_v29  ;;  %v4246_v18 = vadd.f32 %v8657_v58, %v4207_v60 }
 0x471   : > { %4341 = vst.msk [vmem:[%s8682_s16 + $0xc0] sm:$0xff] %vm280_vm0, %v4309_v25  ;;  %v4312_v22 = vmax.f32 %v4280_v16, 0.0  ;;  %v4278_v56 = vadd.f32 %v4246_v18, %v9182_v8 }
 0x473   : > { %4344 = vst.msk [vmem:[%s8682_s16 + $0xd8] sm:$0xff] %vm280_vm0, %v4312_v22  ;;  %v4310_v0 = vmax.f32 %v4278_v56, 0.0 }
 0x475   : > { %4342 = vst.msk [vmem:[%s8682_s16 + $0xc8] sm:$0xff] %vm280_vm0, %v4310_v0 }
 0x47f   : > { %v4571_v51 = vpop.f32.mrf.mxu1 }
 0x480   : > { %v4212_v63 = vmul.f32 %v4571_v51, %v8649_v2 }
 0x481   : > { %v4160_v31 = vpop.f32.mrf.mxu1 }
 0x482   : > { %v4251_v46 = vadd.f32 %v8657_v58, %v4212_v63  ;;  %v4210_v57 = vmul.f32 %v8649_v2, %v4160_v31 }
 0x483   : > { %v4572_v28 = vpop.f32.mrf.mxu1 }
 0x484   : > { %v4283_v62 = vadd.f32 %v4251_v46, %v9183_v32  ;;  %v4249_v17 = vadd.f32 %v8657_v58, %v4210_v57  ;;  %v4213_v47 = vmul.f32 %v4572_v28, %v8649_v2 }
 0x485   : > { %v4163_v1 = vpop.f32.mrf.mxu1 }
 0x486   : > { %v4315_v19 = vmax.f32 %v4283_v62, 0.0  ;;  %v4281_v53 = vadd.f32 %v4249_v17, %v9184_v55  ;;  %v4252_v11 = vadd.f32 %v8657_v58, %v4213_v47  ;;  %v4211_v35 = vmul.f32 %v8649_v2, %v4163_v1 }
 0x488   : > { %4347 = vst.msk [vmem:[%s8682_s16 + $0xf0] sm:$0xff] %vm280_vm0, %v4315_v19  ;;  %v4313_v6 = vmax.f32 %v4281_v53, 0.0  ;;  %v4284_v52 = vadd.f32 %v4252_v11, %v9185_v39  ;;  %v4250_v4 = vadd.f32 %v8657_v58, %v4211_v35 }
 0x48a   : > { %4345 = vst.msk [vmem:[%s8682_s16 + $0xe0] sm:$0xff] %vm280_vm0, %v4313_v6  ;;  %v4316_v38 = vmax.f32 %v4284_v52, 0.0  ;;  %v4282_v33 = vadd.f32 %v4250_v4, %v9186_v50 }
 0x48c   : > { %4348 = vst.msk [vmem:[%s8682_s16 + $0xf8] sm:$0xff] %vm280_vm0, %v4316_v38  ;;  %v4314_v54 = vmax.f32 %v4282_v33, 0.0 }
 0x48e   : > { %4346 = vst.msk [vmem:[%s8682_s16 + $0xe8] sm:$0xff] %vm280_vm0, %v4314_v54 }
 0x48f PF: > { %s17_s24 = sadd.s32 1, %s5886_s24  }
 0x490   : > { %p14_p4 = scmp.ge.s32.totalorder %s17_s24, 4  }
 0x492   :  { %16 = sbr.rel (!%p14_p4) target bundleno = 1 (0x1), region = 81 }

// kernel: tpu_custom_call.1
= control target key start
LH: loop header
LB: loop body
LE: loop exit
PB: predicated region body
PF: predicated region fallthrough
CT: control target
= control target key end

     0   :  { %s9821_s24 = smov 0   ;;  %s13170_s0 = inlined_call_operand.vmem [shape: f32[2,16,16,4], index: 0, kind: input, shape index: {}]   ;;  %s13171_s1 = inlined_call_operand.vmem [shape: bf16[36,4], index: 1, kind: input, shape index: {}]   ;;  %s13172_s2 = inlined_call_operand.vmem [shape: bf16[36,4], index: 2, kind: input, shape index: {}]   ;;  %s13173_s3 = inlined_call_operand.vmem [shape: f32[1,4], index: 3, kind: input, shape index: {}]   ;;  %s13174_s4 = inlined_call_operand.vmem [shape: f32[1,4], index: 4, kind: input, shape index: {}]   ;;  %s13175_s5 = inlined_call_operand.vmem [shape: f32[1,4], index: 5, kind: input, shape index: {}]   ;;  %s13176_s6 = inlined_call_operand.vmem [shape: f32[1,4], index: 6, kind: input, shape index: {}]   ;;  %s13177_s7 = inlined_call_operand.vmem [shape: f32[2,16,16,4], index: 7, kind: output, shape index: {}]  }
   0x1 LB: > { %s7639_s25 = sadd.s32 4294967295, %s9778_s24   ;;  %p7643_p0 = scmp.ge.s32.totalorder %s9778_s24, 1  ;;  %s9778_s24 = sphi %s9821_s24, %s17_s24  }
   0x2   : > { %p237_p1 = scmp.lt.s32.totalorder %s9778_s24, 3 }
   0x4   : > { %p238_p2 = pnand %p7643_p0, %p237_p1 }
   0x6   : > { %241 = sbr.rel (%p238_p2) target bundleno = 1027 (0x403), region = 48 }
   0xb   : > { %v8251_v0 = vld [vmem:[%s13171_s1] sm:$0xff]   ;;  %vm794_vm0 = vcmask 1043456   ;;  %vm279_vm1 = vcmask 31744   ;;  %vm282_vm2 = vcmask 25600   ;;  %p9834_p3 = scmp.lt.s32.totalorder %s7639_s25, 1  ;;  %v9780_v2 = vmov 0.0  }
   0xc   : > { %v8252_v1 = vunpack.c.l.bf16 %v8251_v0  ;;  %280 = vst.msk [vmem:[#allocation2] sm:$0xff] %vm279_vm1, %v9780_v2  ;;  %281 = vst.msk [vmem:[#allocation2 + $0x8] sm:$0xff] %vm279_vm1, %v9780_v2  ;;  %vm288_vm3 = vcmask 24576   ;;  %v9842_v3 = vunpack.c.h.bf16 %v8251_v0  ;;  %v9889_v4 = vld [vmem:[%s13171_s1 + $0x8] sm:$0xff]  }
   0xd   : > { %285 = vst.msk [vmem:[#allocation2 + $0x198] sm:$0xff] %vm279_vm1, %v9780_v2  ;;  %286 = vst.msk [vmem:[#allocation2 + $0x1a0] sm:$0xff] %vm279_vm1, %v9780_v2  ;;  %s13776_s25 = smov (!%p9834_p3, %s7639_s25), 1  ;;  %v9906_v7 = vunpack.c.l.bf16 %v9889_v4 }
   0xe   : > { %283 = vst.msk [vmem:[#allocation2 + $0x10] sm:$0x3] %vm282_vm2, %v9780_v2  ;;  %287 = vst.msk [vmem:[#allocation2 + $0x1a8] sm:$0x3] %vm282_vm2, %v9780_v2  ;;  %v694_v5 = vcombine.high %v8252_v1, %v8252_v1  ;;  %8912 = vmatprep.subr.msk.mxu1 %vm794_vm0, %v8252_v1  ;;  %v695_v6 = vcombine.high %v9842_v3, %v9842_v3  ;;  %s8248_s8 = sshll.u32 %s13776_s25, 8 }
   0xf   : > { %289 = vst.msk [vmem:[#allocation2] sm:$0x1] %vm288_vm3, %v9780_v2  ;;  %290 = vst.msk [vmem:[#allocation2 + $0x18] sm:$0x1] %vm288_vm3, %v9780_v2  ;;  %8913 = vmatpush3.msk.msra.mxu1 %vm794_vm0, %v8252_v1  ;;  %s9902_s11 = scalar_lea.vmem %s13170_s0, %s8248_s8  ;;  %v9950_v20 = vcombine.high %v9906_v7, %v9906_v7  ;;  %s12907_s12 = scalar_lea.vmem %s13177_s7, %s8248_s8 }
  0x10   : > { %291 = vst.msk [vmem:[#allocation2 + $0x30] sm:$0x1] %vm288_vm3, %v9780_v2  ;;  %292 = vst.msk [vmem:[#allocation2 + $0x48] sm:$0x1] %vm288_vm3, %v9780_v2  ;;  %8862 = vmatprep.subr.msk.mxu0 %vm794_vm0, %v694_v5  ;;  %9012 = vmatprep.subr.msk.mxu1 %vm794_vm0, %v695_v6  ;;  %v9910_v8 = vld [vmem:[%s9902_s11] sm:$0xff]  ;;  %v9913_v9 = vld [vmem:[%s9902_s11 + $0x8] sm:$0xff] }
  0x11   : > { %293 = vst.msk [vmem:[#allocation2 + $0x60] sm:$0x1] %vm288_vm3, %v9780_v2  ;;  %294 = vst.msk [vmem:[#allocation2 + $0x78] sm:$0x1] %vm288_vm3, %v9780_v2  ;;  %8863 = vmatpush3.msk.msra.mxu0 %vm794_vm0, %v694_v5  ;;  %v9916_v10 = vld [vmem:[%s9902_s11 + $0x10] sm:$0xff]  ;;  %v9927_v11 = vld [vmem:[%s9902_s11 + $0x18] sm:$0xff] }
  0x12   : > { %295 = vst.msk [vmem:[#allocation2 + $0x90] sm:$0x1] %vm288_vm3, %v9780_v2  ;;  %296 = vst.msk [vmem:[#allocation2 + $0xa8] sm:$0x1] %vm288_vm3, %v9780_v2  ;;  %8962 = vmatprep.subr.msk.mxu0 %vm794_vm0, %v9842_v3  ;;  %v9930_v12 = vld [vmem:[%s9902_s11 + $0x20] sm:$0xff]  ;;  %v9933_v13 = vld [vmem:[%s9902_s11 + $0x28] sm:$0xff] }
  0x13   : > { %297 = vst.msk [vmem:[#allocation2 + $0xc0] sm:$0x1] %vm288_vm3, %v9780_v2  ;;  %298 = vst.msk [vmem:[#allocation2 + $0xd8] sm:$0x1] %vm288_vm3, %v9780_v2  ;;  %v422_v14 = vld [vmem:[#allocation2 + $0x1] sm:$0xff]  ;;  %v9943_v18 = vld [vmem:[%s9902_s11 + $0x30] sm:$0xff] }
  0x14   : > { %299 = vst.msk [vmem:[#allocation2 + $0xf0] sm:$0x1] %vm288_vm3, %v9780_v2  ;;  %300 = vst.msk [vmem:[#allocation2 + $0x108] sm:$0x1] %vm288_vm3, %v9780_v2  ;;  %v391_v16 = vld [vmem:[#allocation2 + $0x8] sm:$0xff]  ;;  %8864 = vmatprep.mubr.msk.f32.mxu0 %vm279_vm1, %v422_v14  ;;  %v9946_v19 = vld [vmem:[%s9902_s11 + $0x38] sm:$0xff] }
  0x15   : > { %301 = vst.msk [vmem:[#allocation2 + $0x120] sm:$0x1] %vm288_vm3, %v9780_v2  ;;  %302 = vst.msk [vmem:[#allocation2 + $0x138] sm:$0x1] %vm288_vm3, %v9780_v2  ;;  %v423_v15 = vld [vmem:[#allocation2 + $0x9] sm:$0xff]  ;;  %v9959_v21 = vld [vmem:[%s9902_s11 + $0x40] sm:$0xff] }
  0x16   : > { %303 = vst.msk [vmem:[#allocation2 + $0x150] sm:$0x1] %vm288_vm3, %v9780_v2  ;;  %304 = vst.msk [vmem:[#allocation2 + $0x168] sm:$0x1] %vm288_vm3, %v9780_v2  ;;  %v390_v17 = vld [vmem:[#allocation2] sm:$0xff]  ;;  %8865 = vmatmul.mubr.msk.f32.vlgmr.msra.gmra.mxu0 %vm279_vm1, %v423_v15  ;;  %v9962_v22 = vld [vmem:[%s9902_s11 + $0x48] sm:$0xff] }
  0x17   : > { %305 = vst.msk [vmem:[#allocation2 + $0x180] sm:$0x1] %vm288_vm3, %v9780_v2  ;;  %306 = vst.msk [vmem:[#allocation2 + $0x198] sm:$0x1] %vm288_vm3, %v9780_v2  ;;  %8914 = vmatprep.mubr.msk.f32.mxu1 %vm279_vm1, %v390_v17  ;;  %v9965_v23 = vld [vmem:[%s9902_s11 + $0x50] sm:$0xff]  ;;  %8963 = vmatpush3.msk.msra.mxu0 %vm794_vm0, %v9842_v3  ;;  %v9977_v24 = vld [vmem:[%s9902_s11 + $0x58] sm:$0xff] }
  0x18   : > { %307 = vst.msk [vmem:[#allocation2 + $0x11] sm:$0x1] %vm288_vm3, %v9780_v2  ;;  %308 = vst.msk [vmem:[#allocation2 + $0x29] sm:$0x1] %vm288_vm3, %v9780_v2  ;;  %8915 = vmatmul.mubr.msk.f32.vlgmr.msra.gmra.mxu1 %vm279_vm1, %v391_v16  ;;  %v9980_v25 = vld [vmem:[%s9902_s11 + $0x60] sm:$0xff]  ;;  %v9983_v26 = vld [vmem:[%s9902_s11 + $0x68] sm:$0xff]  ;;  %9062 = vmatprep.subr.msk.mxu0 %vm794_vm0, %v9906_v7 }
  0x19   : > { %309 = vst.msk [vmem:[#allocation2 + $0x41] sm:$0x1] %vm288_vm3, %v9780_v2  ;;  %310 = vst.msk [vmem:[#allocation2 + $0x59] sm:$0x1] %vm288_vm3, %v9780_v2  ;;  %v9992_v27 = vld [vmem:[%s9902_s11 + $0x70] sm:$0xff]  ;;  %v9995_v28 = vld [vmem:[%s9902_s11 + $0x78] sm:$0xff]  ;;  %9013 = vmatpush3.msk.msra.mxu1 %vm794_vm0, %v695_v6 }
  0x1a   : > { %311 = vst.msk [vmem:[#allocation2 + $0x71] sm:$0x1] %vm288_vm3, %v9780_v2  ;;  %312 = vst.msk [vmem:[#allocation2 + $0x89] sm:$0x1] %vm288_vm3, %v9780_v2  ;;  %v9998_v29 = vld [vmem:[%s9902_s11 + $0x80] sm:$0xff]  ;;  %v10010_v30 = vld [vmem:[%s9902_s11 + $0x88] sm:$0xff]  ;;  %9112 = vmatprep.subr.msk.mxu1 %vm794_vm0, %v9950_v20 }
  0x1b   : > { %313 = vst.msk [vmem:[#allocation2 + $0xa1] sm:$0x1] %vm288_vm3, %v9780_v2  ;;  %314 = vst.msk [vmem:[#allocation2 + $0xb9] sm:$0x1] %vm288_vm3, %v9780_v2  ;;  %v10013_v31 = vld [vmem:[%s9902_s11 + $0x90] sm:$0xff]  ;;  %v10016_v32 = vld [vmem:[%s9902_s11 + $0x98] sm:$0xff] }
  0x1c   : > { %315 = vst.msk [vmem:[#allocation2 + $0xd1] sm:$0x1] %vm288_vm3, %v9780_v2  ;;  %316 = vst.msk [vmem:[#allocation2 + $0xe9] sm:$0x1] %vm288_vm3, %v9780_v2  ;;  %v10095_v53 = vld [vmem:[%s9902_s11 + $0xa0] sm:$0xff]  ;;  %v10098_v54 = vld [vmem:[%s9902_s11 + $0xa8] sm:$0xff] }
  0x1d   : > { %317 = vst.msk [vmem:[#allocation2 + $0x101] sm:$0x1] %vm288_vm3, %v9780_v2  ;;  %318 = vst.msk [vmem:[#allocation2 + $0x119] sm:$0x1] %vm288_vm3, %v9780_v2  ;;  %v10111_v56 = vld [vmem:[%s9902_s11 + $0xb0] sm:$0xff]  ;;  %v10114_v57 = vld [vmem:[%s9902_s11 + $0xb8] sm:$0xff] }
  0x1e   : > { %319 = vst.msk [vmem:[#allocation2 + $0x131] sm:$0x1] %vm288_vm3, %v9780_v2  ;;  %320 = vst.msk [vmem:[#allocation2 + $0x149] sm:$0x1] %vm288_vm3, %v9780_v2  ;;  %v10117_v58 = vld [vmem:[%s9902_s11 + $0xc0] sm:$0xff]  ;;  %v10130_v59 = vld [vmem:[%s9902_s11 + $0xc8] sm:$0xff] }
  0x1f   : > { %321 = vst.msk [vmem:[#allocation2 + $0x161] sm:$0x1] %vm288_vm3, %v9780_v2  ;;  %322 = vst.msk [vmem:[#allocation2 + $0x179] sm:$0x1] %vm288_vm3, %v9780_v2  ;;  %v10133_v60 = vld [vmem:[%s9902_s11 + $0xd0] sm:$0xff]  ;;  %v10136_v61 = vld [vmem:[%s9902_s11 + $0xd8] sm:$0xff] }
  0x20   : > { %323 = vst.msk [vmem:[#allocation2 + $0x191] sm:$0x1] %vm288_vm3, %v9780_v2  ;;  %324 = vst.msk [vmem:[#allocation2 + $0x1a9] sm:$0x1] %vm288_vm3, %v9780_v2  ;;  %v10147_v63 = vld [vmem:[%s9902_s11 + $0xe0] sm:$0xff]  ;;  %v10150_v0 = vld [vmem:[%s9902_s11 + $0xe8] sm:$0xff] }
  0x21   : > { %13283 = vst [vmem:[#allocation3_spill] sm:$0xff] %v9910_v8  ;;  %13284 = vst [vmem:[#allocation4_spill] sm:$0xff] %v9913_v9 }
  0x22   : > { %13285 = vst [vmem:[#allocation5_spill] sm:$0xff] %v9916_v10  ;;  %358 = vst.msk [vmem:[#allocation2 + $0x19] sm:$0xff] %vm279_vm1, %v9910_v8 }
  0x23   : > { %359 = vst.msk [vmem:[#allocation2 + $0x21] sm:$0xff] %vm279_vm1, %v9913_v9  ;;  %360 = vst.msk [vmem:[#allocation2 + $0x31] sm:$0xff] %vm279_vm1, %v9916_v10  ;;  %v454_v9 = vld [vmem:[#allocation2 + $0x2] sm:$0xff] }
  0x24   : > { %13286 = vst [vmem:[#allocation6_spill] sm:$0xff] %v9927_v11  ;;  %13287 = vst [vmem:[#allocation7_spill] sm:$0xff] %v9930_v12 }
  0x25   : > { %13288 = vst [vmem:[#allocation8_spill] sm:$0xff] %v9933_v13  ;;  %361 = vst.msk [vmem:[#allocation2 + $0x39] sm:$0xff] %vm279_vm1, %v9927_v11 }
  0x26   : > { %362 = vst.msk [vmem:[#allocation2 + $0x49] sm:$0xff] %vm279_vm1, %v9930_v12  ;;  %363 = vst.msk [vmem:[#allocation2 + $0x51] sm:$0xff] %vm279_vm1, %v9933_v13 }
  0x27   : > { %13289 = vst [vmem:[#allocation9_spill] sm:$0xff] %v9943_v18  ;;  %13290 = vst [vmem:[#allocation10_spill] sm:$0xff] %v9946_v19 }
  0x28   : > { %364 = vst.msk [vmem:[#allocation2 + $0x61] sm:$0xff] %vm279_vm1, %v9943_v18  ;;  %365 = vst.msk [vmem:[#allocation2 + $0x69] sm:$0xff] %vm279_vm1, %v9946_v19 }
  0x29   : > { %13291 = vst [vmem:[#allocation11_spill] sm:$0xff] %v9959_v21  ;;  %13292 = vst [vmem:[#allocation12_spill] sm:$0xff] %v9962_v22  ;;  %v10020_v33 = vld [vmem:[#allocation2 + $0x19] sm:$0xff] }
  0x2a   : > { %13293 = vst [vmem:[#allocation13_spill] sm:$0xff] %v9965_v23  ;;  %366 = vst.msk [vmem:[#allocation2 + $0x79] sm:$0xff] %vm279_vm1, %v9959_v21  ;;  %v10022_v34 = vld [vmem:[#allocation2 + $0x18] sm:$0xff]  ;;  %v10024_v35 = vld [vmem:[#allocation2 + $0x21] sm:$0xff]  ;;  %8867 = vmatprep.mubr.msk.f32.mxu0 %vm279_vm1, %v10020_v33 }
  0x2b   : > { %367 = vst.msk [vmem:[#allocation2 + $0x81] sm:$0xff] %vm279_vm1, %v9962_v22  ;;  %368 = vst.msk [vmem:[#allocation2 + $0x91] sm:$0xff] %vm279_vm1, %v9965_v23  ;;  %8917 = vmatprep.mubr.msk.f32.mxu1 %vm279_vm1, %v10022_v34  ;;  %v10036_v36 = vld [vmem:[#allocation2 + $0x20] sm:$0xff]  ;;  %v10038_v37 = vld [vmem:[#allocation2 + $0x31] sm:$0xff]  ;;  %8868 = vmatmul.mubr.msk.f32.gmra.mxu0 %vm279_vm1, %v10024_v35 }
  0x2c   : > { %13294 = vst [vmem:[#allocation14_spill] sm:$0xff] %v9977_v24  ;;  %13295 = vst [vmem:[#allocation15_spill] sm:$0xff] %v9980_v25  ;;  %v10040_v38 = vld [vmem:[#allocation2 + $0x30] sm:$0xff]  ;;  %8918 = vmatmul.mubr.msk.f32.gmra.mxu1 %vm279_vm1, %v10036_v36  ;;  %8870 = vmatprep.mubr.msk.f32.mxu0 %vm279_vm1, %v10038_v37  ;;  %v10050_v39 = vld [vmem:[#allocation2 + $0x39] sm:$0xff] }
  0x2d   : > { %13296 = vst [vmem:[#allocation16_spill] sm:$0xff] %v9983_v26  ;;  %369 = vst.msk [vmem:[#allocation2 + $0x99] sm:$0xff] %vm279_vm1, %v9977_v24  ;;  %8920 = vmatprep.mubr.msk.f32.mxu1 %vm279_vm1, %v10040_v38  ;;  %v10052_v40 = vld [vmem:[#allocation2 + $0x38] sm:$0xff]  ;;  %v10054_v41 = vld [vmem:[#allocation2 + $0x49] sm:$0xff] }
  0x2e   : > { %370 = vst.msk [vmem:[#allocation2 + $0xa9] sm:$0xff] %vm279_vm1, %v9980_v25  ;;  %371 = vst.msk [vmem:[#allocation2 + $0xb1] sm:$0xff] %vm279_vm1, %v9983_v26  ;;  %v10056_v42 = vld [vmem:[#allocation2 + $0x48] sm:$0xff]  ;;  %v10066_v43 = vld [vmem:[#allocation2 + $0x51] sm:$0xff] }
  0x2f   : > { %13297 = vst [vmem:[#allocation17_spill] sm:$0xff] %v9992_v27  ;;  %13298 = vst [vmem:[#allocation18_spill] sm:$0xff] %v9995_v28  ;;  %8871 = vmatmul.mubr.msk.f32.gmra.mxu0 %vm279_vm1, %v10050_v39  ;;  %v10068_v44 = vld [vmem:[#allocation2 + $0x50] sm:$0xff]  ;;  %v10070_v45 = vld [vmem:[#allocation2 + $0x61] sm:$0xff] }
  0x30   : > { %13299 = vst [vmem:[#allocation19_spill] sm:$0xff] %v9998_v29  ;;  %372 = vst.msk [vmem:[#allocation2 + $0xc1] sm:$0xff] %vm279_vm1, %v9992_v27  ;;  %8921 = vmatmul.mubr.msk.f32.gmra.mxu1 %vm279_vm1, %v10052_v40  ;;  %8873 = vmatprep.mubr.msk.f32.mxu0 %vm279_vm1, %v10054_v41  ;;  %v10072_v46 = vld [vmem:[#allocation2 + $0x60] sm:$0xff]  ;;  %v10082_v47 = vld [vmem:[#allocation2 + $0x69] sm:$0xff] }
  0x31   : > { %373 = vst.msk [vmem:[#allocation2 + $0xc9] sm:$0xff] %vm279_vm1, %v9995_v28  ;;  %374 = vst.msk [vmem:[#allocation2 + $0xd9] sm:$0xff] %vm279_vm1, %v9998_v29  ;;  %8923 = vmatprep.mubr.msk.f32.mxu1 %vm279_vm1, %v10056_v42  ;;  %v10084_v48 = vld [vmem:[#allocation2 + $0x68] sm:$0xff]  ;;  %v10086_v49 = vld [vmem:[#allocation2 + $0x79] sm:$0xff] }
  0x32   : > { %13300 = vst [vmem:[#allocation20_spill] sm:$0xff] %v10010_v30  ;;  %13301 = vst [vmem:[#allocation21_spill] sm:$0xff] %v10013_v31  ;;  %v10088_v50 = vld [vmem:[#allocation2 + $0x78] sm:$0xff]  ;;  %v10090_v51 = vld [vmem:[#allocation2 + $0x81] sm:$0xff] }
  0x33   : > { %13302 = vst [vmem:[#allocation22_spill] sm:$0xff] %v10016_v32  ;;  %375 = vst.msk [vmem:[#allocation2 + $0xe1] sm:$0xff] %vm279_vm1, %v10010_v30  ;;  %8874 = vmatmul.mubr.msk.f32.gmra.mxu0 %vm279_vm1, %v10066_v43  ;;  %v10092_v52 = vld [vmem:[#allocation2 + $0x80] sm:$0xff]  ;;  %v10104_v55 = vld [vmem:[#allocation2 + $0x91] sm:$0xff] }
  0x34   : > { %376 = vst.msk [vmem:[#allocation2 + $0xf1] sm:$0xff] %vm279_vm1, %v10013_v31  ;;  %377 = vst.msk [vmem:[#allocation2 + $0xf9] sm:$0xff] %vm279_vm1, %v10016_v32  ;;  %8924 = vmatmul.mubr.msk.f32.gmra.mxu1 %vm279_vm1, %v10068_v44  ;;  %8876 = vmatprep.mubr.msk.f32.mxu0 %vm279_vm1, %v10070_v45  ;;  %v10138_v62 = vld [vmem:[#allocation2 + $0x90] sm:$0xff]  ;;  %v10164_v1 = vld [vmem:[#allocation2 + $0x99] sm:$0xff] }
  0x35   : > { %13303 = vst [vmem:[#allocation23_spill] sm:$0xff] %v10056_v42  ;;  %13304 = vst [vmem:[#allocation24_spill] sm:$0xff] %v10068_v44  ;;  %8926 = vmatprep.mubr.msk.f32.mxu1 %vm279_vm1, %v10072_v46  ;;  %v10166_v2 = vld [vmem:[#allocation2 + $0x98] sm:$0xff]  ;;  %v10168_v3 = vld [vmem:[#allocation2 + $0xa9] sm:$0xff] }
  0x36   : > { %13305 = vst [vmem:[#allocation25_spill] sm:$0xff] %v10072_v46  ;;  %13306 = vst [vmem:[#allocation26_spill] sm:$0xff] %v10084_v48  ;;  %v10170_v5 = vld [vmem:[#allocation2 + $0xa8] sm:$0xff]  ;;  %v10180_v6 = vld [vmem:[#allocation2 + $0xb1] sm:$0xff] }
  0x37   : > { %13307 = vst [vmem:[#allocation27_spill] sm:$0xff] %v10088_v50  ;;  %13308 = vst [vmem:[#allocation28_spill] sm:$0xff] %v10092_v52  ;;  %8877 = vmatmul.mubr.msk.f32.gmra.mxu0 %vm279_vm1, %v10082_v47  ;;  %v10182_v14 = vld [vmem:[#allocation2 + $0xb0] sm:$0xff]  ;;  %v10184_v15 = vld [vmem:[#allocation2 + $0xc1] sm:$0xff] }
  0x38   : > { %13309 = vst [vmem:[#allocation29_spill] sm:$0xff] %v10095_v53  ;;  %13310 = vst [vmem:[#allocation30_spill] sm:$0xff] %v10098_v54  ;;  %8927 = vmatmul.mubr.msk.f32.gmra.mxu1 %vm279_vm1, %v10084_v48  ;;  %8879 = vmatprep.mubr.msk.f32.mxu0 %vm279_vm1, %v10086_v49  ;;  %v10186_v16 = vld [vmem:[#allocation2 + $0xc0] sm:$0xff]  ;;  %v10196_v17 = vld [vmem:[#allocation2 + $0xc9] sm:$0xff] }
  0x39   : > { %378 = vst.msk [vmem:[#allocation2 + $0x109] sm:$0xff] %vm279_vm1, %v10095_v53  ;;  %379 = vst.msk [vmem:[#allocation2 + $0x111] sm:$0xff] %vm279_vm1, %v10098_v54  ;;  %8929 = vmatprep.mubr.msk.f32.mxu1 %vm279_vm1, %v10088_v50  ;;  %v10228_v53 = vld [vmem:[%s9902_s11 + $0xf8] sm:$0xff] }
  0x3a   : > { %13311 = vst [vmem:[#allocation31_spill] sm:$0xff] %v10111_v56  ;;  %13312 = vst [vmem:[#allocation32_spill] sm:$0xff] %v10114_v57 }
  0x3b   : > { %13313 = vst [vmem:[#allocation33_spill] sm:$0xff] %v10117_v58  ;;  %380 = vst.msk [vmem:[#allocation2 + $0x121] sm:$0xff] %vm279_vm1, %v10111_v56  ;;  %8880 = vmatmul.mubr.msk.f32.gmra.mxu0 %vm279_vm1, %v10090_v51  ;;  %v10218_v56 = vld [vmem:[#allocation2 + $0xf0] sm:$0xff]  ;;  %v10234_v54 = vld [vmem:[#allocation2 + $0xf9] sm:$0xff] }
  0x3c   : > { %381 = vst.msk [vmem:[#allocation2 + $0x129] sm:$0xff] %vm279_vm1, %v10114_v57  ;;  %382 = vst.msk [vmem:[#allocation2 + $0x139] sm:$0xff] %vm279_vm1, %v10117_v58  ;;  %8930 = vmatmul.mubr.msk.f32.gmra.mxu1 %vm279_vm1, %v10092_v52  ;;  %8882 = vmatprep.mubr.msk.f32.mxu0 %vm279_vm1, %v10104_v55  ;;  %v10214_v58 = vld [vmem:[#allocation2 + $0xe0] sm:$0xff]  ;;  %v10225_v57 = vld [vmem:[%s9902_s11 + $0xf0] sm:$0xff] }
  0x3d   : > { %13314 = vst [vmem:[#allocation34_spill] sm:$0xff] %v10130_v59  ;;  %13315 = vst [vmem:[#allocation35_spill] sm:$0xff] %v10133_v60  ;;  %8932 = vmatprep.mubr.msk.f32.mxu1 %vm279_vm1, %v10138_v62  ;;  %v10236_v31 = vld [vmem:[#allocation2 + $0xf8] sm:$0xff] }
  0x3e   : > { %13316 = vst [vmem:[#allocation36_spill] sm:$0xff] %v10136_v61  ;;  %13317 = vst [vmem:[#allocation37_spill] sm:$0xff] %v10138_v62 }
  0x3f   : > { %383 = vst.msk [vmem:[#allocation2 + $0x141] sm:$0xff] %vm279_vm1, %v10130_v59  ;;  %384 = vst.msk [vmem:[#allocation2 + $0x151] sm:$0xff] %vm279_vm1, %v10133_v60  ;;  %8883 = vmatmul.mubr.msk.f32.gmra.mxu0 %vm279_vm1, %v10164_v1  ;;  %v10202_v60 = vld [vmem:[#allocation2 + $0xd8] sm:$0xff] }
  0x40   : > { %385 = vst.msk [vmem:[#allocation2 + $0x159] sm:$0xff] %vm279_vm1, %v10136_v61  ;;  %13318 = vst [vmem:[#allocation38_spill] sm:$0xff] %v10147_v63  ;;  %8933 = vmatmul.mubr.msk.f32.gmra.mxu1 %vm279_vm1, %v10166_v2  ;;  %8885 = vmatprep.mubr.msk.f32.mxu0 %vm279_vm1, %v10168_v3  ;;  %v10212_v61 = vld [vmem:[#allocation2 + $0xe1] sm:$0xff]  ;;  %v10216_v59 = vld [vmem:[#allocation2 + $0xf1] sm:$0xff] }
  0x41   : > { %13319 = vst [vmem:[#allocation39_spill] sm:$0xff] %v10150_v0  ;;  %386 = vst.msk [vmem:[#allocation2 + $0x169] sm:$0xff] %vm279_vm1, %v10147_v63  ;;  %8935 = vmatprep.mubr.msk.f32.mxu1 %vm279_vm1, %v10170_v5  ;;  %v10198_v63 = vld [vmem:[#allocation2 + $0xc8] sm:$0xff]  ;;  %v10256_v30 = vld [vmem:[#allocation2 + $0x110] sm:$0xff] }
  0x42   : > { %387 = vst.msk [vmem:[#allocation2 + $0x171] sm:$0xff] %vm279_vm1, %v10150_v0  ;;  %13320 = vst [vmem:[#allocation40_spill] sm:$0xff] %v10166_v2  ;;  %v10200_v0 = vld [vmem:[#allocation2 + $0xd9] sm:$0xff]  ;;  %v10242_v32 = vld [vmem:[#allocation2 + $0x109] sm:$0xff] }
  0x43   : > { %13321 = vst [vmem:[#allocation41_spill] sm:$0xff] %v10170_v5  ;;  %13322 = vst [vmem:[#allocation42_spill] sm:$0xff] %v10182_v14  ;;  %8886 = vmatmul.mubr.msk.f32.gmra.mxu0 %vm279_vm1, %v10180_v6  ;;  %v10244_v29 = vld [vmem:[#allocation2 + $0x108] sm:$0xff]  ;;  %v10260_v27 = vld [vmem:[#allocation2 + $0x120] sm:$0xff] }
  0x44   : > { %13323 = vst [vmem:[#allocation43_spill] sm:$0xff] %v10186_v16  ;;  %8936 = vmatmul.mubr.msk.f32.gmra.mxu1 %vm279_vm1, %v10182_v14  ;;  %8888 = vmatprep.mubr.msk.f32.mxu0 %vm279_vm1, %v10184_v15  ;;  %13324 = vst [vmem:[#allocation44_spill] sm:$0xff] %v10198_v63  ;;  %v10270_v28 = vld [vmem:[#allocation2 + $0x129] sm:$0xff]  ;;  %v10274_v26 = vld [vmem:[#allocation2 + $0x139] sm:$0xff] }
  0x45   : > { %8938 = vmatprep.mubr.msk.f32.mxu1 %vm279_vm1, %v10186_v16  ;;  %13325 = vst [vmem:[#allocation45_spill] sm:$0xff] %v10202_v60  ;;  %13326 = vst [vmem:[#allocation46_spill] sm:$0xff] %v10214_v58  ;;  %v10272_v25 = vld [vmem:[#allocation2 + $0x128] sm:$0xff]  ;;  %v10276_v23 = vld [vmem:[#allocation2 + $0x138] sm:$0xff] }
  0x46   : > { %13327 = vst [vmem:[#allocation47_spill] sm:$0xff] %v10218_v56  ;;  %13328 = vst [vmem:[#allocation48_spill] sm:$0xff] %v10225_v57  ;;  %v10286_v24 = vld [vmem:[#allocation2 + $0x141] sm:$0xff]  ;;  %v10290_v22 = vld [vmem:[#allocation2 + $0x151] sm:$0xff] }
  0x47   : > { %8889 = vmatmul.mubr.msk.f32.gmra.mxu0 %vm279_vm1, %v10196_v17  ;;  %13329 = vst [vmem:[#allocation49_spill] sm:$0xff] %v10228_v53  ;;  %13330 = vst [vmem:[#allocation50_spill] sm:$0xff] %v10236_v31  ;;  %v10288_v21 = vld [vmem:[#allocation2 + $0x140] sm:$0xff]  ;;  %v10292_v18 = vld [vmem:[#allocation2 + $0x150] sm:$0xff] }
  0x48   : > { %8939 = vmatmul.mubr.msk.f32.gmra.mxu1 %vm279_vm1, %v10198_v63  ;;  %8891 = vmatprep.mubr.msk.f32.mxu0 %vm279_vm1, %v10200_v0  ;;  %388 = vst.msk [vmem:[#allocation2 + $0x181] sm:$0xff] %vm279_vm1, %v10225_v57  ;;  %389 = vst.msk [vmem:[#allocation2 + $0x189] sm:$0xff] %vm279_vm1, %v10228_v53  ;;  %v10254_v57 = vld [vmem:[#allocation2 + $0x111] sm:$0xff]  ;;  %v10258_v53 = vld [vmem:[#allocation2 + $0x121] sm:$0xff] }
  0x49   : > { %8941 = vmatprep.mubr.msk.f32.mxu1 %vm279_vm1, %v10202_v60  ;;  %13331 = vst [vmem:[#allocation51_spill] sm:$0xff] %v10244_v29  ;;  %13332 = vst [vmem:[#allocation52_spill] sm:$0xff] %v10256_v30  ;;  %v10302_v19 = vld [vmem:[#allocation2 + $0x159] sm:$0xff]  ;;  %v10306_v13 = vld [vmem:[#allocation2 + $0x169] sm:$0xff] }
  0x4a   : > { %13333 = vst [vmem:[#allocation53_spill] sm:$0xff] %v10260_v27  ;;  %13334 = vst [vmem:[#allocation54_spill] sm:$0xff] %v10272_v25  ;;  %v10304_v12 = vld [vmem:[#allocation2 + $0x158] sm:$0xff]  ;;  %v10308_v10 = vld [vmem:[#allocation2 + $0x168] sm:$0xff] }
  0x4b   : > { %8892 = vmatmul.mubr.msk.f32.gmra.mxu0 %vm279_vm1, %v10212_v61  ;;  %13335 = vst [vmem:[#allocation55_spill] sm:$0xff] %v10276_v23  ;;  %13336 = vst [vmem:[#allocation56_spill] sm:$0xff] %v10286_v24  ;;  %v10318_v11 = vld [vmem:[#allocation2 + $0x171] sm:$0xff] }
  0x4c   : > { %8942 = vmatmul.mubr.msk.f32.gmra.mxu1 %vm279_vm1, %v10214_v58  ;;  %8894 = vmatprep.mubr.msk.f32.mxu0 %vm279_vm1, %v10216_v59  ;;  %13337 = vst [vmem:[#allocation57_spill] sm:$0xff] %v10288_v21  ;;  %13338 = vst [vmem:[#allocation58_spill] sm:$0xff] %v10290_v22  ;;  %v10320_v8 = vld [vmem:[#allocation2 + $0x170] sm:$0xff] }
  0x4d   : > { %8944 = vmatprep.mubr.msk.f32.mxu1 %vm279_vm1, %v10218_v56  ;;  %13339 = vst [vmem:[#allocation59_spill] sm:$0xff] %v10292_v18  ;;  %13340 = vst [vmem:[#allocation60_spill] sm:$0xff] %v10302_v19 }
  0x4e   : > { %13341 = vst [vmem:[#allocation61_spill] sm:$0xff] %v10304_v12  ;;  %13342 = vst [vmem:[#allocation62_spill] sm:$0xff] %v10306_v13 }
  0x4f   : > { %8895 = vmatmul.mubr.msk.f32.gmra.mxu0 %vm279_vm1, %v10234_v54  ;;  %13343 = vst [vmem:[#allocation63_spill] sm:$0xff] %v10320_v8 }
  0x50   : > { %8945 = vmatmul.mubr.msk.f32.gmra.mxu1 %vm279_vm1, %v10236_v31  ;;  %8897 = vmatprep.mubr.msk.f32.mxu0 %vm279_vm1, %v10242_v32 }
  0x51   : > { %8947 = vmatprep.mubr.msk.f32.mxu1 %vm279_vm1, %v10244_v29 }
  0x53   : > { %8898 = vmatmul.mubr.msk.f32.gmra.mxu0 %vm279_vm1, %v10254_v57 }
  0x54   : > { %8948 = vmatmul.mubr.msk.f32.gmra.mxu1 %vm279_vm1, %v10256_v30  ;;  %8900 = vmatprep.mubr.msk.f32.mxu0 %vm279_vm1, %v10258_v53 }
  0x55   : > { %8950 = vmatprep.mubr.msk.f32.mxu1 %vm279_vm1, %v10260_v27 }
  0x57   : > { %8901 = vmatmul.mubr.msk.f32.gmra.mxu0 %vm279_vm1, %v10270_v28 }
  0x58   : > { %8951 = vmatmul.mubr.msk.f32.gmra.mxu1 %vm279_vm1, %v10272_v25  ;;  %8903 = vmatprep.mubr.msk.f32.mxu0 %vm279_vm1, %v10274_v26 }
  0x59   : > { %8953 = vmatprep.mubr.msk.f32.mxu1 %vm279_vm1, %v10276_v23 }
  0x5b   : > { %8904 = vmatmul.mubr.msk.f32.gmra.mxu0 %vm279_vm1, %v10286_v24 }
  0x5c   : > { %8954 = vmatmul.mubr.msk.f32.gmra.mxu1 %vm279_vm1, %v10288_v21  ;;  %8906 = vmatprep.mubr.msk.f32.mxu0 %vm279_vm1, %v10290_v22  ;;  %v10323_v22 = vunpack.c.h.bf16 %v9889_v4  ;;  %v10345_v4 = vld [vmem:[#allocation2 + $0x22] sm:$0xff] }
  0x5d   : > { %8956 = vmatprep.mubr.msk.f32.mxu1 %vm279_vm1, %v10292_v18 }
  0x5e   : > { %v10336_v24 = vcombine.high %v10323_v22, %v10323_v22 }
  0x5f   : > { %8907 = vmatmul.mubr.msk.f32.gmra.mxu0 %vm279_vm1, %v10302_v19  ;;  %v10332_v19 = vld [vmem:[#allocation2 + $0x1a] sm:$0xff] }
  0x60   : > { %8957 = vmatmul.mubr.msk.f32.gmra.mxu1 %vm279_vm1, %v10304_v12  ;;  %8909 = vmatprep.mubr.msk.f32.mxu0 %vm279_vm1, %v10306_v13  ;;  %v455_v13 = vld [vmem:[#allocation2 + $0xa] sm:$0xff] }
  0x61   : > { %8959 = vmatprep.mubr.msk.f32.mxu1 %vm279_vm1, %v10308_v10 }
  0x63   : > { %8910 = vmatmul.mubr.msk.f32.gmra.mxu0 %vm279_vm1, %v10318_v11 }
  0x64   : > { %8960 = vmatmul.mubr.msk.f32.gmra.mxu1 %vm279_vm1, %v10320_v8  ;;  %8964 = vmatprep.mubr.msk.f32.mxu0 %vm279_vm1, %v454_v9  ;;  %v10349_v9 = vld [vmem:[#allocation2 + $0x32] sm:$0xff] }
  0x65   : > { %9014 = vmatprep.mubr.msk.f32.mxu1 %vm279_vm1, %v10022_v34  ;;  %v10379_v34 = vld [vmem:[#allocation2 + $0x62] sm:$0xff] }
  0x67   : > { %8965 = vmatmul.mubr.msk.f32.vlgmr.msra.gmra.mxu0 %vm279_vm1, %v455_v13  ;;  %v10367_v13 = vld [vmem:[#allocation2 + $0x4a] sm:$0xff] }
  0x68   : > { %9015 = vmatmul.mubr.msk.f32.vlgmr.msra.gmra.mxu1 %vm279_vm1, %v10036_v36  ;;  %9063 = vmatpush3.msk.msra.mxu0 %vm794_vm0, %v9906_v7  ;;  %v10363_v7 = vld [vmem:[#allocation2 + $0x3a] sm:$0xff]  ;;  %v10387_v36 = vld [vmem:[#allocation2 + $0x6a] sm:$0xff] }
  0x69   : > { %8967 = vmatprep.mubr.msk.f32.mxu0 %vm279_vm1, %v10332_v19  ;;  %9017 = vmatprep.mubr.msk.f32.mxu1 %vm279_vm1, %v10040_v38 }
  0x6a   : > { %9113 = vmatpush3.msk.msra.mxu1 %vm794_vm0, %v9950_v20  ;;  %9162 = vmatprep.subr.msk.mxu0 %vm794_vm0, %v10323_v22  ;;  %v10375_v20 = vld [vmem:[#allocation2 + $0x52] sm:$0xff] }
  0x6b   : > { %9212 = vmatprep.subr.msk.mxu1 %vm794_vm0, %v10336_v24  ;;  %8968 = vmatmul.mubr.msk.f32.gmra.mxu0 %vm279_vm1, %v10345_v4 }
  0x6c   : > { %9018 = vmatmul.mubr.msk.f32.gmra.mxu1 %vm279_vm1, %v10052_v40  ;;  %8970 = vmatprep.mubr.msk.f32.mxu0 %vm279_vm1, %v10349_v9 }
  0x6d   : > { %9020 = vmatprep.mubr.msk.f32.mxu1 %vm279_vm1, %v10056_v42  ;;  %v10513_v42 = vld [vmem:[#allocation2 + $0x180] sm:$0xff] }
  0x6e   : > { %13344 = vst [vmem:[#allocation64_spill] sm:$0xff] %v10513_v42 }
  0x6f   : > { %8971 = vmatmul.mubr.msk.f32.gmra.mxu0 %vm279_vm1, %v10363_v7 }
  0x70   : > { %9021 = vmatmul.mubr.msk.f32.gmra.mxu1 %vm279_vm1, %v10068_v44  ;;  %8973 = vmatprep.mubr.msk.f32.mxu0 %vm279_vm1, %v10367_v13  ;;  %v10391_v44 = vld [vmem:[#allocation2 + $0x7a] sm:$0xff] }
  0x71   : > { %9023 = vmatprep.mubr.msk.f32.mxu1 %vm279_vm1, %v10072_v46  ;;  %v10403_v46 = vld [vmem:[#allocation2 + $0x92] sm:$0xff] }
  0x73   : > { %8974 = vmatmul.mubr.msk.f32.gmra.mxu0 %vm279_vm1, %v10375_v20 }
  0x74   : > { %9024 = vmatmul.mubr.msk.f32.gmra.mxu1 %vm279_vm1, %v10084_v48  ;;  %8976 = vmatprep.mubr.msk.f32.mxu0 %vm279_vm1, %v10379_v34  ;;  %v10399_v48 = vld [vmem:[#allocation2 + $0x82] sm:$0xff] }
  0x75   : > { %9026 = vmatprep.mubr.msk.f32.mxu1 %vm279_vm1, %v10088_v50  ;;  %v10415_v50 = vld [vmem:[#allocation2 + $0xaa] sm:$0xff] }
  0x77   : > { %8977 = vmatmul.mubr.msk.f32.gmra.mxu0 %vm279_vm1, %v10387_v36 }
  0x78   : > { %9027 = vmatmul.mubr.msk.f32.gmra.mxu1 %vm279_vm1, %v10092_v52  ;;  %8979 = vmatprep.mubr.msk.f32.mxu0 %vm279_vm1, %v10391_v44  ;;  %v10411_v52 = vld [vmem:[#allocation2 + $0x9a] sm:$0xff] }
  0x79   : > { %9029 = vmatprep.mubr.msk.f32.mxu1 %vm279_vm1, %v10138_v62  ;;  %v10427_v62 = vld [vmem:[#allocation2 + $0xc2] sm:$0xff] }
  0x7b   : > { %8980 = vmatmul.mubr.msk.f32.gmra.mxu0 %vm279_vm1, %v10399_v48 }
  0x7c   : > { %9030 = vmatmul.mubr.msk.f32.gmra.mxu1 %vm279_vm1, %v10166_v2  ;;  %8982 = vmatprep.mubr.msk.f32.mxu0 %vm279_vm1, %v10403_v46  ;;  %v10423_v2 = vld [vmem:[#allocation2 + $0xb2] sm:$0xff] }
  0x7d   : > { %9032 = vmatprep.mubr.msk.f32.mxu1 %vm279_vm1, %v10170_v5  ;;  %v10439_v5 = vld [vmem:[#allocation2 + $0xda] sm:$0xff] }
  0x7f   : > { %8983 = vmatmul.mubr.msk.f32.gmra.mxu0 %vm279_vm1, %v10411_v52 }
  0x80   : > { %9033 = vmatmul.mubr.msk.f32.gmra.mxu1 %vm279_vm1, %v10182_v14  ;;  %8985 = vmatprep.mubr.msk.f32.mxu0 %vm279_vm1, %v10415_v50  ;;  %v10435_v14 = vld [vmem:[#allocation2 + $0xca] sm:$0xff] }
  0x81   : > { %9035 = vmatprep.mubr.msk.f32.mxu1 %vm279_vm1, %v10186_v16  ;;  %v10451_v16 = vld [vmem:[#allocation2 + $0xf2] sm:$0xff] }
  0x83   : > { %8986 = vmatmul.mubr.msk.f32.gmra.mxu0 %vm279_vm1, %v10423_v2 }
  0x84   : > { %9036 = vmatmul.mubr.msk.f32.gmra.mxu1 %vm279_vm1, %v10198_v63  ;;  %8988 = vmatprep.mubr.msk.f32.mxu0 %vm279_vm1, %v10427_v62  ;;  %v10447_v63 = vld [vmem:[#allocation2 + $0xe2] sm:$0xff] }
  0x85   : > { %9038 = vmatprep.mubr.msk.f32.mxu1 %vm279_vm1, %v10202_v60  ;;  %v10463_v60 = vld [vmem:[#allocation2 + $0x10a] sm:$0xff] }
  0x87   : > { %8989 = vmatmul.mubr.msk.f32.gmra.mxu0 %vm279_vm1, %v10435_v14 }
  0x88   : > { %9039 = vmatmul.mubr.msk.f32.gmra.mxu1 %vm279_vm1, %v10214_v58  ;;  %8991 = vmatprep.mubr.msk.f32.mxu0 %vm279_vm1, %v10439_v5  ;;  %v10459_v58 = vld [vmem:[#allocation2 + $0xfa] sm:$0xff] }
  0x89   : > { %9041 = vmatprep.mubr.msk.f32.mxu1 %vm279_vm1, %v10218_v56  ;;  %v10475_v56 = vld [vmem:[#allocation2 + $0x122] sm:$0xff] }
  0x8b   : > { %8992 = vmatmul.mubr.msk.f32.gmra.mxu0 %vm279_vm1, %v10447_v63 }
  0x8c   : > { %9042 = vmatmul.mubr.msk.f32.gmra.mxu1 %vm279_vm1, %v10236_v31  ;;  %8994 = vmatprep.mubr.msk.f32.mxu0 %vm279_vm1, %v10451_v16  ;;  %v10471_v31 = vld [vmem:[#allocation2 + $0x112] sm:$0xff] }
  0x8d   : > { %9044 = vmatprep.mubr.msk.f32.mxu1 %vm279_vm1, %v10244_v29  ;;  %v10487_v29 = vld [vmem:[#allocation2 + $0x13a] sm:$0xff] }
  0x8f   : > { %8995 = vmatmul.mubr.msk.f32.gmra.mxu0 %vm279_vm1, %v10459_v58 }
  0x90   : > { %9045 = vmatmul.mubr.msk.f32.gmra.mxu1 %vm279_vm1, %v10256_v30  ;;  %8997 = vmatprep.mubr.msk.f32.mxu0 %vm279_vm1, %v10463_v60  ;;  %v10483_v30 = vld [vmem:[#allocation2 + $0x12a] sm:$0xff] }
  0x91   : > { %9047 = vmatprep.mubr.msk.f32.mxu1 %vm279_vm1, %v10260_v27  ;;  %v10499_v27 = vld [vmem:[#allocation2 + $0x152] sm:$0xff] }
  0x93   : > { %8998 = vmatmul.mubr.msk.f32.gmra.mxu0 %vm279_vm1, %v10471_v31 }
  0x94   : > { %9048 = vmatmul.mubr.msk.f32.gmra.mxu1 %vm279_vm1, %v10272_v25  ;;  %9000 = vmatprep.mubr.msk.f32.mxu0 %vm279_vm1, %v10475_v56  ;;  %v10495_v25 = vld [vmem:[#allocation2 + $0x142] sm:$0xff] }
  0x95   : > { %9050 = vmatprep.mubr.msk.f32.mxu1 %vm279_vm1, %v10276_v23  ;;  %v10511_v23 = vld [vmem:[#allocation2 + $0x16a] sm:$0xff] }
  0x97   : > { %9001 = vmatmul.mubr.msk.f32.gmra.mxu0 %vm279_vm1, %v10483_v30 }
  0x98   : > { %9051 = vmatmul.mubr.msk.f32.gmra.mxu1 %vm279_vm1, %v10288_v21  ;;  %9003 = vmatprep.mubr.msk.f32.mxu0 %vm279_vm1, %v10487_v29  ;;  %v10507_v21 = vld [vmem:[#allocation2 + $0x15a] sm:$0xff] }
  0x99   : > { %9053 = vmatprep.mubr.msk.f32.mxu1 %vm279_vm1, %v10292_v18  ;;  %v10525_v18 = vld [vmem:[#allocation2 + $0x188] sm:$0xff] }
  0x9b   : > { %9004 = vmatmul.mubr.msk.f32.gmra.mxu0 %vm279_vm1, %v10495_v25 }
  0x9c   : > { %9054 = vmatmul.mubr.msk.f32.gmra.mxu1 %vm279_vm1, %v10304_v12  ;;  %9006 = vmatprep.mubr.msk.f32.mxu0 %vm279_vm1, %v10499_v27  ;;  %v10521_v12 = vld [vmem:[#allocation2 + $0x172] sm:$0xff] }
  0x9d   : > { %9056 = vmatprep.mubr.msk.f32.mxu1 %vm279_vm1, %v10308_v10 }
  0x9f   : > { %9007 = vmatmul.mubr.msk.f32.gmra.mxu0 %vm279_vm1, %v10507_v21 }
  0xa0   : > { %9057 = vmatmul.mubr.msk.f32.gmra.mxu1 %vm279_vm1, %v10320_v8  ;;  %9009 = vmatprep.mubr.msk.f32.mxu0 %vm279_vm1, %v10511_v23  ;;  %v10534_v8 = vld [vmem:[%s13171_s1 + $0x10] sm:$0x3] }
  0xa1   : > { %9059 = vmatprep.mubr.msk.f32.mxu1 %vm279_vm1, %v10513_v42  ;;  %v688_v42 = vunpack.c.l.bf16 %v10534_v8 }
  0xa3   : > { %9010 = vmatmul.mubr.msk.f32.gmra.mxu0 %vm279_vm1, %v10521_v12 }
  0xa4   : > { %9060 = vmatmul.mubr.msk.f32.gmra.mxu1 %vm279_vm1, %v10525_v18  ;;  %9064 = vmatprep.mubr.msk.f32.mxu0 %vm279_vm1, %v10020_v33 }
  0xa5   : > { %9114 = vmatprep.mubr.msk.f32.mxu1 %vm279_vm1, %v10332_v19  ;;  %v13345_v19 = vld [vmem:[#allocation56_spill] sm:$0xff] }
  0xa7   : > { %9065 = vmatmul.mubr.msk.f32.vlgmr.msra.gmra.mxu0 %vm279_vm1, %v10024_v35 }
  0xa8   : > { %9115 = vmatmul.mubr.msk.f32.vlgmr.msra.gmra.mxu1 %vm279_vm1, %v10345_v4  ;;  %9163 = vmatpush3.msk.msra.mxu0 %vm794_vm0, %v10323_v22  ;;  %v13346_v22 = vld [vmem:[#allocation58_spill] sm:$0xff] }
  0xa9   : > { %9067 = vmatprep.mubr.msk.f32.mxu0 %vm279_vm1, %v10038_v37  ;;  %9117 = vmatprep.mubr.msk.f32.mxu1 %vm279_vm1, %v10349_v9 }
  0xaa   : > { %9213 = vmatpush3.msk.msra.mxu1 %vm794_vm0, %v10336_v24  ;;  %9262 = vmatprep.subr.msk.mxu0 %vm794_vm0, %v688_v42  ;;  %v13347_v24 = vld [vmem:[#allocation60_spill] sm:$0xff] }
  0xab   : > { %9068 = vmatmul.mubr.msk.f32.gmra.mxu0 %vm279_vm1, %v10050_v39 }
  0xac   : > { %9118 = vmatmul.mubr.msk.f32.gmra.mxu1 %vm279_vm1, %v10363_v7  ;;  %9070 = vmatprep.mubr.msk.f32.mxu0 %vm279_vm1, %v10054_v41 }
  0xad   : > { %9120 = vmatprep.mubr.msk.f32.mxu1 %vm279_vm1, %v10367_v13 }
  0xaf   : > { %9071 = vmatmul.mubr.msk.f32.gmra.mxu0 %vm279_vm1, %v10066_v43 }
  0xb0   : > { %9121 = vmatmul.mubr.msk.f32.gmra.mxu1 %vm279_vm1, %v10375_v20  ;;  %9073 = vmatprep.mubr.msk.f32.mxu0 %vm279_vm1, %v10070_v45 }
  0xb1   : > { %9123 = vmatprep.mubr.msk.f32.mxu1 %vm279_vm1, %v10379_v34 }
  0xb3   : > { %9074 = vmatmul.mubr.msk.f32.gmra.mxu0 %vm279_vm1, %v10082_v47 }
  0xb4   : > { %9124 = vmatmul.mubr.msk.f32.gmra.mxu1 %vm279_vm1, %v10387_v36  ;;  %9076 = vmatprep.mubr.msk.f32.mxu0 %vm279_vm1, %v10086_v49 }
  0xb5   : > { %9126 = vmatprep.mubr.msk.f32.mxu1 %vm279_vm1, %v10391_v44 }
  0xb7   : > { %9077 = vmatmul.mubr.msk.f32.gmra.mxu0 %vm279_vm1, %v10090_v51 }
  0xb8   : > { %9127 = vmatmul.mubr.msk.f32.gmra.mxu1 %vm279_vm1, %v10399_v48  ;;  %9079 = vmatprep.mubr.msk.f32.mxu0 %vm279_vm1, %v10104_v55 }
  0xb9   : > { %9129 = vmatprep.mubr.msk.f32.mxu1 %vm279_vm1, %v10403_v46 }
  0xbb   : > { %9080 = vmatmul.mubr.msk.f32.gmra.mxu0 %vm279_vm1, %v10164_v1 }
  0xbc   : > { %9130 = vmatmul.mubr.msk.f32.gmra.mxu1 %vm279_vm1, %v10411_v52  ;;  %9082 = vmatprep.mubr.msk.f32.mxu0 %vm279_vm1, %v10168_v3 }
  0xbd   : > { %9132 = vmatprep.mubr.msk.f32.mxu1 %vm279_vm1, %v10415_v50 }
  0xbf   : > { %9083 = vmatmul.mubr.msk.f32.gmra.mxu0 %vm279_vm1, %v10180_v6 }
  0xc0   : > { %9133 = vmatmul.mubr.msk.f32.gmra.mxu1 %vm279_vm1, %v10423_v2  ;;  %9085 = vmatprep.mubr.msk.f32.mxu0 %vm279_vm1, %v10184_v15 }
  0xc1   : > { %9135 = vmatprep.mubr.msk.f32.mxu1 %vm279_vm1, %v10427_v62 }
  0xc3   : > { %9086 = vmatmul.mubr.msk.f32.gmra.mxu0 %vm279_vm1, %v10196_v17 }
  0xc4   : > { %9136 = vmatmul.mubr.msk.f32.gmra.mxu1 %vm279_vm1, %v10435_v14  ;;  %9088 = vmatprep.mubr.msk.f32.mxu0 %vm279_vm1, %v10200_v0 }
  0xc5   : > { %9138 = vmatprep.mubr.msk.f32.mxu1 %vm279_vm1, %v10439_v5 }
  0xc7   : > { %9089 = vmatmul.mubr.msk.f32.gmra.mxu0 %vm279_vm1, %v10212_v61 }
  0xc8   : > { %9139 = vmatmul.mubr.msk.f32.gmra.mxu1 %vm279_vm1, %v10447_v63  ;;  %9091 = vmatprep.mubr.msk.f32.mxu0 %vm279_vm1, %v10216_v59 }
  0xc9   : > { %9141 = vmatprep.mubr.msk.f32.mxu1 %vm279_vm1, %v10451_v16 }
  0xcb   : > { %9092 = vmatmul.mubr.msk.f32.gmra.mxu0 %vm279_vm1, %v10234_v54 }
  0xcc   : > { %9142 = vmatmul.mubr.msk.f32.gmra.mxu1 %vm279_vm1, %v10459_v58  ;;  %9094 = vmatprep.mubr.msk.f32.mxu0 %vm279_vm1, %v10242_v32 }
  0xcd   : > { %9144 = vmatprep.mubr.msk.f32.mxu1 %vm279_vm1, %v10463_v60  ;;  %v13350_v60 = vld [vmem:[#allocation24_spill] sm:$0xff] }
  0xcf   : > { %9095 = vmatmul.mubr.msk.f32.gmra.mxu0 %vm279_vm1, %v10254_v57 }
  0xd0   : > { %9145 = vmatmul.mubr.msk.f32.gmra.mxu1 %vm279_vm1, %v10471_v31  ;;  %9097 = vmatprep.mubr.msk.f32.mxu0 %vm279_vm1, %v10258_v53 }
  0xd1   : > { %9147 = vmatprep.mubr.msk.f32.mxu1 %vm279_vm1, %v10475_v56 }
  0xd3   : > { %9098 = vmatmul.mubr.msk.f32.gmra.mxu0 %vm279_vm1, %v10270_v28 }
  0xd4   : > { %9148 = vmatmul.mubr.msk.f32.gmra.mxu1 %vm279_vm1, %v10483_v30  ;;  %9100 = vmatprep.mubr.msk.f32.mxu0 %vm279_vm1, %v10274_v26  ;;  %v13348_v30 = vld [vmem:[#allocation62_spill] sm:$0xff] }
  0xd5   : > { %9150 = vmatprep.mubr.msk.f32.mxu1 %vm279_vm1, %v10487_v29  ;;  %v10660_v29 = vld [vmem:[#allocation2 + $0x181] sm:$0xff] }
  0xd7   : > { %9101 = vmatmul.mubr.msk.f32.gmra.mxu0 %vm279_vm1, %v13345_v19 }
  0xd8   : > { %9151 = vmatmul.mubr.msk.f32.gmra.mxu1 %vm279_vm1, %v10495_v25  ;;  %9103 = vmatprep.mubr.msk.f32.mxu0 %vm279_vm1, %v13346_v22  ;;  %v10662_v25 = vld [vmem:[#allocation2 + $0x182] sm:$0xff] }
  0xd9   : > { %9153 = vmatprep.mubr.msk.f32.mxu1 %vm279_vm1, %v10499_v27  ;;  %v10674_v27 = vld [vmem:[#allocation2 + $0x18a] sm:$0xff] }
  0xdb   : > { %9104 = vmatmul.mubr.msk.f32.gmra.mxu0 %vm279_vm1, %v13347_v24 }
  0xdc   : > { %9154 = vmatmul.mubr.msk.f32.gmra.mxu1 %vm279_vm1, %v10507_v21  ;;  %9106 = vmatprep.mubr.msk.f32.mxu0 %vm279_vm1, %v13348_v30  ;;  %v10670_v21 = vld [vmem:[#allocation2 + $0x189] sm:$0xff] }
  0xdd   : > { %9156 = vmatprep.mubr.msk.f32.mxu1 %vm279_vm1, %v10511_v23  ;;  %v8916_v23 = vpop.f32.mrf.mxu1 }
  0xdf   : > { %9107 = vmatmul.mubr.msk.f32.gmra.mxu0 %vm279_vm1, %v10318_v11  ;;  %v1186_v35 = vpop.f32.mrf.mxu1 }
  0xe0   : > { %9157 = vmatmul.mubr.msk.f32.gmra.mxu1 %vm279_vm1, %v10521_v12  ;;  %9109 = vmatprep.mubr.msk.f32.mxu0 %vm279_vm1, %v10660_v29  ;;  %v8866_v12 = vpop.f32.mrf.mxu0 }
  0xe1   : > { %9159 = vmatprep.mubr.msk.f32.mxu1 %vm279_vm1, %v10662_v25  ;;  %v10684_v31 = vadd.f32 %v8916_v23, %v8866_v12  ;;  %v13352_v23 = vld [vmem:[#allocation26_spill] sm:$0xff] }
  0xe2   : > { %v863_v33 = vpop.f32.mrf.mxu0 }
  0xe3   : > { %9110 = vmatmul.mubr.msk.f32.gmra.mxu0 %vm279_vm1, %v10670_v21 }
  0xe4   : > { %9160 = vmatmul.mubr.msk.f32.gmra.mxu1 %vm279_vm1, %v10674_v27  ;;  %9164 = vmatprep.mubr.msk.f32.mxu0 %vm279_vm1, %v10040_v38  ;;  %v13349_v38 = vld [vmem:[#allocation23_spill] sm:$0xff] }
  0xe5   : > { %9214 = vmatprep.mubr.msk.f32.mxu1 %vm279_vm1, %v10038_v37  ;;  %v10695_v37 = vadd.f32 %v1186_v35, %v863_v33  ;;  %v13353_v33 = vld [vmem:[#allocation27_spill] sm:$0xff] }
  0xe7   : > { %9165 = vmatmul.mubr.msk.f32.vlgmr.msra.gmra.mxu0 %vm279_vm1, %v10052_v40 }
  0xe8   : > { %9215 = vmatmul.mubr.msk.f32.vlgmr.msra.gmra.mxu1 %vm279_vm1, %v10050_v39  ;;  %9263 = vmatpush3.msk.msra.mxu0 %vm794_vm0, %v688_v42  ;;  %v13351_v39 = vld [vmem:[#allocation25_spill] sm:$0xff] }
  0xe9   : > { %9167 = vmatprep.mubr.msk.f32.mxu0 %vm279_vm1, %v13349_v38  ;;  %9217 = vmatprep.mubr.msk.f32.mxu1 %vm279_vm1, %v10054_v41 }
  0xeb   : > { %v8869_v56 = vpop.f32.mrf.mxu0  ;;  %9168 = vmatmul.mubr.msk.f32.gmra.mxu0 %vm279_vm1, %v13350_v60  ;;  %v13354_v60 = vld [vmem:[#allocation28_spill] sm:$0xff] }
  0xec   : > { %v8919_v58 = vpop.f32.mrf.mxu1  ;;  %9218 = vmatmul.mubr.msk.f32.gmra.mxu1 %vm279_vm1, %v10066_v43  ;;  %9170 = vmatprep.mubr.msk.f32.mxu0 %vm279_vm1, %v13351_v39  ;;  %v13355_v39 = vld [vmem:[#allocation37_spill] sm:$0xff] }
  0xed   : > { %v10703_v8 = vadd.f32 %v8919_v58, %v8869_v56  ;;  %9220 = vmatprep.mubr.msk.f32.mxu1 %vm279_vm1, %v10070_v45  ;;  %v873_v40 = vpop.f32.mrf.mxu0 }
  0xee   : > { %v1196_v42 = vpop.f32.mrf.mxu1 }
  0xef   : > { %v10709_v4 = vadd.f32 %v1196_v42, %v873_v40  ;;  %v8872_v41 = vpop.f32.mrf.mxu0  ;;  %9171 = vmatmul.mubr.msk.f32.gmra.mxu0 %vm279_vm1, %v13352_v23  ;;  %v13356_v23 = vld [vmem:[#allocation40_spill] sm:$0xff] }
  0xf0   : > { %v8922_v12 = vpop.f32.mrf.mxu1  ;;  %9221 = vmatmul.mubr.msk.f32.gmra.mxu1 %vm279_vm1, %v10082_v47  ;;  %9173 = vmatprep.mubr.msk.f32.mxu0 %vm279_vm1, %v13353_v33  ;;  %v13357_v33 = vld [vmem:[#allocation41_spill] sm:$0xff] }
  0xf1   : > { %v10715_v43 = vadd.f32 %v8922_v12, %v8872_v41  ;;  %9223 = vmatprep.mubr.msk.f32.mxu1 %vm279_vm1, %v10086_v49  ;;  %v883_v45 = vpop.f32.mrf.mxu0 }
  0xf2   : > { %v1206_v35 = vpop.f32.mrf.mxu1 }
  0xf3   : > { %v10721_v38 = vadd.f32 %v1206_v35, %v883_v45  ;;  %v8875_v56 = vpop.f32.mrf.mxu0  ;;  %9174 = vmatmul.mubr.msk.f32.gmra.mxu0 %vm279_vm1, %v13354_v60  ;;  %v13358_v60 = vld [vmem:[#allocation42_spill] sm:$0xff] }
  0xf4   : > { %v8925_v58 = vpop.f32.mrf.mxu1  ;;  %9224 = vmatmul.mubr.msk.f32.gmra.mxu1 %vm279_vm1, %v10090_v51  ;;  %9176 = vmatprep.mubr.msk.f32.mxu0 %vm279_vm1, %v13355_v39  ;;  %v13359_v39 = vld [vmem:[#allocation43_spill] sm:$0xff] }
  0xf5   : > { %v10727_v47 = vadd.f32 %v8925_v58, %v8875_v56  ;;  %9226 = vmatprep.mubr.msk.f32.mxu1 %vm279_vm1, %v10104_v55  ;;  %v893_v49 = vpop.f32.mrf.mxu0 }
  0xf6   : > { %v1216_v40 = vpop.f32.mrf.mxu1 }
  0xf7   : > { %v10733_v42 = vadd.f32 %v1216_v40, %v893_v49  ;;  %v8878_v41 = vpop.f32.mrf.mxu0  ;;  %9177 = vmatmul.mubr.msk.f32.gmra.mxu0 %vm279_vm1, %v13356_v23  ;;  %v13360_v23 = vld [vmem:[#allocation44_spill] sm:$0xff] }
  0xf8   : > { %v8928_v12 = vpop.f32.mrf.mxu1  ;;  %9227 = vmatmul.mubr.msk.f32.gmra.mxu1 %vm279_vm1, %v10164_v1  ;;  %9179 = vmatprep.mubr.msk.f32.mxu0 %vm279_vm1, %v13357_v33  ;;  %v13361_v33 = vld [vmem:[#allocation45_spill] sm:$0xff] }
  0xf9   : > { %v10739_v51 = vadd.f32 %v8928_v12, %v8878_v41  ;;  %9229 = vmatprep.mubr.msk.f32.mxu1 %vm279_vm1, %v10168_v3  ;;  %v903_v55 = vpop.f32.mrf.mxu0 }
  0xfa   : > { %v1226_v45 = vpop.f32.mrf.mxu1 }
  0xfb   : > { %v10745_v35 = vadd.f32 %v1226_v45, %v903_v55  ;;  %v8881_v56 = vpop.f32.mrf.mxu0  ;;  %9180 = vmatmul.mubr.msk.f32.gmra.mxu0 %vm279_vm1, %v13358_v60  ;;  %v13362_v60 = vld [vmem:[#allocation46_spill] sm:$0xff] }
  0xfc   : > { %v8931_v58 = vpop.f32.mrf.mxu1  ;;  %9230 = vmatmul.mubr.msk.f32.gmra.mxu1 %vm279_vm1, %v10180_v6  ;;  %9182 = vmatprep.mubr.msk.f32.mxu0 %vm279_vm1, %v13359_v39  ;;  %v13363_v39 = vld [vmem:[#allocation47_spill] sm:$0xff] }
  0xfd   : > { %v10751_v1 = vadd.f32 %v8931_v58, %v8881_v56  ;;  %9232 = vmatprep.mubr.msk.f32.mxu1 %vm279_vm1, %v10184_v15  ;;  %v913_v3 = vpop.f32.mrf.mxu0 }
  0xfe   : > { %v1236_v49 = vpop.f32.mrf.mxu1 }
  0xff   : > { %v10757_v40 = vadd.f32 %v1236_v49, %v913_v3  ;;  %v8884_v41 = vpop.f32.mrf.mxu0  ;;  %9183 = vmatmul.mubr.msk.f32.gmra.mxu0 %vm279_vm1, %v13360_v23  ;;  %v13364_v23 = vld [vmem:[#allocation50_spill] sm:$0xff] }
 0x100   : > { %v8934_v12 = vpop.f32.mrf.mxu1  ;;  %9233 = vmatmul.mubr.msk.f32.gmra.mxu1 %vm279_vm1, %v10196_v17  ;;  %9185 = vmatprep.mubr.msk.f32.mxu0 %vm279_vm1, %v13361_v33  ;;  %v13365_v33 = vld [vmem:[#allocation51_spill] sm:$0xff] }
 0x101   : > { %v10763_v6 = vadd.f32 %v8934_v12, %v8884_v41  ;;  %9235 = vmatprep.mubr.msk.f32.mxu1 %vm279_vm1, %v10200_v0  ;;  %v923_v15 = vpop.f32.mrf.mxu0 }
 0x102   : > { %v1246_v55 = vpop.f32.mrf.mxu1 }
 0x103   : > { %v10769_v45 = vadd.f32 %v1246_v55, %v923_v15  ;;  %v8887_v56 = vpop.f32.mrf.mxu0  ;;  %9186 = vmatmul.mubr.msk.f32.gmra.mxu0 %vm279_vm1, %v13362_v60  ;;  %v13367_v60 = vld [vmem:[#allocation53_spill] sm:$0xff] }
 0x104   : > { %v8937_v58 = vpop.f32.mrf.mxu1  ;;  %9236 = vmatmul.mubr.msk.f32.gmra.mxu1 %vm279_vm1, %v10212_v61  ;;  %9188 = vmatprep.mubr.msk.f32.mxu0 %vm279_vm1, %v13363_v39 }
 0x105   : > { %v10775_v17 = vadd.f32 %v8937_v58, %v8887_v56  ;;  %9238 = vmatprep.mubr.msk.f32.mxu1 %vm279_vm1, %v10216_v59  ;;  %v933_v0 = vpop.f32.mrf.mxu0  ;;  %v13366_v58 = vld [vmem:[#allocation52_spill] sm:$0xff] }
 0x106   : > { %v1256_v3 = vpop.f32.mrf.mxu1 }
 0x107   : > { %v10781_v49 = vadd.f32 %v1256_v3, %v933_v0  ;;  %v8890_v41 = vpop.f32.mrf.mxu0  ;;  %9189 = vmatmul.mubr.msk.f32.gmra.mxu0 %vm279_vm1, %v13364_v23 }
 0x108   : > { %v8940_v12 = vpop.f32.mrf.mxu1  ;;  %9239 = vmatmul.mubr.msk.f32.gmra.mxu1 %vm279_vm1, %v10234_v54  ;;  %9191 = vmatprep.mubr.msk.f32.mxu0 %vm279_vm1, %v13365_v33 }
 0x109   : > { %v10787_v61 = vadd.f32 %v8940_v12, %v8890_v41  ;;  %9241 = vmatprep.mubr.msk.f32.mxu1 %vm279_vm1, %v10242_v32  ;;  %v10793_v59 = vpop.f32.mrf.mxu0  ;;  %v13368_v41 = vld [vmem:[#allocation54_spill] sm:$0xff]  ;;  %v13369_v12 = vld [vmem:[#allocation55_spill] sm:$0xff] }
 0x10a   : > { %v10795_v15 = vpop.f32.mrf.mxu1 }
 0x10b   : > { %v8893_v55 = vpop.f32.mrf.mxu0  ;;  %9192 = vmatmul.mubr.msk.f32.gmra.mxu0 %vm279_vm1, %v13366_v58  ;;  %v13371_v58 = vld [vmem:[#allocation59_spill] sm:$0xff] }
 0x10c   : > { %v8943_v56 = vpop.f32.mrf.mxu1  ;;  %9242 = vmatmul.mubr.msk.f32.gmra.mxu1 %vm279_vm1, %v10254_v57  ;;  %9194 = vmatprep.mubr.msk.f32.mxu0 %vm279_vm1, %v13367_v60 }
 0x10d   : > { %v10801_v54 = vadd.f32 %v8943_v56, %v8893_v55  ;;  %9244 = vmatprep.mubr.msk.f32.mxu1 %vm279_vm1, %v10258_v53  ;;  %v10807_v32 = vpop.f32.mrf.mxu0  ;;  %v13370_v56 = vld [vmem:[#allocation57_spill] sm:$0xff] }
 0x10e   : > { %v10809_v39 = vpop.f32.mrf.mxu1 }
 0x10f   : > { %v8896_v0 = vpop.f32.mrf.mxu0  ;;  %9195 = vmatmul.mubr.msk.f32.gmra.mxu0 %vm279_vm1, %v13368_v41  ;;  %v13372_v41 = vld [vmem:[#allocation61_spill] sm:$0xff] }
 0x110   : > { %v8946_v3 = vpop.f32.mrf.mxu1  ;;  %9245 = vmatmul.mubr.msk.f32.gmra.mxu1 %vm279_vm1, %v10270_v28  ;;  %9197 = vmatprep.mubr.msk.f32.mxu0 %vm279_vm1, %v13369_v12 }
 0x111   : > { %v10815_v57 = vadd.f32 %v8946_v3, %v8896_v0  ;;  %9247 = vmatprep.mubr.msk.f32.mxu1 %vm279_vm1, %v10274_v26  ;;  %v10821_v53 = vpop.f32.mrf.mxu0 }
 0x112   : > { %v10823_v23 = vpop.f32.mrf.mxu1 }
 0x113   : > { %v8899_v33 = vpop.f32.mrf.mxu0  ;;  %9198 = vmatmul.mubr.msk.f32.gmra.mxu0 %vm279_vm1, %v13370_v56  ;;  %v13374_v56 = vld [vmem:[#allocation63_spill] sm:$0xff] }
 0x114   : > { %v8949_v55 = vpop.f32.mrf.mxu1  ;;  %9248 = vmatmul.mubr.msk.f32.gmra.mxu1 %vm279_vm1, %v13345_v19  ;;  %9200 = vmatprep.mubr.msk.f32.mxu0 %vm279_vm1, %v13371_v58  ;;  %v13375_v58 = vld [vmem:[#allocation64_spill] sm:$0xff] }
 0x115   : > { %v10829_v28 = vadd.f32 %v8949_v55, %v8899_v33  ;;  %9250 = vmatprep.mubr.msk.f32.mxu1 %vm279_vm1, %v13346_v22  ;;  %v10835_v26 = vpop.f32.mrf.mxu0 }
 0x116   : > { %v10837_v60 = vpop.f32.mrf.mxu1 }
 0x117   : > { %v8902_v0 = vpop.f32.mrf.mxu0  ;;  %9201 = vmatmul.mubr.msk.f32.gmra.mxu0 %vm279_vm1, %v13372_v41 }
 0x118   : > { %v8952_v3 = vpop.f32.mrf.mxu1  ;;  %9251 = vmatmul.mubr.msk.f32.gmra.mxu1 %vm279_vm1, %v13347_v24  ;;  %9203 = vmatprep.mubr.msk.f32.mxu0 %vm279_vm1, %v10308_v10 }
 0x119   : > { %v10843_v19 = vadd.f32 %v8952_v3, %v8902_v0  ;;  %9253 = vmatprep.mubr.msk.f32.mxu1 %vm279_vm1, %v13348_v30  ;;  %v10849_v22 = vpop.f32.mrf.mxu0  ;;  %v613_v0 = vld [vmem:[#allocation2 + $0x198] sm:$0xff] }
 0x11a   : > { %v10851_v12 = vpop.f32.mrf.mxu1  ;;  %v645_v3 = vld [vmem:[#allocation2 + $0x199] sm:$0xff] }
 0x11b   : > { %13373 = vst [vmem:[#allocation56_spill] sm:$0xff] %v10851_v12  ;;  %v8905_v33 = vpop.f32.mrf.mxu0  ;;  %9204 = vmatmul.mubr.msk.f32.gmra.mxu0 %vm279_vm1, %v13374_v56 }
 0x11c   : > { %v8955_v55 = vpop.f32.mrf.mxu1  ;;  %9254 = vmatmul.mubr.msk.f32.gmra.mxu1 %vm279_vm1, %v10318_v11  ;;  %9206 = vmatprep.mubr.msk.f32.mxu0 %vm279_vm1, %v13375_v58 }
 0x11d   : > { %v10857_v24 = vadd.f32 %v8955_v55, %v8905_v33  ;;  %9256 = vmatprep.mubr.msk.f32.mxu1 %vm279_vm1, %v10660_v29  ;;  %v10863_v10 = vpop.f32.mrf.mxu0  ;;  %v614_v33 = vld [vmem:[#allocation2 + $0x1a0] sm:$0xff] }
 0x11e   : > { %v10865_v30 = vpop.f32.mrf.mxu1  ;;  %v646_v29 = vld [vmem:[#allocation2 + $0x1a1] sm:$0xff] }
 0x11f   : > { %13376 = vst [vmem:[#allocation58_spill] sm:$0xff] %v10865_v30  ;;  %v8908_v41 = vpop.f32.mrf.mxu0  ;;  %9207 = vmatmul.mubr.msk.f32.gmra.mxu0 %vm279_vm1, %v10525_v18 }
 0x120   : > { %v8958_v12 = vpop.f32.mrf.mxu1  ;;  %9257 = vmatmul.mubr.msk.f32.gmra.mxu1 %vm279_vm1, %v10670_v21  ;;  %9209 = vmatprep.mubr.msk.f32.mxu0 %vm279_vm1, %v613_v0 }
 0x121   : > { %v10871_v11 = vadd.f32 %v8958_v12, %v8908_v41  ;;  %9259 = vmatprep.mubr.msk.f32.mxu1 %vm279_vm1, %v645_v3  ;;  %v10875_v55 = vpop.f32.mrf.mxu0 }
 0x122   : > { %v10877_v56 = vpop.f32.mrf.mxu1 }
 0x123   : > { %v8911_v58 = vpop.f32.mrf.mxu0  ;;  %9210 = vmatmul.mubr.msk.f32.gmra.mxu0 %vm279_vm1, %v614_v33 }
 0x124   : > { %v8961_v30 = vpop.f32.mrf.mxu1  ;;  %9260 = vmatmul.mubr.msk.f32.gmra.mxu1 %vm279_vm1, %v646_v29  ;;  %9264 = vmatprep.mubr.msk.f32.mxu0 %vm279_vm1, %v10349_v9 }
 0x125   : > { %v10881_v18 = vadd.f32 %v8961_v30, %v8911_v58  ;;  %v10885_v21 = vpop.f32.mrf.mxu0 }
 0x126   : > { %v10887_v12 = vpop.f32.mrf.mxu1 }
 0x127   : > { %13377 = vst [vmem:[#allocation60_spill] sm:$0xff] %v10887_v12  ;;  %v8966_v0 = vpop.f32.mrf.mxu0  ;;  %9265 = vmatmul.mubr.msk.f32.vlgmr.msra.gmra.mxu0 %vm279_vm1, %v10363_v7 }
 0x128   : > { %v9016_v3 = vpop.f32.mrf.mxu1  ;;  %v1669_v41 = vadd.f32 %v8966_v0, %v10684_v31  ;;  %9267 = vmatprep.mubr.msk.f32.mxu0 %vm279_vm1, %v10367_v13 }
 0x129   : > { %v1509_v33 = vpop.f32.mrf.mxu0 }
 0x12a   : > { %v10894_v30 = vpop.f32.mrf.mxu1  ;;  %v10897_v29 = vadd.f32 %v1509_v33, %v10695_v37  ;;  %v10899_v9 = vadd.f32 %v9016_v3, %v1669_v41 }
 0x12b   : > { %v8969_v58 = vpop.f32.mrf.mxu0  ;;  %9268 = vmatmul.mubr.msk.f32.gmra.mxu0 %vm279_vm1, %v10375_v20 }
 0x12c   : > { %v9019_v12 = vpop.f32.mrf.mxu1  ;;  %v1671_v7 = vadd.f32 %v8969_v58, %v10703_v8  ;;  %9270 = vmatprep.mubr.msk.f32.mxu0 %vm279_vm1, %v10379_v34 }
 0x12d   : > { %v1519_v31 = vpop.f32.mrf.mxu0 }
 0x12e   : > { %v10906_v13 = vpop.f32.mrf.mxu1  ;;  %v10909_v0 = vadd.f32 %v1519_v31, %v10709_v4  ;;  %v10911_v37 = vadd.f32 %v9019_v12, %v1671_v7  ;;  %v10940_v31 = vld [vmem:[%s13172_s2] sm:$0xff]  }
 0x12f   : > { %v8972_v3 = vpop.f32.mrf.mxu0  ;;  %9271 = vmatmul.mubr.msk.f32.gmra.mxu0 %vm279_vm1, %v10387_v36 }
 0x130   : > { %v9022_v41 = vpop.f32.mrf.mxu1  ;;  %v1673_v20 = vadd.f32 %v8972_v3, %v10715_v43  ;;  %9273 = vmatprep.mubr.msk.f32.mxu0 %vm279_vm1, %v10391_v44 }
 0x131   : > { %v1529_v8 = vpop.f32.mrf.mxu0 }
 0x132   : > { %v10918_v34 = vpop.f32.mrf.mxu1  ;;  %v10921_v33 = vadd.f32 %v1529_v8, %v10721_v38  ;;  %v10923_v4 = vadd.f32 %v9022_v41, %v1673_v20 }
 0x133   : > { %v8975_v12 = vpop.f32.mrf.mxu0  ;;  %9274 = vmatmul.mubr.msk.f32.gmra.mxu0 %vm279_vm1, %v10399_v48 }
 0x134   : > { %v9025_v58 = vpop.f32.mrf.mxu1  ;;  %v1675_v36 = vadd.f32 %v8975_v12, %v10727_v47  ;;  %9276 = vmatprep.mubr.msk.f32.mxu0 %vm279_vm1, %v10403_v46  ;;  %v8260_v46 = vunpack.c.l.bf16 %v10940_v31 }
 0x135   : > { %v1539_v43 = vpop.f32.mrf.mxu0 }
 0x136   : > { %v10930_v44 = vpop.f32.mrf.mxu1  ;;  %v10933_v7 = vadd.f32 %v1539_v43, %v10733_v42  ;;  %v10935_v38 = vadd.f32 %v9025_v58, %v1675_v36  ;;  %v4275_v20 = vcombine.high %v8260_v46, %v8260_v46  ;;  %9362 = vmatprep.subr.msk.mxu0 %vm794_vm0, %v8260_v46 }
 0x137   : > { %v8978_v48 = vpop.f32.mrf.mxu0  ;;  %9277 = vmatmul.mubr.msk.f32.gmra.mxu0 %vm279_vm1, %v10411_v52 }
 0x138   : > { %v9028_v47 = vpop.f32.mrf.mxu1  ;;  %v1677_v3 = vadd.f32 %v8978_v48, %v10739_v51  ;;  %9279 = vmatprep.mubr.msk.f32.mxu0 %vm279_vm1, %v10415_v50  ;;  %9363 = vmatpush3.msk.msra.mxu0 %vm794_vm0, %v8260_v46 }
 0x139   : > { %v1549_v42 = vpop.f32.mrf.mxu0  ;;  %9312 = vmatprep.subr.msk.mxu1 %vm794_vm0, %v4275_v20 }
 0x13a   : > { %v10948_v41 = vpop.f32.mrf.mxu1  ;;  %v10952_v8 = vadd.f32 %v1549_v42, %v10745_v35  ;;  %v10954_v12 = vadd.f32 %v9028_v47, %v1677_v3  ;;  %9313 = vmatpush3.msk.msra.mxu1 %vm794_vm0, %v4275_v20 }
 0x13b   : > { %v8981_v52 = vpop.f32.mrf.mxu0  ;;  %9280 = vmatmul.mubr.msk.f32.gmra.mxu0 %vm279_vm1, %v10423_v2 }
 0x13c   : > { %v9031_v51 = vpop.f32.mrf.mxu1  ;;  %v1679_v50 = vadd.f32 %v8981_v52, %v10751_v1  ;;  %9282 = vmatprep.mubr.msk.f32.mxu0 %vm279_vm1, %v10427_v62  ;;  %v665_v52 = vld [vmem:[#allocation2 + $0x10a] sm:$0xff] }
 0x13d   : > { %v1559_v35 = vpop.f32.mrf.mxu0 }
 0x13e   : > { %v10964_v58 = vpop.f32.mrf.mxu1  ;;  %v10967_v36 = vadd.f32 %v1559_v35, %v10757_v40  ;;  %v10969_v43 = vadd.f32 %v9031_v51, %v1679_v50 }
 0x13f   : > { %v8984_v48 = vpop.f32.mrf.mxu0  ;;  %9283 = vmatmul.mubr.msk.f32.gmra.mxu0 %vm279_vm1, %v10435_v14 }
 0x140   : > { %v9034_v2 = vpop.f32.mrf.mxu1  ;;  %v1681_v1 = vadd.f32 %v8984_v48, %v10763_v6  ;;  %9285 = vmatprep.mubr.msk.f32.mxu0 %vm279_vm1, %v10439_v5  ;;  %v664_v6 = vld [vmem:[#allocation2 + $0xfa] sm:$0xff] }
 0x141   : > { %v1569_v62 = vpop.f32.mrf.mxu0 }
 0x142   : > { %v10976_v47 = vpop.f32.mrf.mxu1  ;;  %v10979_v46 = vadd.f32 %v1569_v62, %v10769_v45  ;;  %v10981_v40 = vadd.f32 %v9034_v2, %v1681_v1  ;;  %v667_v1 = vld [vmem:[#allocation2 + $0x122] sm:$0xff] }
 0x143   : > { %v8987_v3 = vpop.f32.mrf.mxu0  ;;  %9286 = vmatmul.mubr.msk.f32.gmra.mxu0 %vm279_vm1, %v10447_v63 }
 0x144   : > { %v9037_v42 = vpop.f32.mrf.mxu1  ;;  %v1683_v14 = vadd.f32 %v8987_v3, %v10775_v17  ;;  %9288 = vmatprep.mubr.msk.f32.mxu0 %vm279_vm1, %v10451_v16  ;;  %v1267_v17 = vadd.f32 %v10795_v15, %v10793_v59  ;;  %v666_v16 = vld [vmem:[#allocation2 + $0x112] sm:$0xff] }
 0x145   : > { %v1579_v5 = vpop.f32.mrf.mxu0 }
 0x146   : > { %v10988_v20 = vpop.f32.mrf.mxu1  ;;  %v10991_v45 = vadd.f32 %v1579_v5, %v10781_v49  ;;  %v10993_v51 = vadd.f32 %v9037_v42, %v1683_v14 }
 0x147   : > { %v8990_v50 = vpop.f32.mrf.mxu0  ;;  %9289 = vmatmul.mubr.msk.f32.gmra.mxu0 %vm279_vm1, %v664_v6  ;;  %v669_v6 = vld [vmem:[#allocation2 + $0x13a] sm:$0xff] }
 0x148   : > { %v9040_v63 = vpop.f32.mrf.mxu1  ;;  %v1685_v35 = vadd.f32 %v8990_v50, %v10787_v61  ;;  %9291 = vmatprep.mubr.msk.f32.mxu0 %vm279_vm1, %v665_v52  ;;  %v668_v61 = vld [vmem:[#allocation2 + $0x12a] sm:$0xff] }
 0x149   : > { %v1589_v48 = vpop.f32.mrf.mxu0 }
 0x14a   : > { %v11000_v2 = vpop.f32.mrf.mxu1  ;;  %v11002_v49 = vadd.f32 %v1589_v48, %v1267_v17  ;;  %v11004_v62 = vadd.f32 %v9040_v63, %v1685_v35  ;;  %v670_v17 = vld [vmem:[#allocation2 + $0x142] sm:$0xff] }
 0x14b   : > { %v8993_v3 = vpop.f32.mrf.mxu0  ;;  %9292 = vmatmul.mubr.msk.f32.gmra.mxu0 %vm279_vm1, %v666_v16  ;;  %v671_v16 = vld [vmem:[#allocation2 + $0x152] sm:$0xff] }
 0x14c   : > { %v9043_v42 = vpop.f32.mrf.mxu1  ;;  %v1687_v14 = vadd.f32 %v8993_v3, %v10801_v54  ;;  %9294 = vmatprep.mubr.msk.f32.mxu0 %vm279_vm1, %v667_v1 }
 0x14d   : > { %v11009_v59 = vpop.f32.mrf.mxu0 }
 0x14e   : > { %v11011_v15 = vpop.f32.mrf.mxu1  ;;  %v11013_v5 = vadd.f32 %v9043_v42, %v1687_v14  ;;  %v672_v14 = vld [vmem:[#allocation2 + $0x15a] sm:$0xff] }
 0x14f   : > { %13378 = vst [vmem:[#allocation62_spill] sm:$0xff] %v11011_v15  ;;  %v8996_v52 = vpop.f32.mrf.mxu0  ;;  %9295 = vmatmul.mubr.msk.f32.gmra.mxu0 %vm279_vm1, %v668_v61 }
 0x150   : > { %v9046_v50 = vpop.f32.mrf.mxu1  ;;  %v1689_v63 = vadd.f32 %v8996_v52, %v10815_v57  ;;  %9297 = vmatprep.mubr.msk.f32.mxu0 %vm279_vm1, %v669_v6  ;;  %v673_v6 = vld [vmem:[#allocation2 + $0x16a] sm:$0xff] }
 0x151   : > { %v11018_v54 = vpop.f32.mrf.mxu0 }
 0x152   : > { %v11020_v35 = vpop.f32.mrf.mxu1  ;;  %v11022_v48 = vadd.f32 %v9046_v50, %v1689_v63 }
 0x153   : > { %13379 = vst [vmem:[#allocation23_spill] sm:$0xff] %v11020_v35  ;;  %v8999_v1 = vpop.f32.mrf.mxu0  ;;  %9298 = vmatmul.mubr.msk.f32.gmra.mxu0 %vm279_vm1, %v670_v17  ;;  %v674_v17 = vld [vmem:[#allocation2 + $0x172] sm:$0xff] }
 0x154   : > { %v9049_v3 = vpop.f32.mrf.mxu1  ;;  %v1691_v42 = vadd.f32 %v8999_v1, %v10829_v28  ;;  %9300 = vmatprep.mubr.msk.f32.mxu0 %vm279_vm1, %v671_v16 }
 0x155   : > { %v11027_v57 = vpop.f32.mrf.mxu0 }
 0x156   : > { %13380 = vst [vmem:[#allocation24_spill] sm:$0xff] %v11027_v57  ;;  %v11029_v61 = vpop.f32.mrf.mxu1  ;;  %v11031_v52 = vadd.f32 %v9049_v3, %v1691_v42  ;;  %v4004_v57 = vld [vmem:[#allocation2 + $0x1] sm:$0xff] }
 0x157   : > { %13381 = vst [vmem:[#allocation25_spill] sm:$0xff] %v11029_v61  ;;  %v9002_v35 = vpop.f32.mrf.mxu0  ;;  %9301 = vmatmul.mubr.msk.f32.gmra.mxu0 %vm279_vm1, %v672_v14  ;;  %9314 = vmatprep.mubr.msk.f32.mxu1 %vm279_vm1, %v4004_v57 }
 0x158   : > { %v9052_v50 = vpop.f32.mrf.mxu1  ;;  %v1693_v63 = vadd.f32 %v9002_v35, %v10843_v19  ;;  %9303 = vmatprep.mubr.msk.f32.mxu0 %vm279_vm1, %v673_v6  ;;  %v677_v35 = vld [vmem:[#allocation2 + $0x19a] sm:$0xff] }
 0x159   : > { %v11036_v28 = vpop.f32.mrf.mxu0 }
 0x15a   : > { %13382 = vst [vmem:[#allocation26_spill] sm:$0xff] %v11036_v28  ;;  %v11038_v16 = vpop.f32.mrf.mxu1  ;;  %v11040_v1 = vadd.f32 %v9052_v50, %v1693_v63 }
 0x15b   : > { %13383 = vst [vmem:[#allocation27_spill] sm:$0xff] %v11038_v16  ;;  %v9005_v15 = vpop.f32.mrf.mxu0  ;;  %9304 = vmatmul.mubr.msk.f32.gmra.mxu0 %vm279_vm1, %v674_v17 }
 0x15c   : > { %v9055_v3 = vpop.f32.mrf.mxu1  ;;  %v1695_v42 = vadd.f32 %v9005_v15, %v10857_v24  ;;  %9306 = vmatprep.mubr.msk.f32.mxu0 %vm279_vm1, %v10662_v25  ;;  %v678_v24 = vld [vmem:[#allocation2 + $0x1a2] sm:$0xff] }
 0x15d   : > { %v11046_v14 = vpop.f32.mrf.mxu0 }
 0x15e   : > { %13384 = vst [vmem:[#allocation28_spill] sm:$0xff] %v11046_v14  ;;  %v11048_v19 = vpop.f32.mrf.mxu1  ;;  %v11050_v6 = vadd.f32 %v9055_v3, %v1695_v42 }
 0x15f   : > { %13385 = vst [vmem:[#allocation37_spill] sm:$0xff] %v11048_v19  ;;  %v9008_v61 = vpop.f32.mrf.mxu0  ;;  %9307 = vmatmul.mubr.msk.f32.gmra.mxu0 %vm279_vm1, %v10674_v27 }
 0x160   : > { %v9058_v50 = vpop.f32.mrf.mxu1  ;;  %v1697_v63 = vadd.f32 %v9008_v61, %v10871_v11  ;;  %9309 = vmatprep.mubr.msk.f32.mxu0 %vm279_vm1, %v677_v35 }
 0x161   : > { %v11056_v15 = vpop.f32.mrf.mxu0 }
 0x162   : > { %13386 = vst [vmem:[#allocation40_spill] sm:$0xff] %v11056_v15  ;;  %v11058_v25 = vpop.f32.mrf.mxu1  ;;  %v11060_v17 = vadd.f32 %v9058_v50, %v1697_v63 }
 0x163   : > { %13387 = vst [vmem:[#allocation41_spill] sm:$0xff] %v11058_v25  ;;  %v9011_v19 = vpop.f32.mrf.mxu0  ;;  %9310 = vmatmul.mubr.msk.f32.gmra.mxu0 %vm279_vm1, %v678_v24 }
 0x164   : > { %v9061_v3 = vpop.f32.mrf.mxu1  ;;  %v1699_v42 = vadd.f32 %v9011_v19, %v10881_v18 }
 0x165   : > { %v11064_v16 = vpop.f32.mrf.mxu0 }
 0x166   : > { %13388 = vst [vmem:[#allocation42_spill] sm:$0xff] %v11064_v16  ;;  %v11066_v27 = vpop.f32.mrf.mxu1  ;;  %v11068_v11 = vadd.f32 %v9061_v3, %v1699_v42 }
 0x167   : > { %13389 = vst [vmem:[#allocation43_spill] sm:$0xff] %v11066_v27  ;;  %v9066_v61 = vpop.f32.mrf.mxu0 }
 0x168   : > { %v11070_v35 = vpop.f32.mrf.mxu1  ;;  %v11073_v15 = vadd.f32 %v9066_v61, %v10899_v9 }
 0x169   : > { %v11075_v50 = vpop.f32.mrf.mxu0 }
 0x16a   : > { %v11077_v63 = vpop.f32.mrf.mxu1 }
 0x16b   : > { %v9069_v24 = vpop.f32.mrf.mxu0 }
 0x16c   : > { %v11079_v25 = vpop.f32.mrf.mxu1  ;;  %v11082_v18 = vadd.f32 %v9069_v24, %v10911_v37  ;;  %v3972_v37 = vld [vmem:[#allocation2] sm:$0xff] }
 0x16d   : > { %v11084_v19 = vpop.f32.mrf.mxu0  ;;  %9364 = vmatprep.mubr.msk.f32.mxu0 %vm279_vm1, %v3972_v37 }
 0x16e   : > { %v11086_v3 = vpop.f32.mrf.mxu1 }
 0x16f   : > { %13390 = vst [vmem:[#allocation44_spill] sm:$0xff] %v11086_v3  ;;  %v9072_v42 = vpop.f32.mrf.mxu0  ;;  %v3973_v3 = vld [vmem:[#allocation2 + $0x8] sm:$0xff] }
 0x170   : > { %v11088_v27 = vpop.f32.mrf.mxu1  ;;  %v11091_v9 = vadd.f32 %v9072_v42, %v10923_v4  ;;  %9365 = vmatmul.mubr.msk.f32.vlgmr.msra.gmra.mxu0 %vm279_vm1, %v3973_v3  ;;  %v11129_v3 = vunpack.c.h.bf16 %v10940_v31 }
 0x171   : > { %13391 = vst [vmem:[#allocation45_spill] sm:$0xff] %v11088_v27  ;;  %v11093_v61 = vpop.f32.mrf.mxu0  ;;  %v4005_v27 = vld [vmem:[#allocation2 + $0x9] sm:$0xff] }
 0x172   : > { %v11095_v16 = vpop.f32.mrf.mxu1  ;;  %9315 = vmatmul.mubr.msk.f32.vlgmr.msra.gmra.mxu1 %vm279_vm1, %v4005_v27  ;;  %9412 = vmatprep.subr.msk.mxu1 %vm794_vm0, %v11129_v3 }
 0x173   : > { %13392 = vst [vmem:[#allocation46_spill] sm:$0xff] %v11095_v16  ;;  %v9075_v14 = vpop.f32.mrf.mxu0  ;;  %9413 = vmatpush3.msk.msra.mxu1 %vm794_vm0, %v11129_v3 }
 0x174   : > { %v11097_v28 = vpop.f32.mrf.mxu1  ;;  %v11100_v24 = vadd.f32 %v9075_v14, %v10935_v38 }
 0x175   : > { %13393 = vst [vmem:[#allocation47_spill] sm:$0xff] %v11097_v28  ;;  %v11104_v4 = vpop.f32.mrf.mxu0 }
 0x176   : > { %13394 = vst [vmem:[#allocation50_spill] sm:$0xff] %v11100_v24  ;;  %13395 = vst [vmem:[#allocation51_spill] sm:$0xff] %v11104_v4  ;;  %v11106_v42 = vpop.f32.mrf.mxu1 }
 0x177   : > { %13396 = vst [vmem:[#allocation52_spill] sm:$0xff] %v11106_v42  ;;  %v9078_v28 = vpop.f32.mrf.mxu0 }
 0x178   : > { %v11110_v16 = vpop.f32.mrf.mxu1  ;;  %v11113_v38 = vadd.f32 %v9078_v28, %v10954_v12 }
 0x179   : > { %13397 = vst [vmem:[#allocation53_spill] sm:$0xff] %v11110_v16  ;;  %v11115_v14 = vpop.f32.mrf.mxu0 }
 0x17a   : > { %13398 = vst [vmem:[#allocation54_spill] sm:$0xff] %v11113_v38  ;;  %v11117_v57 = vpop.f32.mrf.mxu1 }
 0x17b   : > { %13399 = vst [vmem:[#allocation55_spill] sm:$0xff] %v11117_v57  ;;  %v9081_v37 = vpop.f32.mrf.mxu0 }
 0x17c   : > { %v11119_v24 = vpop.f32.mrf.mxu1  ;;  %v11122_v4 = vadd.f32 %v9081_v37, %v10969_v43 }
 0x17d   : > { %13400 = vst [vmem:[#allocation57_spill] sm:$0xff] %v11119_v24  ;;  %v11124_v42 = vpop.f32.mrf.mxu0 }
 0x17e   : > { %13401 = vst [vmem:[#allocation59_spill] sm:$0xff] %v11122_v4  ;;  %13402 = vst [vmem:[#allocation61_spill] sm:$0xff] %v11124_v42  ;;  %v11126_v27 = vpop.f32.mrf.mxu1 }
 0x17f   : > { %13403 = vst [vmem:[#allocation63_spill] sm:$0xff] %v11126_v27  ;;  %v9084_v16 = vpop.f32.mrf.mxu0 }
 0x180   : > { %v11131_v12 = vpop.f32.mrf.mxu1  ;;  %v11134_v28 = vadd.f32 %v9084_v16, %v10981_v40 }
 0x181   : > { %13404 = vst [vmem:[#allocation64_spill] sm:$0xff] %v11131_v12  ;;  %v11138_v24 = vpop.f32.mrf.mxu0 }
 0x182   : > { %13405 = vst [vmem:[#allocation65_spill] sm:$0xff] %v11134_v28  ;;  %13406 = vst [vmem:[#allocation66_spill] sm:$0xff] %v11138_v24  ;;  %v11140_v43 = vpop.f32.mrf.mxu1 }
 0x183   : > { %13407 = vst [vmem:[#allocation67_spill] sm:$0xff] %v11140_v43  ;;  %v9087_v37 = vpop.f32.mrf.mxu0 }
 0x184   : > { %v11144_v27 = vpop.f32.mrf.mxu1  ;;  %v11147_v31 = vadd.f32 %v9087_v37, %v10993_v51 }
 0x185   : > { %13408 = vst [vmem:[#allocation68_spill] sm:$0xff] %v11144_v27  ;;  %v11149_v12 = vpop.f32.mrf.mxu0 }
 0x186   : > { %13409 = vst [vmem:[#allocation69_spill] sm:$0xff] %v11147_v31  ;;  %13410 = vst [vmem:[#allocation70_spill] sm:$0xff] %v11149_v12  ;;  %v11151_v40 = vpop.f32.mrf.mxu1 }
 0x187   : > { %13411 = vst [vmem:[#allocation71_spill] sm:$0xff] %v11151_v40  ;;  %v9090_v16 = vpop.f32.mrf.mxu0 }
 0x188   : > { %v11153_v28 = vpop.f32.mrf.mxu1  ;;  %v11156_v24 = vadd.f32 %v9090_v16, %v11004_v62 }
 0x189   : > { %13412 = vst [vmem:[#allocation72_spill] sm:$0xff] %v11153_v28  ;;  %v11158_v43 = vpop.f32.mrf.mxu0 }
 0x18a   : > { %13413 = vst [vmem:[#allocation73_spill] sm:$0xff] %v11156_v24  ;;  %13414 = vst [vmem:[#allocation74_spill] sm:$0xff] %v11158_v43  ;;  %v11160_v4 = vpop.f32.mrf.mxu1 }
 0x18b   : > { %13415 = vst [vmem:[#allocation75_spill] sm:$0xff] %v11160_v4  ;;  %v9093_v57 = vpop.f32.mrf.mxu0 }
 0x18c   : > { %v11162_v42 = vpop.f32.mrf.mxu1  ;;  %v11165_v51 = vadd.f32 %v9093_v57, %v11013_v5 }
 0x18d   : > { %13416 = vst [vmem:[#allocation76_spill] sm:$0xff] %v11162_v42  ;;  %v11167_v37 = vpop.f32.mrf.mxu0 }
 0x18e   : > { %13417 = vst [vmem:[#allocation77_spill] sm:$0xff] %v11165_v51  ;;  %13418 = vst [vmem:[#allocation78_spill] sm:$0xff] %v11167_v37  ;;  %v11169_v27 = vpop.f32.mrf.mxu1 }
 0x18f   : > { %13419 = vst [vmem:[#allocation79_spill] sm:$0xff] %v11169_v27  ;;  %v9096_v40 = vpop.f32.mrf.mxu0 }
 0x190   : > { %v11171_v31 = vpop.f32.mrf.mxu1  ;;  %v11174_v62 = vadd.f32 %v9096_v40, %v11022_v48 }
 0x191   : > { %13420 = vst [vmem:[#allocation80_spill] sm:$0xff] %v11171_v31  ;;  %v11176_v16 = vpop.f32.mrf.mxu0 }
 0x192   : > { %13421 = vst [vmem:[#allocation81_spill] sm:$0xff] %v11174_v62  ;;  %13422 = vst [vmem:[#allocation82_spill] sm:$0xff] %v11176_v16  ;;  %v11178_v28 = vpop.f32.mrf.mxu1 }
 0x193   : > { %13423 = vst [vmem:[#allocation83_spill] sm:$0xff] %v11178_v28  ;;  %v9099_v4 = vpop.f32.mrf.mxu0 }
 0x194   : > { %v11180_v24 = vpop.f32.mrf.mxu1  ;;  %v11183_v5 = vadd.f32 %v9099_v4, %v11031_v52 }
 0x195   : > { %13424 = vst [vmem:[#allocation84_spill] sm:$0xff] %v11180_v24  ;;  %v11185_v57 = vpop.f32.mrf.mxu0 }
 0x196   : > { %13425 = vst [vmem:[#allocation85_spill] sm:$0xff] %v11183_v5  ;;  %13426 = vst [vmem:[#allocation86_spill] sm:$0xff] %v11185_v57  ;;  %v11187_v42 = vpop.f32.mrf.mxu1 }
 0x197   : > { %13427 = vst [vmem:[#allocation87_spill] sm:$0xff] %v11187_v42  ;;  %v9102_v27 = vpop.f32.mrf.mxu0 }
 0x198   : > { %v11189_v51 = vpop.f32.mrf.mxu1  ;;  %v11192_v48 = vadd.f32 %v9102_v27, %v11040_v1 }
 0x199   : > { %13428 = vst [vmem:[#allocation88_spill] sm:$0xff] %v11189_v51  ;;  %v11194_v40 = vpop.f32.mrf.mxu0 }
 0x19a   : > { %13429 = vst [vmem:[#allocation89_spill] sm:$0xff] %v11192_v48  ;;  %13430 = vst [vmem:[#allocation90_spill] sm:$0xff] %v11194_v40  ;;  %v11196_v31 = vpop.f32.mrf.mxu1 }
 0x19b   : > { %13431 = vst [vmem:[#allocation91_spill] sm:$0xff] %v11196_v31  ;;  %v9105_v28 = vpop.f32.mrf.mxu0 }
 0x19c   : > { %v11198_v62 = vpop.f32.mrf.mxu1  ;;  %v11201_v52 = vadd.f32 %v9105_v28, %v11050_v6 }
 0x19d   : > { %13432 = vst [vmem:[#allocation92_spill] sm:$0xff] %v11198_v62  ;;  %v11203_v4 = vpop.f32.mrf.mxu0 }
 0x19e   : > { %13433 = vst [vmem:[#allocation93_spill] sm:$0xff] %v11201_v52  ;;  %13434 = vst [vmem:[#allocation94_spill] sm:$0xff] %v11203_v4  ;;  %v11205_v24 = vpop.f32.mrf.mxu1  ;;  %v8267_v52 = vld [vmem:[%s13172_s2 + $0x8] sm:$0xff]  }
 0x19f   : > { %13435 = vst [vmem:[#allocation95_spill] sm:$0xff] %v11205_v24  ;;  %v9108_v42 = vpop.f32.mrf.mxu0  ;;  %v11257_v40 = vunpack.c.l.bf16 %v8267_v52 }
 0x1a0   : > { %v11207_v5 = vpop.f32.mrf.mxu1  ;;  %v11210_v1 = vadd.f32 %v9108_v42, %v11060_v17 }
 0x1a1   : > { %13436 = vst [vmem:[#allocation96_spill] sm:$0xff] %v11207_v5  ;;  %v11212_v27 = vpop.f32.mrf.mxu0  ;;  %13445 = vst [vmem:[#allocation105_spill] sm:$0xff] %v11257_v40  ;;  %9512 = vmatprep.subr.msk.mxu1 %vm794_vm0, %v11257_v40 }
 0x1a2   : > { %13437 = vst [vmem:[#allocation97_spill] sm:$0xff] %v11210_v1  ;;  %13438 = vst [vmem:[#allocation98_spill] sm:$0xff] %v11212_v27  ;;  %v11214_v51 = vpop.f32.mrf.mxu1 }
 0x1a3   : > { %13439 = vst [vmem:[#allocation99_spill] sm:$0xff] %v11214_v51  ;;  %v9111_v31 = vpop.f32.mrf.mxu0 }
 0x1a4   : > { %v11216_v48 = vpop.f32.mrf.mxu1  ;;  %v11219_v6 = vadd.f32 %v9111_v31, %v11068_v11 }
 0x1a5   : > { %13440 = vst [vmem:[#allocation100_spill] sm:$0xff] %v11216_v48  ;;  %v11221_v28 = vpop.f32.mrf.mxu0 }
 0x1a6   : > { %13441 = vst [vmem:[#allocation101_spill] sm:$0xff] %v11219_v6  ;;  %13442 = vst [vmem:[#allocation102_spill] sm:$0xff] %v11221_v28  ;;  %v11223_v62 = vpop.f32.mrf.mxu1  ;;  %v4276_v28 = vcombine.high %v11129_v3, %v11129_v3 }
 0x1a7   : > { %13443 = vst [vmem:[#allocation103_spill] sm:$0xff] %v11223_v62  ;;  %v11225_v24 = vpop.f32.mrf.mxu0 }
 0x1a8   : > { %v11227_v5 = vpop.f32.mrf.mxu1  ;;  %9462 = vmatprep.subr.msk.mxu0 %vm794_vm0, %v4276_v28 }
 0x1a9   : > { %v11229_v17 = vpop.f32.mrf.mxu0  ;;  %9463 = vmatpush3.msk.msra.mxu0 %vm794_vm0, %v4276_v28 }
 0x1aa   : > { %v11231_v42 = vpop.f32.mrf.mxu1 }
 0x1ab   : > { %v11233_v1 = vpop.f32.mrf.mxu0 }
 0x1ac   : > { %v11235_v51 = vpop.f32.mrf.mxu1 }
 0x1ad   : > { %v11237_v48 = vpop.f32.mrf.mxu0 }
 0x1ae   : > { %v11241_v31 = vpop.f32.mrf.mxu1 }
 0x1af   : > { %v11239_v11 = vpop.f32.mrf.mxu0 }
 0x1b0   : > { %v11249_v27 = vpop.f32.mrf.mxu1 }
 0x1b1   : > { %v11243_v6 = vpop.f32.mrf.mxu0 }
 0x1b2   : > { %v11264_v3 = vpop.f32.mrf.mxu1 }
 0x1b3   : > { %v11245_v62 = vpop.f32.mrf.mxu0  ;;  %13447 = vst [vmem:[#allocation107_spill] sm:$0xff] %v11264_v3 }
 0x1b4   : > { %v11270_v43 = vpop.f32.mrf.mxu1 }
 0x1b5   : > { %v11254_v4 = vpop.f32.mrf.mxu0  ;;  %13450 = vst [vmem:[#allocation110_spill] sm:$0xff] %v11270_v43 }
 0x1b6   : > { %13444 = vst [vmem:[#allocation104_spill] sm:$0xff] %v11254_v4  ;;  %v11276_v52 = vpop.f32.mrf.mxu1 }
 0x1b7   : > { %v11260_v57 = vpop.f32.mrf.mxu0  ;;  %13453 = vst [vmem:[#allocation113_spill] sm:$0xff] %v11276_v52 }
 0x1b8   : > { %13446 = vst [vmem:[#allocation106_spill] sm:$0xff] %v11260_v57  ;;  %v11282_v38 = vpop.f32.mrf.mxu1 }
 0x1b9   : > { %v11266_v16 = vpop.f32.mrf.mxu0  ;;  %13456 = vst [vmem:[#allocation116_spill] sm:$0xff] %v11282_v38 }
 0x1ba   : > { %13448 = vst [vmem:[#allocation108_spill] sm:$0xff] %v11266_v16  ;;  %v11288_v16 = vpop.f32.mrf.mxu1 }
 0x1bb   : > { %v11268_v37 = vpop.f32.mrf.mxu0  ;;  %13459 = vst [vmem:[#allocation119_spill] sm:$0xff] %v11288_v16 }
 0x1bc   : > { %13449 = vst [vmem:[#allocation109_spill] sm:$0xff] %v11268_v37 }
 0x1bd   : > { %v11272_v12 = vpop.f32.mrf.mxu0 }
 0x1be   : > { %13451 = vst [vmem:[#allocation111_spill] sm:$0xff] %v11272_v12  ;;  %v11294_v12 = vpop.f32.mrf.mxu1 }
 0x1bf   : > { %v11274_v4 = vpop.f32.mrf.mxu0  ;;  %13462 = vst [vmem:[#allocation122_spill] sm:$0xff] %v11294_v12 }
 0x1c0   : > { %13452 = vst [vmem:[#allocation112_spill] sm:$0xff] %v11274_v4 }
 0x1c1   : > { %v11278_v28 = vpop.f32.mrf.mxu0 }
 0x1c2   : > { %13454 = vst [vmem:[#allocation114_spill] sm:$0xff] %v11278_v28  ;;  %v11300_v28 = vpop.f32.mrf.mxu1 }
 0x1c3   : > { %v11280_v57 = vpop.f32.mrf.mxu0 }
 0x1c4   : > { %13455 = vst [vmem:[#allocation115_spill] sm:$0xff] %v11280_v57 }
 0x1c5   : > { %v11284_v40 = vpop.f32.mrf.mxu0 }
 0x1c6   : > { %13457 = vst [vmem:[#allocation117_spill] sm:$0xff] %v11284_v40  ;;  %v11306_v40 = vpop.f32.mrf.mxu1 }
 0x1c7   : > { %v11286_v3 = vpop.f32.mrf.mxu0  ;;  %13467 = vst [vmem:[#allocation127_spill] sm:$0xff] %v11306_v40 }
 0x1c8   : > { %13458 = vst [vmem:[#allocation118_spill] sm:$0xff] %v11286_v3 }
 0x1c9   : > { %v11290_v37 = vpop.f32.mrf.mxu0 }
 0x1ca   : > { %13460 = vst [vmem:[#allocation120_spill] sm:$0xff] %v11290_v37  ;;  %v11312_v37 = vpop.f32.mrf.mxu1 }
 0x1cb   : > { %v11292_v43 = vpop.f32.mrf.mxu0 }
 0x1cc   : > { %13461 = vst [vmem:[#allocation121_spill] sm:$0xff] %v11292_v43 }
 0x1cd   : > { %v11296_v4 = vpop.f32.mrf.mxu0 }
 0x1ce   : > { %13463 = vst [vmem:[#allocation123_spill] sm:$0xff] %v11296_v4  ;;  %v11320_v4 = vpop.f32.mrf.mxu1 }
 0x1cf   : > { %v11298_v52 = vpop.f32.mrf.mxu0 }
 0x1d0   : > { %13464 = vst [vmem:[#allocation124_spill] sm:$0xff] %v11298_v52  ;;  %v2023_v52 = vadd.f32 %v10894_v30, %v10897_v29  ;;  %v2025_v30 = vadd.f32 %v10906_v13, %v10909_v0  ;;  %v2734_v29 = vadd.f32 %v11070_v35, %v11073_v15  ;;  %v2027_v13 = vadd.f32 %v10918_v34, %v10921_v33 }
 0x1d1   : > { %v11302_v57 = vpop.f32.mrf.mxu0  ;;  %v11367_v34 = vadd.f32 %v10976_v47, %v10979_v46 }
 0x1d2   : > { %13465 = vst [vmem:[#allocation125_spill] sm:$0xff] %v11302_v57  ;;  %v2380_v15 = vadd.f32 %v11084_v19, %v2025_v30  ;;  %v2382_v47 = vadd.f32 %v11093_v61, %v2027_v13  ;;  %v13482_v30 = vld [vmem:[#allocation23_spill] sm:$0xff] }
 0x1d3   : > { %v11304_v38 = vpop.f32.mrf.mxu0 }
 0x1d4   : > { %13466 = vst [vmem:[#allocation126_spill] sm:$0xff] %v11304_v38  ;;  %v2378_v38 = vadd.f32 %v11075_v50, %v2023_v52  ;;  %v13472_v50 = vld [vmem:[#allocation56_spill] sm:$0xff] }
 0x1d5   : > { %v11308_v3 = vpop.f32.mrf.mxu0  ;;  %v1307_v52 = vadd.f32 %v13472_v50, %v10849_v22  ;;  %v3089_v22 = vadd.f32 %v11225_v24, %v2734_v29 }
 0x1d6   : > { %13468 = vst [vmem:[#allocation128_spill] sm:$0xff] %v11308_v3  ;;  %v1277_v3 = vadd.f32 %v10809_v39, %v10807_v32  ;;  %v13473_v32 = vld [vmem:[#allocation58_spill] sm:$0xff]  ;;  %v2733_v0 = vadd.f32 %v11077_v63, %v2378_v38  ;;  %v2736_v63 = vadd.f32 %v11079_v25, %v11082_v18  ;;  %v13477_v25 = vld [vmem:[#allocation44_spill] sm:$0xff] }
 0x1d7   : > { %v11310_v16 = vpop.f32.mrf.mxu0  ;;  %v1317_v39 = vadd.f32 %v13473_v32, %v10863_v10  ;;  %v2029_v10 = vadd.f32 %v10930_v44, %v10933_v7  ;;  %v2735_v18 = vadd.f32 %v13477_v25, %v2380_v15  ;;  %v3444_v19 = vadd.f32 %v11227_v5, %v3089_v22  ;;  %v13479_v38 = vld [vmem:[#allocation28_spill] sm:$0xff]  ;;  %v13483_v32 = vld [vmem:[#allocation25_spill] sm:$0xff]  ;;  %v13486_v22 = vld [vmem:[#allocation27_spill] sm:$0xff] }
 0x1d8   : > { %13469 = vst [vmem:[#allocation129_spill] sm:$0xff] %v11310_v16  ;;  %v1287_v16 = vadd.f32 %v10823_v23, %v10821_v53  ;;  %v1327_v53 = vadd.f32 %v10877_v56, %v10875_v55  ;;  %v13474_v23 = vld [vmem:[#allocation60_spill] sm:$0xff]  ;;  %v2031_v55 = vadd.f32 %v10948_v41, %v10952_v8  ;;  %v2033_v56 = vadd.f32 %v10964_v58, %v10967_v36  ;;  %v11419_v15 = vld [vmem:[%s13174_s4] ss:$0 sm:$0xff] }
 0x1d9   : > { %v11314_v43 = vpop.f32.mrf.mxu0  ;;  %v3088_v44 = vadd.f32 %v11229_v17, %v2733_v0  ;;  %v11377_v41 = vadd.f32 %v10988_v20, %v10991_v45  ;;  %v11381_v8 = vadd.f32 %v11000_v2, %v11002_v49  ;;  %v13475_v58 = vld [vmem:[#allocation24_spill] sm:$0xff]  ;;  %v3091_v24 = vadd.f32 %v11233_v1, %v2736_v63  ;;  %v13478_v20 = vld [vmem:[#allocation62_spill] sm:$0xff] }
 0x1da   : > { %v1688_v33 = vadd.f32 %v11018_v54, %v1287_v16  ;;  %v1694_v2 = vadd.f32 %v13479_v38, %v1317_v39  ;;  %v13480_v49 = vld [vmem:[#allocation40_spill] sm:$0xff]  ;;  %v3090_v29 = vadd.f32 %v11237_v48, %v2735_v18 }
 0x1db   : > { %v11316_v12 = vpop.f32.mrf.mxu0  ;;  %v1696_v16 = vadd.f32 %v13480_v49, %v1327_v53  ;;  %v3443_v1 = vadd.f32 %v11231_v42, %v3088_v44  ;;  %v13487_v44 = vld [vmem:[#allocation37_spill] sm:$0xff]  ;;  %v13491_v38 = vld [vmem:[#allocation52_spill] sm:$0xff]  ;;  %v2386_v49 = vadd.f32 %v11115_v14, %v2031_v55 }
 0x1dc   : > { %13470 = vst [vmem:[#allocation130_spill] sm:$0xff] %v11316_v12  ;;  %v1297_v12 = vadd.f32 %v10837_v60, %v10835_v26  ;;  %v11347_v26 = vadd.f32 %v13474_v23, %v10885_v21  ;;  %v1686_v21 = vadd.f32 %v11009_v59, %v1277_v3  ;;  %v13476_v59 = vld [vmem:[#allocation26_spill] sm:$0xff]  ;;  %v11401_v3 = vld [vmem:[%s13173_s3] ss:$0 sm:$0xff]  ;;  %v11404_v5 = vadd.f32 %v13482_v30, %v1688_v33  ;;  %v13485_v23 = vld [vmem:[#allocation51_spill] sm:$0xff] }
 0x1dd   : > { %v11322_v57 = vpop.f32.mrf.mxu0  ;;  %v1692_v54 = vadd.f32 %v13476_v59, %v1307_v52  ;;  %v2384_v13 = vadd.f32 %v13485_v23, %v2029_v10  ;;  %v13488_v10 = vld [vmem:[#allocation41_spill] sm:$0xff] }
 0x1de   : > { %13471 = vst [vmem:[#allocation131_spill] sm:$0xff] %v11322_v57  ;;  %v11337_v57 = vpop.f32.mrf.mxu1  ;;  %v1690_v36 = vadd.f32 %v13475_v58, %v1297_v12  ;;  %v11392_v45 = vadd.f32 %v13478_v20, %v1686_v21  ;;  %v13481_v12 = vld [vmem:[#allocation45_spill] sm:$0xff]  ;;  %v3446_v21 = vadd.f32 %v11235_v51, %v3091_v24  ;;  %v11427_v58 = vadd.f32 %v13487_v44, %v1694_v2  ;;  %v13499_v44 = vld [vmem:[#allocation110_spill] sm:$0xff] }
 0x1df   : > { %v11327_v40 = vpop.f32.mrf.mxu0  ;;  %v2738_v61 = vadd.f32 %v13481_v12, %v11091_v9  ;;  %v13484_v9 = vld [vmem:[#allocation46_spill] sm:$0xff]  ;;  %v11422_v48 = vadd.f32 %v13486_v22, %v1692_v54  ;;  %v3445_v54 = vadd.f32 %v11241_v31, %v3090_v29  ;;  %v2739_v2 = vadd.f32 %v13491_v38, %v2384_v13  ;;  %v13493_v29 = vld [vmem:[#allocation53_spill] sm:$0xff]  ;;  %v13496_v13 = vld [vmem:[#allocation104_spill] sm:$0xff] }
 0x1e0   : > { %v11373_v7 = vpop.f32.mrf.mxu1  ;;  %v11411_v39 = vadd.f32 %v13483_v32, %v1690_v36  ;;  %v2737_v53 = vadd.f32 %v13484_v9, %v2382_v47  ;;  %v11430_v36 = vadd.f32 %v13488_v10, %v1696_v16  ;;  %v13490_v47 = vld [vmem:[#allocation47_spill] sm:$0xff]  ;;  %v13494_v32 = vld [vmem:[#allocation61_spill] sm:$0xff] }
 0x1e1   : > { %v11349_v60 = vpop.f32.mrf.mxu0  ;;  %v3093_v0 = vadd.f32 %v11239_v11, %v2738_v61  ;;  %v13489_v11 = vld [vmem:[#allocation50_spill] sm:$0xff]  ;;  %v2388_v9 = vadd.f32 %v13494_v32, %v2033_v56  ;;  %v3094_v14 = vadd.f32 %v13496_v13, %v2739_v2  ;;  %v13503_v2 = vld [vmem:[#allocation63_spill] sm:$0xff] }
 0x1e2   : > { %v11408_v50 = vpop.f32.mrf.mxu1  ;;  %v2740_v59 = vadd.f32 %v13490_v47, %v13489_v11  ;;  %v3092_v25 = vadd.f32 %v11243_v6, %v2737_v53  ;;  %v13495_v53 = vld [vmem:[#allocation107_spill] sm:$0xff]  ;;  %v13500_v11 = vld [vmem:[#allocation106_spill] sm:$0xff] }
 0x1e3   : > { %v11363_v35 = vpop.f32.mrf.mxu0  ;;  %v3448_v16 = vadd.f32 %v11249_v27, %v3093_v0 }
 0x1e4   : > { %v3095_v12 = vadd.f32 %v11245_v62, %v2740_v59  ;;  %v3447_v23 = vadd.f32 %v13495_v53, %v3092_v25  ;;  %v13507_v53 = vld [vmem:[#allocation116_spill] sm:$0xff] }
 0x1e5   : > { %v11385_v46 = vpop.f32.mrf.mxu0 }
 0x1e6   : > { %v3450_v10 = vadd.f32 %v13499_v44, %v3095_v12  ;;  %v13512_v44 = vld [vmem:[#allocation64_spill] sm:$0xff] }
 0x1e7   : > { %v9266_v17 = vpop.f32.mrf.mxu0 }
 0x1e8   : > { %v3799_v52 = vadd.f32 %v9266_v17, %v3444_v19  ;;  %v11436_v19 = vpop.f32.mrf.mxu1 }
 0x1e9   : > { %v3639_v42 = vpop.f32.mrf.mxu0 }
 0x1ea   : > { %v3838_v33 = vmul.f32 %v11401_v3, %v3799_v52  ;;  %v3798_v63 = vadd.f32 %v3639_v42, %v3443_v1  ;;  %v13492_v1 = vld [vmem:[#allocation54_spill] sm:$0xff]  ;;  %v11451_v27 = vpop.f32.mrf.mxu1 }
 0x1eb   : > { %v9269_v18 = vpop.f32.mrf.mxu0  ;;  %v2742_v52 = vadd.f32 %v13493_v29, %v13492_v1 }
 0x1ec   : > { %v3877_v51 = vadd.f32 %v11419_v15, %v3838_v33  ;;  %v3837_v24 = vmul.f32 %v11401_v3, %v3798_v63  ;;  %v3801_v20 = vadd.f32 %v9269_v18, %v3446_v21  ;;  %v13497_v21 = vld [vmem:[#allocation42_spill] sm:$0xff]  ;;  %v13498_v63 = vld [vmem:[#allocation55_spill] sm:$0xff] }
 0x1ed   : > { %v3649_v61 = vpop.f32.mrf.mxu0  ;;  %v1698_v33 = vadd.f32 %v13497_v21, %v11347_v26  ;;  %v2741_v56 = vadd.f32 %v13498_v63, %v2386_v49  ;;  %v3097_v47 = vadd.f32 %v13500_v11, %v2742_v52  ;;  %v2743_v26 = vadd.f32 %v13503_v2, %v2388_v9  ;;  %v13506_v52 = vld [vmem:[#allocation66_spill] sm:$0xff]  ;;  %v13510_v63 = vld [vmem:[#allocation43_spill] sm:$0xff] }
 0x1ee   : > { %v3909_v6 = vmax.f32 %v3877_v51, 0.0  ;;  %v3876_v17 = vadd.f32 %v11419_v15, %v3837_v24  ;;  %v3840_v31 = vmul.f32 %v11401_v3, %v3801_v20  ;;  %v3800_v30 = vadd.f32 %v3649_v61, %v3445_v54  ;;  %v13501_v24 = vld [vmem:[#allocation59_spill] sm:$0xff]  ;;  %v13502_v20 = vld [vmem:[#allocation57_spill] sm:$0xff]  ;;  %v13505_v61 = vld [vmem:[#allocation108_spill] sm:$0xff] }
 0x1ef   : > { %v9272_v55 = vpop.f32.mrf.mxu0  ;;  %v2744_v38 = vadd.f32 %v13502_v20, %v13501_v24  ;;  %v3096_v12 = vadd.f32 %v13505_v61, %v2741_v56  ;;  %v2390_v32 = vadd.f32 %v13506_v52, %v11367_v34  ;;  %v3452_v9 = vadd.f32 %v13507_v53, %v3097_v47  ;;  %v13511_v34 = vld [vmem:[#allocation65_spill] sm:$0xff]  ;;  %v13513_v11 = vld [vmem:[#allocation119_spill] sm:$0xff] }
 0x1f0   : > { %3941 = vst.msk [vmem:[#allocation2 + $0x21] sm:$0xff] %vm279_vm1, %v3909_v6  ;;  %v3908_v62 = vmax.f32 %v3876_v17, 0.0  ;;  %v3879_v0 = vadd.f32 %v11419_v15, %v3840_v31  ;;  %v3839_v42 = vmul.f32 %v11401_v3, %v3800_v30  ;;  %v3803_v22 = vadd.f32 %v9272_v55, %v3448_v16  ;;  %v13504_v16 = vld [vmem:[#allocation113_spill] sm:$0xff]  ;;  %v11469_v17 = vpop.f32.mrf.mxu1 }
 0x1f1   : > { %v3659_v59 = vpop.f32.mrf.mxu0  ;;  %v3449_v49 = vadd.f32 %v13504_v16, %v3094_v14  ;;  %v13509_v55 = vld [vmem:[#allocation105_spill] sm:$0xff]  ;;  %v11486_v56 = vadd.f32 %v13510_v63, %v1698_v33  ;;  %v3451_v47 = vadd.f32 %v13513_v11, %v3096_v12  ;;  %v13516_v16 = vld [vmem:[#allocation70_spill] sm:$0xff]  ;;  %v13518_v12 = vld [vmem:[#allocation112_spill] sm:$0xff] }
 0x1f2   : > { %3940 = vst.msk [vmem:[#allocation2 + $0x19] sm:$0xff] %vm279_vm1, %v3908_v62  ;;  %v3911_v25 = vmax.f32 %v3879_v0, 0.0  ;;  %v3878_v18 = vadd.f32 %v11419_v15, %v3839_v42  ;;  %v3842_v54 = vmul.f32 %v11401_v3, %v3803_v22  ;;  %v3802_v51 = vadd.f32 %v3659_v59, %v3447_v23  ;;  %v13508_v23 = vld [vmem:[#allocation109_spill] sm:$0xff]  ;;  %v13514_v59 = vld [vmem:[#allocation111_spill] sm:$0xff] }
 0x1f3   : > { %v9275_v6 = vpop.f32.mrf.mxu0  ;;  %v3099_v13 = vadd.f32 %v13508_v23, %v2744_v38  ;;  %v11480_v62 = vcombine.high %v13509_v55, %v13509_v55  ;;  %v13515_v38 = vld [vmem:[#allocation67_spill] sm:$0xff]  ;;  %v13519_v23 = vld [vmem:[#allocation69_spill] sm:$0xff] }
 0x1f4   : > { %3943 = vst.msk [vmem:[#allocation2 + $0x39] sm:$0xff] %vm279_vm1, %v3911_v25  ;;  %v3910_v31 = vmax.f32 %v3878_v18, 0.0  ;;  %v3881_v30 = vadd.f32 %v11419_v15, %v3842_v54  ;;  %v3841_v1 = vmul.f32 %v11401_v3, %v3802_v51  ;;  %v3805_v29 = vadd.f32 %v9275_v6, %v3450_v10  ;;  %v11494_v54 = vpop.f32.mrf.mxu1 }
 0x1f5   : > { %v3669_v14 = vpop.f32.mrf.mxu0  ;;  %v2746_v10 = vadd.f32 %v13512_v44, %v13511_v34  ;;  %v3098_v25 = vadd.f32 %v13514_v59, %v2743_v26  ;;  %9562 = vmatprep.subr.msk.mxu0 %vm794_vm0, %v11480_v62  ;;  %v2745_v2 = vadd.f32 %v13515_v38, %v2390_v32  ;;  %v13517_v26 = vld [vmem:[#allocation122_spill] sm:$0xff] }
 0x1f6   : > { %3942 = vst.msk [vmem:[#allocation2 + $0x31] sm:$0xff] %vm279_vm1, %v3910_v31  ;;  %v3913_v0 = vmax.f32 %v3881_v30, 0.0  ;;  %v3880_v42 = vadd.f32 %v11419_v15, %v3841_v1  ;;  %v3844_v22 = vmul.f32 %v11401_v3, %v3805_v29  ;;  %v3804_v21 = vadd.f32 %v3669_v14, %v3449_v49  ;;  %v11527_v63 = vpop.f32.mrf.mxu1  ;;  %v13523_v59 = vld [vmem:[#allocation74_spill] sm:$0xff] }
 0x1f7   : > { %v9278_v18 = vpop.f32.mrf.mxu0  ;;  %v2392_v49 = vadd.f32 %v13516_v16, %v11377_v41  ;;  %v3454_v61 = vadd.f32 %v13517_v26, %v3099_v13  ;;  %v3101_v6 = vadd.f32 %v13518_v12, %v2746_v10  ;;  %v11517_v41 = vld [vmem:[#allocation2 + $0x21] sm:$0xff]  ;;  %v13520_v13 = vld [vmem:[#allocation68_spill] sm:$0xff] }
 0x1f8   : > { %3945 = vst.msk [vmem:[#allocation2 + $0x51] sm:$0xff] %vm279_vm1, %v3913_v0  ;;  %v3912_v51 = vmax.f32 %v3880_v42, 0.0  ;;  %v3883_v24 = vadd.f32 %v11419_v15, %v3844_v22  ;;  %v3843_v33 = vmul.f32 %v11401_v3, %v3804_v21  ;;  %v3807_v20 = vadd.f32 %v9278_v18, %v3452_v9  ;;  %v13521_v42 = vld [vmem:[#allocation114_spill] sm:$0xff]  ;;  %v13524_v18 = vld [vmem:[#allocation127_spill] sm:$0xff] }
 0x1f9   : > { %v3679_v31 = vpop.f32.mrf.mxu0  ;;  %v11504_v30 = vld [vmem:[#allocation2 + $0x19] sm:$0xff]  ;;  %v2748_v14 = vadd.f32 %v13520_v13, %v13519_v23  ;;  %v3453_v0 = vadd.f32 %v11300_v28, %v3098_v25  ;;  %v3100_v22 = vadd.f32 %v13521_v42, %v2745_v2  ;;  %v13522_v28 = vld [vmem:[#allocation71_spill] sm:$0xff]  ;;  %v2394_v25 = vadd.f32 %v13523_v59, %v11381_v8  ;;  %v11560_v13 = vpop.f32.mrf.mxu1 }
 0x1fa   : > { %v11506_v1 = vld [vmem:[#allocation2 + $0x18] sm:$0xff]  ;;  %v11508_v29 = vld [vmem:[#allocation2 + $0x20] sm:$0xff]  ;;  %3944 = vst.msk [vmem:[#allocation2 + $0x49] sm:$0xff] %vm279_vm1, %v3912_v51  ;;  %v3915_v52 = vmax.f32 %v3883_v24, 0.0  ;;  %v3882_v53 = vadd.f32 %v11419_v15, %v3843_v33  ;;  %v3846_v32 = vmul.f32 %v11401_v3, %v3807_v20  ;;  %v3806_v9 = vadd.f32 %v3679_v31, %v3451_v47  ;;  %9317 = vmatprep.mubr.msk.f32.mxu1 %vm279_vm1, %v11504_v30  ;;  %v13525_v24 = vld [vmem:[#allocation115_spill] sm:$0xff] }
 0x1fb   : > { %9367 = vmatprep.mubr.msk.f32.mxu0 %vm279_vm1, %v11506_v1  ;;  %v9281_v21 = vpop.f32.mrf.mxu0  ;;  %9318 = vmatmul.mubr.msk.f32.gmra.mxu1 %vm279_vm1, %v11517_v41  ;;  %v2747_v47 = vadd.f32 %v13522_v28, %v2392_v49  ;;  %v3456_v51 = vadd.f32 %v13524_v18, %v3101_v6  ;;  %v3103_v33 = vadd.f32 %v13525_v24, %v2748_v14  ;;  %v11550_v8 = vld [vmem:[#allocation2 + $0x39] sm:$0xff] }
 0x1fc   : > { %9368 = vmatmul.mubr.msk.f32.gmra.mxu0 %vm279_vm1, %v11508_v29  ;;  %3947 = vst.msk [vmem:[#allocation2 + $0x69] sm:$0xff] %vm279_vm1, %v3915_v52  ;;  %v3914_v34 = vmax.f32 %v3882_v53, 0.0  ;;  %v3885_v44 = vadd.f32 %v11419_v15, %v3846_v32  ;;  %v3845_v10 = vmul.f32 %v11401_v3, %v3806_v9  ;;  %v3809_v11 = vadd.f32 %v9281_v21, %v3454_v61  ;;  %v13526_v6 = vld [vmem:[#allocation73_spill] sm:$0xff]  ;;  %v13527_v31 = vld [vmem:[#allocation72_spill] sm:$0xff] }
 0x1fd   : > { %v3689_v20 = vpop.f32.mrf.mxu0  ;;  %v11537_v38 = vld [vmem:[#allocation2 + $0x31] sm:$0xff]  ;;  %v2750_v52 = vadd.f32 %v13527_v31, %v13526_v6  ;;  %v3455_v53 = vadd.f32 %v11312_v37, %v3100_v22  ;;  %v13528_v32 = vld [vmem:[#allocation117_spill] sm:$0xff] }
 0x1fe   : > { %v11539_v2 = vld [vmem:[#allocation2 + $0x30] sm:$0xff]  ;;  %v11541_v16 = vld [vmem:[#allocation2 + $0x38] sm:$0xff]  ;;  %3946 = vst.msk [vmem:[#allocation2 + $0x61] sm:$0xff] %vm279_vm1, %v3914_v34  ;;  %v3917_v26 = vmax.f32 %v3885_v44, 0.0  ;;  %v3884_v61 = vadd.f32 %v11419_v15, %v3845_v10  ;;  %v3848_v49 = vmul.f32 %v11401_v3, %v3809_v11  ;;  %v3808_v12 = vadd.f32 %v3689_v20, %v3453_v0  ;;  %9320 = vmatprep.mubr.msk.f32.mxu1 %vm279_vm1, %v11537_v38  ;;  %v13530_v34 = vld [vmem:[#allocation78_spill] sm:$0xff] }
 0x1ff   : > { %9370 = vmatprep.mubr.msk.f32.mxu0 %vm279_vm1, %v11539_v2  ;;  %v3102_v9 = vadd.f32 %v13528_v32, %v2747_v47  ;;  %v9284_v23 = vpop.f32.mrf.mxu0  ;;  %9321 = vmatmul.mubr.msk.f32.gmra.mxu1 %vm279_vm1, %v11550_v8  ;;  %v13529_v37 = vld [vmem:[#allocation75_spill] sm:$0xff]  ;;  %v2396_v44 = vadd.f32 %v13530_v34, %v11392_v45  ;;  %v3458_v10 = vadd.f32 %v11320_v4, %v3103_v33  ;;  %v13531_v11 = vld [vmem:[#allocation118_spill] sm:$0xff]  ;;  %v13532_v45 = vld [vmem:[#allocation77_spill] sm:$0xff] }
 0x200   : > { %9371 = vmatmul.mubr.msk.f32.gmra.mxu0 %vm279_vm1, %v11541_v16  ;;  %3949 = vst.msk [vmem:[#allocation2 + $0x81] sm:$0xff] %vm279_vm1, %v3917_v26  ;;  %v3916_v14 = vmax.f32 %v3884_v61, 0.0  ;;  %v3887_v0 = vadd.f32 %v11419_v15, %v3848_v49  ;;  %v3847_v42 = vmul.f32 %v11401_v3, %v3808_v12  ;;  %v3811_v21 = vadd.f32 %v9284_v23, %v3456_v51  ;;  %v11583_v4 = vld [vmem:[#allocation2 + $0x51] sm:$0xff] }
 0x201   : > { %v2749_v22 = vadd.f32 %v13529_v37, %v2394_v25  ;;  %v3105_v28 = vadd.f32 %v13531_v11, %v2750_v52  ;;  %v3699_v47 = vpop.f32.mrf.mxu0  ;;  %v11570_v59 = vld [vmem:[#allocation2 + $0x49] sm:$0xff]  ;;  %v13533_v33 = vld [vmem:[#allocation76_spill] sm:$0xff]  ;;  %v3457_v49 = vadd.f32 %v11337_v57, %v3102_v9  ;;  %v11593_v52 = vpop.f32.mrf.mxu1  ;;  %v13537_v37 = vld [vmem:[#allocation121_spill] sm:$0xff] }
 0x202   : > { %v11572_v18 = vld [vmem:[#allocation2 + $0x48] sm:$0xff]  ;;  %v11574_v24 = vld [vmem:[#allocation2 + $0x50] sm:$0xff]  ;;  %3948 = vst.msk [vmem:[#allocation2 + $0x79] sm:$0xff] %vm279_vm1, %v3916_v14  ;;  %v3919_v20 = vmax.f32 %v3887_v0, 0.0  ;;  %v3886_v51 = vadd.f32 %v11419_v15, %v3847_v42  ;;  %v3850_v25 = vmul.f32 %v11401_v3, %v3811_v21  ;;  %v3810_v26 = vadd.f32 %v3699_v47, %v3455_v53  ;;  %9323 = vmatprep.mubr.msk.f32.mxu1 %vm279_vm1, %v11570_v59  ;;  %v13534_v12 = vld [vmem:[#allocation120_spill] sm:$0xff] }
 0x203   : > { %9373 = vmatprep.mubr.msk.f32.mxu0 %vm279_vm1, %v11572_v18  ;;  %v2752_v61 = vadd.f32 %v13533_v33, %v13532_v45  ;;  %v3104_v6 = vadd.f32 %v13534_v12, %v2749_v22  ;;  %v9287_v31 = vpop.f32.mrf.mxu0  ;;  %9324 = vmatmul.mubr.msk.f32.gmra.mxu1 %vm279_vm1, %v11583_v4  ;;  %v13535_v57 = vld [vmem:[#allocation79_spill] sm:$0xff]  ;;  %v13536_v0 = vld [vmem:[#allocation82_spill] sm:$0xff]  ;;  %v3460_v21 = vadd.f32 %v11373_v7, %v3105_v28  ;;  %v13540_v28 = vld [vmem:[#allocation80_spill] sm:$0xff] }
 0x204   : > { %9374 = vmatmul.mubr.msk.f32.gmra.mxu0 %vm279_vm1, %v11574_v24  ;;  %3951 = vst.msk [vmem:[#allocation2 + $0x99] sm:$0xff] %vm279_vm1, %v3919_v20  ;;  %v3918_v53 = vmax.f32 %v3886_v51, 0.0  ;;  %v3889_v32 = vadd.f32 %v11419_v15, %v3850_v25  ;;  %v3849_v23 = vmul.f32 %v11401_v3, %v3810_v26  ;;  %v3813_v14 = vadd.f32 %v9287_v31, %v3458_v10  ;;  %v11616_v7 = vld [vmem:[#allocation2 + $0x69] sm:$0xff] }
 0x205   : > { %v2751_v9 = vadd.f32 %v13535_v57, %v2396_v44  ;;  %v2398_v42 = vadd.f32 %v13536_v0, %v11404_v5  ;;  %v3107_v22 = vadd.f32 %v13537_v37, %v2752_v61  ;;  %v3709_v34 = vpop.f32.mrf.mxu0  ;;  %v11603_v11 = vld [vmem:[#allocation2 + $0x61] sm:$0xff]  ;;  %v3459_v45 = vadd.f32 %v11408_v50, %v3104_v6  ;;  %v13541_v33 = vld [vmem:[#allocation123_spill] sm:$0xff]  ;;  %v13544_v0 = vld [vmem:[#allocation124_spill] sm:$0xff] }
 0x206   : > { %v11605_v47 = vld [vmem:[#allocation2 + $0x60] sm:$0xff]  ;;  %v11607_v20 = vld [vmem:[#allocation2 + $0x68] sm:$0xff]  ;;  %3950 = vst.msk [vmem:[#allocation2 + $0x91] sm:$0xff] %vm279_vm1, %v3918_v53  ;;  %v3921_v51 = vmax.f32 %v3889_v32, 0.0  ;;  %v3888_v10 = vadd.f32 %v11419_v15, %v3849_v23  ;;  %v3852_v44 = vmul.f32 %v11401_v3, %v3813_v14  ;;  %v3812_v25 = vadd.f32 %v3709_v34, %v3457_v49  ;;  %9326 = vmatprep.mubr.msk.f32.mxu1 %vm279_vm1, %v11603_v11  ;;  %v11626_v49 = vpop.f32.mrf.mxu1  ;;  %v13542_v50 = vld [vmem:[#allocation83_spill] sm:$0xff] }
 0x207   : > { %13538 = vst [vmem:[#allocation56_spill] sm:$0xff] %v11607_v20  ;;  %9376 = vmatprep.mubr.msk.f32.mxu0 %vm279_vm1, %v11605_v47  ;;  %v13539_v5 = vld [vmem:[#allocation81_spill] sm:$0xff]  ;;  %v3106_v61 = vadd.f32 %v13541_v33, %v2751_v9  ;;  %v9290_v12 = vpop.f32.mrf.mxu0  ;;  %9327 = vmatmul.mubr.msk.f32.gmra.mxu1 %vm279_vm1, %v11616_v7  ;;  %v2753_v6 = vadd.f32 %v13542_v50, %v2398_v42  ;;  %v13543_v14 = vld [vmem:[#allocation86_spill] sm:$0xff] }
 0x208   : > { %v2754_v26 = vadd.f32 %v13540_v28, %v13539_v5  ;;  %9377 = vmatmul.mubr.msk.f32.gmra.mxu0 %vm279_vm1, %v11607_v20  ;;  %3953 = vst.msk [vmem:[#allocation2 + $0xb1] sm:$0xff] %vm279_vm1, %v3921_v51  ;;  %v3920_v31 = vmax.f32 %v3888_v10, 0.0  ;;  %v3891_v53 = vadd.f32 %v11419_v15, %v3852_v44  ;;  %v3851_v32 = vmul.f32 %v11401_v3, %v3812_v25  ;;  %v13550_v33 = vld [vmem:[#allocation125_spill] sm:$0xff] }
 0x209   : > { %v3815_v23 = vadd.f32 %v9290_v12, %v3460_v21  ;;  %v2400_v57 = vadd.f32 %v13543_v14, %v11411_v39  ;;  %v3462_v9 = vadd.f32 %v11436_v19, %v3107_v22  ;;  %v3719_v34 = vpop.f32.mrf.mxu0  ;;  %v11636_v5 = vld [vmem:[#allocation2 + $0x79] sm:$0xff]  ;;  %v11649_v39 = vld [vmem:[#allocation2 + $0x81] sm:$0xff]  ;;  %v3108_v12 = vadd.f32 %v13550_v33, %v2753_v6 }
 0x20a   : > { %v3109_v37 = vadd.f32 %v13544_v0, %v2754_v26  ;;  %v11638_v28 = vld [vmem:[#allocation2 + $0x78] sm:$0xff]  ;;  %v11640_v51 = vld [vmem:[#allocation2 + $0x80] sm:$0xff]  ;;  %3952 = vst.msk [vmem:[#allocation2 + $0xa9] sm:$0xff] %vm279_vm1, %v3920_v31  ;;  %v3923_v10 = vmax.f32 %v3891_v53, 0.0  ;;  %v3890_v21 = vadd.f32 %v11419_v15, %v3851_v32  ;;  %v3814_v44 = vadd.f32 %v3719_v34, %v3459_v45  ;;  %9329 = vmatprep.mubr.msk.f32.mxu1 %vm279_vm1, %v11636_v5  ;;  %v11659_v45 = vpop.f32.mrf.mxu1  ;;  %v13552_v6 = vld [vmem:[#allocation90_spill] sm:$0xff] }
 0x20b   : > { %13545 = vst [vmem:[#allocation58_spill] sm:$0xff] %v11638_v28  ;;  %13546 = vst [vmem:[#allocation60_spill] sm:$0xff] %v11640_v51  ;;  %v3854_v42 = vmul.f32 %v11401_v3, %v3815_v23  ;;  %9379 = vmatprep.mubr.msk.f32.mxu0 %vm279_vm1, %v11638_v28  ;;  %v13548_v19 = vld [vmem:[#allocation85_spill] sm:$0xff]  ;;  %v13549_v22 = vld [vmem:[#allocation84_spill] sm:$0xff]  ;;  %v3461_v26 = vadd.f32 %v11451_v27, %v3106_v61  ;;  %v9293_v31 = vpop.f32.mrf.mxu0  ;;  %9330 = vmatmul.mubr.msk.f32.gmra.mxu1 %vm279_vm1, %v11649_v39 }
 0x20c   : > { %13547 = vst [vmem:[#allocation24_spill] sm:$0xff] %v11649_v39  ;;  %v2756_v25 = vadd.f32 %v13549_v22, %v13548_v19  ;;  %9380 = vmatmul.mubr.msk.f32.gmra.mxu0 %vm279_vm1, %v11640_v51  ;;  %3955 = vst.msk [vmem:[#allocation2 + $0xc9] sm:$0xff] %vm279_vm1, %v3923_v10  ;;  %v3922_v53 = vmax.f32 %v3890_v21, 0.0  ;;  %v3853_v23 = vmul.f32 %v11401_v3, %v3814_v44  ;;  %v13551_v27 = vld [vmem:[#allocation87_spill] sm:$0xff]  ;;  %v13553_v34 = vld [vmem:[#allocation126_spill] sm:$0xff] }
 0x20d   : > { %v3893_v32 = vadd.f32 %v11419_v15, %v3854_v42  ;;  %v3817_v50 = vadd.f32 %v9293_v31, %v3462_v9  ;;  %v2755_v61 = vadd.f32 %v13551_v27, %v2400_v57  ;;  %v2402_v14 = vadd.f32 %v13552_v6, %v11422_v48  ;;  %v3729_v22 = vpop.f32.mrf.mxu0  ;;  %v11669_v33 = vld [vmem:[#allocation2 + $0x91] sm:$0xff]  ;;  %v11682_v48 = vld [vmem:[#allocation2 + $0x99] sm:$0xff] }
 0x20e   : > { %v3464_v0 = vadd.f32 %v11469_v17, %v3109_v37  ;;  %v3111_v19 = vadd.f32 %v13553_v34, %v2756_v25  ;;  %13554 = vst [vmem:[#allocation26_spill] sm:$0xff] %v11669_v33  ;;  %v11671_v39 = vld [vmem:[#allocation2 + $0x90] sm:$0xff]  ;;  %v11673_v10 = vld [vmem:[#allocation2 + $0x98] sm:$0xff]  ;;  %3954 = vst.msk [vmem:[#allocation2 + $0xc1] sm:$0xff] %vm279_vm1, %v3922_v53  ;;  %v3892_v9 = vadd.f32 %v11419_v15, %v3853_v23  ;;  %9332 = vmatprep.mubr.msk.f32.mxu1 %vm279_vm1, %v11669_v33 }
 0x20f   : > { %13555 = vst [vmem:[#allocation44_spill] sm:$0xff] %v11671_v39  ;;  %13556 = vst [vmem:[#allocation62_spill] sm:$0xff] %v11673_v10  ;;  %v3925_v21 = vmax.f32 %v3893_v32, 0.0  ;;  %v3856_v57 = vmul.f32 %v11401_v3, %v3817_v50  ;;  %v3816_v42 = vadd.f32 %v3729_v22, %v3461_v26  ;;  %9382 = vmatprep.mubr.msk.f32.mxu0 %vm279_vm1, %v11671_v39  ;;  %v13558_v17 = vld [vmem:[#allocation89_spill] sm:$0xff]  ;;  %v13559_v37 = vld [vmem:[#allocation88_spill] sm:$0xff]  ;;  %v9296_v32 = vpop.f32.mrf.mxu0  ;;  %9333 = vmatmul.mubr.msk.f32.gmra.mxu1 %vm279_vm1, %v11682_v48  ;;  %v11692_v26 = vpop.f32.mrf.mxu1 }
 0x210   : > { %13557 = vst [vmem:[#allocation28_spill] sm:$0xff] %v11682_v48  ;;  %v2758_v44 = vadd.f32 %v13559_v37, %v13558_v17  ;;  %v3463_v25 = vadd.f32 %v11494_v54, %v3108_v12  ;;  %v13560_v31 = vld [vmem:[#allocation128_spill] sm:$0xff]  ;;  %9383 = vmatmul.mubr.msk.f32.gmra.mxu0 %vm279_vm1, %v11673_v10  ;;  %v3924_v23 = vmax.f32 %v3892_v9, 0.0  ;;  %v3819_v6 = vadd.f32 %v9296_v32, %v3464_v0  ;;  %v13561_v54 = vld [vmem:[#allocation91_spill] sm:$0xff]  ;;  %v13563_v17 = vld [vmem:[#allocation129_spill] sm:$0xff] }
 0x211   : > { %v3110_v53 = vadd.f32 %v13560_v31, %v2755_v61  ;;  %3957 = vst.msk [vmem:[#allocation2 + $0xe1] sm:$0xff] %vm279_vm1, %v3925_v21  ;;  %v3895_v50 = vadd.f32 %v11419_v15, %v3856_v57  ;;  %v3855_v27 = vmul.f32 %v11401_v3, %v3816_v42  ;;  %v2757_v12 = vadd.f32 %v13561_v54, %v2402_v14  ;;  %v13562_v61 = vld [vmem:[#allocation94_spill] sm:$0xff]  ;;  %v3739_v31 = vpop.f32.mrf.mxu0  ;;  %v11706_v21 = vld [vmem:[#allocation2 + $0xb0] sm:$0xff] }
 0x212   : > { %v2404_v34 = vadd.f32 %v13562_v61, %v11427_v58  ;;  %v3466_v22 = vadd.f32 %v11527_v63, %v3111_v19  ;;  %v3113_v37 = vadd.f32 %v13563_v17, %v2758_v44  ;;  %v11702_v48 = vld [vmem:[#allocation2 + $0xa9] sm:$0xff]  ;;  %13565 = vst [vmem:[#allocation45_spill] sm:$0xff] %v11706_v21  ;;  %3956 = vst.msk [vmem:[#allocation2 + $0xd9] sm:$0xff] %vm279_vm1, %v3924_v23  ;;  %v11715_v58 = vld [vmem:[#allocation2 + $0xb1] sm:$0xff] }
 0x213   : > { %v11704_v33 = vld [vmem:[#allocation2 + $0xa8] sm:$0xff]  ;;  %v3927_v9 = vmax.f32 %v3895_v50, 0.0  ;;  %v3894_v0 = vadd.f32 %v11419_v15, %v3855_v27  ;;  %v3858_v14 = vmul.f32 %v11401_v3, %v3819_v6  ;;  %v3818_v57 = vadd.f32 %v3739_v31, %v3463_v25  ;;  %9335 = vmatprep.mubr.msk.f32.mxu1 %vm279_vm1, %v11702_v48  ;;  %13566 = vst [vmem:[#allocation23_spill] sm:$0xff] %v11715_v58  ;;  %v13567_v63 = vld [vmem:[#allocation93_spill] sm:$0xff]  ;;  %v13568_v19 = vld [vmem:[#allocation92_spill] sm:$0xff]  ;;  %v9299_v23 = vpop.f32.mrf.mxu0  ;;  %v11725_v25 = vpop.f32.mrf.mxu1 }
 0x214   : > { %13564 = vst [vmem:[#allocation40_spill] sm:$0xff] %v11704_v33  ;;  %9385 = vmatprep.mubr.msk.f32.mxu0 %vm279_vm1, %v11704_v33  ;;  %v2760_v42 = vadd.f32 %v13568_v19, %v13567_v63  ;;  %v3465_v44 = vadd.f32 %v11560_v13, %v3110_v53  ;;  %v3112_v32 = vadd.f32 %v11314_v43, %v2757_v12  ;;  %v13569_v13 = vld [vmem:[#allocation95_spill] sm:$0xff]  ;;  %v13570_v43 = vld [vmem:[#allocation98_spill] sm:$0xff] }
 0x215   : > { %9336 = vmatmul.mubr.msk.f32.gmra.mxu1 %vm279_vm1, %v11715_v58  ;;  %9386 = vmatmul.mubr.msk.f32.gmra.mxu0 %vm279_vm1, %v11706_v21  ;;  %3959 = vst.msk [vmem:[#allocation2 + $0xf9] sm:$0xff] %vm279_vm1, %v3927_v9  ;;  %v3926_v50 = vmax.f32 %v3894_v0, 0.0  ;;  %v3897_v27 = vadd.f32 %v11419_v15, %v3858_v14  ;;  %v3857_v6 = vmul.f32 %v11401_v3, %v3818_v57  ;;  %v13571_v17 = vld [vmem:[#allocation130_spill] sm:$0xff]  ;;  %v3749_v63 = vpop.f32.mrf.mxu0  ;;  %v11737_v58 = vld [vmem:[#allocation2 + $0xc0] sm:$0xff] }
 0x216   : > { %v3821_v54 = vadd.f32 %v9299_v23, %v3466_v22  ;;  %v2759_v53 = vadd.f32 %v13569_v13, %v2404_v34  ;;  %v2406_v12 = vadd.f32 %v13570_v43, %v11430_v36  ;;  %v3468_v61 = vadd.f32 %v11593_v52, %v3113_v37  ;;  %v11735_v19 = vld [vmem:[#allocation2 + $0xc1] sm:$0xff]  ;;  %13572 = vst [vmem:[#allocation25_spill] sm:$0xff] %v11737_v58  ;;  %v11748_v36 = vld [vmem:[#allocation2 + $0xc9] sm:$0xff]  ;;  %v13576_v37 = vld [vmem:[#allocation96_spill] sm:$0xff] }
 0x217   : > { %v3115_v31 = vadd.f32 %v13571_v17, %v2760_v42  ;;  %v11739_v9 = vld [vmem:[#allocation2 + $0xc8] sm:$0xff]  ;;  %3958 = vst.msk [vmem:[#allocation2 + $0xf1] sm:$0xff] %vm279_vm1, %v3926_v50  ;;  %v3929_v0 = vmax.f32 %v3897_v27, 0.0  ;;  %v3896_v22 = vadd.f32 %v11419_v15, %v3857_v6  ;;  %v3820_v14 = vadd.f32 %v3749_v63, %v3465_v44  ;;  %9338 = vmatprep.mubr.msk.f32.mxu1 %vm279_vm1, %v11735_v19  ;;  %v13575_v52 = vld [vmem:[#allocation97_spill] sm:$0xff]  ;;  %v13577_v23 = vld [vmem:[#allocation131_spill] sm:$0xff]  ;;  %v9302_v27 = vpop.f32.mrf.mxu0  ;;  %v3424_v44 = vpop.f32.mrf.mxu1 }
 0x218   : > { %13573 = vst [vmem:[#allocation46_spill] sm:$0xff] %v11739_v9  ;;  %v3860_v34 = vmul.f32 %v11401_v3, %v3821_v54  ;;  %9388 = vmatprep.mubr.msk.f32.mxu0 %vm279_vm1, %v11737_v58  ;;  %13574 = vst [vmem:[#allocation51_spill] sm:$0xff] %v11748_v36  ;;  %v2762_v57 = vadd.f32 %v13576_v37, %v13575_v52  ;;  %v3467_v42 = vadd.f32 %v11626_v49, %v3112_v32  ;;  %v13578_v17 = vld [vmem:[#allocation99_spill] sm:$0xff]  ;;  %v13579_v32 = vld [vmem:[#allocation102_spill] sm:$0xff] }
 0x219   : > { %v3114_v50 = vadd.f32 %v13577_v23, %v2759_v53  ;;  %9339 = vmatmul.mubr.msk.f32.gmra.mxu1 %vm279_vm1, %v11748_v36  ;;  %9389 = vmatmul.mubr.msk.f32.gmra.mxu0 %vm279_vm1, %v11739_v9  ;;  %3961 = vst.msk [vmem:[#allocation2 + $0x111] sm:$0xff] %vm279_vm1, %v3929_v0  ;;  %v3928_v6 = vmax.f32 %v3896_v22, 0.0  ;;  %v3859_v13 = vmul.f32 %v11401_v3, %v3820_v14  ;;  %v3759_v37 = vpop.f32.mrf.mxu0  ;;  %v11766_v23 = vld [vmem:[#allocation2 + $0xd9] sm:$0xff] }
 0x21a   : > { %v3899_v54 = vadd.f32 %v11419_v15, %v3860_v34  ;;  %v3823_v43 = vadd.f32 %v9302_v27, %v3468_v61  ;;  %v2761_v49 = vadd.f32 %v13578_v17, %v2406_v12  ;;  %v2408_v53 = vadd.f32 %v13579_v32, %v11486_v56  ;;  %v11768_v36 = vld [vmem:[#allocation2 + $0xd8] sm:$0xff]  ;;  %v11770_v0 = vld [vmem:[#allocation2 + $0xe0] sm:$0xff]  ;;  %9341 = vmatprep.mubr.msk.f32.mxu1 %vm279_vm1, %v11766_v23  ;;  %v13584_v17 = vld [vmem:[#allocation103_spill] sm:$0xff] }
 0x21b   : > { %v3470_v63 = vadd.f32 %v11659_v45, %v3115_v31  ;;  %v3117_v52 = vadd.f32 %v11327_v40, %v2762_v57  ;;  %13580 = vst [vmem:[#allocation27_spill] sm:$0xff] %v11768_v36  ;;  %13581 = vst [vmem:[#allocation37_spill] sm:$0xff] %v11770_v0  ;;  %v3898_v61 = vadd.f32 %v11419_v15, %v3859_v13  ;;  %9391 = vmatprep.mubr.msk.f32.mxu0 %vm279_vm1, %v11768_v36  ;;  %v11779_v40 = vld [vmem:[#allocation2 + $0xe1] sm:$0xff]  ;;  %v13583_v45 = vld [vmem:[#allocation100_spill] sm:$0xff]  ;;  %v9305_v27 = vpop.f32.mrf.mxu0 }
 0x21c   : > { %3960 = vst.msk [vmem:[#allocation2 + $0x109] sm:$0xff] %vm279_vm1, %v3928_v6  ;;  %v3931_v22 = vmax.f32 %v3899_v54, 0.0  ;;  %v3862_v12 = vmul.f32 %v11401_v3, %v3823_v43  ;;  %v3822_v34 = vadd.f32 %v3759_v37, %v3467_v42  ;;  %v13582_v56 = vld [vmem:[#allocation101_spill] sm:$0xff]  ;;  %v3469_v14 = vadd.f32 %v11692_v26, %v3114_v50  ;;  %v9261_v42 = vpop.f32.mrf.mxu1 }
 0x21d   : > { %v2764_v31 = vadd.f32 %v13583_v45, %v13582_v56  ;;  %v3116_v57 = vadd.f32 %v11349_v60, %v2761_v49  ;;  %9342 = vmatmul.mubr.msk.f32.gmra.mxu1 %vm279_vm1, %v11779_v40  ;;  %9392 = vmatmul.mubr.msk.f32.gmra.mxu0 %vm279_vm1, %v11770_v0  ;;  %v3930_v6 = vmax.f32 %v3898_v61, 0.0  ;;  %v3825_v43 = vadd.f32 %v9305_v27, %v3470_v63  ;;  %v3769_v49 = vpop.f32.mrf.mxu0 }
 0x21e   : > { %3963 = vst.msk [vmem:[#allocation2 + $0x129] sm:$0xff] %vm279_vm1, %v3931_v22  ;;  %v3901_v54 = vadd.f32 %v11419_v15, %v3862_v12  ;;  %v3861_v13 = vmul.f32 %v11401_v3, %v3822_v34  ;;  %v2763_v26 = vadd.f32 %v13584_v17, %v2408_v53  ;;  %v3472_v60 = vadd.f32 %v11725_v25, %v3117_v52  ;;  %v11795_v32 = vld [vmem:[#allocation2 + $0xf1] sm:$0xff]  ;;  %v3434_v34 = vpop.f32.mrf.mxu1 }
 0x21f   : > { %v3119_v50 = vadd.f32 %v11363_v35, %v2764_v31  ;;  %v11797_v37 = vld [vmem:[#allocation2 + $0xf0] sm:$0xff]  ;;  %v11799_v56 = vld [vmem:[#allocation2 + $0xf8] sm:$0xff]  ;;  %3962 = vst.msk [vmem:[#allocation2 + $0x121] sm:$0xff] %vm279_vm1, %v3930_v6  ;;  %v3864_v63 = vmul.f32 %v11401_v3, %v3825_v43  ;;  %v3824_v12 = vadd.f32 %v3769_v49, %v3469_v14  ;;  %9344 = vmatprep.mubr.msk.f32.mxu1 %vm279_vm1, %v11795_v32  ;;  %v9308_v52 = vpop.f32.mrf.mxu0 }
 0x220   : > { %13585 = vst [vmem:[#allocation41_spill] sm:$0xff] %v11797_v37  ;;  %13586 = vst [vmem:[#allocation50_spill] sm:$0xff] %v11799_v56  ;;  %v3933_v22 = vmax.f32 %v3901_v54, 0.0  ;;  %v3900_v61 = vadd.f32 %v11419_v15, %v3861_v13  ;;  %9394 = vmatprep.mubr.msk.f32.mxu0 %vm279_vm1, %v11797_v37  ;;  %v11808_v35 = vld [vmem:[#allocation2 + $0xf9] sm:$0xff]  ;;  %v3471_v25 = vadd.f32 %v3424_v44, %v3116_v57 }
 0x221   : > { %v3118_v53 = vadd.f32 %v11385_v46, %v2763_v26  ;;  %9345 = vmatmul.mubr.msk.f32.gmra.mxu1 %vm279_vm1, %v11808_v35  ;;  %9395 = vmatmul.mubr.msk.f32.gmra.mxu0 %vm279_vm1, %v11799_v56  ;;  %v3903_v31 = vadd.f32 %v11419_v15, %v3864_v63  ;;  %v3863_v14 = vmul.f32 %v11401_v3, %v3824_v12  ;;  %v3779_v44 = vpop.f32.mrf.mxu0 }
 0x222   : > { %3965 = vst.msk [vmem:[#allocation2 + $0x141] sm:$0xff] %vm279_vm1, %v3933_v22  ;;  %v3932_v45 = vmax.f32 %v3900_v61, 0.0  ;;  %v3827_v27 = vadd.f32 %v9308_v52, %v3472_v60  ;;  %v3474_v6 = vadd.f32 %v9261_v42, %v3119_v50  ;;  %v3826_v26 = vadd.f32 %v3779_v44, %v3471_v25  ;;  %v11831_v42 = vld [vmem:[#allocation2 + $0x111] sm:$0xff] }
 0x223   : > { %v11818_v57 = vld [vmem:[#allocation2 + $0x109] sm:$0xff]  ;;  %v3935_v13 = vmax.f32 %v3903_v31, 0.0  ;;  %v3902_v43 = vadd.f32 %v11419_v15, %v3863_v14  ;;  %v3473_v60 = vadd.f32 %v3434_v34, %v3118_v53  ;;  %v9311_v50 = vpop.f32.mrf.mxu0 }
 0x224   : > { %v11820_v46 = vld [vmem:[#allocation2 + $0x108] sm:$0xff]  ;;  %v11822_v54 = vld [vmem:[#allocation2 + $0x110] sm:$0xff]  ;;  %3964 = vst.msk [vmem:[#allocation2 + $0x139] sm:$0xff] %vm279_vm1, %v3932_v45  ;;  %v3866_v17 = vmul.f32 %v11401_v3, %v3827_v27  ;;  %9347 = vmatprep.mubr.msk.f32.mxu1 %vm279_vm1, %v11818_v57  ;;  %v3865_v61 = vmul.f32 %v11401_v3, %v3826_v26  ;;  %v3829_v63 = vadd.f32 %v9311_v50, %v3474_v6 }
 0x225   : > { %13587 = vst [vmem:[#allocation47_spill] sm:$0xff] %v11820_v46  ;;  %13588 = vst [vmem:[#allocation52_spill] sm:$0xff] %v11822_v54  ;;  %9397 = vmatprep.mubr.msk.f32.mxu0 %vm279_vm1, %v11820_v46  ;;  %9348 = vmatmul.mubr.msk.f32.gmra.mxu1 %vm279_vm1, %v11831_v42  ;;  %v3934_v49 = vmax.f32 %v3902_v43, 0.0  ;;  %v3789_v12 = vpop.f32.mrf.mxu0  ;;  %v11853_v27 = vld [vmem:[#allocation2 + $0x129] sm:$0xff] }
 0x226   : > { %9398 = vmatmul.mubr.msk.f32.gmra.mxu0 %vm279_vm1, %v11822_v54  ;;  %3967 = vst.msk [vmem:[#allocation2 + $0x159] sm:$0xff] %vm279_vm1, %v3935_v13  ;;  %v3905_v22 = vadd.f32 %v11419_v15, %v3866_v17  ;;  %v11840_v25 = vld [vmem:[#allocation2 + $0x121] sm:$0xff]  ;;  %v3904_v45 = vadd.f32 %v11419_v15, %v3865_v61  ;;  %v3868_v31 = vmul.f32 %v11401_v3, %v3829_v63 }
 0x227   : > { %v11842_v52 = vld [vmem:[#allocation2 + $0x120] sm:$0xff]  ;;  %v11844_v53 = vld [vmem:[#allocation2 + $0x128] sm:$0xff]  ;;  %3966 = vst.msk [vmem:[#allocation2 + $0x151] sm:$0xff] %vm279_vm1, %v3934_v49  ;;  %v3828_v14 = vadd.f32 %v3789_v12, %v3473_v60  ;;  %9350 = vmatprep.mubr.msk.f32.mxu1 %vm279_vm1, %v11840_v25 }
 0x228   : > { %13589 = vst [vmem:[#allocation54_spill] sm:$0xff] %v11842_v52  ;;  %13590 = vst [vmem:[#allocation53_spill] sm:$0xff] %v11844_v53  ;;  %v3937_v34 = vmax.f32 %v3905_v22, 0.0  ;;  %9400 = vmatprep.mubr.msk.f32.mxu0 %vm279_vm1, %v11842_v52  ;;  %v3936_v6 = vmax.f32 %v3904_v45, 0.0  ;;  %v3907_v44 = vadd.f32 %v11419_v15, %v3868_v31  ;;  %v4036_v12 = vld [vmem:[#allocation2 + $0x2] sm:$0xff] }
 0x229   : > { %9351 = vmatmul.mubr.msk.f32.gmra.mxu1 %vm279_vm1, %v11853_v27  ;;  %v3867_v13 = vmul.f32 %v11401_v3, %v3828_v14  ;;  %v11874_v49 = vld [vmem:[#allocation2 + $0x141] sm:$0xff] }
 0x22a   : > { %9401 = vmatmul.mubr.msk.f32.gmra.mxu0 %vm279_vm1, %v11844_v53  ;;  %3969 = vst.msk [vmem:[#allocation2 + $0x171] sm:$0xff] %vm279_vm1, %v3937_v34  ;;  %3968 = vst.msk [vmem:[#allocation2 + $0x169] sm:$0xff] %vm279_vm1, %v3936_v6  ;;  %v3939_v60 = vmax.f32 %v3907_v44, 0.0  ;;  %v9771_v6 = vld [vmem:[%s13172_s2 + $0x8] sm:$0xff]  }
 0x22b   : > { %v11862_v43 = vld [vmem:[#allocation2 + $0x139] sm:$0xff]  ;;  %v3906_v50 = vadd.f32 %v11419_v15, %v3867_v13  ;;  %v11913_v44 = vunpack.c.h.bf16 %v9771_v6  ;;  %v4037_v13 = vld [vmem:[#allocation2 + $0xa] sm:$0xff] }
 0x22c   : > { %v11864_v17 = vld [vmem:[#allocation2 + $0x138] sm:$0xff]  ;;  %v11866_v26 = vld [vmem:[#allocation2 + $0x140] sm:$0xff]  ;;  %9353 = vmatprep.mubr.msk.f32.mxu1 %vm279_vm1, %v11862_v43  ;;  %3971 = vst.msk [vmem:[#allocation2 + $0x189] sm:$0xff] %vm279_vm1, %v3939_v60 }
 0x22d   : > { %13591 = vst [vmem:[#allocation61_spill] sm:$0xff] %v11864_v17  ;;  %13592 = vst [vmem:[#allocation107_spill] sm:$0xff] %v11866_v26  ;;  %9403 = vmatprep.mubr.msk.f32.mxu0 %vm279_vm1, %v11864_v17  ;;  %9354 = vmatmul.mubr.msk.f32.gmra.mxu1 %vm279_vm1, %v11874_v49  ;;  %v3938_v3 = vmax.f32 %v3906_v50, 0.0  ;;  %v11892_v63 = vld [vmem:[#allocation2 + $0x159] sm:$0xff] }
 0x22e   : > { %9404 = vmatmul.mubr.msk.f32.gmra.mxu0 %vm279_vm1, %v11866_v26  ;;  %v11881_v22 = vld [vmem:[#allocation2 + $0x151] sm:$0xff] }
 0x22f   : > { %v11883_v15 = vld [vmem:[#allocation2 + $0x150] sm:$0xff]  ;;  %v11885_v61 = vld [vmem:[#allocation2 + $0x158] sm:$0xff]  ;;  %3970 = vst.msk [vmem:[#allocation2 + $0x181] sm:$0xff] %vm279_vm1, %v3938_v3  ;;  %9356 = vmatprep.mubr.msk.f32.mxu1 %vm279_vm1, %v11881_v22  ;;  %v11924_v3 = vcombine.high %v11913_v44, %v11913_v44 }
 0x230   : > { %13593 = vst [vmem:[#allocation104_spill] sm:$0xff] %v11883_v15  ;;  %13594 = vst [vmem:[#allocation42_spill] sm:$0xff] %v11885_v61  ;;  %9406 = vmatprep.mubr.msk.f32.mxu0 %vm279_vm1, %v11883_v15  ;;  %v9366_v50 = vpop.f32.mrf.mxu0 }
 0x231   : > { %9357 = vmatmul.mubr.msk.f32.gmra.mxu1 %vm279_vm1, %v11892_v63  ;;  %v11898_v34 = vld [vmem:[#allocation2 + $0x169] sm:$0xff]  ;;  %v11908_v14 = vld [vmem:[#allocation2 + $0x171] sm:$0xff] }
 0x232   : > { %9407 = vmatmul.mubr.msk.f32.gmra.mxu0 %vm279_vm1, %v11885_v61  ;;  %v11900_v45 = vld [vmem:[#allocation2 + $0x168] sm:$0xff]  ;;  %v11902_v31 = vld [vmem:[#allocation2 + $0x170] sm:$0xff]  ;;  %9359 = vmatprep.mubr.msk.f32.mxu1 %vm279_vm1, %v11898_v34  ;;  %13597 = vst [vmem:[#allocation106_spill] sm:$0xff] %v11908_v14  ;;  %v9316_v60 = vpop.f32.mrf.mxu1 }
 0x233   : > { %13595 = vst [vmem:[#allocation55_spill] sm:$0xff] %v11900_v45  ;;  %13596 = vst [vmem:[#allocation110_spill] sm:$0xff] %v11902_v31  ;;  %9409 = vmatprep.mubr.msk.f32.mxu0 %vm279_vm1, %v11900_v45  ;;  %v11926_v6 = vadd.f32 %v9366_v50, %v9316_v60  ;;  %v11981_v60 = vld [vmem:[#allocation2 + $0x6a] sm:$0xff]  ;;  %v11987_v50 = vld [vmem:[#allocation2 + $0x7a] sm:$0xff] }
 0x235   : > { %9360 = vmatmul.mubr.msk.f32.gmra.mxu1 %vm279_vm1, %v11908_v14  ;;  %13598 = vst [vmem:[#allocation59_spill] sm:$0xff] %v11926_v6  ;;  %v11931_v14 = vld [vmem:[#allocation2 + $0x1a] sm:$0xff]  ;;  %v11993_v6 = vld [vmem:[#allocation2 + $0x82] sm:$0xff] }
 0x236   : > { %9410 = vmatmul.mubr.msk.f32.gmra.mxu0 %vm279_vm1, %v11902_v31  ;;  %9414 = vmatprep.mubr.msk.f32.mxu1 %vm279_vm1, %v4036_v12  ;;  %v11969_v12 = vld [vmem:[#allocation2 + $0x52] sm:$0xff] }
 0x237   : > { %9464 = vmatprep.mubr.msk.f32.mxu0 %vm279_vm1, %v11506_v1  ;;  %v11941_v1 = vld [vmem:[#allocation2 + $0x22] sm:$0xff] }
 0x239   : > { %9415 = vmatmul.mubr.msk.f32.vlgmr.msra.gmra.mxu1 %vm279_vm1, %v4037_v13  ;;  %v11975_v13 = vld [vmem:[#allocation2 + $0x62] sm:$0xff] }
 0x23a   : > { %9465 = vmatmul.mubr.msk.f32.vlgmr.msra.gmra.mxu0 %vm279_vm1, %v11508_v29  ;;  %9513 = vmatpush3.msk.msra.mxu1 %vm794_vm0, %v13509_v55  ;;  %v11951_v55 = vld [vmem:[#allocation2 + $0x32] sm:$0xff]  ;;  %v11963_v29 = vld [vmem:[#allocation2 + $0x4a] sm:$0xff] }
 0x23b   : > { %9417 = vmatprep.mubr.msk.f32.mxu1 %vm279_vm1, %v11931_v14  ;;  %9467 = vmatprep.mubr.msk.f32.mxu0 %vm279_vm1, %v11539_v2 }
 0x23c   : > { %9563 = vmatpush3.msk.msra.mxu0 %vm794_vm0, %v11480_v62  ;;  %9612 = vmatprep.subr.msk.mxu1 %vm794_vm0, %v11913_v44  ;;  %v11957_v62 = vld [vmem:[#allocation2 + $0x3a] sm:$0xff] }
 0x23d   : > { %9662 = vmatprep.subr.msk.mxu0 %vm794_vm0, %v11924_v3  ;;  %9418 = vmatmul.mubr.msk.f32.gmra.mxu1 %vm279_vm1, %v11941_v1 }
 0x23e   : > { %9468 = vmatmul.mubr.msk.f32.gmra.mxu0 %vm279_vm1, %v11541_v16  ;;  %9420 = vmatprep.mubr.msk.f32.mxu1 %vm279_vm1, %v11951_v55 }
 0x23f   : > { %9470 = vmatprep.mubr.msk.f32.mxu0 %vm279_vm1, %v11572_v18 }
 0x241   : > { %9421 = vmatmul.mubr.msk.f32.gmra.mxu1 %vm279_vm1, %v11957_v62 }
 0x242   : > { %9471 = vmatmul.mubr.msk.f32.gmra.mxu0 %vm279_vm1, %v11574_v24  ;;  %9423 = vmatprep.mubr.msk.f32.mxu1 %vm279_vm1, %v11963_v29 }
 0x243   : > { %9473 = vmatprep.mubr.msk.f32.mxu0 %vm279_vm1, %v11605_v47 }
 0x245   : > { %9424 = vmatmul.mubr.msk.f32.gmra.mxu1 %vm279_vm1, %v11969_v12 }
 0x246   : > { %9474 = vmatmul.mubr.msk.f32.gmra.mxu0 %vm279_vm1, %v11607_v20  ;;  %9426 = vmatprep.mubr.msk.f32.mxu1 %vm279_vm1, %v11975_v13  ;;  %v12109_v20 = vld [vmem:[#allocation2 + $0x180] sm:$0xff] }
 0x247   : > { %9476 = vmatprep.mubr.msk.f32.mxu0 %vm279_vm1, %v11638_v28  ;;  %v11999_v28 = vld [vmem:[#allocation2 + $0x92] sm:$0xff]  ;;  %13599 = vst [vmem:[#allocation57_spill] sm:$0xff] %v12109_v20 }
 0x249   : > { %9427 = vmatmul.mubr.msk.f32.gmra.mxu1 %vm279_vm1, %v11981_v60 }
 0x24a   : > { %9477 = vmatmul.mubr.msk.f32.gmra.mxu0 %vm279_vm1, %v11640_v51  ;;  %9429 = vmatprep.mubr.msk.f32.mxu1 %vm279_vm1, %v11987_v50  ;;  %v12005_v51 = vld [vmem:[#allocation2 + $0x9a] sm:$0xff] }
 0x24b   : > { %9479 = vmatprep.mubr.msk.f32.mxu0 %vm279_vm1, %v11671_v39  ;;  %v12011_v39 = vld [vmem:[#allocation2 + $0xaa] sm:$0xff] }
 0x24d   : > { %9430 = vmatmul.mubr.msk.f32.gmra.mxu1 %vm279_vm1, %v11993_v6 }
 0x24e   : > { %9480 = vmatmul.mubr.msk.f32.gmra.mxu0 %vm279_vm1, %v11673_v10  ;;  %9432 = vmatprep.mubr.msk.f32.mxu1 %vm279_vm1, %v11999_v28  ;;  %v12017_v10 = vld [vmem:[#allocation2 + $0xb2] sm:$0xff] }
 0x24f   : > { %9482 = vmatprep.mubr.msk.f32.mxu0 %vm279_vm1, %v11704_v33  ;;  %v12023_v33 = vld [vmem:[#allocation2 + $0xc2] sm:$0xff] }
 0x251   : > { %9433 = vmatmul.mubr.msk.f32.gmra.mxu1 %vm279_vm1, %v12005_v51 }
 0x252   : > { %9483 = vmatmul.mubr.msk.f32.gmra.mxu0 %vm279_vm1, %v11706_v21  ;;  %9435 = vmatprep.mubr.msk.f32.mxu1 %vm279_vm1, %v12011_v39  ;;  %v12029_v21 = vld [vmem:[#allocation2 + $0xca] sm:$0xff] }
 0x253   : > { %9485 = vmatprep.mubr.msk.f32.mxu0 %vm279_vm1, %v11737_v58  ;;  %v12035_v58 = vld [vmem:[#allocation2 + $0xda] sm:$0xff] }
 0x255   : > { %9436 = vmatmul.mubr.msk.f32.gmra.mxu1 %vm279_vm1, %v12017_v10 }
 0x256   : > { %9486 = vmatmul.mubr.msk.f32.gmra.mxu0 %vm279_vm1, %v11739_v9  ;;  %9438 = vmatprep.mubr.msk.f32.mxu1 %vm279_vm1, %v12023_v33  ;;  %v12041_v9 = vld [vmem:[#allocation2 + $0xe2] sm:$0xff] }
 0x257   : > { %9488 = vmatprep.mubr.msk.f32.mxu0 %vm279_vm1, %v11768_v36  ;;  %v12047_v36 = vld [vmem:[#allocation2 + $0xf2] sm:$0xff] }
 0x259   : > { %9439 = vmatmul.mubr.msk.f32.gmra.mxu1 %vm279_vm1, %v12029_v21 }
 0x25a   : > { %9489 = vmatmul.mubr.msk.f32.gmra.mxu0 %vm279_vm1, %v11770_v0  ;;  %9441 = vmatprep.mubr.msk.f32.mxu1 %vm279_vm1, %v12035_v58  ;;  %v12053_v0 = vld [vmem:[#allocation2 + $0xfa] sm:$0xff] }
 0x25b   : > { %9491 = vmatprep.mubr.msk.f32.mxu0 %vm279_vm1, %v11797_v37  ;;  %v12059_v37 = vld [vmem:[#allocation2 + $0x10a] sm:$0xff] }
 0x25d   : > { %9442 = vmatmul.mubr.msk.f32.gmra.mxu1 %vm279_vm1, %v12041_v9 }
 0x25e   : > { %9492 = vmatmul.mubr.msk.f32.gmra.mxu0 %vm279_vm1, %v11799_v56  ;;  %9444 = vmatprep.mubr.msk.f32.mxu1 %vm279_vm1, %v12047_v36  ;;  %v12065_v56 = vld [vmem:[#allocation2 + $0x112] sm:$0xff] }
 0x25f   : > { %9494 = vmatprep.mubr.msk.f32.mxu0 %vm279_vm1, %v11820_v46  ;;  %v12071_v46 = vld [vmem:[#allocation2 + $0x122] sm:$0xff] }
 0x261   : > { %9445 = vmatmul.mubr.msk.f32.gmra.mxu1 %vm279_vm1, %v12053_v0 }
 0x262   : > { %9495 = vmatmul.mubr.msk.f32.gmra.mxu0 %vm279_vm1, %v11822_v54  ;;  %9447 = vmatprep.mubr.msk.f32.mxu1 %vm279_vm1, %v12059_v37  ;;  %v12077_v54 = vld [vmem:[#allocation2 + $0x12a] sm:$0xff] }
 0x263   : > { %9497 = vmatprep.mubr.msk.f32.mxu0 %vm279_vm1, %v11842_v52  ;;  %v12083_v52 = vld [vmem:[#allocation2 + $0x13a] sm:$0xff] }
 0x265   : > { %9448 = vmatmul.mubr.msk.f32.gmra.mxu1 %vm279_vm1, %v12065_v56 }
 0x266   : > { %9498 = vmatmul.mubr.msk.f32.gmra.mxu0 %vm279_vm1, %v11844_v53  ;;  %9450 = vmatprep.mubr.msk.f32.mxu1 %vm279_vm1, %v12071_v46  ;;  %v12089_v53 = vld [vmem:[#allocation2 + $0x142] sm:$0xff] }
 0x267   : > { %9500 = vmatprep.mubr.msk.f32.mxu0 %vm279_vm1, %v11864_v17  ;;  %v12095_v17 = vld [vmem:[#allocation2 + $0x152] sm:$0xff] }
 0x269   : > { %9451 = vmatmul.mubr.msk.f32.gmra.mxu1 %vm279_vm1, %v12077_v54 }
 0x26a   : > { %9501 = vmatmul.mubr.msk.f32.gmra.mxu0 %vm279_vm1, %v11866_v26  ;;  %9453 = vmatprep.mubr.msk.f32.mxu1 %vm279_vm1, %v12083_v52  ;;  %v12101_v26 = vld [vmem:[#allocation2 + $0x15a] sm:$0xff] }
 0x26b   : > { %9503 = vmatprep.mubr.msk.f32.mxu0 %vm279_vm1, %v11883_v15  ;;  %v12107_v15 = vld [vmem:[#allocation2 + $0x16a] sm:$0xff] }
 0x26d   : > { %9454 = vmatmul.mubr.msk.f32.gmra.mxu1 %vm279_vm1, %v12089_v53 }
 0x26e   : > { %9504 = vmatmul.mubr.msk.f32.gmra.mxu0 %vm279_vm1, %v11885_v61  ;;  %9456 = vmatprep.mubr.msk.f32.mxu1 %vm279_vm1, %v12095_v17  ;;  %v12115_v61 = vld [vmem:[#allocation2 + $0x172] sm:$0xff] }
 0x26f   : > { %9506 = vmatprep.mubr.msk.f32.mxu0 %vm279_vm1, %v11900_v45  ;;  %v12117_v45 = vld [vmem:[#allocation2 + $0x188] sm:$0xff] }
 0x271   : > { %9457 = vmatmul.mubr.msk.f32.gmra.mxu1 %vm279_vm1, %v12101_v26 }
 0x272   : > { %9507 = vmatmul.mubr.msk.f32.gmra.mxu0 %vm279_vm1, %v11902_v31  ;;  %9459 = vmatprep.mubr.msk.f32.mxu1 %vm279_vm1, %v12107_v15  ;;  %v12126_v31 = vld [vmem:[%s13172_s2 + $0x10] sm:$0x3] }
 0x273   : > { %9509 = vmatprep.mubr.msk.f32.mxu0 %vm279_vm1, %v12109_v20  ;;  %v4269_v20 = vunpack.c.l.bf16 %v12126_v31 }
 0x275   : > { %9460 = vmatmul.mubr.msk.f32.gmra.mxu1 %vm279_vm1, %v12115_v61 }
 0x276   : > { %9510 = vmatmul.mubr.msk.f32.gmra.mxu0 %vm279_vm1, %v12117_v45  ;;  %9514 = vmatprep.mubr.msk.f32.mxu1 %vm279_vm1, %v11504_v30  ;;  %v13600_v30 = vld [vmem:[#allocation24_spill] sm:$0xff] }
 0x277   : > { %9564 = vmatprep.mubr.msk.f32.mxu0 %vm279_vm1, %v11931_v14  ;;  %v13602_v14 = vld [vmem:[#allocation28_spill] sm:$0xff] }
 0x279   : > { %9515 = vmatmul.mubr.msk.f32.vlgmr.msra.gmra.mxu1 %vm279_vm1, %v11517_v41  ;;  %v13601_v41 = vld [vmem:[#allocation26_spill] sm:$0xff] }
 0x27a   : > { %9565 = vmatmul.mubr.msk.f32.vlgmr.msra.gmra.mxu0 %vm279_vm1, %v11941_v1  ;;  %9613 = vmatpush3.msk.msra.mxu1 %vm794_vm0, %v11913_v44  ;;  %v13603_v44 = vld [vmem:[#allocation23_spill] sm:$0xff] }
 0x27b   : > { %9517 = vmatprep.mubr.msk.f32.mxu1 %vm279_vm1, %v11537_v38  ;;  %9567 = vmatprep.mubr.msk.f32.mxu0 %vm279_vm1, %v11951_v55 }
 0x27c   : > { %9663 = vmatpush3.msk.msra.mxu0 %vm794_vm0, %v11924_v3  ;;  %9712 = vmatprep.subr.msk.mxu1 %vm794_vm0, %v4269_v20  ;;  %v13604_v3 = vld [vmem:[#allocation51_spill] sm:$0xff] }
 0x27d   : > { %9518 = vmatmul.mubr.msk.f32.gmra.mxu1 %vm279_vm1, %v11550_v8 }
 0x27e   : > { %9568 = vmatmul.mubr.msk.f32.gmra.mxu0 %vm279_vm1, %v11957_v62  ;;  %9520 = vmatprep.mubr.msk.f32.mxu1 %vm279_vm1, %v11570_v59 }
 0x27f   : > { %9570 = vmatprep.mubr.msk.f32.mxu0 %vm279_vm1, %v11963_v29 }
 0x281   : > { %9521 = vmatmul.mubr.msk.f32.gmra.mxu1 %vm279_vm1, %v11583_v4 }
 0x282   : > { %9571 = vmatmul.mubr.msk.f32.gmra.mxu0 %vm279_vm1, %v11969_v12  ;;  %9523 = vmatprep.mubr.msk.f32.mxu1 %vm279_vm1, %v11603_v11 }
 0x283   : > { %9573 = vmatprep.mubr.msk.f32.mxu0 %vm279_vm1, %v11975_v13 }
 0x285   : > { %9524 = vmatmul.mubr.msk.f32.gmra.mxu1 %vm279_vm1, %v11616_v7 }
 0x286   : > { %9574 = vmatmul.mubr.msk.f32.gmra.mxu0 %vm279_vm1, %v11981_v60  ;;  %9526 = vmatprep.mubr.msk.f32.mxu1 %vm279_vm1, %v11636_v5 }
 0x287   : > { %9576 = vmatprep.mubr.msk.f32.mxu0 %vm279_vm1, %v11987_v50 }
 0x289   : > { %9527 = vmatmul.mubr.msk.f32.gmra.mxu1 %vm279_vm1, %v13600_v30 }
 0x28a   : > { %9577 = vmatmul.mubr.msk.f32.gmra.mxu0 %vm279_vm1, %v11993_v6  ;;  %9529 = vmatprep.mubr.msk.f32.mxu1 %vm279_vm1, %v13601_v41 }
 0x28b   : > { %9579 = vmatprep.mubr.msk.f32.mxu0 %vm279_vm1, %v11999_v28 }
 0x28d   : > { %9530 = vmatmul.mubr.msk.f32.gmra.mxu1 %vm279_vm1, %v13602_v14 }
 0x28e   : > { %9580 = vmatmul.mubr.msk.f32.gmra.mxu0 %vm279_vm1, %v12005_v51  ;;  %9532 = vmatprep.mubr.msk.f32.mxu1 %vm279_vm1, %v11702_v48 }
 0x28f   : > { %9582 = vmatprep.mubr.msk.f32.mxu0 %vm279_vm1, %v12011_v39 }
 0x291   : > { %9533 = vmatmul.mubr.msk.f32.gmra.mxu1 %vm279_vm1, %v13603_v44 }
 0x292   : > { %9583 = vmatmul.mubr.msk.f32.gmra.mxu0 %vm279_vm1, %v12017_v10  ;;  %9535 = vmatprep.mubr.msk.f32.mxu1 %vm279_vm1, %v11735_v19 }
 0x293   : > { %9585 = vmatprep.mubr.msk.f32.mxu0 %vm279_vm1, %v12023_v33 }
 0x295   : > { %9536 = vmatmul.mubr.msk.f32.gmra.mxu1 %vm279_vm1, %v13604_v3 }
 0x296   : > { %9586 = vmatmul.mubr.msk.f32.gmra.mxu0 %vm279_vm1, %v12029_v21  ;;  %9538 = vmatprep.mubr.msk.f32.mxu1 %vm279_vm1, %v11766_v23 }
 0x297   : > { %9588 = vmatprep.mubr.msk.f32.mxu0 %vm279_vm1, %v12035_v58 }
 0x299   : > { %9539 = vmatmul.mubr.msk.f32.gmra.mxu1 %vm279_vm1, %v11779_v40 }
 0x29a   : > { %9589 = vmatmul.mubr.msk.f32.gmra.mxu0 %vm279_vm1, %v12041_v9  ;;  %9541 = vmatprep.mubr.msk.f32.mxu1 %vm279_vm1, %v11795_v32 }
 0x29b   : > { %9591 = vmatprep.mubr.msk.f32.mxu0 %vm279_vm1, %v12047_v36 }
 0x29d   : > { %9542 = vmatmul.mubr.msk.f32.gmra.mxu1 %vm279_vm1, %v11808_v35 }
 0x29e   : > { %9592 = vmatmul.mubr.msk.f32.gmra.mxu0 %vm279_vm1, %v12053_v0  ;;  %9544 = vmatprep.mubr.msk.f32.mxu1 %vm279_vm1, %v11818_v57 }
 0x29f   : > { %9594 = vmatprep.mubr.msk.f32.mxu0 %vm279_vm1, %v12059_v37 }
 0x2a1   : > { %9545 = vmatmul.mubr.msk.f32.gmra.mxu1 %vm279_vm1, %v11831_v42 }
 0x2a2   : > { %9595 = vmatmul.mubr.msk.f32.gmra.mxu0 %vm279_vm1, %v12065_v56  ;;  %9547 = vmatprep.mubr.msk.f32.mxu1 %vm279_vm1, %v11840_v25  ;;  %v13605_v56 = vld [vmem:[#allocation106_spill] sm:$0xff] }
 0x2a3   : > { %9597 = vmatprep.mubr.msk.f32.mxu0 %vm279_vm1, %v12071_v46  ;;  %v12256_v46 = vld [vmem:[#allocation2 + $0x181] sm:$0xff] }
 0x2a5   : > { %9548 = vmatmul.mubr.msk.f32.gmra.mxu1 %vm279_vm1, %v11853_v27 }
 0x2a6   : > { %9598 = vmatmul.mubr.msk.f32.gmra.mxu0 %vm279_vm1, %v12077_v54  ;;  %9550 = vmatprep.mubr.msk.f32.mxu1 %vm279_vm1, %v11862_v43  ;;  %v12258_v54 = vld [vmem:[#allocation2 + $0x182] sm:$0xff] }
 0x2a7   : > { %9600 = vmatprep.mubr.msk.f32.mxu0 %vm279_vm1, %v12083_v52  ;;  %v12264_v52 = vld [vmem:[#allocation2 + $0x189] sm:$0xff] }
 0x2a9   : > { %9551 = vmatmul.mubr.msk.f32.gmra.mxu1 %vm279_vm1, %v11874_v49 }
 0x2aa   : > { %9601 = vmatmul.mubr.msk.f32.gmra.mxu0 %vm279_vm1, %v12089_v53  ;;  %9553 = vmatprep.mubr.msk.f32.mxu1 %vm279_vm1, %v11881_v22  ;;  %v12266_v53 = vld [vmem:[#allocation2 + $0x18a] sm:$0xff] }
 0x2ab   : > { %9603 = vmatprep.mubr.msk.f32.mxu0 %vm279_vm1, %v12095_v17  ;;  %v12285_v17 = vpop.f32.mrf.mxu1 }
 0x2ad   : > { %9554 = vmatmul.mubr.msk.f32.gmra.mxu1 %vm279_vm1, %v11892_v63 }
 0x2ae   : > { %9604 = vmatmul.mubr.msk.f32.gmra.mxu0 %vm279_vm1, %v12101_v26  ;;  %9556 = vmatprep.mubr.msk.f32.mxu1 %vm279_vm1, %v11898_v34  ;;  %v12287_v26 = vpop.f32.mrf.mxu0 }
 0x2af   : > { %9606 = vmatprep.mubr.msk.f32.mxu0 %vm279_vm1, %v12107_v15 }
 0x2b1   : > { %9557 = vmatmul.mubr.msk.f32.gmra.mxu1 %vm279_vm1, %v13605_v56 }
 0x2b2   : > { %9607 = vmatmul.mubr.msk.f32.gmra.mxu0 %vm279_vm1, %v12115_v61  ;;  %9559 = vmatprep.mubr.msk.f32.mxu1 %vm279_vm1, %v12256_v46  ;;  %v13606_v61 = vld [vmem:[#allocation56_spill] sm:$0xff] }
 0x2b3   : > { %9609 = vmatprep.mubr.msk.f32.mxu0 %vm279_vm1, %v12258_v54 }
 0x2b5   : > { %9560 = vmatmul.mubr.msk.f32.gmra.mxu1 %vm279_vm1, %v12264_v52 }
 0x2b6   : > { %9610 = vmatmul.mubr.msk.f32.gmra.mxu0 %vm279_vm1, %v12266_v53  ;;  %9614 = vmatprep.mubr.msk.f32.mxu1 %vm279_vm1, %v11539_v2 }
 0x2b7   : > { %9664 = vmatprep.mubr.msk.f32.mxu0 %vm279_vm1, %v11537_v38 }
 0x2b9   : > { %9615 = vmatmul.mubr.msk.f32.vlgmr.msra.gmra.mxu1 %vm279_vm1, %v11541_v16 }
 0x2ba   : > { %9665 = vmatmul.mubr.msk.f32.vlgmr.msra.gmra.mxu0 %vm279_vm1, %v11550_v8  ;;  %9713 = vmatpush3.msk.msra.mxu1 %vm794_vm0, %v4269_v20 }
 0x2bb   : > { %9617 = vmatprep.mubr.msk.f32.mxu1 %vm279_vm1, %v11572_v18  ;;  %9667 = vmatprep.mubr.msk.f32.mxu0 %vm279_vm1, %v11570_v59  ;;  %v9319_v38 = vpop.f32.mrf.mxu1 }
 0x2bc   : > { %v9369_v2 = vpop.f32.mrf.mxu0 }
 0x2bd   : > { %9618 = vmatmul.mubr.msk.f32.gmra.mxu1 %vm279_vm1, %v11574_v24  ;;  %v12295_v16 = vadd.f32 %v9369_v2, %v9319_v38  ;;  %v4453_v8 = vpop.f32.mrf.mxu1  ;;  %v13608_v2 = vld [vmem:[#allocation60_spill] sm:$0xff] }
 0x2be   : > { %9668 = vmatmul.mubr.msk.f32.gmra.mxu0 %vm279_vm1, %v11583_v4  ;;  %9620 = vmatprep.mubr.msk.f32.mxu1 %vm279_vm1, %v11605_v47  ;;  %v4776_v18 = vpop.f32.mrf.mxu0  ;;  %v13607_v4 = vld [vmem:[#allocation58_spill] sm:$0xff] }
 0x2bf   : > { %9670 = vmatprep.mubr.msk.f32.mxu0 %vm279_vm1, %v11603_v11  ;;  %v12301_v20 = vadd.f32 %v4776_v18, %v4453_v8  ;;  %v9322_v59 = vpop.f32.mrf.mxu1  ;;  %v13609_v8 = vld [vmem:[#allocation44_spill] sm:$0xff] }
 0x2c0   : > { %v9372_v15 = vpop.f32.mrf.mxu0 }
 0x2c1   : > { %9621 = vmatmul.mubr.msk.f32.gmra.mxu1 %vm279_vm1, %v13606_v61  ;;  %v12307_v24 = vadd.f32 %v9372_v15, %v9322_v59  ;;  %v4463_v11 = vpop.f32.mrf.mxu1 }
 0x2c2   : > { %9671 = vmatmul.mubr.msk.f32.gmra.mxu0 %vm279_vm1, %v11616_v7  ;;  %9623 = vmatprep.mubr.msk.f32.mxu1 %vm279_vm1, %v13607_v4  ;;  %v4786_v47 = vpop.f32.mrf.mxu0  ;;  %v13610_v4 = vld [vmem:[#allocation62_spill] sm:$0xff] }
 0x2c3   : > { %9673 = vmatprep.mubr.msk.f32.mxu0 %vm279_vm1, %v11636_v5  ;;  %v12313_v31 = vadd.f32 %v4786_v47, %v4463_v11  ;;  %v9325_v1 = vpop.f32.mrf.mxu1  ;;  %v13611_v11 = vld [vmem:[#allocation40_spill] sm:$0xff] }
 0x2c4   : > { %v9375_v38 = vpop.f32.mrf.mxu0 }
 0x2c5   : > { %9624 = vmatmul.mubr.msk.f32.gmra.mxu1 %vm279_vm1, %v13608_v2  ;;  %v12319_v7 = vadd.f32 %v9375_v38, %v9325_v1  ;;  %v4473_v5 = vpop.f32.mrf.mxu1 }
 0x2c6   : > { %9674 = vmatmul.mubr.msk.f32.gmra.mxu0 %vm279_vm1, %v13600_v30  ;;  %9626 = vmatprep.mubr.msk.f32.mxu1 %vm279_vm1, %v13609_v8  ;;  %v4796_v18 = vpop.f32.mrf.mxu0  ;;  %v13612_v8 = vld [vmem:[#allocation45_spill] sm:$0xff] }
 0x2c7   : > { %9676 = vmatprep.mubr.msk.f32.mxu0 %vm279_vm1, %v13601_v41  ;;  %v12325_v59 = vadd.f32 %v4796_v18, %v4473_v5  ;;  %v9328_v15 = vpop.f32.mrf.mxu1  ;;  %v13613_v5 = vld [vmem:[#allocation25_spill] sm:$0xff] }
 0x2c8   : > { %v9378_v61 = vpop.f32.mrf.mxu0 }
 0x2c9   : > { %9627 = vmatmul.mubr.msk.f32.gmra.mxu1 %vm279_vm1, %v13610_v4  ;;  %v12331_v30 = vadd.f32 %v9378_v61, %v9328_v15  ;;  %v4483_v41 = vpop.f32.mrf.mxu1 }
 0x2ca   : > { %9677 = vmatmul.mubr.msk.f32.gmra.mxu0 %vm279_vm1, %v13602_v14  ;;  %9629 = vmatprep.mubr.msk.f32.mxu1 %vm279_vm1, %v13611_v11  ;;  %v4806_v47 = vpop.f32.mrf.mxu0  ;;  %v13614_v11 = vld [vmem:[#allocation46_spill] sm:$0xff] }
 0x2cb   : > { %9679 = vmatprep.mubr.msk.f32.mxu0 %vm279_vm1, %v11702_v48  ;;  %v12337_v1 = vadd.f32 %v4806_v47, %v4483_v41  ;;  %v9331_v38 = vpop.f32.mrf.mxu1  ;;  %v13615_v41 = vld [vmem:[#allocation27_spill] sm:$0xff] }
 0x2cc   : > { %v9381_v2 = vpop.f32.mrf.mxu0 }
 0x2cd   : > { %9630 = vmatmul.mubr.msk.f32.gmra.mxu1 %vm279_vm1, %v13612_v8  ;;  %v12343_v14 = vadd.f32 %v9381_v2, %v9331_v38  ;;  %v4493_v48 = vpop.f32.mrf.mxu1 }
 0x2ce   : > { %9680 = vmatmul.mubr.msk.f32.gmra.mxu0 %vm279_vm1, %v13603_v44  ;;  %9632 = vmatprep.mubr.msk.f32.mxu1 %vm279_vm1, %v13613_v5  ;;  %v4816_v18 = vpop.f32.mrf.mxu0  ;;  %v13616_v5 = vld [vmem:[#allocation37_spill] sm:$0xff] }
 0x2cf   : > { %9682 = vmatprep.mubr.msk.f32.mxu0 %vm279_vm1, %v11735_v19  ;;  %v12349_v15 = vadd.f32 %v4816_v18, %v4493_v48  ;;  %v9334_v61 = vpop.f32.mrf.mxu1  ;;  %v13617_v48 = vld [vmem:[#allocation41_spill] sm:$0xff] }
 0x2d0   : > { %v9384_v4 = vpop.f32.mrf.mxu0 }
 0x2d1   : > { %9633 = vmatmul.mubr.msk.f32.gmra.mxu1 %vm279_vm1, %v13614_v11  ;;  %v12355_v44 = vadd.f32 %v9384_v4, %v9334_v61  ;;  %v4503_v19 = vpop.f32.mrf.mxu1 }
 0x2d2   : > { %9683 = vmatmul.mubr.msk.f32.gmra.mxu0 %vm279_vm1, %v13604_v3  ;;  %9635 = vmatprep.mubr.msk.f32.mxu1 %vm279_vm1, %v13615_v41  ;;  %v4826_v47 = vpop.f32.mrf.mxu0  ;;  %v13618_v41 = vld [vmem:[#allocation50_spill] sm:$0xff] }
 0x2d3   : > { %9685 = vmatprep.mubr.msk.f32.mxu0 %vm279_vm1, %v11766_v23  ;;  %v12361_v38 = vadd.f32 %v4826_v47, %v4503_v19  ;;  %v13619_v19 = vld [vmem:[#allocation47_spill] sm:$0xff] }
 0x2d5   : > { %v9337_v2 = vpop.f32.mrf.mxu1  ;;  %v9387_v8 = vpop.f32.mrf.mxu0  ;;  %9636 = vmatmul.mubr.msk.f32.gmra.mxu1 %vm279_vm1, %v13616_v5 }
 0x2d6   : > { %9686 = vmatmul.mubr.msk.f32.gmra.mxu0 %vm279_vm1, %v11779_v40  ;;  %v12367_v3 = vadd.f32 %v9387_v8, %v9337_v2  ;;  %9638 = vmatprep.mubr.msk.f32.mxu1 %vm279_vm1, %v13617_v48  ;;  %v13620_v48 = vld [vmem:[#allocation52_spill] sm:$0xff] }
 0x2d7   : > { %9688 = vmatprep.mubr.msk.f32.mxu0 %vm279_vm1, %v11795_v32  ;;  %v4513_v23 = vpop.f32.mrf.mxu1  ;;  %v4836_v18 = vpop.f32.mrf.mxu0 }
 0x2d8   : > { %v12373_v61 = vadd.f32 %v4836_v18, %v4513_v23  ;;  %v13621_v23 = vld [vmem:[#allocation54_spill] sm:$0xff] }
 0x2d9   : > { %v9340_v4 = vpop.f32.mrf.mxu1  ;;  %v9390_v11 = vpop.f32.mrf.mxu0  ;;  %9639 = vmatmul.mubr.msk.f32.gmra.mxu1 %vm279_vm1, %v13618_v41 }
 0x2da   : > { %9689 = vmatmul.mubr.msk.f32.gmra.mxu0 %vm279_vm1, %v11808_v35  ;;  %v12379_v40 = vadd.f32 %v9390_v11, %v9340_v4  ;;  %9641 = vmatprep.mubr.msk.f32.mxu1 %vm279_vm1, %v13619_v19  ;;  %v13622_v19 = vld [vmem:[#allocation53_spill] sm:$0xff] }
 0x2db   : > { %9691 = vmatprep.mubr.msk.f32.mxu0 %vm279_vm1, %v11818_v57  ;;  %v4523_v32 = vpop.f32.mrf.mxu1  ;;  %v4846_v47 = vpop.f32.mrf.mxu0 }
 0x2dc   : > { %v12385_v2 = vadd.f32 %v4846_v47, %v4523_v32  ;;  %v13623_v32 = vld [vmem:[#allocation61_spill] sm:$0xff] }
 0x2dd   : > { %v9343_v8 = vpop.f32.mrf.mxu1  ;;  %v9393_v5 = vpop.f32.mrf.mxu0  ;;  %9642 = vmatmul.mubr.msk.f32.gmra.mxu1 %vm279_vm1, %v13620_v48 }
 0x2de   : > { %9692 = vmatmul.mubr.msk.f32.gmra.mxu0 %vm279_vm1, %v11831_v42  ;;  %v12391_v35 = vadd.f32 %v9393_v5, %v9343_v8  ;;  %9644 = vmatprep.mubr.msk.f32.mxu1 %vm279_vm1, %v13621_v23  ;;  %v13624_v23 = vld [vmem:[#allocation107_spill] sm:$0xff] }
 0x2df   : > { %9694 = vmatprep.mubr.msk.f32.mxu0 %vm279_vm1, %v11840_v25  ;;  %v4533_v57 = vpop.f32.mrf.mxu1  ;;  %v4856_v18 = vpop.f32.mrf.mxu0 }
 0x2e0   : > { %v12397_v4 = vadd.f32 %v4856_v18, %v4533_v57  ;;  %v13625_v57 = vld [vmem:[#allocation104_spill] sm:$0xff] }
 0x2e1   : > { %v9346_v11 = vpop.f32.mrf.mxu1  ;;  %v9396_v41 = vpop.f32.mrf.mxu0  ;;  %9645 = vmatmul.mubr.msk.f32.gmra.mxu1 %vm279_vm1, %v13622_v19 }
 0x2e2   : > { %9695 = vmatmul.mubr.msk.f32.gmra.mxu0 %vm279_vm1, %v11853_v27  ;;  %v12403_v42 = vadd.f32 %v9396_v41, %v9346_v11  ;;  %9647 = vmatprep.mubr.msk.f32.mxu1 %vm279_vm1, %v13623_v32  ;;  %v13626_v32 = vld [vmem:[#allocation42_spill] sm:$0xff] }
 0x2e3   : > { %9697 = vmatprep.mubr.msk.f32.mxu0 %vm279_vm1, %v11862_v43  ;;  %v4543_v25 = vpop.f32.mrf.mxu1  ;;  %v4866_v47 = vpop.f32.mrf.mxu0 }
 0x2e4   : > { %v12409_v8 = vadd.f32 %v4866_v47, %v4543_v25  ;;  %v13627_v25 = vld [vmem:[#allocation55_spill] sm:$0xff] }
 0x2e5   : > { %v9349_v5 = vpop.f32.mrf.mxu1  ;;  %9648 = vmatmul.mubr.msk.f32.gmra.mxu1 %vm279_vm1, %v13624_v23 }
 0x2e6   : > { %v9399_v48 = vpop.f32.mrf.mxu0  ;;  %9698 = vmatmul.mubr.msk.f32.gmra.mxu0 %vm279_vm1, %v11874_v49  ;;  %9650 = vmatprep.mubr.msk.f32.mxu1 %vm279_vm1, %v13625_v57  ;;  %v13628_v57 = vld [vmem:[#allocation110_spill] sm:$0xff] }
 0x2e7   : > { %v12415_v27 = vadd.f32 %v9399_v48, %v9349_v5  ;;  %9700 = vmatprep.mubr.msk.f32.mxu0 %vm279_vm1, %v11881_v22  ;;  %v4553_v43 = vpop.f32.mrf.mxu1 }
 0x2e8   : > { %v4876_v18 = vpop.f32.mrf.mxu0 }
 0x2e9   : > { %v12421_v11 = vadd.f32 %v4876_v18, %v4553_v43  ;;  %v9352_v41 = vpop.f32.mrf.mxu1  ;;  %9651 = vmatmul.mubr.msk.f32.gmra.mxu1 %vm279_vm1, %v13626_v32  ;;  %v13629_v43 = vld [vmem:[#allocation57_spill] sm:$0xff] }
 0x2ea   : > { %v9402_v19 = vpop.f32.mrf.mxu0  ;;  %9701 = vmatmul.mubr.msk.f32.gmra.mxu0 %vm279_vm1, %v11892_v63  ;;  %9653 = vmatprep.mubr.msk.f32.mxu1 %vm279_vm1, %v13627_v25 }
 0x2eb   : > { %v12427_v49 = vadd.f32 %v9402_v19, %v9352_v41  ;;  %9703 = vmatprep.mubr.msk.f32.mxu0 %vm279_vm1, %v11898_v34  ;;  %v4563_v22 = vpop.f32.mrf.mxu1  ;;  %v4194_v41 = vld [vmem:[#allocation2 + $0x198] sm:$0xff] }
 0x2ec   : > { %v4886_v47 = vpop.f32.mrf.mxu0  ;;  %v4226_v19 = vld [vmem:[#allocation2 + $0x199] sm:$0xff] }
 0x2ed   : > { %v12433_v5 = vadd.f32 %v4886_v47, %v4563_v22  ;;  %v9355_v48 = vpop.f32.mrf.mxu1  ;;  %9654 = vmatmul.mubr.msk.f32.gmra.mxu1 %vm279_vm1, %v13628_v57  ;;  %v4195_v47 = vld [vmem:[#allocation2 + $0x1a0] sm:$0xff] }
 0x2ee   : > { %v9405_v23 = vpop.f32.mrf.mxu0  ;;  %9704 = vmatmul.mubr.msk.f32.gmra.mxu0 %vm279_vm1, %v13605_v56  ;;  %9656 = vmatprep.mubr.msk.f32.mxu1 %vm279_vm1, %v13629_v43 }
 0x2ef   : > { %v12439_v63 = vadd.f32 %v9405_v23, %v9355_v48  ;;  %9706 = vmatprep.mubr.msk.f32.mxu0 %vm279_vm1, %v12256_v46  ;;  %v4573_v34 = vpop.f32.mrf.mxu1  ;;  %v4227_v46 = vld [vmem:[#allocation2 + $0x1a1] sm:$0xff] }
 0x2f0   : > { %v4896_v18 = vpop.f32.mrf.mxu0 }
 0x2f1   : > { %v12445_v32 = vadd.f32 %v4896_v18, %v4573_v34  ;;  %v9358_v25 = vpop.f32.mrf.mxu1  ;;  %9657 = vmatmul.mubr.msk.f32.gmra.mxu1 %vm279_vm1, %v12117_v45 }
 0x2f2   : > { %v9408_v22 = vpop.f32.mrf.mxu0  ;;  %9707 = vmatmul.mubr.msk.f32.gmra.mxu0 %vm279_vm1, %v12264_v52  ;;  %9659 = vmatprep.mubr.msk.f32.mxu1 %vm279_vm1, %v4194_v41 }
 0x2f3   : > { %v12451_v56 = vadd.f32 %v9408_v22, %v9358_v25  ;;  %9709 = vmatprep.mubr.msk.f32.mxu0 %vm279_vm1, %v4226_v19  ;;  %v4583_v48 = vpop.f32.mrf.mxu1  ;;  %v4767_v22 = vadd.f32 %v12287_v26, %v12285_v17 }
 0x2f4   : > { %v4906_v23 = vpop.f32.mrf.mxu0 }
 0x2f5   : > { %v12455_v57 = vadd.f32 %v4906_v23, %v4583_v48  ;;  %v9361_v43 = vpop.f32.mrf.mxu1  ;;  %9660 = vmatmul.mubr.msk.f32.gmra.mxu1 %vm279_vm1, %v4195_v47  ;;  %v13630_v47 = vld [vmem:[#allocation59_spill] sm:$0xff] }
 0x2f6   : > { %v9411_v34 = vpop.f32.mrf.mxu0  ;;  %9710 = vmatmul.mubr.msk.f32.gmra.mxu0 %vm279_vm1, %v4227_v46  ;;  %9714 = vmatprep.mubr.msk.f32.mxu1 %vm279_vm1, %v11951_v55 }
 0x2f7   : > { %v12459_v45 = vadd.f32 %v9411_v34, %v9361_v43  ;;  %v4593_v52 = vpop.f32.mrf.mxu1 }
 0x2f8   : > { %v4916_v18 = vpop.f32.mrf.mxu0 }
 0x2f9   : > { %v12463_v41 = vadd.f32 %v4916_v18, %v4593_v52  ;;  %v9416_v19 = vpop.f32.mrf.mxu1  ;;  %9715 = vmatmul.mubr.msk.f32.vlgmr.msra.gmra.mxu1 %vm279_vm1, %v11957_v62 }
 0x2fa   : > { %v9466_v25 = vpop.f32.mrf.mxu0  ;;  %v5249_v48 = vadd.f32 %v9416_v19, %v13630_v47  ;;  %9717 = vmatprep.mubr.msk.f32.mxu1 %vm279_vm1, %v11963_v29 }
 0x2fb   : > { %v5089_v46 = vpop.f32.mrf.mxu1 }
 0x2fc   : > { %v5444_v23 = vpop.f32.mrf.mxu0  ;;  %v12472_v55 = vadd.f32 %v9466_v25, %v5249_v48  ;;  %v5248_v43 = vadd.f32 %v5089_v46, %v4767_v22 }
 0x2fd   : > { %v9419_v34 = vpop.f32.mrf.mxu1  ;;  %9718 = vmatmul.mubr.msk.f32.gmra.mxu1 %vm279_vm1, %v11969_v12 }
 0x2fe   : > { %v9469_v52 = vpop.f32.mrf.mxu0  ;;  %v12476_v18 = vadd.f32 %v5444_v23, %v5248_v43  ;;  %v5251_v62 = vadd.f32 %v9419_v34, %v12295_v16  ;;  %9720 = vmatprep.mubr.msk.f32.mxu1 %vm279_vm1, %v11975_v13 }
 0x2ff   : > { %v5099_v17 = vpop.f32.mrf.mxu1 }
 0x300   : > { %v5454_v26 = vpop.f32.mrf.mxu0  ;;  %v12481_v29 = vadd.f32 %v9469_v52, %v5251_v62  ;;  %v5250_v19 = vadd.f32 %v5099_v17, %v12301_v20 }
 0x301   : > { %v9422_v25 = vpop.f32.mrf.mxu1  ;;  %9721 = vmatmul.mubr.msk.f32.gmra.mxu1 %vm279_vm1, %v11981_v60 }
 0x302   : > { %v9472_v22 = vpop.f32.mrf.mxu0  ;;  %v12486_v47 = vadd.f32 %v5454_v26, %v5250_v19  ;;  %v5253_v12 = vadd.f32 %v9422_v25, %v12307_v24  ;;  %9723 = vmatprep.mubr.msk.f32.mxu1 %vm279_vm1, %v11987_v50 }
 0x303   : > { %v5109_v16 = vpop.f32.mrf.mxu1 }
 0x304   : > { %v5464_v13 = vpop.f32.mrf.mxu0  ;;  %v12491_v48 = vadd.f32 %v9472_v22, %v5253_v12  ;;  %v5252_v46 = vadd.f32 %v5109_v16, %v12313_v31 }
 0x305   : > { %v9425_v23 = vpop.f32.mrf.mxu1  ;;  %9724 = vmatmul.mubr.msk.f32.gmra.mxu1 %vm279_vm1, %v11993_v6 }
 0x306   : > { %v9475_v20 = vpop.f32.mrf.mxu0  ;;  %v12496_v43 = vadd.f32 %v5464_v13, %v5252_v46  ;;  %v5255_v60 = vadd.f32 %v9425_v23, %v12319_v7  ;;  %9726 = vmatprep.mubr.msk.f32.mxu1 %vm279_vm1, %v11999_v28 }
 0x307   : > { %v5119_v24 = vpop.f32.mrf.mxu1 }
 0x308   : > { %v5474_v50 = vpop.f32.mrf.mxu0  ;;  %v12501_v34 = vadd.f32 %v9475_v20, %v5255_v60  ;;  %v5254_v52 = vadd.f32 %v5119_v24, %v12325_v59 }
 0x309   : > { %v9428_v62 = vpop.f32.mrf.mxu1  ;;  %9727 = vmatmul.mubr.msk.f32.gmra.mxu1 %vm279_vm1, %v12005_v51 }
 0x30a   : > { %v9478_v31 = vpop.f32.mrf.mxu0  ;;  %v12506_v17 = vadd.f32 %v5474_v50, %v5254_v52  ;;  %v5257_v6 = vadd.f32 %v9428_v62, %v12331_v30  ;;  %9729 = vmatprep.mubr.msk.f32.mxu1 %vm279_vm1, %v12011_v39 }
 0x30b   : > { %v5129_v7 = vpop.f32.mrf.mxu1 }
 0x30c   : > { %v5484_v28 = vpop.f32.mrf.mxu0  ;;  %v12511_v26 = vadd.f32 %v9478_v31, %v5257_v6  ;;  %v5256_v19 = vadd.f32 %v5129_v7, %v12337_v1 }
 0x30d   : > { %v9431_v25 = vpop.f32.mrf.mxu1  ;;  %9730 = vmatmul.mubr.msk.f32.gmra.mxu1 %vm279_vm1, %v12017_v10 }
 0x30e   : > { %v9481_v59 = vpop.f32.mrf.mxu0  ;;  %v12516_v22 = vadd.f32 %v5484_v28, %v5256_v19  ;;  %v5259_v51 = vadd.f32 %v9431_v25, %v12343_v14  ;;  %9732 = vmatprep.mubr.msk.f32.mxu1 %vm279_vm1, %v12023_v33  ;;  %v4247_v28 = vld [vmem:[#allocation2 + $0x112] sm:$0xff]  ;;  %v4248_v25 = vld [vmem:[#allocation2 + $0x122] sm:$0xff] }
 0x30f   : > { %v5139_v30 = vpop.f32.mrf.mxu1 }
 0x310   : > { %v5494_v39 = vpop.f32.mrf.mxu0  ;;  %v12521_v12 = vadd.f32 %v9481_v59, %v5259_v51  ;;  %v5258_v16 = vadd.f32 %v5139_v30, %v12349_v15 }
 0x311   : > { %v9434_v13 = vpop.f32.mrf.mxu1  ;;  %9733 = vmatmul.mubr.msk.f32.gmra.mxu1 %vm279_vm1, %v12029_v21 }
 0x312   : > { %v9484_v1 = vpop.f32.mrf.mxu0  ;;  %v12526_v46 = vadd.f32 %v5494_v39, %v5258_v16  ;;  %v5261_v10 = vadd.f32 %v9434_v13, %v12355_v44  ;;  %9735 = vmatprep.mubr.msk.f32.mxu1 %vm279_vm1, %v12035_v58  ;;  %v4249_v39 = vld [vmem:[#allocation2 + $0x12a] sm:$0xff]  ;;  %v4250_v13 = vld [vmem:[#allocation2 + $0x13a] sm:$0xff] }
 0x313   : > { %v5149_v14 = vpop.f32.mrf.mxu1 }
 0x314   : > { %v5504_v33 = vpop.f32.mrf.mxu0  ;;  %v12531_v23 = vadd.f32 %v9484_v1, %v5261_v10  ;;  %v5260_v20 = vadd.f32 %v5149_v14, %v12361_v38 }
 0x315   : > { %v9437_v60 = vpop.f32.mrf.mxu1  ;;  %9736 = vmatmul.mubr.msk.f32.gmra.mxu1 %vm279_vm1, %v12041_v9 }
 0x316   : > { %v9487_v15 = vpop.f32.mrf.mxu0  ;;  %v12536_v24 = vadd.f32 %v5504_v33, %v5260_v20  ;;  %v5263_v21 = vadd.f32 %v9437_v60, %v12367_v3  ;;  %9738 = vmatprep.mubr.msk.f32.mxu1 %vm279_vm1, %v12047_v36  ;;  %v4251_v60 = vld [vmem:[#allocation2 + $0x142] sm:$0xff] }
 0x317   : > { %v5159_v44 = vpop.f32.mrf.mxu1 }
 0x318   : > { %v5514_v58 = vpop.f32.mrf.mxu0  ;;  %v12541_v50 = vadd.f32 %v9487_v15, %v5263_v21  ;;  %v5262_v52 = vadd.f32 %v5159_v44, %v12373_v61  ;;  %v4252_v21 = vld [vmem:[#allocation2 + $0x152] sm:$0xff] }
 0x319   : > { %v9440_v62 = vpop.f32.mrf.mxu1  ;;  %9739 = vmatmul.mubr.msk.f32.gmra.mxu1 %vm279_vm1, %v12053_v0 }
 0x31a   : > { %v9490_v38 = vpop.f32.mrf.mxu0  ;;  %v12546_v31 = vadd.f32 %v5514_v58, %v5262_v52  ;;  %v5265_v9 = vadd.f32 %v9440_v62, %v12379_v40  ;;  %9741 = vmatprep.mubr.msk.f32.mxu1 %vm279_vm1, %v12059_v37 }
 0x31b   : > { %v5169_v3 = vpop.f32.mrf.mxu1 }
 0x31c   : > { %v5524_v36 = vpop.f32.mrf.mxu0  ;;  %v12551_v6 = vadd.f32 %v9490_v38, %v5265_v9  ;;  %v5264_v7 = vadd.f32 %v5169_v3, %v12385_v2  ;;  %v4253_v9 = vld [vmem:[#allocation2 + $0x15a] sm:$0xff] }
 0x31d   : > { %v9443_v61 = vpop.f32.mrf.mxu1  ;;  %9742 = vmatmul.mubr.msk.f32.gmra.mxu1 %vm279_vm1, %v4247_v28 }
 0x31e   : > { %v9493_v19 = vpop.f32.mrf.mxu0  ;;  %v12555_v0 = vadd.f32 %v5524_v36, %v5264_v7  ;;  %v5267_v59 = vadd.f32 %v9443_v61, %v12391_v35  ;;  %9744 = vmatprep.mubr.msk.f32.mxu1 %vm279_vm1, %v4248_v25  ;;  %v4254_v36 = vld [vmem:[#allocation2 + $0x16a] sm:$0xff] }
 0x31f   : > { %v5179_v40 = vpop.f32.mrf.mxu1 }
 0x320   : > { %v5534_v37 = vpop.f32.mrf.mxu0  ;;  %v12559_v51 = vadd.f32 %v9493_v19, %v5267_v59  ;;  %v5266_v30 = vadd.f32 %v5179_v40, %v12397_v4  ;;  %v4255_v59 = vld [vmem:[#allocation2 + $0x172] sm:$0xff] }
 0x321   : > { %v9446_v2 = vpop.f32.mrf.mxu1  ;;  %9745 = vmatmul.mubr.msk.f32.gmra.mxu1 %vm279_vm1, %v4249_v39 }
 0x322   : > { %v9496_v16 = vpop.f32.mrf.mxu0  ;;  %v12563_v1 = vadd.f32 %v5534_v37, %v5266_v30  ;;  %v5269_v10 = vadd.f32 %v9446_v2, %v12403_v42  ;;  %9747 = vmatprep.mubr.msk.f32.mxu1 %vm279_vm1, %v4250_v13  ;;  %v4258_v2 = vld [vmem:[#allocation2 + $0x19a] sm:$0xff] }
 0x323   : > { %v5189_v35 = vpop.f32.mrf.mxu1 }
 0x324   : > { %v5544_v14 = vpop.f32.mrf.mxu0  ;;  %v12567_v33 = vadd.f32 %v9496_v16, %v5269_v10  ;;  %v5268_v20 = vadd.f32 %v5189_v35, %v12409_v8 }
 0x325   : > { %v9449_v4 = vpop.f32.mrf.mxu1  ;;  %9748 = vmatmul.mubr.msk.f32.gmra.mxu1 %vm279_vm1, %v4251_v60 }
 0x326   : > { %v9499_v15 = vpop.f32.mrf.mxu0  ;;  %v12571_v44 = vadd.f32 %v5544_v14, %v5268_v20  ;;  %v5271_v58 = vadd.f32 %v9449_v4, %v12415_v27  ;;  %9750 = vmatprep.mubr.msk.f32.mxu1 %vm279_vm1, %v4252_v21 }
 0x327   : > { %v5199_v42 = vpop.f32.mrf.mxu1 }
 0x328   : > { %v5554_v52 = vpop.f32.mrf.mxu0  ;;  %v12575_v62 = vadd.f32 %v9499_v15, %v5271_v58  ;;  %v5270_v38 = vadd.f32 %v5199_v42, %v12421_v11 }
 0x329   : > { %v9452_v8 = vpop.f32.mrf.mxu1  ;;  %9751 = vmatmul.mubr.msk.f32.gmra.mxu1 %vm279_vm1, %v4253_v9 }
 0x32a   : > { %v9502_v3 = vpop.f32.mrf.mxu0  ;;  %v12579_v7 = vadd.f32 %v5554_v52, %v5270_v38  ;;  %v5273_v28 = vadd.f32 %v9452_v8, %v12427_v49  ;;  %9753 = vmatprep.mubr.msk.f32.mxu1 %vm279_vm1, %v4254_v36 }
 0x32b   : > { %v5209_v27 = vpop.f32.mrf.mxu1 }
 0x32c   : > { %v5564_v61 = vpop.f32.mrf.mxu0  ;;  %v12583_v19 = vadd.f32 %v9502_v3, %v5273_v28  ;;  %v5272_v25 = vadd.f32 %v5209_v27, %v12433_v5 }
 0x32d   : > { %v9455_v11 = vpop.f32.mrf.mxu1  ;;  %9754 = vmatmul.mubr.msk.f32.gmra.mxu1 %vm279_vm1, %v4255_v59 }
 0x32e   : > { %v9505_v40 = vpop.f32.mrf.mxu0  ;;  %v12587_v37 = vadd.f32 %v5564_v61, %v5272_v25  ;;  %v5275_v30 = vadd.f32 %v9455_v11, %v12439_v63  ;;  %9756 = vmatprep.mubr.msk.f32.mxu1 %vm279_vm1, %v12258_v54  ;;  %v4259_v63 = vld [vmem:[#allocation2 + $0x1a2] sm:$0xff] }
 0x32f   : > { %v5219_v49 = vpop.f32.mrf.mxu1 }
 0x330   : > { %v5574_v39 = vpop.f32.mrf.mxu0  ;;  %v12592_v16 = vadd.f32 %v9505_v40, %v5275_v30  ;;  %v5274_v13 = vadd.f32 %v5219_v49, %v12445_v32 }
 0x331   : > { %v9458_v5 = vpop.f32.mrf.mxu1  ;;  %9757 = vmatmul.mubr.msk.f32.gmra.mxu1 %vm279_vm1, %v12266_v53 }
 0x332   : > { %v9508_v10 = vpop.f32.mrf.mxu0  ;;  %v12597_v35 = vadd.f32 %v5574_v39, %v5274_v13  ;;  %v5277_v14 = vadd.f32 %v9458_v5, %v12451_v56  ;;  %9759 = vmatprep.mubr.msk.f32.mxu1 %vm279_vm1, %v4258_v2 }
 0x333   : > { %v5229_v54 = vpop.f32.mrf.mxu1 }
 0x334   : > { %v5584_v20 = vpop.f32.mrf.mxu0  ;;  %v12601_v60 = vadd.f32 %v9508_v10, %v5277_v14  ;;  %v5276_v4 = vadd.f32 %v5229_v54, %v12455_v57 }
 0x335   : > { %v9461_v15 = vpop.f32.mrf.mxu1  ;;  %9760 = vmatmul.mubr.msk.f32.gmra.mxu1 %vm279_vm1, %v4259_v63 }
 0x336   : > { %v9511_v32 = vpop.f32.mrf.mxu0  ;;  %v12605_v21 = vadd.f32 %v5584_v20, %v5276_v4  ;;  %v5279_v53 = vadd.f32 %v9461_v15, %v12459_v45 }
 0x337   : > { %v5239_v58 = vpop.f32.mrf.mxu1 }
 0x338   : > { %v5594_v42 = vpop.f32.mrf.mxu0  ;;  %v12608_v56 = vadd.f32 %v9511_v32, %v5279_v53  ;;  %v5278_v52 = vadd.f32 %v5239_v58, %v12463_v41 }
 0x339   : > { %v9516_v38 = vpop.f32.mrf.mxu1 }
 0x33a   : > { %v12611_v9 = vpop.f32.mrf.mxu0  ;;  %v12613_v8 = vadd.f32 %v5594_v42, %v5278_v52  ;;  %v12616_v57 = vadd.f32 %v9516_v38, %v12472_v55 }
 0x33b   : > { %v5799_v3 = vpop.f32.mrf.mxu1 }
 0x33c   : > { %v12618_v36 = vpop.f32.mrf.mxu0  ;;  %v12621_v28 = vadd.f32 %v5799_v3, %v12476_v18 }
 0x33d   : > { %v9519_v45 = vpop.f32.mrf.mxu1 }
 0x33e   : > { %v12623_v27 = vpop.f32.mrf.mxu0  ;;  %v12626_v61 = vadd.f32 %v9519_v45, %v12481_v29 }
 0x33f   : > { %v5809_v41 = vpop.f32.mrf.mxu1 }
 0x340   : > { %v12628_v25 = vpop.f32.mrf.mxu0  ;;  %v12631_v59 = vadd.f32 %v5809_v41, %v12486_v47 }
 0x341   : > { %v9522_v55 = vpop.f32.mrf.mxu1 }
 0x342   : > { %v12633_v11 = vpop.f32.mrf.mxu0  ;;  %v12636_v40 = vadd.f32 %v9522_v55, %v12491_v48 }
 0x343   : > { %v5819_v18 = vpop.f32.mrf.mxu1 }
 0x344   : > { %v12638_v30 = vpop.f32.mrf.mxu0  ;;  %v12641_v49 = vadd.f32 %v5819_v18, %v12496_v43 }
 0x345   : > { %v9525_v29 = vpop.f32.mrf.mxu1 }
 0x346   : > { %v12643_v39 = vpop.f32.mrf.mxu0  ;;  %v12646_v2 = vadd.f32 %v9525_v29, %v12501_v34 }
 0x347   : > { %v5829_v47 = vpop.f32.mrf.mxu1 }
 0x348   : > { %v12648_v13 = vpop.f32.mrf.mxu0  ;;  %v12651_v5 = vadd.f32 %v5829_v47, %v12506_v17 }
 0x349   : > { %v9528_v48 = vpop.f32.mrf.mxu1 }
 0x34a   : > { %v12653_v10 = vpop.f32.mrf.mxu0  ;;  %v12656_v14 = vadd.f32 %v9528_v48, %v12511_v26 }
 0x34b   : > { %v5839_v43 = vpop.f32.mrf.mxu1 }
 0x34c   : > { %v12658_v63 = vpop.f32.mrf.mxu0  ;;  %v12661_v54 = vadd.f32 %v5839_v43, %v12516_v22 }
 0x34d   : > { %v9531_v34 = vpop.f32.mrf.mxu1 }
 0x34e   : > { %v12663_v20 = vpop.f32.mrf.mxu0  ;;  %v12666_v4 = vadd.f32 %v9531_v34, %v12521_v12 }
 0x34f   : > { %v5849_v17 = vpop.f32.mrf.mxu1 }
 0x350   : > { %v12668_v15 = vpop.f32.mrf.mxu0  ;;  %v12671_v32 = vadd.f32 %v5849_v17, %v12526_v46 }
 0x351   : > { %v9534_v26 = vpop.f32.mrf.mxu1 }
 0x352   : > { %v12673_v53 = vpop.f32.mrf.mxu0  ;;  %v12676_v58 = vadd.f32 %v9534_v26, %v12531_v23 }
 0x353   : > { %v5859_v22 = vpop.f32.mrf.mxu1 }
 0x354   : > { %v12678_v42 = vpop.f32.mrf.mxu0  ;;  %v12681_v52 = vadd.f32 %v5859_v22, %v12536_v24 }
 0x355   : > { %v9537_v12 = vpop.f32.mrf.mxu1 }
 0x356   : > { %v12683_v38 = vpop.f32.mrf.mxu0  ;;  %v12686_v3 = vadd.f32 %v9537_v12, %v12541_v50 }
 0x357   : > { %13631 = vst [vmem:[#allocation63_spill] sm:$0xff] %v12683_v38  ;;  %v5869_v46 = vpop.f32.mrf.mxu1 }
 0x358   : > { %v12688_v45 = vpop.f32.mrf.mxu0  ;;  %v12691_v41 = vadd.f32 %v5869_v46, %v12546_v31 }
 0x359   : > { %13632 = vst [vmem:[#allocation113_spill] sm:$0xff] %v12688_v45  ;;  %v9540_v23 = vpop.f32.mrf.mxu1 }
 0x35a   : > { %13633 = vst [vmem:[#allocation108_spill] sm:$0xff] %v12691_v41  ;;  %v12693_v55 = vpop.f32.mrf.mxu0  ;;  %v12696_v18 = vadd.f32 %v9540_v23, %v12551_v6 }
 0x35b   : > { %13634 = vst [vmem:[#allocation66_spill] sm:$0xff] %v12693_v55  ;;  %v5879_v24 = vpop.f32.mrf.mxu1 }
 0x35c   : > { %13635 = vst [vmem:[#allocation116_spill] sm:$0xff] %v12696_v18  ;;  %v12698_v29 = vpop.f32.mrf.mxu0  ;;  %v12701_v47 = vadd.f32 %v5879_v24, %v12555_v0 }
 0x35d   : > { %13636 = vst [vmem:[#allocation109_spill] sm:$0xff] %v12698_v29  ;;  %v9543_v50 = vpop.f32.mrf.mxu1 }
 0x35e   : > { %13637 = vst [vmem:[#allocation105_spill] sm:$0xff] %v12701_v47  ;;  %v12703_v48 = vpop.f32.mrf.mxu0  ;;  %v12706_v43 = vadd.f32 %v9543_v50, %v12559_v51 }
 0x35f   : > { %13638 = vst [vmem:[#allocation43_spill] sm:$0xff] %v12703_v48  ;;  %v5889_v31 = vpop.f32.mrf.mxu1 }
 0x360   : > { %13639 = vst [vmem:[#allocation65_spill] sm:$0xff] %v12706_v43  ;;  %v12708_v34 = vpop.f32.mrf.mxu0  ;;  %v12711_v17 = vadd.f32 %v5889_v31, %v12563_v1 }
 0x361   : > { %13640 = vst [vmem:[#allocation64_spill] sm:$0xff] %v12708_v34  ;;  %v9546_v6 = vpop.f32.mrf.mxu1 }
 0x362   : > { %13641 = vst [vmem:[#allocation119_spill] sm:$0xff] %v12711_v17  ;;  %v12713_v26 = vpop.f32.mrf.mxu0  ;;  %v12716_v22 = vadd.f32 %v9546_v6, %v12567_v33 }
 0x363   : > { %13642 = vst [vmem:[#allocation111_spill] sm:$0xff] %v12713_v26  ;;  %v5899_v0 = vpop.f32.mrf.mxu1 }
 0x364   : > { %13643 = vst [vmem:[#allocation67_spill] sm:$0xff] %v12716_v22  ;;  %v12718_v12 = vpop.f32.mrf.mxu0  ;;  %v12721_v46 = vadd.f32 %v5899_v0, %v12571_v44 }
 0x365   : > { %13644 = vst [vmem:[#allocation70_spill] sm:$0xff] %v12718_v12  ;;  %v9549_v51 = vpop.f32.mrf.mxu1 }
 0x366   : > { %13645 = vst [vmem:[#allocation122_spill] sm:$0xff] %v12721_v46  ;;  %v12723_v23 = vpop.f32.mrf.mxu0  ;;  %v12726_v24 = vadd.f32 %v9549_v51, %v12575_v62 }
 0x367   : > { %13646 = vst [vmem:[#allocation112_spill] sm:$0xff] %v12723_v23  ;;  %v5909_v1 = vpop.f32.mrf.mxu1 }
 0x368   : > { %13647 = vst [vmem:[#allocation69_spill] sm:$0xff] %v12726_v24  ;;  %v12728_v50 = vpop.f32.mrf.mxu0  ;;  %v12731_v31 = vadd.f32 %v5909_v1, %v12579_v7 }
 0x369   : > { %13648 = vst [vmem:[#allocation68_spill] sm:$0xff] %v12728_v50  ;;  %v9552_v33 = vpop.f32.mrf.mxu1 }
 0x36a   : > { %13649 = vst [vmem:[#allocation114_spill] sm:$0xff] %v12731_v31  ;;  %v12733_v6 = vpop.f32.mrf.mxu0  ;;  %v12736_v12 = vadd.f32 %v9552_v33, %v12583_v19 }
 0x36b   : > { %13650 = vst [vmem:[#allocation71_spill] sm:$0xff] %v12733_v6  ;;  %v5919_v44 = vpop.f32.mrf.mxu1 }
 0x36c   : > { %13651 = vst [vmem:[#allocation74_spill] sm:$0xff] %v12736_v12  ;;  %v12738_v0 = vpop.f32.mrf.mxu0  ;;  %v12741_v23 = vadd.f32 %v5919_v44, %v12587_v37 }
 0x36d   : > { %13652 = vst [vmem:[#allocation127_spill] sm:$0xff] %v12738_v0  ;;  %v9555_v62 = vpop.f32.mrf.mxu1 }
 0x36e   : > { %13653 = vst [vmem:[#allocation115_spill] sm:$0xff] %v12741_v23  ;;  %v12743_v51 = vpop.f32.mrf.mxu0  ;;  %v12746_v50 = vadd.f32 %v9555_v62, %v12592_v16 }
 0x36f   : > { %13654 = vst [vmem:[#allocation73_spill] sm:$0xff] %v12743_v51  ;;  %v5929_v7 = vpop.f32.mrf.mxu1 }
 0x370   : > { %13655 = vst [vmem:[#allocation72_spill] sm:$0xff] %v12746_v50  ;;  %v12748_v1 = vpop.f32.mrf.mxu0  ;;  %v12751_v6 = vadd.f32 %v5929_v7, %v12597_v35 }
 0x371   : > { %13656 = vst [vmem:[#allocation117_spill] sm:$0xff] %v12748_v1  ;;  %v9558_v19 = vpop.f32.mrf.mxu1 }
 0x372   : > { %13657 = vst [vmem:[#allocation75_spill] sm:$0xff] %v12751_v6  ;;  %v12753_v33 = vpop.f32.mrf.mxu0  ;;  %v12756_v0 = vadd.f32 %v9558_v19, %v12601_v60 }
 0x373   : > { %13658 = vst [vmem:[#allocation78_spill] sm:$0xff] %v12753_v33  ;;  %v5939_v37 = vpop.f32.mrf.mxu1 }
 0x374   : > { %13659 = vst [vmem:[#allocation118_spill] sm:$0xff] %v12756_v0  ;;  %v12758_v44 = vpop.f32.mrf.mxu0  ;;  %v12761_v51 = vadd.f32 %v5939_v37, %v12605_v21 }
 0x375   : > { %13660 = vst [vmem:[#allocation77_spill] sm:$0xff] %v12758_v44  ;;  %v9561_v16 = vpop.f32.mrf.mxu1 }
 0x376   : > { %13661 = vst [vmem:[#allocation76_spill] sm:$0xff] %v12761_v51  ;;  %v12763_v62 = vpop.f32.mrf.mxu0  ;;  %v12766_v1 = vadd.f32 %v9561_v16, %v12608_v56 }
 0x377   : > { %13662 = vst [vmem:[#allocation120_spill] sm:$0xff] %v12763_v62  ;;  %v5949_v35 = vpop.f32.mrf.mxu1 }
 0x378   : > { %13663 = vst [vmem:[#allocation79_spill] sm:$0xff] %v12766_v1  ;;  %v12768_v7 = vpop.f32.mrf.mxu0  ;;  %v12771_v33 = vadd.f32 %v5949_v35, %v12613_v8 }
 0x379   : > { %13664 = vst [vmem:[#allocation82_spill] sm:$0xff] %v12768_v7  ;;  %v9616_v60 = vpop.f32.mrf.mxu1 }
 0x37a   : > { %13665 = vst [vmem:[#allocation121_spill] sm:$0xff] %v12771_v33  ;;  %v9666_v19 = vpop.f32.mrf.mxu0 }
 0x37b   : > { %v6509_v0 = vpop.f32.mrf.mxu1 }
 0x37c   : > { %v6864_v6 = vpop.f32.mrf.mxu0 }
 0x37d   : > { %v9619_v44 = vpop.f32.mrf.mxu1 }
 0x37e   : > { %v9669_v21 = vpop.f32.mrf.mxu0 }
 0x37f   : > { %v6519_v50 = vpop.f32.mrf.mxu1 }
 0x380   : > { %v12777_v62 = vpop.f32.mrf.mxu0 }
 0x381   : > { %v12773_v37 = vpop.f32.mrf.mxu1 }
 0x382   : > { %v12783_v7 = vpop.f32.mrf.mxu0 }
 0x383   : > { %v12775_v51 = vpop.f32.mrf.mxu1 }
 0x384   : > { %v12789_v33 = vpop.f32.mrf.mxu0 }
 0x385   : > { %v12779_v56 = vpop.f32.mrf.mxu1 }
 0x386   : > { %v12795_v12 = vpop.f32.mrf.mxu0 }
 0x387   : > { %v12781_v16 = vpop.f32.mrf.mxu1 }
 0x388   : > { %v12801_v46 = vpop.f32.mrf.mxu0 }
 0x389   : > { %v12785_v8 = vpop.f32.mrf.mxu1 }
 0x38a   : > { %v12807_v34 = vpop.f32.mrf.mxu0 }
 0x38b   : > { %v12787_v35 = vpop.f32.mrf.mxu1 }
 0x38c   : > { %v12813_v43 = vpop.f32.mrf.mxu0 }
 0x38d   : > { %v12791_v1 = vpop.f32.mrf.mxu1 }
 0x38e   : > { %v12819_v55 = vpop.f32.mrf.mxu0 }
 0x38f   : > { %v12793_v23 = vpop.f32.mrf.mxu1 }
 0x391   : > { %v12797_v31 = vpop.f32.mrf.mxu1 }
 0x393   : > { %v12799_v24 = vpop.f32.mrf.mxu1 }
 0x394   : > { %13666 = vst [vmem:[#allocation81_spill] sm:$0xff] %v12799_v24 }
 0x395   : > { %v12803_v26 = vpop.f32.mrf.mxu1 }
 0x396   : > { %13667 = vst [vmem:[#allocation80_spill] sm:$0xff] %v12803_v26  ;;  %v12825_v26 = vpop.f32.mrf.mxu0 }
 0x397   : > { %v12805_v22 = vpop.f32.mrf.mxu1  ;;  %13675 = vst [vmem:[#allocation87_spill] sm:$0xff] %v12825_v26 }
 0x398   : > { %13668 = vst [vmem:[#allocation123_spill] sm:$0xff] %v12805_v22 }
 0x399   : > { %v12809_v17 = vpop.f32.mrf.mxu1 }
 0x39a   : > { %13669 = vst [vmem:[#allocation83_spill] sm:$0xff] %v12809_v17  ;;  %v12831_v17 = vpop.f32.mrf.mxu0 }
 0x39b   : > { %v12811_v48 = vpop.f32.mrf.mxu1  ;;  %13678 = vst [vmem:[#allocation89_spill] sm:$0xff] %v12831_v17 }
 0x39c   : > { %13670 = vst [vmem:[#allocation86_spill] sm:$0xff] %v12811_v48 }
 0x39d   : > { %v12815_v29 = vpop.f32.mrf.mxu1 }
 0x39e   : > { %13671 = vst [vmem:[#allocation124_spill] sm:$0xff] %v12815_v29  ;;  %v12837_v29 = vpop.f32.mrf.mxu0 }
 0x39f   : > { %v12817_v47 = vpop.f32.mrf.mxu1  ;;  %13681 = vst [vmem:[#allocation91_spill] sm:$0xff] %v12837_v29 }
 0x3a0   : > { %13672 = vst [vmem:[#allocation85_spill] sm:$0xff] %v12817_v47 }
 0x3a1   : > { %v12821_v18 = vpop.f32.mrf.mxu1 }
 0x3a2   : > { %13673 = vst [vmem:[#allocation84_spill] sm:$0xff] %v12821_v18  ;;  %v12843_v18 = vpop.f32.mrf.mxu0 }
 0x3a3   : > { %v12823_v45 = vpop.f32.mrf.mxu1  ;;  %13684 = vst [vmem:[#allocation93_spill] sm:$0xff] %v12843_v18 }
 0x3a4   : > { %13674 = vst [vmem:[#allocation125_spill] sm:$0xff] %v12823_v45 }
 0x3a5   : > { %v12827_v22 = vpop.f32.mrf.mxu1 }
 0x3a6   : > { %13676 = vst [vmem:[#allocation90_spill] sm:$0xff] %v12827_v22  ;;  %v6314_v22 = vadd.f32 %v12611_v9, %v12616_v57 }
 0x3a7   : > { %v12829_v41 = vpop.f32.mrf.mxu1 }
 0x3a8   : > { %13677 = vst [vmem:[#allocation126_spill] sm:$0xff] %v12829_v41  ;;  %v6669_v17 = vadd.f32 %v9616_v60, %v6314_v22 }
 0x3a9   : > { %v12833_v48 = vpop.f32.mrf.mxu1 }
 0x3aa   : > { %13679 = vst [vmem:[#allocation88_spill] sm:$0xff] %v12833_v48  ;;  %v6313_v48 = vadd.f32 %v12618_v36, %v12621_v28  ;;  %v7024_v9 = vadd.f32 %v9666_v19, %v6669_v17  ;;  %v12868_v36 = vld [vmem:[%s13175_s5] ss:$0 sm:$0xff] }
 0x3ab   : > { %v12835_v24 = vpop.f32.mrf.mxu1 }
 0x3ac   : > { %13680 = vst [vmem:[#allocation128_spill] sm:$0xff] %v12835_v24  ;;  %v12853_v24 = vpop.f32.mrf.mxu0 }
 0x3ad   : > { %v12839_v47 = vpop.f32.mrf.mxu1 }
 0x3ae   : > { %13682 = vst [vmem:[#allocation94_spill] sm:$0xff] %v12839_v47  ;;  %v6668_v47 = vadd.f32 %v6509_v0, %v6313_v48  ;;  %v6319_v0 = vadd.f32 %v12648_v13, %v12651_v5 }
 0x3af   : > { %v12841_v38 = vpop.f32.mrf.mxu1 }
 0x3b0   : > { %13683 = vst [vmem:[#allocation129_spill] sm:$0xff] %v12841_v38  ;;  %v6316_v38 = vadd.f32 %v12623_v27, %v12626_v61  ;;  %v7023_v28 = vadd.f32 %v6864_v6, %v6668_v47  ;;  %v6318_v27 = vadd.f32 %v12633_v11, %v12636_v40  ;;  %v6317_v61 = vadd.f32 %v12638_v30, %v12641_v49 }
 0x3b1   : > { %v12845_v45 = vpop.f32.mrf.mxu1  ;;  %v6674_v13 = vadd.f32 %v12781_v16, %v6319_v0 }
 0x3b2   : > { %13685 = vst [vmem:[#allocation92_spill] sm:$0xff] %v12845_v45  ;;  %v6315_v45 = vadd.f32 %v12628_v25, %v12631_v59  ;;  %v6671_v57 = vadd.f32 %v9619_v44, %v6316_v38  ;;  %v12877_v25 = vld [vmem:[%s13176_s6] ss:$0 sm:$0xff]  ;;  %v6673_v11 = vadd.f32 %v12773_v37, %v6318_v27  ;;  %v6672_v40 = vadd.f32 %v12775_v51, %v6317_v61 }
 0x3b3   : > { %v12849_v41 = vpop.f32.mrf.mxu1 }
 0x3b4   : > { %13686 = vst [vmem:[#allocation95_spill] sm:$0xff] %v12849_v41  ;;  %v12863_v41 = vpop.f32.mrf.mxu0  ;;  %v6670_v22 = vadd.f32 %v6519_v50, %v6315_v45  ;;  %v7026_v38 = vadd.f32 %v9669_v21, %v6671_v57  ;;  %v6320_v45 = vadd.f32 %v12643_v39, %v12646_v2  ;;  %v13687_v2 = vld [vmem:[#allocation4_spill] sm:$0xff]  ;;  %v7028_v57 = vadd.f32 %v12783_v7, %v6673_v11 }
 0x3b5   : > { %v12855_v29 = vpop.f32.mrf.mxu1 }
 0x3b6   : > { %v12879_v48 = vpop.f32.mrf.mxu0  ;;  %v7025_v49 = vadd.f32 %v12777_v62, %v6670_v22  ;;  %v6675_v44 = vadd.f32 %v12779_v56, %v6320_v45  ;;  %v13688_v22 = vld [vmem:[#allocation3_spill] sm:$0xff] }
 0x3b7   : > { %v12859_v18 = vpop.f32.mrf.mxu1 }
 0x3b8   : > { %v12892_v39 = vpop.f32.mrf.mxu0 }
 0x3b9   : > { %v9716_v26 = vpop.f32.mrf.mxu1 }
 0x3ba   : > { %v7379_v60 = vadd.f32 %v9716_v26, %v7024_v9  ;;  %v6322_v9 = vadd.f32 %v12653_v10, %v12656_v14  ;;  %v6321_v14 = vadd.f32 %v12658_v63, %v12661_v54  ;;  %v6324_v63 = vadd.f32 %v12663_v20, %v12666_v4 }
 0x3bb   : > { %v7219_v59 = vpop.f32.mrf.mxu1  ;;  %v6323_v54 = vadd.f32 %v12668_v15, %v12671_v32 }
 0x3bc   : > { %v7418_v17 = vmul.f32 %v12868_v36, %v7379_v60  ;;  %v7378_v47 = vadd.f32 %v7219_v59, %v7023_v28  ;;  %v7027_v28 = vadd.f32 %v12789_v33, %v6672_v40  ;;  %v7030_v33 = vadd.f32 %v12795_v12, %v6675_v44  ;;  %v12916_v59 = vpop.f32.mrf.mxu0 }
 0x3bd   : > { %v9719_v30 = vpop.f32.mrf.mxu1  ;;  %v6677_v7 = vadd.f32 %v12785_v8, %v6322_v9  ;;  %v7029_v12 = vadd.f32 %v12801_v46, %v6674_v13  ;;  %v6676_v20 = vadd.f32 %v12787_v35, %v6321_v14  ;;  %v6679_v4 = vadd.f32 %v12791_v1, %v6324_v63  ;;  %v13692_v9 = vld [vmem:[#allocation7_spill] sm:$0xff] }
 0x3be   : > { %v7457_v26 = vadd.f32 %v12877_v25, %v7418_v17  ;;  %v7417_v50 = vmul.f32 %v12868_v36, %v7378_v47  ;;  %v7381_v6 = vadd.f32 %v9719_v30, %v7026_v38  ;;  %v13689_v17 = vld [vmem:[#allocation6_spill] sm:$0xff]  ;;  %v12936_v46 = vpop.f32.mrf.mxu0  ;;  %v6325_v35 = vadd.f32 %v12678_v42, %v12681_v52 }
 0x3bf   : > { %v7229_v19 = vpop.f32.mrf.mxu1  ;;  %v7032_v0 = vadd.f32 %v12807_v34, %v6677_v7  ;;  %v6326_v34 = vadd.f32 %v12673_v53, %v12676_v58  ;;  %v6678_v1 = vadd.f32 %v12793_v23, %v6323_v54  ;;  %v7031_v53 = vadd.f32 %v12813_v43, %v6676_v20  ;;  %v13695_v43 = vld [vmem:[#allocation87_spill] sm:$0xff]  ;;  %v13698_v54 = vld [vmem:[#allocation108_spill] sm:$0xff] }
 0x3c0   : > { %v7489_v21 = vadd.f32 %v7457_v26, %v13687_v2  ;;  %v7456_v51 = vadd.f32 %v12877_v25, %v7417_v50  ;;  %v7420_v62 = vmul.f32 %v12868_v36, %v7381_v6  ;;  %v7380_v37 = vadd.f32 %v7229_v19, %v7025_v49  ;;  %v13690_v49 = vld [vmem:[#allocation5_spill] sm:$0xff] }
 0x3c1   : > { %v9722_v5 = vpop.f32.mrf.mxu1  ;;  %v7034_v58 = vadd.f32 %v12819_v55, %v6679_v4  ;;  %v6681_v42 = vadd.f32 %v12797_v31, %v6326_v34  ;;  %v13703_v4 = vld [vmem:[#allocation12_spill] sm:$0xff] }
 0x3c2   : > { %v7521_v56 = vmax.f32 %v7489_v21, 0.0  ;;  %v7488_v60 = vadd.f32 %v7456_v51, %v13688_v22  ;;  %v7459_v27 = vadd.f32 %v12877_v25, %v7420_v62  ;;  %v7419_v10 = vmul.f32 %v12868_v36, %v7380_v37  ;;  %v13691_v51 = vld [vmem:[#allocation8_spill] sm:$0xff] }
 0x3c3   : > { %v7383_v16 = vadd.f32 %v9722_v5, %v7028_v57  ;;  %v7239_v61 = vpop.f32.mrf.mxu1 }
 0x3c4   : > { %7553 = vst.msk [vmem:[%s12907_s12 + $0x8] sm:$0xff] %vm279_vm1, %v7521_v56  ;;  %v7520_v38 = vmax.f32 %v7488_v60, 0.0  ;;  %v7491_v47 = vadd.f32 %v7459_v27, %v13689_v17  ;;  %v7458_v45 = vadd.f32 %v12877_v25, %v7419_v10  ;;  %v7382_v11 = vadd.f32 %v7239_v61, %v7027_v28  ;;  %v12956_v56 = vpop.f32.mrf.mxu0  ;;  %v13693_v60 = vld [vmem:[#allocation10_spill] sm:$0xff]  ;;  %v13696_v61 = vld [vmem:[#allocation81_spill] sm:$0xff] }
 0x3c5   : > { %v7422_v8 = vmul.f32 %v12868_v36, %v7383_v16  ;;  %v9725_v40 = vpop.f32.mrf.mxu1  ;;  %v7033_v16 = vadd.f32 %v13695_v43, %v6678_v1  ;;  %v6680_v55 = vadd.f32 %v13696_v61, %v6325_v35  ;;  %v13706_v35 = vld [vmem:[#allocation123_spill] sm:$0xff] }
 0x3c6   : > { %7552 = vst.msk [vmem:[%s12907_s12] sm:$0xff] %vm279_vm1, %v7520_v38  ;;  %v7523_v30 = vmax.f32 %v7491_v47, 0.0  ;;  %v7490_v26 = vadd.f32 %v7458_v45, %v13690_v49  ;;  %v7421_v50 = vmul.f32 %v12868_v36, %v7382_v11  ;;  %v7385_v6 = vadd.f32 %v9725_v40, %v7030_v33  ;;  %v13694_v33 = vld [vmem:[#allocation63_spill] sm:$0xff]  ;;  %v13697_v47 = vld [vmem:[#allocation9_spill] sm:$0xff]  ;;  %v13701_v40 = vld [vmem:[#allocation66_spill] sm:$0xff] }
 0x3c7   : > { %v7461_v15 = vadd.f32 %v12877_v25, %v7422_v8  ;;  %v7249_v32 = vpop.f32.mrf.mxu1  ;;  %v6328_v7 = vadd.f32 %v13694_v33, %v12686_v3  ;;  %v13700_v8 = vld [vmem:[#allocation116_spill] sm:$0xff]  ;;  %v13702_v49 = vld [vmem:[#allocation89_spill] sm:$0xff]  ;;  %v13713_v33 = vld [vmem:[#allocation14_spill] sm:$0xff] }
 0x3c8   : > { %7555 = vst.msk [vmem:[%s12907_s12 + $0x18] sm:$0xff] %vm279_vm1, %v7523_v30  ;;  %v7522_v44 = vmax.f32 %v7490_v26, 0.0  ;;  %v7460_v19 = vadd.f32 %v12877_v25, %v7421_v50  ;;  %v7424_v2 = vmul.f32 %v12868_v36, %v7385_v6  ;;  %v7384_v21 = vadd.f32 %v7249_v32, %v7029_v12  ;;  %v13699_v12 = vld [vmem:[#allocation113_spill] sm:$0xff] }
 0x3c9   : > { %v7493_v62 = vadd.f32 %v7461_v15, %v13691_v51  ;;  %v9728_v37 = vpop.f32.mrf.mxu1  ;;  %v6327_v3 = vadd.f32 %v13699_v12, %v13698_v54  ;;  %v6330_v30 = vadd.f32 %v13701_v40, %v13700_v8  ;;  %v7036_v26 = vadd.f32 %v13702_v49, %v6681_v42  ;;  %v13710_v42 = vld [vmem:[#allocation43_spill] sm:$0xff]  ;;  %v13716_v54 = vld [vmem:[#allocation13_spill] sm:$0xff] }
 0x3ca   : > { %7554 = vst.msk [vmem:[%s12907_s12 + $0x10] sm:$0xff] %vm279_vm1, %v7522_v44  ;;  %v7492_v57 = vadd.f32 %v7460_v19, %v13692_v9  ;;  %v7463_v28 = vadd.f32 %v12877_v25, %v7424_v2  ;;  %v7423_v13 = vmul.f32 %v12868_v36, %v7384_v21  ;;  %v7387_v5 = vadd.f32 %v9728_v37, %v7032_v0  ;;  %v12977_v0 = vpop.f32.mrf.mxu0  ;;  %v13704_v19 = vld [vmem:[#allocation91_spill] sm:$0xff]  ;;  %v13705_v21 = vld [vmem:[#allocation80_spill] sm:$0xff] }
 0x3cb   : > { %v7525_v52 = vmax.f32 %v7493_v62, 0.0  ;;  %v7259_v23 = vpop.f32.mrf.mxu1  ;;  %v7035_v2 = vadd.f32 %v13704_v19, %v6680_v55  ;;  %v6683_v34 = vadd.f32 %v13705_v21, %v6328_v7  ;;  %v6682_v1 = vadd.f32 %v13706_v35, %v6327_v3  ;;  %v13714_v55 = vld [vmem:[#allocation93_spill] sm:$0xff]  ;;  %v13717_v40 = vld [vmem:[#allocation119_spill] sm:$0xff]  ;;  %v13723_v35 = vld [vmem:[#allocation122_spill] sm:$0xff] }
 0x3cc   : > { %v7524_v22 = vmax.f32 %v7492_v57, 0.0  ;;  %v7495_v27 = vadd.f32 %v7463_v28, %v13693_v60  ;;  %v7462_v10 = vadd.f32 %v12877_v25, %v7423_v13  ;;  %v7426_v14 = vmul.f32 %v12868_v36, %v7387_v5  ;;  %v13707_v13 = vld [vmem:[#allocation105_spill] sm:$0xff]  ;;  %v13712_v60 = vld [vmem:[#allocation11_spill] sm:$0xff] }
 0x3cd   : > { %7557 = vst.msk [vmem:[%s12907_s12 + $0x28] sm:$0xff] %vm279_vm1, %v7525_v52  ;;  %v7386_v31 = vadd.f32 %v7259_v23, %v7031_v53  ;;  %v9731_v38 = vpop.f32.mrf.mxu1  ;;  %v13708_v5 = vld [vmem:[#allocation109_spill] sm:$0xff]  ;;  %v13711_v23 = vld [vmem:[#allocation83_spill] sm:$0xff] }
 0x3ce   : > { %7556 = vst.msk [vmem:[%s12907_s12 + $0x20] sm:$0xff] %vm279_vm1, %v7524_v22  ;;  %v7527_v17 = vmax.f32 %v7495_v27, 0.0  ;;  %v7494_v45 = vadd.f32 %v7462_v10, %v13697_v47  ;;  %v7465_v11 = vadd.f32 %v12877_v25, %v7426_v14  ;;  %v7389_v63 = vadd.f32 %v9731_v38, %v7034_v58  ;;  %v13709_v58 = vld [vmem:[#allocation65_spill] sm:$0xff]  ;;  %v12997_v14 = vpop.f32.mrf.mxu0  ;;  %v13721_v21 = vld [vmem:[#allocation67_spill] sm:$0xff] }
 0x3cf   : > { %v7425_v50 = vmul.f32 %v12868_v36, %v7386_v31  ;;  %v7269_v6 = vpop.f32.mrf.mxu1  ;;  %v6329_v53 = vadd.f32 %v13708_v5, %v13707_v13  ;;  %v6332_v52 = vadd.f32 %v13710_v42, %v13709_v58  ;;  %v6685_v22 = vadd.f32 %v13711_v23, %v6330_v30  ;;  %v13718_v30 = vld [vmem:[#allocation64_spill] sm:$0xff]  ;;  %v13726_v42 = vld [vmem:[#allocation85_spill] sm:$0xff] }
 0x3d0   : > { %7559 = vst.msk [vmem:[%s12907_s12 + $0x38] sm:$0xff] %vm279_vm1, %v7527_v17  ;;  %v7526_v20 = vmax.f32 %v7494_v45, 0.0  ;;  %v7497_v15 = vadd.f32 %v7465_v11, %v13703_v4  ;;  %v7428_v32 = vmul.f32 %v12868_v36, %v7389_v63  ;;  %v7388_v44 = vadd.f32 %v7269_v6, %v7033_v16  ;;  %v13715_v17 = vld [vmem:[#allocation86_spill] sm:$0xff]  ;;  %v13016_v4 = vpop.f32.mrf.mxu0  ;;  %v13727_v23 = vld [vmem:[#allocation84_spill] sm:$0xff] }
 0x3d1   : > { %v7464_v51 = vadd.f32 %v12877_v25, %v7425_v50  ;;  %v9734_v62 = vpop.f32.mrf.mxu1  ;;  %v7038_v31 = vadd.f32 %v13714_v55, %v6683_v34  ;;  %v7037_v38 = vadd.f32 %v12853_v24, %v6682_v1  ;;  %v6684_v47 = vadd.f32 %v13715_v17, %v6329_v53  ;;  %v13719_v50 = vld [vmem:[#allocation124_spill] sm:$0xff]  ;;  %v13722_v34 = vld [vmem:[#allocation111_spill] sm:$0xff]  ;;  %v13724_v1 = vld [vmem:[#allocation70_spill] sm:$0xff] }
 0x3d2   : > { %7558 = vst.msk [vmem:[%s12907_s12 + $0x30] sm:$0xff] %vm279_vm1, %v7526_v20  ;;  %v7529_v37 = vmax.f32 %v7497_v15, 0.0  ;;  %v7467_v9 = vadd.f32 %v12877_v25, %v7428_v32  ;;  %v7427_v57 = vmul.f32 %v12868_v36, %v7388_v44  ;;  %v7391_v28 = vadd.f32 %v9734_v62, %v7036_v26  ;;  %v13720_v32 = vld [vmem:[#allocation16_spill] sm:$0xff]  ;;  %v13730_v55 = vld [vmem:[#allocation114_spill] sm:$0xff]  ;;  %v13732_v17 = vld [vmem:[#allocation125_spill] sm:$0xff] }
 0x3d3   : > { %v7496_v27 = vadd.f32 %v7464_v51, %v13712_v60  ;;  %v7279_v10 = vpop.f32.mrf.mxu1  ;;  %v6331_v49 = vadd.f32 %v13718_v30, %v13717_v40  ;;  %v7040_v26 = vadd.f32 %v12863_v41, %v6685_v22  ;;  %v6687_v6 = vadd.f32 %v13719_v50, %v6332_v52 }
 0x3d4   : > { %7561 = vst.msk [vmem:[%s12907_s12 + $0x48] sm:$0xff] %vm279_vm1, %v7529_v37  ;;  %v7499_v7 = vadd.f32 %v7467_v9, %v13713_v33  ;;  %v7466_v43 = vadd.f32 %v12877_v25, %v7427_v57  ;;  %v7430_v16 = vmul.f32 %v12868_v36, %v7391_v28  ;;  %v7390_v61 = vadd.f32 %v7279_v10, %v7035_v2  ;;  %v13725_v28 = vld [vmem:[#allocation15_spill] sm:$0xff] }
 0x3d5   : > { %v7528_v45 = vmax.f32 %v7496_v27, 0.0  ;;  %v9737_v11 = vpop.f32.mrf.mxu1  ;;  %v6334_v41 = vadd.f32 %v13722_v34, %v13721_v21  ;;  %v6333_v51 = vadd.f32 %v13724_v1, %v13723_v35  ;;  %v7039_v62 = vadd.f32 %v12879_v48, %v6684_v47  ;;  %v13036_v27 = vpop.f32.mrf.mxu0  ;;  %v13737_v21 = vld [vmem:[#allocation74_spill] sm:$0xff]  ;;  %v13738_v34 = vld [vmem:[#allocation71_spill] sm:$0xff] }
 0x3d6   : > { %v7531_v63 = vmax.f32 %v7499_v7, 0.0  ;;  %v7498_v12 = vadd.f32 %v7466_v43, %v13716_v54  ;;  %v7469_v3 = vadd.f32 %v12877_v25, %v7430_v16  ;;  %v7429_v8 = vmul.f32 %v12868_v36, %v7390_v61  ;;  %v13728_v16 = vld [vmem:[#allocation69_spill] sm:$0xff]  ;;  %v13739_v35 = vld [vmem:[#allocation126_spill] sm:$0xff] }
 0x3d7   : > { %7560 = vst.msk [vmem:[%s12907_s12 + $0x40] sm:$0xff] %vm279_vm1, %v7528_v45  ;;  %v7393_v24 = vadd.f32 %v9737_v11, %v7038_v31  ;;  %v7289_v20 = vpop.f32.mrf.mxu1  ;;  %v7042_v58 = vadd.f32 %v12892_v39, %v6687_v6  ;;  %v6686_v52 = vadd.f32 %v13726_v42, %v6331_v49  ;;  %v6689_v22 = vadd.f32 %v13727_v23, %v6334_v41  ;;  %v13729_v39 = vld [vmem:[#allocation112_spill] sm:$0xff]  ;;  %v13733_v45 = vld [vmem:[#allocation18_spill] sm:$0xff]  ;;  %v13734_v54 = vld [vmem:[#allocation17_spill] sm:$0xff] }
 0x3d8   : > { %7563 = vst.msk [vmem:[%s12907_s12 + $0x58] sm:$0xff] %vm279_vm1, %v7531_v63  ;;  %v7530_v15 = vmax.f32 %v7498_v12, 0.0  ;;  %v7501_v44 = vadd.f32 %v7469_v3, %v13720_v32  ;;  %v7468_v19 = vadd.f32 %v12877_v25, %v7429_v8  ;;  %v7392_v2 = vadd.f32 %v7289_v20, %v7037_v38  ;;  %v13731_v31 = vld [vmem:[#allocation68_spill] sm:$0xff]  ;;  %v9705_v20 = vpop.f32.mrf.mxu0 }
 0x3d9   : > { %v7432_v37 = vmul.f32 %v12868_v36, %v7393_v24  ;;  %v9740_v9 = vpop.f32.mrf.mxu1  ;;  %v6336_v61 = vadd.f32 %v13729_v39, %v13728_v16  ;;  %v6335_v38 = vadd.f32 %v13731_v31, %v13730_v55  ;;  %v6688_v47 = vadd.f32 %v13732_v17, %v6333_v51  ;;  %v13736_v32 = vld [vmem:[#allocation20_spill] sm:$0xff] }
 0x3da   : > { %7562 = vst.msk [vmem:[%s12907_s12 + $0x50] sm:$0xff] %vm279_vm1, %v7530_v15  ;;  %v7533_v57 = vmax.f32 %v7501_v44, 0.0  ;;  %v7500_v13 = vadd.f32 %v7468_v19, %v13725_v28  ;;  %v7431_v5 = vmul.f32 %v12868_v36, %v7392_v2  ;;  %v7395_v53 = vadd.f32 %v9740_v9, %v7040_v26  ;;  %v13735_v26 = vld [vmem:[#allocation90_spill] sm:$0xff]  ;;  %v13746_v39 = vld [vmem:[#allocation88_spill] sm:$0xff] }
 0x3db   : > { %v7471_v48 = vadd.f32 %v12877_v25, %v7432_v37  ;;  %v7299_v60 = vpop.f32.mrf.mxu1  ;;  %v7041_v30 = vadd.f32 %v12916_v59, %v6686_v52  ;;  %v7044_v49 = vadd.f32 %v12936_v46, %v6689_v22  ;;  %v6691_v50 = vadd.f32 %v13735_v26, %v6336_v61  ;;  %v13740_v37 = vld [vmem:[#allocation19_spill] sm:$0xff]  ;;  %v13747_v55 = vld [vmem:[#allocation128_spill] sm:$0xff] }
 0x3dc   : > { %7565 = vst.msk [vmem:[%s12907_s12 + $0x68] sm:$0xff] %vm279_vm1, %v7533_v57  ;;  %v7532_v10 = vmax.f32 %v7500_v13, 0.0  ;;  %v7470_v33 = vadd.f32 %v12877_v25, %v7431_v5  ;;  %v7434_v7 = vmul.f32 %v12868_v36, %v7395_v53  ;;  %v7394_v43 = vadd.f32 %v7299_v60, %v7039_v62  ;;  %v13741_v13 = vld [vmem:[#allocation115_spill] sm:$0xff] }
 0x3dd   : > { %v7503_v11 = vadd.f32 %v7471_v48, %v13733_v45  ;;  %v9743_v63 = vpop.f32.mrf.mxu1  ;;  %v6338_v41 = vadd.f32 %v13738_v34, %v13737_v21  ;;  %v7043_v59 = vadd.f32 %v12956_v56, %v6688_v47  ;;  %v6690_v46 = vadd.f32 %v13739_v35, %v6335_v38  ;;  %v13742_v5 = vld [vmem:[#allocation127_spill] sm:$0xff]  ;;  %v13744_v56 = vld [vmem:[#allocation73_spill] sm:$0xff]  ;;  %v6994_v48 = vpop.f32.mrf.mxu0 }
 0x3de   : > { %7564 = vst.msk [vmem:[%s12907_s12 + $0x60] sm:$0xff] %vm279_vm1, %v7532_v10  ;;  %v7502_v12 = vadd.f32 %v7470_v33, %v13734_v54  ;;  %v7473_v3 = vadd.f32 %v12877_v25, %v7434_v7  ;;  %v7433_v8 = vmul.f32 %v12868_v36, %v7394_v43  ;;  %v7397_v40 = vadd.f32 %v9743_v63, %v7042_v58  ;;  %v13743_v58 = vld [vmem:[#allocation72_spill] sm:$0xff]  ;;  %v13745_v10 = vld [vmem:[#allocation22_spill] sm:$0xff]  ;;  %v13748_v63 = vld [vmem:[#allocation75_spill] sm:$0xff] }
 0x3df   : > { %v7535_v6 = vmax.f32 %v7503_v11, 0.0  ;;  %v7309_v24 = vpop.f32.mrf.mxu1  ;;  %v6337_v53 = vadd.f32 %v13742_v5, %v13741_v13  ;;  %v6340_v42 = vadd.f32 %v13744_v56, %v13743_v58  ;;  %v7046_v52 = vadd.f32 %v12977_v0, %v6691_v50  ;;  %v13749_v54 = vld [vmem:[#allocation117_spill] sm:$0xff]  ;;  %v13759_v5 = vld [vmem:[#allocation92_spill] sm:$0xff] }
 0x3e0   : > { %v7534_v15 = vmax.f32 %v7502_v12, 0.0  ;;  %v7505_v44 = vadd.f32 %v7473_v3, %v13736_v32  ;;  %v7472_v19 = vadd.f32 %v12877_v25, %v7433_v8  ;;  %v7436_v2 = vmul.f32 %v12868_v36, %v7397_v40  ;;  %v13751_v3 = vld [vmem:[#allocation78_spill] sm:$0xff]  ;;  %v13755_v34 = vld [vmem:[#allocation129_spill] sm:$0xff] }
 0x3e1   : > { %7567 = vst.msk [vmem:[%s12907_s12 + $0x78] sm:$0xff] %vm279_vm1, %v7535_v6  ;;  %v7396_v1 = vadd.f32 %v7309_v24, %v7041_v30  ;;  %v9746_v51 = vpop.f32.mrf.mxu1  ;;  %v7045_v16 = vadd.f32 %v12997_v14, %v6690_v46  ;;  %v6693_v61 = vadd.f32 %v13746_v39, %v6338_v41  ;;  %v6692_v31 = vadd.f32 %v13747_v55, %v6337_v53  ;;  %v13750_v14 = vld [vmem:[#allocation118_spill] sm:$0xff]  ;;  %v9708_v6 = vpop.f32.mrf.mxu0 }
 0x3e2   : > { %7566 = vst.msk [vmem:[%s12907_s12 + $0x70] sm:$0xff] %vm279_vm1, %v7534_v15  ;;  %v7537_v62 = vmax.f32 %v7505_v44, 0.0  ;;  %v7504_v9 = vadd.f32 %v7472_v19, %v13740_v37  ;;  %v7475_v57 = vadd.f32 %v12877_v25, %v7436_v2  ;;  %v7399_v28 = vadd.f32 %v9746_v51, %v7044_v49  ;;  %v13752_v40 = vld [vmem:[#allocation94_spill] sm:$0xff]  ;;  %v13753_v49 = vld [vmem:[#allocation21_spill] sm:$0xff] }
 0x3e3   : > { %v7435_v23 = vmul.f32 %v12868_v36, %v7396_v1  ;;  %v7319_v22 = vpop.f32.mrf.mxu1  ;;  %v6339_v12 = vadd.f32 %v13749_v54, %v13748_v63  ;;  %v6342_v8 = vadd.f32 %v13751_v3, %v13750_v14  ;;  %v6695_v30 = vadd.f32 %v13752_v40, %v6340_v42  ;;  %v13754_v24 = vld [vmem:[#allocation30_spill] sm:$0xff]  ;;  %v13756_v1 = vld [vmem:[#allocation29_spill] sm:$0xff]  ;;  %v7004_v58 = vpop.f32.mrf.mxu0  ;;  %v13760_v42 = vld [vmem:[#allocation32_spill] sm:$0xff] }
 0x3e4   : > { %7569 = vst.msk [vmem:[%s12907_s12 + $0x88] sm:$0xff] %vm279_vm1, %v7537_v62  ;;  %v7536_v60 = vmax.f32 %v7504_v9, 0.0  ;;  %v7507_v33 = vadd.f32 %v7475_v57, %v13745_v10  ;;  %v7438_v7 = vmul.f32 %v12868_v36, %v7399_v28  ;;  %v7398_v43 = vadd.f32 %v7319_v22, %v7043_v59  ;;  %v13757_v9 = vld [vmem:[#allocation76_spill] sm:$0xff]  ;;  %v13758_v57 = vld [vmem:[#allocation77_spill] sm:$0xff] }
 0x3e5   : > { %v7474_v0 = vadd.f32 %v12877_v25, %v7435_v23  ;;  %v9749_v38 = vpop.f32.mrf.mxu1  ;;  %v7048_v2 = vadd.f32 %v13016_v4, %v6693_v61  ;;  %v7047_v21 = vadd.f32 %v13036_v27, %v6692_v31  ;;  %v6694_v41 = vadd.f32 %v13755_v34, %v6339_v12  ;;  %v13762_v10 = vld [vmem:[#allocation120_spill] sm:$0xff]  ;;  %v9711_v55 = vpop.f32.mrf.mxu0 }
 0x3e6   : > { %7568 = vst.msk [vmem:[%s12907_s12 + $0x80] sm:$0xff] %vm279_vm1, %v7536_v60  ;;  %v7539_v17 = vmax.f32 %v7507_v33, 0.0  ;;  %v7477_v47 = vadd.f32 %v12877_v25, %v7438_v7  ;;  %v7437_v45 = vmul.f32 %v12868_v36, %v7398_v43  ;;  %v7401_v11 = vadd.f32 %v9749_v38, %v7046_v52  ;;  %v13761_v60 = vld [vmem:[#allocation79_spill] sm:$0xff]  ;;  %v13764_v7 = vld [vmem:[#allocation82_spill] sm:$0xff] }
 0x3e7   : > { %v7506_v26 = vadd.f32 %v7474_v0, %v13753_v49  ;;  %v7329_v50 = vpop.f32.mrf.mxu1  ;;  %v6341_v28 = vadd.f32 %v13758_v57, %v13757_v9  ;;  %v7050_v13 = vadd.f32 %v9705_v20, %v6695_v30  ;;  %v6697_v4 = vadd.f32 %v13759_v5, %v6342_v8  ;;  %v13763_v20 = vld [vmem:[#allocation121_spill] sm:$0xff]  ;;  %v13765_v0 = vld [vmem:[#allocation31_spill] sm:$0xff]  ;;  %v13767_v49 = vld [vmem:[#allocation34_spill] sm:$0xff] }
 0x3e8   : > { %7571 = vst.msk [vmem:[%s12907_s12 + $0x98] sm:$0xff] %vm279_vm1, %v7539_v17  ;;  %v7509_v15 = vadd.f32 %v7477_v47, %v13754_v24  ;;  %v7476_v32 = vadd.f32 %v12877_v25, %v7437_v45  ;;  %v7440_v44 = vmul.f32 %v12868_v36, %v7401_v11  ;;  %v7400_v19 = vadd.f32 %v7329_v50, %v7045_v16  ;;  %v13766_v11 = vld [vmem:[#allocation95_spill] sm:$0xff] }
 0x3e9   : > { %v7538_v59 = vmax.f32 %v7506_v26, 0.0  ;;  %v9752_v35 = vpop.f32.mrf.mxu1  ;;  %v6344_v33 = vadd.f32 %v13762_v10, %v13761_v60  ;;  %v6343_v43 = vadd.f32 %v13764_v7, %v13763_v20  ;;  %v7049_v16 = vadd.f32 %v6994_v48, %v6694_v41  ;;  %v13769_v41 = vld [vmem:[#allocation36_spill] sm:$0xff]  ;;  %v13770_v9 = vld [vmem:[#allocation35_spill] sm:$0xff]  ;;  %v13772_v10 = vld [vmem:[#allocation38_spill] sm:$0xff] }
 0x3ea   : > { %v7541_v46 = vmax.f32 %v7509_v15, 0.0  ;;  %v7508_v51 = vadd.f32 %v7476_v32, %v13756_v1  ;;  %v7479_v62 = vadd.f32 %v12877_v25, %v7440_v44  ;;  %v7439_v37 = vmul.f32 %v12868_v36, %v7400_v19  ;;  %v13773_v20 = vld [vmem:[#allocation49_spill] sm:$0xff] }
 0x3eb   : > { %7570 = vst.msk [vmem:[%s12907_s12 + $0x90] sm:$0xff] %vm279_vm1, %v7538_v59  ;;  %v7403_v27 = vadd.f32 %v9752_v35, %v7048_v2  ;;  %v7339_v53 = vpop.f32.mrf.mxu1  ;;  %v7052_v45 = vadd.f32 %v9708_v6, %v6697_v4  ;;  %v6696_v63 = vadd.f32 %v13766_v11, %v6341_v28  ;;  %v6699_v54 = vadd.f32 %v12855_v29, %v6344_v33  ;;  %v7014_v6 = vpop.f32.mrf.mxu0  ;;  %v13768_v29 = vld [vmem:[#allocation33_spill] sm:$0xff] }
 0x3ec   : > { %7573 = vst.msk [vmem:[%s12907_s12 + $0xa8] sm:$0xff] %vm279_vm1, %v7541_v46  ;;  %v7540_v56 = vmax.f32 %v7508_v51, 0.0  ;;  %v7511_v52 = vadd.f32 %v7479_v62, %v13760_v42  ;;  %v7478_v23 = vadd.f32 %v12877_v25, %v7439_v37  ;;  %v7402_v22 = vadd.f32 %v7339_v53, %v7047_v21  ;;  %v13771_v53 = vld [vmem:[#allocation39_spill] sm:$0xff] }
 0x3ed   : > { %v7442_v39 = vmul.f32 %v12868_v36, %v7403_v27  ;;  %v9755_v61 = vpop.f32.mrf.mxu1  ;;  %v6698_v30 = vadd.f32 %v12859_v18, %v6343_v43  ;;  %v7051_v19 = vadd.f32 %v7004_v58, %v6696_v63  ;;  %v7054_v2 = vadd.f32 %v9711_v55, %v6699_v54 }
 0x3ee   : > { %7572 = vst.msk [vmem:[%s12907_s12 + $0xa0] sm:$0xff] %vm279_vm1, %v7540_v56  ;;  %v7543_v31 = vmax.f32 %v7511_v52, 0.0  ;;  %v7510_v38 = vadd.f32 %v7478_v23, %v13765_v0  ;;  %v7441_v17 = vmul.f32 %v12868_v36, %v7402_v22  ;;  %v7405_v47 = vadd.f32 %v9755_v61, %v7050_v13  ;;  %v13774_v61 = vld [vmem:[#allocation48_spill] sm:$0xff] }
 0x3ef   : > { %v7481_v48 = vadd.f32 %v12877_v25, %v7442_v39  ;;  %v7349_v12 = vpop.f32.mrf.mxu1  ;;  %v7053_v1 = vadd.f32 %v7014_v6, %v6698_v30 }
 0x3f0   : > { %7575 = vst.msk [vmem:[%s12907_s12 + $0xb8] sm:$0xff] %vm279_vm1, %v7543_v31  ;;  %v7542_v14 = vmax.f32 %v7510_v38, 0.0  ;;  %v7480_v3 = vadd.f32 %v12877_v25, %v7441_v17  ;;  %v7444_v8 = vmul.f32 %v12868_v36, %v7405_v47  ;;  %v7404_v40 = vadd.f32 %v7349_v12, %v7049_v16 }
 0x3f1   : > { %v7513_v26 = vadd.f32 %v7481_v48, %v13767_v49  ;;  %v9758_v50 = vpop.f32.mrf.mxu1 }
 0x3f2   : > { %7574 = vst.msk [vmem:[%s12907_s12 + $0xb0] sm:$0xff] %vm279_vm1, %v7542_v14  ;;  %v7512_v24 = vadd.f32 %v7480_v3, %v13768_v29  ;;  %v7483_v15 = vadd.f32 %v12877_v25, %v7444_v8  ;;  %v7443_v32 = vmul.f32 %v12868_v36, %v7404_v40  ;;  %v7407_v44 = vadd.f32 %v9758_v50, %v7052_v45 }
 0x3f3   : > { %v7545_v21 = vmax.f32 %v7513_v26, 0.0  ;;  %v7359_v34 = vpop.f32.mrf.mxu1 }
 0x3f4   : > { %v7544_v18 = vmax.f32 %v7512_v24, 0.0  ;;  %v7515_v59 = vadd.f32 %v7483_v15, %v13769_v41  ;;  %v7482_v35 = vadd.f32 %v12877_v25, %v7443_v32  ;;  %v7446_v46 = vmul.f32 %v12868_v36, %v7407_v44 }
 0x3f5   : > { %7577 = vst.msk [vmem:[%s12907_s12 + $0xc8] sm:$0xff] %vm279_vm1, %v7545_v21  ;;  %v7406_v51 = vadd.f32 %v7359_v34, %v7051_v19  ;;  %v9761_v62 = vpop.f32.mrf.mxu1 }
 0x3f6   : > { %7576 = vst.msk [vmem:[%s12907_s12 + $0xc0] sm:$0xff] %vm279_vm1, %v7544_v18  ;;  %v7547_v37 = vmax.f32 %v7515_v59, 0.0  ;;  %v7514_v57 = vadd.f32 %v7482_v35, %v13770_v9  ;;  %v7485_v28 = vadd.f32 %v12877_v25, %v7446_v46  ;;  %v7409_v13 = vadd.f32 %v9761_v62, %v7054_v2 }
 0x3f7   : > { %v7445_v5 = vmul.f32 %v12868_v36, %v7406_v51  ;;  %v7369_v4 = vpop.f32.mrf.mxu1 }
 0x3f8   : > { %7579 = vst.msk [vmem:[%s12907_s12 + $0xd8] sm:$0xff] %vm279_vm1, %v7547_v37  ;;  %v7546_v27 = vmax.f32 %v7514_v57, 0.0  ;;  %v7517_v58 = vadd.f32 %v7485_v28, %v13771_v53  ;;  %v7448_v56 = vmul.f32 %v12868_v36, %v7409_v13  ;;  %v7408_v42 = vadd.f32 %v7369_v4, %v7053_v1 }
 0x3f9   : > { %v7484_v52 = vadd.f32 %v12877_v25, %v7445_v5 }
 0x3fa   : > { %7578 = vst.msk [vmem:[%s12907_s12 + $0xd0] sm:$0xff] %vm279_vm1, %v7546_v27  ;;  %v7549_v23 = vmax.f32 %v7517_v58, 0.0  ;;  %v7487_v22 = vadd.f32 %v12877_v25, %v7448_v56  ;;  %v7447_v60 = vmul.f32 %v12868_v36, %v7408_v42 }
 0x3fb   : > { %v7516_v33 = vadd.f32 %v7484_v52, %v13772_v10 }
 0x3fc   : > { %7581 = vst.msk [vmem:[%s12907_s12 + $0xe8] sm:$0xff] %vm279_vm1, %v7549_v23  ;;  %v7519_v7 = vadd.f32 %v7487_v22, %v13773_v20  ;;  %v7486_v43 = vadd.f32 %v12877_v25, %v7447_v60 }
 0x3fd   : > { %v7548_v16 = vmax.f32 %v7516_v33, 0.0 }
 0x3fe   : > { %v7551_v39 = vmax.f32 %v7519_v7, 0.0  ;;  %v7518_v55 = vadd.f32 %v7486_v43, %v13774_v61 }
 0x3ff   : > { %7580 = vst.msk [vmem:[%s12907_s12 + $0xe0] sm:$0xff] %vm279_vm1, %v7548_v16 }
 0x400   : > { %7583 = vst.msk [vmem:[%s12907_s12 + $0xf8] sm:$0xff] %vm279_vm1, %v7551_v39  ;;  %v7550_v31 = vmax.f32 %v7518_v55, 0.0 }
 0x402   : > { %7582 = vst.msk [vmem:[%s12907_s12 + $0xf0] sm:$0xff] %vm279_vm1, %v7550_v31 }
 0x403 PF: > { %s17_s24 = sadd.s32 1, %s9778_s24  }
 0x404   : > { %p14_p4 = scmp.ge.s32.totalorder %s17_s24, 4  }
 0x406   :  { %16 = sbr.rel (!%p14_p4) target bundleno = 1 (0x1), region = 81 }

</bundles_post_ra>
